<compile_context>
chip_gen: v7x
topology: tpu7x:2x2x1
jax: 0.10.0
libtpu: 0.0.40
codegen_flags: <defaults>
</compile_context>

<pallas_src>
import numpy as np
import jax
import jax.numpy as jnp
from jax.experimental import pallas as pl
from jax.experimental.pallas import tpu as pltpu

# ----------------------------- config (small synthetic CLIP) -----------------
VOCAB = 32
CTX_LEN = 8          # text context length
TXT_DIM = 64         # ctx_dim / text transformer width (512 in real CLIP)
TXT_HEADS = 4
TXT_LAYERS = 2
VIS_DIM = 96         # vision transformer width (768 in real CLIP)
VIS_HEADS = 4
VIS_LAYERS = 2
EMBED = 64           # joint embedding dim
N_CLS = 3
N_CTX = 2            # MaPLe context tokens
PROMPT_DEPTH = 2     # => 1 set of compound (deep) prompts
IMG = 16
PATCH = 8
CH = 3
N_PATCH = (IMG // PATCH) ** 2
VIS_SEQ = 1 + N_PATCH + N_CTX            # logical sequence (7)
VIS_SEQ_P = 8                            # padded to a full sublane tile
N_PAD = VIS_SEQ_P - VIS_SEQ
PATCH_FDIM = CH * PATCH * PATCH
TXT_TOT = N_CLS * CTX_LEN                # stacked text slab rows

SOT = VOCAB - 2
EOT = VOCAB - 1

MM_DTYPE = jnp.bfloat16

# ----------------------------- in-kernel helpers -----------------------------


def _mm(a, b):
    """MXU matmul: bf16 operands, f32 accumulation (weights already bf16)."""
    return jnp.dot(a.astype(MM_DTYPE), b.astype(MM_DTYPE),
                   preferred_element_type=jnp.float32)


def _ln(x, g, b, eps=1e-5):
    """LayerNorm over the last axis, all elementwise math in f32."""
    x = x.astype(jnp.float32)
    mu = jnp.mean(x, axis=-1, keepdims=True)
    var = jnp.mean(jnp.square(x - mu), axis=-1, keepdims=True)
    return (x - mu) * jax.lax.rsqrt(var + eps) * g + b


def _attention(x_ln, qkv_w, qkv_b, out_w, out_b, mask, n_heads):
    """MHA on a stacked (S, D) slab; block-diag `mask` keeps sequences apart.

    Per-head outputs are projected by the matching row-slice of out_proj and
    summed in registers (== concat-then-project), so there is no scratch
    round-trip and no lane concat.
    """
    S, D = x_ln.shape
    dh = D // n_heads
    scale = 1.0 / float(np.sqrt(dh))
    qkv = _mm(x_ln, qkv_w) + qkv_b                                   # (S, 3D) f32
    q = qkv[:, 0:D] * scale
    k = qkv[:, D:2 * D]
    v = qkv[:, 2 * D:3 * D]
    acc = None
    for h in range(n_heads):
        sl = slice(h * dh, (h + 1) * dh)
        qh = q[:, sl].astype(MM_DTYPE)
        kh = k[:, sl].astype(MM_DTYPE)
        vh = v[:, sl].astype(MM_DTYPE)
        s = jnp.einsum("qd,kd->qk", qh, kh,
                       preferred_element_type=jnp.float32) + mask
        s = s - jnp.max(s, axis=-1, keepdims=True)
        p = jnp.exp(s)
        p = p * pl.reciprocal(jnp.sum(p, axis=-1, keepdims=True), approx=True)
        oh = jnp.einsum("qk,kd->qd", p.astype(MM_DTYPE), vh,
                        preferred_element_type=jnp.float32)          # (S, dh)
        part = jnp.dot(oh.astype(MM_DTYPE), out_w[sl, :],
                       preferred_element_type=jnp.float32)           # (S, D)
        acc = part if acc is None else acc + part
    return acc + out_b


def _resblock(x, mask, n_heads, ln1_g, ln1_b, qkv_w, qkv_b, out_w, out_b,
              ln2_g, ln2_b, fc_w, fc_b, pr_w, pr_b):
    """Pre-LN CLIP residual attention block (stacked slab)."""
    h = _ln(x, ln1_g, ln1_b)
    x = x + _attention(h, qkv_w, qkv_b, out_w, out_b, mask, n_heads)
    h2 = _ln(x, ln2_g, ln2_b)
    h2 = _mm(h2, fc_w) + fc_b
    h2 = h2 * jax.nn.sigmoid(1.702 * h2)                             # QuickGELU (f32)
    return x + (_mm(h2, pr_w) + pr_b)


# ----------------------------- fused text encoder kernel ---------------------


def _text_encoder_kernel(prompts_ref, pos_ref, mask_ref, eot_ref, deep_ref,
                         ln1_g, ln1_b, qkv_w, qkv_b, out_w, out_b,
                         ln2_g, ln2_b, fc_w, fc_b, pr_w, pr_b,
                         lnf_g, lnf_b, tproj_ref,
                         o_ref, x_scr):
    mask = mask_ref[...]
    x_scr[...] = prompts_ref[...] + pos_ref[...]
    for li in range(TXT_LAYERS):
        if 0 < li <= PROMPT_DEPTH - 1:        # MaPLe deep-prompt token replacement
            dp = deep_ref[li - 1]             # (N_CTX, TXT_DIM)
            for c in range(N_CLS):
                x_scr[c * CTX_LEN + 1: c * CTX_LEN + 1 + N_CTX, :] = dp
        x_scr[...] = _resblock(x_scr[...], mask, TXT_HEADS,
                               ln1_g[li], ln1_b[li], qkv_w[li], qkv_b[li],
                               out_w[li], out_b[li], ln2_g[li], ln2_b[li],
                               fc_w[li], fc_b[li], pr_w[li], pr_b[li])
    x_scr[...] = _ln(x_scr[...], lnf_g[...], lnf_b[...])
    # EOT gather via SMEM scalar indices + dynamic row reads from VMEM scratch.
    rows = []
    for c in range(N_CLS):
        idx = c * CTX_LEN + eot_ref[c]
        rows.append(x_scr[pl.ds(idx, 1), :])
    feats = jnp.concatenate(rows, axis=0)                            # (N_CLS, D)
    o_ref[...] = _mm(feats, tproj_ref[...]).astype(o_ref.dtype)


# ----------------------------- fused vision encoder kernel -------------------


def _vision_encoder_kernel(patches_ref, mask_ref, patch_w_ref, cls_ref, pos_ref,
                           lnpre_g, lnpre_b,
                           ctx_ref, vproj_w, vproj_b,
                           deep_txt_ref, cp_w_ref, cp_b_ref,
                           ln1_g, ln1_b, qkv_w, qkv_b, out_w, out_b,
                           ln2_g, ln2_b, fc_w, fc_b, pr_w, pr_b,
                           lnpost_g, lnpost_b, visproj_ref,
                           o_ref, x_scr):
    B = x_scr.shape[0] // VIS_SEQ_P
    mask = mask_ref[...]
    # patch embedding for ALL images at once (strided Conv2d as patchify @ W)
    xp = _mm(patches_ref[...], patch_w_ref[...])                     # (B*N_PATCH, D)
    # prompt-learner shared visual ctx (nn.Linear, with bias), fused in-kernel
    shared_ctx = _mm(ctx_ref[...], vproj_w[...]) + vproj_b[...]      # (N_CTX, D)
    cls_row = cls_ref[...] + pos_ref[0:1, :]
    for b in range(B):
        o = b * VIS_SEQ_P
        x_scr[o:o + 1, :] = cls_row
        x_scr[o + 1:o + 1 + N_PATCH, :] = (xp[b * N_PATCH:(b + 1) * N_PATCH, :]
                                           + pos_ref[1:1 + N_PATCH, :])
        x_scr[o + 1 + N_PATCH:o + VIS_SEQ, :] = shared_ctx
        if N_PAD > 0:                        # dummy pad token (masked out as key)
            x_scr[o + VIS_SEQ:o + VIS_SEQ_P, :] = jnp.zeros(
                (N_PAD, VIS_DIM), jnp.float32)
    x_scr[...] = _ln(x_scr[...], lnpre_g[...], lnpre_b[...])
    for li in range(VIS_LAYERS):
        if 0 < li <= PROMPT_DEPTH - 1:       # deep visual prompts (projected in-kernel)
            dv = _mm(deep_txt_ref[li - 1], cp_w_ref[li - 1]) + cp_b_ref[li - 1]
            for b in range(B):
                o = b * VIS_SEQ_P
                x_scr[o + 1 + N_PATCH:o + VIS_SEQ, :] = dv
        x_scr[...] = _resblock(x_scr[...], mask, VIS_HEADS,
                               ln1_g[li], ln1_b[li], qkv_w[li], qkv_b[li],
                               out_w[li], out_b[li], ln2_g[li], ln2_b[li],
                               fc_w[li], fc_b[li], pr_w[li], pr_b[li])
    cls_rows = jnp.concatenate(
        [x_scr[b * VIS_SEQ_P:b * VIS_SEQ_P + 1, :] for b in range(B)], axis=0)
    cls_tok = _ln(cls_rows, lnpost_g[...], lnpost_b[...])            # (B, D)
    o_ref[...] = _mm(cls_tok, visproj_ref[...]).astype(o_ref.dtype)


# ----------------------------- logits kernel ---------------------------------


def _clip_logits_kernel(img_ref, txt_ref, scale_ref, o_ref):
    img = img_ref[...].astype(jnp.float32)
    txt = txt_ref[...].astype(jnp.float32)
    img = img * jax.lax.rsqrt(jnp.sum(img * img, axis=-1, keepdims=True) + 1e-12)
    txt = txt * jax.lax.rsqrt(jnp.sum(txt * txt, axis=-1, keepdims=True) + 1e-12)
    sim = jnp.einsum("bd,cd->bc", img.astype(MM_DTYPE), txt.astype(MM_DTYPE),
                     preferred_element_type=jnp.float32)
    o_ref[...] = (scale_ref[0] * sim).astype(o_ref.dtype)


# ----------------------------- pallas_call wrappers ---------------------------


def _full_spec(shape):
    nd = len(shape)
    return pl.BlockSpec(tuple(shape), lambda i, _nd=nd: (0,) * _nd)


def _smem_spec():
    return pl.BlockSpec(memory_space=pltpu.MemorySpace.SMEM)


def text_encoder_fused(tp, prompts_flat, pos_tiled, eot_idx, deep_text, mask):
    w = tp["stacked"]
    args = [prompts_flat, pos_tiled, mask, eot_idx, deep_text,
            w["ln1_g"], w["ln1_b"], w["qkv_w"], w["qkv_b"], w["out_w"], w["out_b"],
            w["ln2_g"], w["ln2_b"], w["fc_w"], w["fc_b"], w["pr_w"], w["pr_b"],
            tp["ln_f_g"], tp["ln_f_b"], tp["text_proj"]]
    in_specs = ([_full_spec(prompts_flat.shape),
                 _full_spec(pos_tiled.shape),
                 _full_spec(mask.shape),
                 _smem_spec()] +
                [_full_spec(a.shape) for a in args[4:]])
    return pl.pallas_call(
        _text_encoder_kernel,
        grid=(1,),
        in_specs=in_specs,
        out_specs=_full_spec((N_CLS, EMBED)),
        out_shape=jax.ShapeDtypeStruct((N_CLS, EMBED), jnp.float32),
        scratch_shapes=[pltpu.VMEM((TXT_TOT, TXT_DIM), jnp.float32)],
        compiler_params=pltpu.CompilerParams(dimension_semantics=("arbitrary",)),
    )(*args)


def vision_encoder_fused(vp, plp, patches_flat, mask):
    B = patches_flat.shape[0] // N_PATCH
    w = vp["stacked"]
    args = [patches_flat, mask, vp["patch_w"], vp["class_emb"], vp["pos_emb"],
            vp["ln_pre_g"], vp["ln_pre_b"],
            plp["ctx"], plp["proj_w"], plp["proj_b"],
            plp["compound_prompts_text"], plp["cp_proj_w"], plp["cp_proj_b"],
            w["ln1_g"], w["ln1_b"], w["qkv_w"], w["qkv_b"], w["out_w"], w["out_b"],
            w["ln2_g"], w["ln2_b"], w["fc_w"], w["fc_b"], w["pr_w"], w["pr_b"],
            vp["ln_post_g"], vp["ln_post_b"], vp["vis_proj"]]
    in_specs = [_full_spec(a.shape) for a in args]
    return pl.pallas_call(
        _vision_encoder_kernel,
        grid=(1,),
        in_specs=in_specs,
        out_specs=_full_spec((B, EMBED)),
        out_shape=jax.ShapeDtypeStruct((B, EMBED), jnp.float32),
        scratch_shapes=[pltpu.VMEM((B * VIS_SEQ_P, VIS_DIM), jnp.float32)],
        compiler_params=pltpu.CompilerParams(dimension_semantics=("arbitrary",)),
    )(*args)


def clip_logits(img_feat, txt_feat, logit_scale_exp):
    B, E = img_feat.shape
    C = txt_feat.shape[0]
    return pl.pallas_call(
        _clip_logits_kernel,
        grid=(1,),
        in_specs=[pl.BlockSpec((B, E), lambda i: (0, 0)),
                  pl.BlockSpec((C, E), lambda i: (0, 0)),
                  _smem_spec()],
        out_specs=pl.BlockSpec((B, C), lambda i: (0, 0)),
        out_shape=jax.ShapeDtypeStruct((B, C), jnp.float32),
        compiler_params=pltpu.CompilerParams(dimension_semantics=("arbitrary",)),
    )(img_feat, txt_feat, jnp.reshape(logit_scale_exp, (1,)).astype(jnp.float32))


# ----------------------------- masks & glue ----------------------------------


def _text_attn_mask():
    """Block-diagonal (per class) causal mask over the stacked text slab."""
    m = np.full((TXT_TOT, TXT_TOT), -1e9, np.float32)
    blk = np.triu(np.full((CTX_LEN, CTX_LEN), -1e9, np.float32), k=1)
    for c in range(N_CLS):
        m[c * CTX_LEN:(c + 1) * CTX_LEN, c * CTX_LEN:(c + 1) * CTX_LEN] = blk
    return jnp.asarray(m)


def _vision_attn_mask(B):
    """Block-diagonal (per image) mask; padding tokens are masked as keys."""
    m = np.full((B * VIS_SEQ_P, B * VIS_SEQ_P), -1e9, np.float32)
    blk = np.zeros((VIS_SEQ_P, VIS_SEQ_P), np.float32)
    blk[:, VIS_SEQ:] = -1e9
    for b in range(B):
        m[b * VIS_SEQ_P:(b + 1) * VIS_SEQ_P, b * VIS_SEQ_P:(b + 1) * VIS_SEQ_P] = blk
    return jnp.asarray(m)


def _patchify(img):
    # NCHW -> (B, n_patch, C*P*P) with (c, kh, kw) ordering (matches Conv2d flatten)
    B = img.shape[0]
    g = IMG // PATCH
    x = img.reshape(B, CH, g, PATCH, g, PATCH)
    x = x.transpose(0, 2, 4, 1, 3, 5)
    return x.reshape(B, g * g, CH * PATCH * PATCH)


def custom_clip_forward(params, image):
    # Eval path of CustomCLIP.forward.
    plp = params["prompt_learner"]
    logit_scale = jnp.exp(params["logit_scale"])

    # prompt assembly (tiny glue, stays in JAX)
    ctx_e = jnp.broadcast_to(plp["ctx"][None], (N_CLS, N_CTX, TXT_DIM))
    prompts = jnp.concatenate([plp["token_prefix"], ctx_e, plp["token_suffix"]], axis=1)
    prompts_flat = prompts.reshape(TXT_TOT, TXT_DIM)
    pos_tiled = jnp.tile(params["text"]["pos_emb"], (N_CLS, 1))
    eot_idx = jnp.argmax(params["tokenized_prompts"], axis=-1).astype(jnp.int32)

    text_features = text_encoder_fused(params["text"], prompts_flat, pos_tiled,
                                       eot_idx, plp["compound_prompts_text"],
                                       params["text"]["attn_mask"])

    patches = _patchify(image.astype(jnp.float32))
    B = patches.shape[0]
    patches_flat = patches.reshape(B * N_PATCH, PATCH_FDIM)
    image_features = vision_encoder_fused(params["visual"], plp, patches_flat,
                                          _vision_attn_mask(B))
    return clip_logits(image_features, text_features, logit_scale)


# ----------------------------- deterministic init ----------------------------


def _linear_init(key, din, dout):
    w = 0.02 * jax.random.normal(key, (din, dout), jnp.float32)
    b = jnp.zeros((dout,), jnp.float32)
    return w, b


def _block_init(key, d):
    k = jax.random.split(key, 4)
    qkv_w, qkv_b = _linear_init(k[0], d, 3 * d)
    out_w, out_b = _linear_init(k[1], d, d)
    fc_w, fc_b = _linear_init(k[2], d, 4 * d)
    pr_w, pr_b = _linear_init(k[3], 4 * d, d)
    return dict(ln1_g=jnp.ones((d,), jnp.float32), ln1_b=jnp.zeros((d,), jnp.float32),
                qkv_w=qkv_w, qkv_b=qkv_b, out_w=out_w, out_b=out_b,
                ln2_g=jnp.ones((d,), jnp.float32), ln2_b=jnp.zeros((d,), jnp.float32),
                fc_w=fc_w, fc_b=fc_b, proj_w=pr_w, proj_b=pr_b)


def _stack_blocks(blocks):
    L = len(blocks)

    def mats(name):                       # matmul weights -> bf16 once at init
        return jnp.stack([blk[name] for blk in blocks]).astype(MM_DTYPE)

    def rows(name):                       # biases / LN params stay f32
        return jnp.stack([blk[name] for blk in blocks]).reshape(L, 1, -1)

    return dict(ln1_g=rows("ln1_g"), ln1_b=rows("ln1_b"),
                qkv_w=mats("qkv_w"), qkv_b=rows("qkv_b"),
                out_w=mats("out_w"), out_b=rows("out_b"),
                ln2_g=rows("ln2_g"), ln2_b=rows("ln2_b"),
                fc_w=mats("fc_w"), fc_b=rows("fc_b"),
                pr_w=mats("proj_w"), pr_b=rows("proj_b"))


def init_params(key):
    keys = jax.random.split(key, 16)

    # synthetic tokenized prompts: "SOT X X <name tokens> EOT <pad>"
    tokenized = np.zeros((N_CLS, CTX_LEN), np.int32)
    tokenized[0] = [SOT, 4, 5, 10, EOT, 0, 0, 0]
    tokenized[1] = [SOT, 4, 5, 11, 12, EOT, 0, 0]
    tokenized[2] = [SOT, 4, 5, 13, EOT, 0, 0, 0]
    tokenized = jnp.asarray(tokenized)

    token_embedding = 0.02 * jax.random.normal(keys[0], (VOCAB, TXT_DIM), jnp.float32)
    embedding = token_embedding[tokenized]                      # (N_CLS, L, TXT_DIM)

    # prompt learner
    ctx = 0.02 * jax.random.normal(keys[1], (N_CTX, TXT_DIM), jnp.float32)
    proj_w, proj_b = _linear_init(keys[2], TXT_DIM, VIS_DIM)
    cp_keys = jax.random.split(keys[3], max(PROMPT_DEPTH - 1, 1))
    compound_prompts_text = jnp.stack(
        [0.02 * jax.random.normal(cp_keys[i], (N_CTX, TXT_DIM), jnp.float32)
         for i in range(PROMPT_DEPTH - 1)])
    cpp_keys = jax.random.split(keys[4], max(PROMPT_DEPTH - 1, 1))
    cp_proj = [_linear_init(cpp_keys[i], TXT_DIM, VIS_DIM) for i in range(PROMPT_DEPTH - 1)]
    prompt_learner = dict(
        ctx=ctx,
        proj_w=proj_w.astype(MM_DTYPE), proj_b=proj_b.reshape(1, VIS_DIM),
        compound_prompts_text=compound_prompts_text,
        cp_proj_w=jnp.stack([w for w, _ in cp_proj]).astype(MM_DTYPE),
        cp_proj_b=jnp.stack([b.reshape(1, VIS_DIM) for _, b in cp_proj]),
        token_prefix=embedding[:, :1, :],
        token_suffix=embedding[:, 1 + N_CTX:, :])

    # text encoder
    tblk_keys = jax.random.split(keys[5], TXT_LAYERS)
    text = dict(
        pos_emb=0.02 * jax.random.normal(keys[6], (CTX_LEN, TXT_DIM), jnp.float32),
        stacked=_stack_blocks([_block_init(tblk_keys[i], TXT_DIM) for i in range(TXT_LAYERS)]),
        ln_f_g=jnp.ones((1, TXT_DIM), jnp.float32),
        ln_f_b=jnp.zeros((1, TXT_DIM), jnp.float32),
        text_proj=(0.02 * jax.random.normal(keys[7], (TXT_DIM, EMBED), jnp.float32)
                   ).astype(MM_DTYPE),
        attn_mask=_text_attn_mask())

    # vision encoder
    vblk_keys = jax.random.split(keys[8], VIS_LAYERS)
    conv_w = 0.02 * jax.random.normal(keys[9], (VIS_DIM, CH, PATCH, PATCH), jnp.float32)
    visual = dict(
        patch_w=conv_w.reshape(VIS_DIM, -1).T.astype(MM_DTYPE),    # (C*P*P, VIS_DIM)
        class_emb=(0.02 * jax.random.normal(keys[10], (VIS_DIM,), jnp.float32)
                   ).reshape(1, VIS_DIM),
        pos_emb=0.02 * jax.random.normal(keys[11], (1 + N_PATCH, VIS_DIM), jnp.float32),
        ln_pre_g=jnp.ones((1, VIS_DIM), jnp.float32),
        ln_pre_b=jnp.zeros((1, VIS_DIM), jnp.float32),
        stacked=_stack_blocks([_block_init(vblk_keys[i], VIS_DIM) for i in range(VIS_LAYERS)]),
        ln_post_g=jnp.ones((1, VIS_DIM), jnp.float32),
        ln_post_b=jnp.zeros((1, VIS_DIM), jnp.float32),
        vis_proj=(0.02 * jax.random.normal(keys[12], (VIS_DIM, EMBED), jnp.float32)
                  ).astype(MM_DTYPE))

    return dict(prompt_learner=prompt_learner, text=text, visual=visual,
                tokenized_prompts=tokenized,
                logit_scale=jnp.asarray(np.log(1.0 / 0.07), jnp.float32))


# ----------------------------- main -------------------------------------------

if __name__ == "__main__":
    root_key = jax.random.PRNGKey(0)
    pkey, ikey = jax.random.split(root_key)
    params = init_params(pkey)
    image = jax.random.normal(ikey, (2, CH, IMG, IMG), jnp.float32)   # NCHW

    forward = jax.jit(custom_clip_forward)
    logits = forward(params, image)
    logits = jax.block_until_ready(logits)
    assert logits.shape == (2, N_CLS), logits.shape
    assert bool(jnp.all(jnp.isfinite(logits)))
    print("KERNEL_OK")
</pallas_src>

<mosaic_0001>
module attributes {stable_mosaic.version = 11 : i64} {
  func.func @_vision_encoder_kernel(%arg0: i32, %arg1: memref<8x192xf32, #tpu.memory_space<vmem>>, %arg2: memref<16x16xf32, #tpu.memory_space<vmem>>, %arg3: memref<192x96xbf16, #tpu.memory_space<vmem>>, %arg4: memref<1x96xf32, #tpu.memory_space<vmem>>, %arg5: memref<5x96xf32, #tpu.memory_space<vmem>>, %arg6: memref<1x96xf32, #tpu.memory_space<vmem>>, %arg7: memref<1x96xf32, #tpu.memory_space<vmem>>, %arg8: memref<2x64xf32, #tpu.memory_space<vmem>>, %arg9: memref<64x96xbf16, #tpu.memory_space<vmem>>, %arg10: memref<1x96xf32, #tpu.memory_space<vmem>>, %arg11: memref<1x2x64xf32, #tpu.memory_space<vmem>>, %arg12: memref<1x64x96xbf16, #tpu.memory_space<vmem>>, %arg13: memref<1x1x96xf32, #tpu.memory_space<vmem>>, %arg14: memref<2x1x96xf32, #tpu.memory_space<vmem>>, %arg15: memref<2x1x96xf32, #tpu.memory_space<vmem>>, %arg16: memref<2x96x288xbf16, #tpu.memory_space<vmem>>, %arg17: memref<2x1x288xf32, #tpu.memory_space<vmem>>, %arg18: memref<2x96x96xbf16, #tpu.memory_space<vmem>>, %arg19: memref<2x1x96xf32, #tpu.memory_space<vmem>>, %arg20: memref<2x1x96xf32, #tpu.memory_space<vmem>>, %arg21: memref<2x1x96xf32, #tpu.memory_space<vmem>>, %arg22: memref<2x96x384xbf16, #tpu.memory_space<vmem>>, %arg23: memref<2x1x384xf32, #tpu.memory_space<vmem>>, %arg24: memref<2x384x96xbf16, #tpu.memory_space<vmem>>, %arg25: memref<2x1x96xf32, #tpu.memory_space<vmem>>, %arg26: memref<1x96xf32, #tpu.memory_space<vmem>>, %arg27: memref<1x96xf32, #tpu.memory_space<vmem>>, %arg28: memref<96x64xbf16, #tpu.memory_space<vmem>>, %arg29: memref<2x64xf32, #tpu.memory_space<vmem>>, %arg30: memref<16x96xf32, #tpu.memory_space<vmem>>) attributes {dimension_semantics = [#tpu.dimension_semantics<arbitrary>], iteration_bounds = array<i64: 1>, scalar_prefetch = 0 : i64, scratch_operands = 1 : i64, tpu.core_type = #tpu.core_type<tc>, window_params = [{pipeline_mode = #tpu.pipeline_mode<synchronous>, transform_indices = @transform_0, window_bounds = array<i64: 8, 192>}, {pipeline_mode = #tpu.pipeline_mode<synchronous>, transform_indices = @transform_1, window_bounds = array<i64: 16, 16>}, {pipeline_mode = #tpu.pipeline_mode<synchronous>, transform_indices = @transform_2, window_bounds = array<i64: 192, 96>}, {pipeline_mode = #tpu.pipeline_mode<synchronous>, transform_indices = @transform_3, window_bounds = array<i64: 1, 96>}, {pipeline_mode = #tpu.pipeline_mode<synchronous>, transform_indices = @transform_4, window_bounds = array<i64: 5, 96>}, {pipeline_mode = #tpu.pipeline_mode<synchronous>, transform_indices = @transform_5, window_bounds = array<i64: 1, 96>}, {pipeline_mode = #tpu.pipeline_mode<synchronous>, transform_indices = @transform_6, window_bounds = array<i64: 1, 96>}, {pipeline_mode = #tpu.pipeline_mode<synchronous>, transform_indices = @transform_7, window_bounds = array<i64: 2, 64>}, {pipeline_mode = #tpu.pipeline_mode<synchronous>, transform_indices = @transform_8, window_bounds = array<i64: 64, 96>}, {pipeline_mode = #tpu.pipeline_mode<synchronous>, transform_indices = @transform_9, window_bounds = array<i64: 1, 96>}, {pipeline_mode = #tpu.pipeline_mode<synchronous>, transform_indices = @transform_10, window_bounds = array<i64: 1, 2, 64>}, {pipeline_mode = #tpu.pipeline_mode<synchronous>, transform_indices = @transform_11, window_bounds = array<i64: 1, 64, 96>}, {pipeline_mode = #tpu.pipeline_mode<synchronous>, transform_indices = @transform_12, window_bounds = array<i64: 1, 1, 96>}, {pipeline_mode = #tpu.pipeline_mode<synchronous>, transform_indices = @transform_13, window_bounds = array<i64: 2, 1, 96>}, {pipeline_mode = #tpu.pipeline_mode<synchronous>, transform_indices = @transform_14, window_bounds = array<i64: 2, 1, 96>}, {pipeline_mode = #tpu.pipeline_mode<synchronous>, transform_indices = @transform_15, window_bounds = array<i64: 2, 96, 288>}, {pipeline_mode = #tpu.pipeline_mode<synchronous>, transform_indices = @transform_16, window_bounds = array<i64: 2, 1, 288>}, {pipeline_mode = #tpu.pipeline_mode<synchronous>, transform_indices = @transform_17, window_bounds = array<i64: 2, 96, 96>}, {pipeline_mode = #tpu.pipeline_mode<synchronous>, transform_indices = @transform_18, window_bounds = array<i64: 2, 1, 96>}, {pipeline_mode = #tpu.pipeline_mode<synchronous>, transform_indices = @transform_19, window_bounds = array<i64: 2, 1, 96>}, {pipeline_mode = #tpu.pipeline_mode<synchronous>, transform_indices = @transform_20, window_bounds = array<i64: 2, 1, 96>}, {pipeline_mode = #tpu.pipeline_mode<synchronous>, transform_indices = @transform_21, window_bounds = array<i64: 2, 96, 384>}, {pipeline_mode = #tpu.pipeline_mode<synchronous>, transform_indices = @transform_22, window_bounds = array<i64: 2, 1, 384>}, {pipeline_mode = #tpu.pipeline_mode<synchronous>, transform_indices = @transform_23, window_bounds = array<i64: 2, 384, 96>}, {pipeline_mode = #tpu.pipeline_mode<synchronous>, transform_indices = @transform_24, window_bounds = array<i64: 2, 1, 96>}, {pipeline_mode = #tpu.pipeline_mode<synchronous>, transform_indices = @transform_25, window_bounds = array<i64: 1, 96>}, {pipeline_mode = #tpu.pipeline_mode<synchronous>, transform_indices = @transform_26, window_bounds = array<i64: 1, 96>}, {pipeline_mode = #tpu.pipeline_mode<synchronous>, transform_indices = @transform_27, window_bounds = array<i64: 96, 64>}, {pipeline_mode = #tpu.pipeline_mode<synchronous>, transform_indices = @transform_28, window_bounds = array<i64: 2, 64>}]} {
    %c0 = arith.constant 0 : index
    %c0_0 = arith.constant 0 : index
    %0 = vector.load %arg2[%c0, %c0_0] : memref<16x16xf32, #tpu.memory_space<vmem>>, vector<16x16xf32>
    %c0_1 = arith.constant 0 : index
    %c0_2 = arith.constant 0 : index
    %1 = vector.load %arg1[%c0_1, %c0_2] : memref<8x192xf32, #tpu.memory_space<vmem>>, vector<8x192xf32>
    %c0_3 = arith.constant 0 : index
    %c0_4 = arith.constant 0 : index
    %2 = vector.load %arg3[%c0_3, %c0_4] : memref<192x96xbf16, #tpu.memory_space<vmem>>, vector<192x96xbf16>
    %3 = arith.truncf %1 : vector<8x192xf32> to vector<8x192xbf16>
    %cst = arith.constant dense<0.000000e+00> : vector<8x96xf32>
    %4 = tpu.matmul %3, %2, %cst {dimension_numbers = #tpu.dot_dimension_numbers<[1], [0], [0], [1], [0, 0, 1, 1], [], []>} : vector<8x192xbf16>, vector<192x96xbf16>, vector<8x96xf32> -> vector<8x96xf32>
    %c0_5 = arith.constant 0 : index
    %c0_6 = arith.constant 0 : index
    %5 = vector.load %arg8[%c0_5, %c0_6] : memref<2x64xf32, #tpu.memory_space<vmem>>, vector<2x64xf32>
    %c0_7 = arith.constant 0 : index
    %c0_8 = arith.constant 0 : index
    %6 = vector.load %arg9[%c0_7, %c0_8] : memref<64x96xbf16, #tpu.memory_space<vmem>>, vector<64x96xbf16>
    %7 = arith.truncf %5 : vector<2x64xf32> to vector<2x64xbf16>
    %cst_9 = arith.constant dense<0.000000e+00> : vector<2x96xf32>
    %8 = tpu.matmul %7, %6, %cst_9 {dimension_numbers = #tpu.dot_dimension_numbers<[1], [0], [0], [1], [0, 0, 1, 1], [], []>} : vector<2x64xbf16>, vector<64x96xbf16>, vector<2x96xf32> -> vector<2x96xf32>
    %c0_10 = arith.constant 0 : index
    %c0_11 = arith.constant 0 : index
    %9 = vector.load %arg10[%c0_10, %c0_11] : memref<1x96xf32, #tpu.memory_space<vmem>>, vector<1x96xf32>
    %10 = vector.broadcast %9 : vector<1x96xf32> to vector<2x96xf32>
    %11 = arith.addf %8, %10 : vector<2x96xf32>
    %c0_12 = arith.constant 0 : index
    %c0_13 = arith.constant 0 : index
    %12 = vector.load %arg4[%c0_12, %c0_13] : memref<1x96xf32, #tpu.memory_space<vmem>>, vector<1x96xf32>
    %c0_14 = arith.constant 0 : index
    %c0_15 = arith.constant 0 : index
    %13 = vector.load %arg5[%c0_14, %c0_15] : memref<5x96xf32, #tpu.memory_space<vmem>>, vector<1x96xf32>
    %14 = arith.addf %12, %13 : vector<1x96xf32>
    %c0_16 = arith.constant 0 : index
    %c0_17 = arith.constant 0 : index
    %15 = vector.load %arg30[%c0_16, %c0_17] : memref<16x96xf32, #tpu.memory_space<vmem>>, vector<1x96xf32>
    tpu.vector_store %arg30[%c0_16, %c0_17], %14 {strides = array<i32>} : memref<16x96xf32, #tpu.memory_space<vmem>>, vector<1x96xf32>,
    %16 = vector.extract_strided_slice %4 {offsets = [0, 0], sizes = [4, 96], strides = [1, 1]} : vector<8x96xf32> to vector<4x96xf32>
    %c1 = arith.constant 1 : index
    %c0_18 = arith.constant 0 : index
    %17 = vector.load %arg5[%c1, %c0_18] : memref<5x96xf32, #tpu.memory_space<vmem>>, vector<4x96xf32>
    %18 = arith.addf %16, %17 : vector<4x96xf32>
    %c1_19 = arith.constant 1 : index
    %c0_20 = arith.constant 0 : index
    %19 = vector.load %arg30[%c1_19, %c0_20] : memref<16x96xf32, #tpu.memory_space<vmem>>, vector<4x96xf32>
    tpu.vector_store %arg30[%c1_19, %c0_20], %18 {strides = array<i32>} : memref<16x96xf32, #tpu.memory_space<vmem>>, vector<4x96xf32>,
    %c5 = arith.constant 5 : index
    %c0_21 = arith.constant 0 : index
    %20 = vector.load %arg30[%c5, %c0_21] : memref<16x96xf32, #tpu.memory_space<vmem>>, vector<2x96xf32>
    tpu.vector_store %arg30[%c5, %c0_21], %11 {strides = array<i32>} : memref<16x96xf32, #tpu.memory_space<vmem>>, vector<2x96xf32>,
    %cst_22 = arith.constant 0.000000e+00 : f32
    %21 = vector.broadcast %cst_22 : f32 to vector<1x96xf32>
    %c7 = arith.constant 7 : index
    %c0_23 = arith.constant 0 : index
    %22 = vector.load %arg30[%c7, %c0_23] : memref<16x96xf32, #tpu.memory_space<vmem>>, vector<1x96xf32>
    tpu.vector_store %arg30[%c7, %c0_23], %21 {strides = array<i32>} : memref<16x96xf32, #tpu.memory_space<vmem>>, vector<1x96xf32>,
    %c8 = arith.constant 8 : index
    %c0_24 = arith.constant 0 : index
    %23 = vector.load %arg30[%c8, %c0_24] : memref<16x96xf32, #tpu.memory_space<vmem>>, vector<1x96xf32>
    tpu.vector_store %arg30[%c8, %c0_24], %14 {strides = array<i32>} : memref<16x96xf32, #tpu.memory_space<vmem>>, vector<1x96xf32>,
    %24 = vector.extract_strided_slice %4 {offsets = [4, 0], sizes = [4, 96], strides = [1, 1]} : vector<8x96xf32> to vector<4x96xf32>
    %c1_25 = arith.constant 1 : index
    %c0_26 = arith.constant 0 : index
    %25 = vector.load %arg5[%c1_25, %c0_26] : memref<5x96xf32, #tpu.memory_space<vmem>>, vector<4x96xf32>
    %26 = arith.addf %24, %25 : vector<4x96xf32>
    %c9 = arith.constant 9 : index
    %c0_27 = arith.constant 0 : index
    %27 = vector.load %arg30[%c9, %c0_27] : memref<16x96xf32, #tpu.memory_space<vmem>>, vector<4x96xf32>
    tpu.vector_store %arg30[%c9, %c0_27], %26 {strides = array<i32>} : memref<16x96xf32, #tpu.memory_space<vmem>>, vector<4x96xf32>,
    %c13 = arith.constant 13 : index
    %c0_28 = arith.constant 0 : index
    %28 = vector.load %arg30[%c13, %c0_28] : memref<16x96xf32, #tpu.memory_space<vmem>>, vector<2x96xf32>
    tpu.vector_store %arg30[%c13, %c0_28], %11 {strides = array<i32>} : memref<16x96xf32, #tpu.memory_space<vmem>>, vector<2x96xf32>,
    %cst_29 = arith.constant 0.000000e+00 : f32
    %29 = vector.broadcast %cst_29 : f32 to vector<1x96xf32>
    %c15 = arith.constant 15 : index
    %c0_30 = arith.constant 0 : index
    %30 = vector.load %arg30[%c15, %c0_30] : memref<16x96xf32, #tpu.memory_space<vmem>>, vector<1x96xf32>
    tpu.vector_store %arg30[%c15, %c0_30], %29 {strides = array<i32>} : memref<16x96xf32, #tpu.memory_space<vmem>>, vector<1x96xf32>,
    %c0_31 = arith.constant 0 : index
    %c0_32 = arith.constant 0 : index
    %31 = vector.load %arg30[%c0_31, %c0_32] : memref<16x96xf32, #tpu.memory_space<vmem>>, vector<16x96xf32>
    %c0_33 = arith.constant 0 : index
    %c0_34 = arith.constant 0 : index
    %32 = vector.load %arg6[%c0_33, %c0_34] : memref<1x96xf32, #tpu.memory_space<vmem>>, vector<1x96xf32>
    %c0_35 = arith.constant 0 : index
    %c0_36 = arith.constant 0 : index
    %33 = vector.load %arg7[%c0_35, %c0_36] : memref<1x96xf32, #tpu.memory_space<vmem>>, vector<1x96xf32>
    %cst_37 = arith.constant dense<0.000000e+00> : vector<16xf32>
    %34 = vector.multi_reduction <add>, %31, %cst_37 [1] : vector<16x96xf32> to vector<16xf32>
    %35 = vector.shape_cast %34 : vector<16xf32> to vector<16x1xf32>
    %cst_38 = arith.constant 9.600000e+01 : f32
    %36 = vector.broadcast %cst_38 : f32 to vector<16x1xf32>
    %37 = arith.divf %35, %36 : vector<16x1xf32>
    %38 = vector.broadcast %37 : vector<16x1xf32> to vector<16x96xf32>
    %39 = arith.subf %31, %38 : vector<16x96xf32>
    %40 = arith.mulf %39, %39 : vector<16x96xf32>
    %cst_39 = arith.constant dense<0.000000e+00> : vector<16xf32>
    %41 = vector.multi_reduction <add>, %40, %cst_39 [1] : vector<16x96xf32> to vector<16xf32>
    %42 = vector.shape_cast %41 : vector<16xf32> to vector<16x1xf32>
    %cst_40 = arith.constant 9.600000e+01 : f32
    %43 = vector.broadcast %cst_40 : f32 to vector<16x1xf32>
    %44 = arith.divf %42, %43 : vector<16x1xf32>
    %45 = vector.broadcast %37 : vector<16x1xf32> to vector<16x96xf32>
    %46 = arith.subf %31, %45 : vector<16x96xf32>
    %cst_41 = arith.constant 9.99999974E-6 : f32
    %47 = vector.broadcast %cst_41 : f32 to vector<16x1xf32>
    %48 = arith.addf %44, %47 : vector<16x1xf32>
    %49 = math.rsqrt %48 : vector<16x1xf32>
    %50 = vector.broadcast %49 : vector<16x1xf32> to vector<16x96xf32>
    %51 = arith.mulf %46, %50 : vector<16x96xf32>
    %52 = vector.broadcast %32 : vector<1x96xf32> to vector<16x96xf32>
    %53 = arith.mulf %51, %52 : vector<16x96xf32>
    %54 = vector.broadcast %33 : vector<1x96xf32> to vector<16x96xf32>
    %55 = arith.addf %53, %54 : vector<16x96xf32>
    %c0_42 = arith.constant 0 : index
    %c0_43 = arith.constant 0 : index
    %56 = vector.load %arg30[%c0_42, %c0_43] : memref<16x96xf32, #tpu.memory_space<vmem>>, vector<16x96xf32>
    tpu.vector_store %arg30[%c0_42, %c0_43], %55 {strides = array<i32>} : memref<16x96xf32, #tpu.memory_space<vmem>>, vector<16x96xf32>,
    %c0_44 = arith.constant 0 : index
    %c0_45 = arith.constant 0 : index
    %57 = vector.load %arg30[%c0_44, %c0_45] : memref<16x96xf32, #tpu.memory_space<vmem>>, vector<16x96xf32>
    %c0_46 = arith.constant 0 : index
    %c0_47 = arith.constant 0 : index
    %c0_48 = arith.constant 0 : index
    %58 = vector.load %arg14[%c0_46, %c0_47, %c0_48] : memref<2x1x96xf32, #tpu.memory_space<vmem>>, vector<1x1x96xf32>
    %59 = vector.shape_cast %58 : vector<1x1x96xf32> to vector<1x96xf32>
    %c0_49 = arith.constant 0 : index
    %c0_50 = arith.constant 0 : index
    %c0_51 = arith.constant 0 : index
    %60 = vector.load %arg15[%c0_49, %c0_50, %c0_51] : memref<2x1x96xf32, #tpu.memory_space<vmem>>, vector<1x1x96xf32>
    %61 = vector.shape_cast %60 : vector<1x1x96xf32> to vector<1x96xf32>
    %c0_52 = arith.constant 0 : index
    %c0_53 = arith.constant 0 : index
    %c0_54 = arith.constant 0 : index
    %62 = vector.load %arg16[%c0_52, %c0_53, %c0_54] : memref<2x96x288xbf16, #tpu.memory_space<vmem>>, vector<1x96x288xbf16>
    %63 = vector.shape_cast %62 : vector<1x96x288xbf16> to vector<96x288xbf16>
    %c0_55 = arith.constant 0 : index
    %c0_56 = arith.constant 0 : index
    %c0_57 = arith.constant 0 : index
    %64 = vector.load %arg17[%c0_55, %c0_56, %c0_57] : memref<2x1x288xf32, #tpu.memory_space<vmem>>, vector<1x1x288xf32>
    %65 = vector.shape_cast %64 : vector<1x1x288xf32> to vector<1x288xf32>
    %c0_58 = arith.constant 0 : index
    %c0_59 = arith.constant 0 : index
    %c0_60 = arith.constant 0 : index
    %66 = vector.load %arg18[%c0_58, %c0_59, %c0_60] : memref<2x96x96xbf16, #tpu.memory_space<vmem>>, vector<1x96x96xbf16>
    %67 = vector.shape_cast %66 : vector<1x96x96xbf16> to vector<96x96xbf16>
    %c0_61 = arith.constant 0 : index
    %c0_62 = arith.constant 0 : index
    %c0_63 = arith.constant 0 : index
    %68 = vector.load %arg19[%c0_61, %c0_62, %c0_63] : memref<2x1x96xf32, #tpu.memory_space<vmem>>, vector<1x1x96xf32>
    %69 = vector.shape_cast %68 : vector<1x1x96xf32> to vector<1x96xf32>
    %c0_64 = arith.constant 0 : index
    %c0_65 = arith.constant 0 : index
    %c0_66 = arith.constant 0 : index
    %70 = vector.load %arg20[%c0_64, %c0_65, %c0_66] : memref<2x1x96xf32, #tpu.memory_space<vmem>>, vector<1x1x96xf32>
    %71 = vector.shape_cast %70 : vector<1x1x96xf32> to vector<1x96xf32>
    %c0_67 = arith.constant 0 : index
    %c0_68 = arith.constant 0 : index
    %c0_69 = arith.constant 0 : index
    %72 = vector.load %arg21[%c0_67, %c0_68, %c0_69] : memref<2x1x96xf32, #tpu.memory_space<vmem>>, vector<1x1x96xf32>
    %73 = vector.shape_cast %72 : vector<1x1x96xf32> to vector<1x96xf32>
    %c0_70 = arith.constant 0 : index
    %c0_71 = arith.constant 0 : index
    %c0_72 = arith.constant 0 : index
    %74 = vector.load %arg22[%c0_70, %c0_71, %c0_72] : memref<2x96x384xbf16, #tpu.memory_space<vmem>>, vector<1x96x384xbf16>
    %75 = vector.shape_cast %74 : vector<1x96x384xbf16> to vector<96x384xbf16>
    %c0_73 = arith.constant 0 : index
    %c0_74 = arith.constant 0 : index
    %c0_75 = arith.constant 0 : index
    %76 = vector.load %arg23[%c0_73, %c0_74, %c0_75] : memref<2x1x384xf32, #tpu.memory_space<vmem>>, vector<1x1x384xf32>
    %77 = vector.shape_cast %76 : vector<1x1x384xf32> to vector<1x384xf32>
    %c0_76 = arith.constant 0 : index
    %c0_77 = arith.constant 0 : index
    %c0_78 = arith.constant 0 : index
    %78 = vector.load %arg24[%c0_76, %c0_77, %c0_78] : memref<2x384x96xbf16, #tpu.memory_space<vmem>>, vector<1x384x96xbf16>
    %79 = vector.shape_cast %78 : vector<1x384x96xbf16> to vector<384x96xbf16>
    %c0_79 = arith.constant 0 : index
    %c0_80 = arith.constant 0 : index
    %c0_81 = arith.constant 0 : index
    %80 = vector.load %arg25[%c0_79, %c0_80, %c0_81] : memref<2x1x96xf32, #tpu.memory_space<vmem>>, vector<1x1x96xf32>
    %81 = vector.shape_cast %80 : vector<1x1x96xf32> to vector<1x96xf32>
    %cst_82 = arith.constant dense<0.000000e+00> : vector<16xf32>
    %82 = vector.multi_reduction <add>, %57, %cst_82 [1] : vector<16x96xf32> to vector<16xf32>
    %83 = vector.shape_cast %82 : vector<16xf32> to vector<16x1xf32>
    %cst_83 = arith.constant 9.600000e+01 : f32
    %84 = vector.broadcast %cst_83 : f32 to vector<16x1xf32>
    %85 = arith.divf %83, %84 : vector<16x1xf32>
    %86 = vector.broadcast %85 : vector<16x1xf32> to vector<16x96xf32>
    %87 = arith.subf %57, %86 : vector<16x96xf32>
    %88 = arith.mulf %87, %87 : vector<16x96xf32>
    %cst_84 = arith.constant dense<0.000000e+00> : vector<16xf32>
    %89 = vector.multi_reduction <add>, %88, %cst_84 [1] : vector<16x96xf32> to vector<16xf32>
    %90 = vector.shape_cast %89 : vector<16xf32> to vector<16x1xf32>
    %cst_85 = arith.constant 9.600000e+01 : f32
    %91 = vector.broadcast %cst_85 : f32 to vector<16x1xf32>
    %92 = arith.divf %90, %91 : vector<16x1xf32>
    %93 = vector.broadcast %85 : vector<16x1xf32> to vector<16x96xf32>
    %94 = arith.subf %57, %93 : vector<16x96xf32>
    %cst_86 = arith.constant 9.99999974E-6 : f32
    %95 = vector.broadcast %cst_86 : f32 to vector<16x1xf32>
    %96 = arith.addf %92, %95 : vector<16x1xf32>
    %97 = math.rsqrt %96 : vector<16x1xf32>
    %98 = vector.broadcast %97 : vector<16x1xf32> to vector<16x96xf32>
    %99 = arith.mulf %94, %98 : vector<16x96xf32>
    %100 = vector.broadcast %59 : vector<1x96xf32> to vector<16x96xf32>
    %101 = arith.mulf %99, %100 : vector<16x96xf32>
    %102 = vector.broadcast %61 : vector<1x96xf32> to vector<16x96xf32>
    %103 = arith.addf %101, %102 : vector<16x96xf32>
    %104 = arith.truncf %103 : vector<16x96xf32> to vector<16x96xbf16>
    %cst_87 = arith.constant dense<0.000000e+00> : vector<16x288xf32>
    %105 = tpu.matmul %104, %63, %cst_87 {dimension_numbers = #tpu.dot_dimension_numbers<[1], [0], [0], [1], [0, 0, 1, 1], [], []>} : vector<16x96xbf16>, vector<96x288xbf16>, vector<16x288xf32> -> vector<16x288xf32>
    %106 = vector.broadcast %65 : vector<1x288xf32> to vector<16x288xf32>
    %107 = arith.addf %105, %106 : vector<16x288xf32>
    %108 = vector.extract_strided_slice %107 {offsets = [0, 0], sizes = [16, 96], strides = [1, 1]} : vector<16x288xf32> to vector<16x96xf32>
    %cst_88 = arith.constant 0.204124153 : f32
    %109 = vector.broadcast %cst_88 : f32 to vector<16x96xf32>
    %110 = arith.mulf %108, %109 : vector<16x96xf32>
    %111 = vector.extract_strided_slice %107 {offsets = [0, 96], sizes = [16, 96], strides = [1, 1]} : vector<16x288xf32> to vector<16x96xf32>
    %112 = vector.extract_strided_slice %107 {offsets = [0, 192], sizes = [16, 96], strides = [1, 1]} : vector<16x288xf32> to vector<16x96xf32>
    %113 = vector.extract_strided_slice %110 {offsets = [0, 0], sizes = [16, 24], strides = [1, 1]} : vector<16x96xf32> to vector<16x24xf32>
    %114 = arith.truncf %113 : vector<16x24xf32> to vector<16x24xbf16>
    %115 = vector.extract_strided_slice %111 {offsets = [0, 0], sizes = [16, 24], strides = [1, 1]} : vector<16x96xf32> to vector<16x24xf32>
    %116 = arith.truncf %115 : vector<16x24xf32> to vector<16x24xbf16>
    %117 = vector.extract_strided_slice %112 {offsets = [0, 0], sizes = [16, 24], strides = [1, 1]} : vector<16x96xf32> to vector<16x24xf32>
    %118 = arith.truncf %117 : vector<16x24xf32> to vector<16x24xbf16>
    "tpu.trace_start"() <{level = 10 : i32, message = "qd,kd->qk"}> : () -> ()
    %cst_89 = arith.constant dense<0.000000e+00> : vector<16x16xf32>
    %119 = tpu.matmul %114, %116, %cst_89 {dimension_numbers = #tpu.dot_dimension_numbers<[1], [1], [0], [0], [0, 0, 1, 0], [], []>} : vector<16x24xbf16>, vector<16x24xbf16>, vector<16x16xf32> -> vector<16x16xf32>
    "tpu.trace_stop"() : () -> ()
    %120 = arith.addf %119, %0 : vector<16x16xf32>
    %cst_90 = arith.constant dense<0xFF800000> : vector<16xf32>
    %121 = vector.multi_reduction <maximumf>, %120, %cst_90 [1] : vector<16x16xf32> to vector<16xf32>
    %122 = vector.shape_cast %121 : vector<16xf32> to vector<16x1xf32>
    %123 = vector.broadcast %122 : vector<16x1xf32> to vector<16x16xf32>
    %124 = arith.subf %120, %123 : vector<16x16xf32>
    %125 = math.exp %124 : vector<16x16xf32>
    %cst_91 = arith.constant dense<0.000000e+00> : vector<16xf32>
    %126 = vector.multi_reduction <add>, %125, %cst_91 [1] : vector<16x16xf32> to vector<16xf32>
    %127 = vector.shape_cast %126 : vector<16xf32> to vector<16x1xf32>
    %128 = tpu.reciprocal %127 {approx = true} : vector<16x1xf32> -> vector<16x1xf32>
    %129 = vector.broadcast %128 : vector<16x1xf32> to vector<16x16xf32>
    %130 = arith.mulf %125, %129 : vector<16x16xf32>
    %131 = arith.truncf %130 : vector<16x16xf32> to vector<16x16xbf16>
    "tpu.trace_start"() <{level = 10 : i32, message = "qk,kd->qd"}> : () -> ()
    %cst_92 = arith.constant dense<0.000000e+00> : vector<16x24xf32>
    %132 = tpu.matmul %131, %118, %cst_92 {dimension_numbers = #tpu.dot_dimension_numbers<[1], [0], [0], [1], [0, 0, 1, 1], [], []>} : vector<16x16xbf16>, vector<16x24xbf16>, vector<16x24xf32> -> vector<16x24xf32>
    "tpu.trace_stop"() : () -> ()
    %133 = arith.truncf %132 : vector<16x24xf32> to vector<16x24xbf16>
    %134 = vector.extract_strided_slice %67 {offsets = [0, 0], sizes = [24, 96], strides = [1, 1]} : vector<96x96xbf16> to vector<24x96xbf16>
    %cst_93 = arith.constant dense<0.000000e+00> : vector<16x96xf32>
    %135 = tpu.matmul %133, %134, %cst_93 {dimension_numbers = #tpu.dot_dimension_numbers<[1], [0], [0], [1], [0, 0, 1, 1], [], []>} : vector<16x24xbf16>, vector<24x96xbf16>, vector<16x96xf32> -> vector<16x96xf32>
    %136 = vector.extract_strided_slice %110 {offsets = [0, 24], sizes = [16, 24], strides = [1, 1]} : vector<16x96xf32> to vector<16x24xf32>
    %137 = arith.truncf %136 : vector<16x24xf32> to vector<16x24xbf16>
    %138 = vector.extract_strided_slice %111 {offsets = [0, 24], sizes = [16, 24], strides = [1, 1]} : vector<16x96xf32> to vector<16x24xf32>
    %139 = arith.truncf %138 : vector<16x24xf32> to vector<16x24xbf16>
    %140 = vector.extract_strided_slice %112 {offsets = [0, 24], sizes = [16, 24], strides = [1, 1]} : vector<16x96xf32> to vector<16x24xf32>
    %141 = arith.truncf %140 : vector<16x24xf32> to vector<16x24xbf16>
    "tpu.trace_start"() <{level = 10 : i32, message = "qd,kd->qk"}> : () -> ()
    %cst_94 = arith.constant dense<0.000000e+00> : vector<16x16xf32>
    %142 = tpu.matmul %137, %139, %cst_94 {dimension_numbers = #tpu.dot_dimension_numbers<[1], [1], [0], [0], [0, 0, 1, 0], [], []>} : vector<16x24xbf16>, vector<16x24xbf16>, vector<16x16xf32> -> vector<16x16xf32>
    "tpu.trace_stop"() : () -> ()
    %143 = arith.addf %142, %0 : vector<16x16xf32>
    %cst_95 = arith.constant dense<0xFF800000> : vector<16xf32>
    %144 = vector.multi_reduction <maximumf>, %143, %cst_95 [1] : vector<16x16xf32> to vector<16xf32>
    %145 = vector.shape_cast %144 : vector<16xf32> to vector<16x1xf32>
    %146 = vector.broadcast %145 : vector<16x1xf32> to vector<16x16xf32>
    %147 = arith.subf %143, %146 : vector<16x16xf32>
    %148 = math.exp %147 : vector<16x16xf32>
    %cst_96 = arith.constant dense<0.000000e+00> : vector<16xf32>
    %149 = vector.multi_reduction <add>, %148, %cst_96 [1] : vector<16x16xf32> to vector<16xf32>
    %150 = vector.shape_cast %149 : vector<16xf32> to vector<16x1xf32>
    %151 = tpu.reciprocal %150 {approx = true} : vector<16x1xf32> -> vector<16x1xf32>
    %152 = vector.broadcast %151 : vector<16x1xf32> to vector<16x16xf32>
    %153 = arith.mulf %148, %152 : vector<16x16xf32>
    %154 = arith.truncf %153 : vector<16x16xf32> to vector<16x16xbf16>
    "tpu.trace_start"() <{level = 10 : i32, message = "qk,kd->qd"}> : () -> ()
    %cst_97 = arith.constant dense<0.000000e+00> : vector<16x24xf32>
    %155 = tpu.matmul %154, %141, %cst_97 {dimension_numbers = #tpu.dot_dimension_numbers<[1], [0], [0], [1], [0, 0, 1, 1], [], []>} : vector<16x16xbf16>, vector<16x24xbf16>, vector<16x24xf32> -> vector<16x24xf32>
    "tpu.trace_stop"() : () -> ()
    %156 = arith.truncf %155 : vector<16x24xf32> to vector<16x24xbf16>
    %157 = vector.extract_strided_slice %67 {offsets = [24, 0], sizes = [24, 96], strides = [1, 1]} : vector<96x96xbf16> to vector<24x96xbf16>
    %cst_98 = arith.constant dense<0.000000e+00> : vector<16x96xf32>
    %158 = tpu.matmul %156, %157, %cst_98 {dimension_numbers = #tpu.dot_dimension_numbers<[1], [0], [0], [1], [0, 0, 1, 1], [], []>} : vector<16x24xbf16>, vector<24x96xbf16>, vector<16x96xf32> -> vector<16x96xf32>
    %159 = arith.addf %135, %158 : vector<16x96xf32>
    %160 = vector.extract_strided_slice %110 {offsets = [0, 48], sizes = [16, 24], strides = [1, 1]} : vector<16x96xf32> to vector<16x24xf32>
    %161 = arith.truncf %160 : vector<16x24xf32> to vector<16x24xbf16>
    %162 = vector.extract_strided_slice %111 {offsets = [0, 48], sizes = [16, 24], strides = [1, 1]} : vector<16x96xf32> to vector<16x24xf32>
    %163 = arith.truncf %162 : vector<16x24xf32> to vector<16x24xbf16>
    %164 = vector.extract_strided_slice %112 {offsets = [0, 48], sizes = [16, 24], strides = [1, 1]} : vector<16x96xf32> to vector<16x24xf32>
    %165 = arith.truncf %164 : vector<16x24xf32> to vector<16x24xbf16>
    "tpu.trace_start"() <{level = 10 : i32, message = "qd,kd->qk"}> : () -> ()
    %cst_99 = arith.constant dense<0.000000e+00> : vector<16x16xf32>
    %166 = tpu.matmul %161, %163, %cst_99 {dimension_numbers = #tpu.dot_dimension_numbers<[1], [1], [0], [0], [0, 0, 1, 0], [], []>} : vector<16x24xbf16>, vector<16x24xbf16>, vector<16x16xf32> -> vector<16x16xf32>
    "tpu.trace_stop"() : () -> ()
    %167 = arith.addf %166, %0 : vector<16x16xf32>
    %cst_100 = arith.constant dense<0xFF800000> : vector<16xf32>
    %168 = vector.multi_reduction <maximumf>, %167, %cst_100 [1] : vector<16x16xf32> to vector<16xf32>
    %169 = vector.shape_cast %168 : vector<16xf32> to vector<16x1xf32>
    %170 = vector.broadcast %169 : vector<16x1xf32> to vector<16x16xf32>
    %171 = arith.subf %167, %170 : vector<16x16xf32>
    %172 = math.exp %171 : vector<16x16xf32>
    %cst_101 = arith.constant dense<0.000000e+00> : vector<16xf32>
    %173 = vector.multi_reduction <add>, %172, %cst_101 [1] : vector<16x16xf32> to vector<16xf32>
    %174 = vector.shape_cast %173 : vector<16xf32> to vector<16x1xf32>
    %175 = tpu.reciprocal %174 {approx = true} : vector<16x1xf32> -> vector<16x1xf32>
    %176 = vector.broadcast %175 : vector<16x1xf32> to vector<16x16xf32>
    %177 = arith.mulf %172, %176 : vector<16x16xf32>
    %178 = arith.truncf %177 : vector<16x16xf32> to vector<16x16xbf16>
    "tpu.trace_start"() <{level = 10 : i32, message = "qk,kd->qd"}> : () -> ()
    %cst_102 = arith.constant dense<0.000000e+00> : vector<16x24xf32>
    %179 = tpu.matmul %178, %165, %cst_102 {dimension_numbers = #tpu.dot_dimension_numbers<[1], [0], [0], [1], [0, 0, 1, 1], [], []>} : vector<16x16xbf16>, vector<16x24xbf16>, vector<16x24xf32> -> vector<16x24xf32>
    "tpu.trace_stop"() : () -> ()
    %180 = arith.truncf %179 : vector<16x24xf32> to vector<16x24xbf16>
    %181 = vector.extract_strided_slice %67 {offsets = [48, 0], sizes = [24, 96], strides = [1, 1]} : vector<96x96xbf16> to vector<24x96xbf16>
    %cst_103 = arith.constant dense<0.000000e+00> : vector<16x96xf32>
    %182 = tpu.matmul %180, %181, %cst_103 {dimension_numbers = #tpu.dot_dimension_numbers<[1], [0], [0], [1], [0, 0, 1, 1], [], []>} : vector<16x24xbf16>, vector<24x96xbf16>, vector<16x96xf32> -> vector<16x96xf32>
    %183 = arith.addf %159, %182 : vector<16x96xf32>
    %184 = vector.extract_strided_slice %110 {offsets = [0, 72], sizes = [16, 24], strides = [1, 1]} : vector<16x96xf32> to vector<16x24xf32>
    %185 = arith.truncf %184 : vector<16x24xf32> to vector<16x24xbf16>
    %186 = vector.extract_strided_slice %111 {offsets = [0, 72], sizes = [16, 24], strides = [1, 1]} : vector<16x96xf32> to vector<16x24xf32>
    %187 = arith.truncf %186 : vector<16x24xf32> to vector<16x24xbf16>
    %188 = vector.extract_strided_slice %112 {offsets = [0, 72], sizes = [16, 24], strides = [1, 1]} : vector<16x96xf32> to vector<16x24xf32>
    %189 = arith.truncf %188 : vector<16x24xf32> to vector<16x24xbf16>
    "tpu.trace_start"() <{level = 10 : i32, message = "qd,kd->qk"}> : () -> ()
    %cst_104 = arith.constant dense<0.000000e+00> : vector<16x16xf32>
    %190 = tpu.matmul %185, %187, %cst_104 {dimension_numbers = #tpu.dot_dimension_numbers<[1], [1], [0], [0], [0, 0, 1, 0], [], []>} : vector<16x24xbf16>, vector<16x24xbf16>, vector<16x16xf32> -> vector<16x16xf32>
    "tpu.trace_stop"() : () -> ()
    %191 = arith.addf %190, %0 : vector<16x16xf32>
    %cst_105 = arith.constant dense<0xFF800000> : vector<16xf32>
    %192 = vector.multi_reduction <maximumf>, %191, %cst_105 [1] : vector<16x16xf32> to vector<16xf32>
    %193 = vector.shape_cast %192 : vector<16xf32> to vector<16x1xf32>
    %194 = vector.broadcast %193 : vector<16x1xf32> to vector<16x16xf32>
    %195 = arith.subf %191, %194 : vector<16x16xf32>
    %196 = math.exp %195 : vector<16x16xf32>
    %cst_106 = arith.constant dense<0.000000e+00> : vector<16xf32>
    %197 = vector.multi_reduction <add>, %196, %cst_106 [1] : vector<16x16xf32> to vector<16xf32>
    %198 = vector.shape_cast %197 : vector<16xf32> to vector<16x1xf32>
    %199 = tpu.reciprocal %198 {approx = true} : vector<16x1xf32> -> vector<16x1xf32>
    %200 = vector.broadcast %199 : vector<16x1xf32> to vector<16x16xf32>
    %201 = arith.mulf %196, %200 : vector<16x16xf32>
    %202 = arith.truncf %201 : vector<16x16xf32> to vector<16x16xbf16>
    "tpu.trace_start"() <{level = 10 : i32, message = "qk,kd->qd"}> : () -> ()
    %cst_107 = arith.constant dense<0.000000e+00> : vector<16x24xf32>
    %203 = tpu.matmul %202, %189, %cst_107 {dimension_numbers = #tpu.dot_dimension_numbers<[1], [0], [0], [1], [0, 0, 1, 1], [], []>} : vector<16x16xbf16>, vector<16x24xbf16>, vector<16x24xf32> -> vector<16x24xf32>
    "tpu.trace_stop"() : () -> ()
    %204 = arith.truncf %203 : vector<16x24xf32> to vector<16x24xbf16>
    %205 = vector.extract_strided_slice %67 {offsets = [72, 0], sizes = [24, 96], strides = [1, 1]} : vector<96x96xbf16> to vector<24x96xbf16>
    %cst_108 = arith.constant dense<0.000000e+00> : vector<16x96xf32>
    %206 = tpu.matmul %204, %205, %cst_108 {dimension_numbers = #tpu.dot_dimension_numbers<[1], [0], [0], [1], [0, 0, 1, 1], [], []>} : vector<16x24xbf16>, vector<24x96xbf16>, vector<16x96xf32> -> vector<16x96xf32>
    %207 = arith.addf %183, %206 : vector<16x96xf32>
    %208 = vector.broadcast %69 : vector<1x96xf32> to vector<16x96xf32>
    %209 = arith.addf %207, %208 : vector<16x96xf32>
    %210 = arith.addf %57, %209 : vector<16x96xf32>
    %cst_109 = arith.constant dense<0.000000e+00> : vector<16xf32>
    %211 = vector.multi_reduction <add>, %210, %cst_109 [1] : vector<16x96xf32> to vector<16xf32>
    %212 = vector.shape_cast %211 : vector<16xf32> to vector<16x1xf32>
    %cst_110 = arith.constant 9.600000e+01 : f32
    %213 = vector.broadcast %cst_110 : f32 to vector<16x1xf32>
    %214 = arith.divf %212, %213 : vector<16x1xf32>
    %215 = vector.broadcast %214 : vector<16x1xf32> to vector<16x96xf32>
    %216 = arith.subf %210, %215 : vector<16x96xf32>
    %217 = arith.mulf %216, %216 : vector<16x96xf32>
    %cst_111 = arith.constant dense<0.000000e+00> : vector<16xf32>
    %218 = vector.multi_reduction <add>, %217, %cst_111 [1] : vector<16x96xf32> to vector<16xf32>
    %219 = vector.shape_cast %218 : vector<16xf32> to vector<16x1xf32>
    %cst_112 = arith.constant 9.600000e+01 : f32
    %220 = vector.broadcast %cst_112 : f32 to vector<16x1xf32>
    %221 = arith.divf %219, %220 : vector<16x1xf32>
    %222 = vector.broadcast %214 : vector<16x1xf32> to vector<16x96xf32>
    %223 = arith.subf %210, %222 : vector<16x96xf32>
    %cst_113 = arith.constant 9.99999974E-6 : f32
    %224 = vector.broadcast %cst_113 : f32 to vector<16x1xf32>
    %225 = arith.addf %221, %224 : vector<16x1xf32>
    %226 = math.rsqrt %225 : vector<16x1xf32>
    %227 = vector.broadcast %226 : vector<16x1xf32> to vector<16x96xf32>
    %228 = arith.mulf %223, %227 : vector<16x96xf32>
    %229 = vector.broadcast %71 : vector<1x96xf32> to vector<16x96xf32>
    %230 = arith.mulf %228, %229 : vector<16x96xf32>
    %231 = vector.broadcast %73 : vector<1x96xf32> to vector<16x96xf32>
    %232 = arith.addf %230, %231 : vector<16x96xf32>
    %233 = arith.truncf %232 : vector<16x96xf32> to vector<16x96xbf16>
    %cst_114 = arith.constant dense<0.000000e+00> : vector<16x384xf32>
    %234 = tpu.matmul %233, %75, %cst_114 {dimension_numbers = #tpu.dot_dimension_numbers<[1], [0], [0], [1], [0, 0, 1, 1], [], []>} : vector<16x96xbf16>, vector<96x384xbf16>, vector<16x384xf32> -> vector<16x384xf32>
    %235 = vector.broadcast %77 : vector<1x384xf32> to vector<16x384xf32>
    %236 = arith.addf %234, %235 : vector<16x384xf32>
    %cst_115 = arith.constant 1.702000e+00 : f32
    %237 = vector.broadcast %cst_115 : f32 to vector<16x384xf32>
    %238 = arith.mulf %237, %236 : vector<16x384xf32>
    %239 = arith.negf %238 : vector<16x384xf32>
    %240 = math.exp %239 : vector<16x384xf32>
    %cst_116 = arith.constant 1.000000e+00 : f32
    %241 = vector.broadcast %cst_116 : f32 to vector<16x384xf32>
    %242 = arith.addf %241, %240 : vector<16x384xf32>
    %243 = arith.divf %241, %242 : vector<16x384xf32>
    %244 = arith.mulf %236, %243 : vector<16x384xf32>
    %245 = arith.truncf %244 : vector<16x384xf32> to vector<16x384xbf16>
    %cst_117 = arith.constant dense<0.000000e+00> : vector<16x96xf32>
    %246 = tpu.matmul %245, %79, %cst_117 {dimension_numbers = #tpu.dot_dimension_numbers<[1], [0], [0], [1], [0, 0, 1, 1], [], []>} : vector<16x384xbf16>, vector<384x96xbf16>, vector<16x96xf32> -> vector<16x96xf32>
    %247 = vector.broadcast %81 : vector<1x96xf32> to vector<16x96xf32>
    %248 = arith.addf %246, %247 : vector<16x96xf32>
    %249 = arith.addf %210, %248 : vector<16x96xf32>
    %c0_118 = arith.constant 0 : index
    %c0_119 = arith.constant 0 : index
    %250 = vector.load %arg30[%c0_118, %c0_119] : memref<16x96xf32, #tpu.memory_space<vmem>>, vector<16x96xf32>
    tpu.vector_store %arg30[%c0_118, %c0_119], %249 {strides = array<i32>} : memref<16x96xf32, #tpu.memory_space<vmem>>, vector<16x96xf32>,
    %c0_120 = arith.constant 0 : index
    %c0_121 = arith.constant 0 : index
    %c0_122 = arith.constant 0 : index
    %251 = vector.load %arg11[%c0_120, %c0_121, %c0_122] : memref<1x2x64xf32, #tpu.memory_space<vmem>>, vector<1x2x64xf32>
    %252 = vector.shape_cast %251 : vector<1x2x64xf32> to vector<2x64xf32>
    %c0_123 = arith.constant 0 : index
    %c0_124 = arith.constant 0 : index
    %c0_125 = arith.constant 0 : index
    %253 = vector.load %arg12[%c0_123, %c0_124, %c0_125] : memref<1x64x96xbf16, #tpu.memory_space<vmem>>, vector<1x64x96xbf16>
    %254 = vector.shape_cast %253 : vector<1x64x96xbf16> to vector<64x96xbf16>
    %255 = arith.truncf %252 : vector<2x64xf32> to vector<2x64xbf16>
    %cst_126 = arith.constant dense<0.000000e+00> : vector<2x96xf32>
    %256 = tpu.matmul %255, %254, %cst_126 {dimension_numbers = #tpu.dot_dimension_numbers<[1], [0], [0], [1], [0, 0, 1, 1], [], []>} : vector<2x64xbf16>, vector<64x96xbf16>, vector<2x96xf32> -> vector<2x96xf32>
    %c0_127 = arith.constant 0 : index
    %c0_128 = arith.constant 0 : index
    %c0_129 = arith.constant 0 : index
    %257 = vector.load %arg13[%c0_127, %c0_128, %c0_129] : memref<1x1x96xf32, #tpu.memory_space<vmem>>, vector<1x1x96xf32>
    %258 = vector.shape_cast %257 : vector<1x1x96xf32> to vector<1x96xf32>
    %259 = vector.broadcast %258 : vector<1x96xf32> to vector<2x96xf32>
    %260 = arith.addf %256, %259 : vector<2x96xf32>
    %c5_130 = arith.constant 5 : index
    %c0_131 = arith.constant 0 : index
    %261 = vector.load %arg30[%c5_130, %c0_131] : memref<16x96xf32, #tpu.memory_space<vmem>>, vector<2x96xf32>
    tpu.vector_store %arg30[%c5_130, %c0_131], %260 {strides = array<i32>} : memref<16x96xf32, #tpu.memory_space<vmem>>, vector<2x96xf32>,
    %c13_132 = arith.constant 13 : index
    %c0_133 = arith.constant 0 : index
    %262 = vector.load %arg30[%c13_132, %c0_133] : memref<16x96xf32, #tpu.memory_space<vmem>>, vector<2x96xf32>
    tpu.vector_store %arg30[%c13_132, %c0_133], %260 {strides = array<i32>} : memref<16x96xf32, #tpu.memory_space<vmem>>, vector<2x96xf32>,
    %c0_134 = arith.constant 0 : index
    %c0_135 = arith.constant 0 : index
    %263 = vector.load %arg30[%c0_134, %c0_135] : memref<16x96xf32, #tpu.memory_space<vmem>>, vector<16x96xf32>
    %c1_136 = arith.constant 1 : index
    %c0_137 = arith.constant 0 : index
    %c0_138 = arith.constant 0 : index
    %264 = vector.load %arg14[%c1_136, %c0_137, %c0_138] : memref<2x1x96xf32, #tpu.memory_space<vmem>>, vector<1x1x96xf32>
    %265 = vector.shape_cast %264 : vector<1x1x96xf32> to vector<1x96xf32>
    %c1_139 = arith.constant 1 : index
    %c0_140 = arith.constant 0 : index
    %c0_141 = arith.constant 0 : index
    %266 = vector.load %arg15[%c1_139, %c0_140, %c0_141] : memref<2x1x96xf32, #tpu.memory_space<vmem>>, vector<1x1x96xf32>
    %267 = vector.shape_cast %266 : vector<1x1x96xf32> to vector<1x96xf32>
    %c1_142 = arith.constant 1 : index
    %c0_143 = arith.constant 0 : index
    %c0_144 = arith.constant 0 : index
    %268 = vector.load %arg16[%c1_142, %c0_143, %c0_144] : memref<2x96x288xbf16, #tpu.memory_space<vmem>>, vector<1x96x288xbf16>
    %269 = vector.shape_cast %268 : vector<1x96x288xbf16> to vector<96x288xbf16>
    %c1_145 = arith.constant 1 : index
    %c0_146 = arith.constant 0 : index
    %c0_147 = arith.constant 0 : index
    %270 = vector.load %arg17[%c1_145, %c0_146, %c0_147] : memref<2x1x288xf32, #tpu.memory_space<vmem>>, vector<1x1x288xf32>
    %271 = vector.shape_cast %270 : vector<1x1x288xf32> to vector<1x288xf32>
    %c1_148 = arith.constant 1 : index
    %c0_149 = arith.constant 0 : index
    %c0_150 = arith.constant 0 : index
    %272 = vector.load %arg18[%c1_148, %c0_149, %c0_150] : memref<2x96x96xbf16, #tpu.memory_space<vmem>>, vector<1x96x96xbf16>
    %273 = vector.shape_cast %272 : vector<1x96x96xbf16> to vector<96x96xbf16>
    %c1_151 = arith.constant 1 : index
    %c0_152 = arith.constant 0 : index
    %c0_153 = arith.constant 0 : index
    %274 = vector.load %arg19[%c1_151, %c0_152, %c0_153] : memref<2x1x96xf32, #tpu.memory_space<vmem>>, vector<1x1x96xf32>
    %275 = vector.shape_cast %274 : vector<1x1x96xf32> to vector<1x96xf32>
    %c1_154 = arith.constant 1 : index
    %c0_155 = arith.constant 0 : index
    %c0_156 = arith.constant 0 : index
    %276 = vector.load %arg20[%c1_154, %c0_155, %c0_156] : memref<2x1x96xf32, #tpu.memory_space<vmem>>, vector<1x1x96xf32>
    %277 = vector.shape_cast %276 : vector<1x1x96xf32> to vector<1x96xf32>
    %c1_157 = arith.constant 1 : index
    %c0_158 = arith.constant 0 : index
    %c0_159 = arith.constant 0 : index
    %278 = vector.load %arg21[%c1_157, %c0_158, %c0_159] : memref<2x1x96xf32, #tpu.memory_space<vmem>>, vector<1x1x96xf32>
    %279 = vector.shape_cast %278 : vector<1x1x96xf32> to vector<1x96xf32>
    %c1_160 = arith.constant 1 : index
    %c0_161 = arith.constant 0 : index
    %c0_162 = arith.constant 0 : index
    %280 = vector.load %arg22[%c1_160, %c0_161, %c0_162] : memref<2x96x384xbf16, #tpu.memory_space<vmem>>, vector<1x96x384xbf16>
    %281 = vector.shape_cast %280 : vector<1x96x384xbf16> to vector<96x384xbf16>
    %c1_163 = arith.constant 1 : index
    %c0_164 = arith.constant 0 : index
    %c0_165 = arith.constant 0 : index
    %282 = vector.load %arg23[%c1_163, %c0_164, %c0_165] : memref<2x1x384xf32, #tpu.memory_space<vmem>>, vector<1x1x384xf32>
    %283 = vector.shape_cast %282 : vector<1x1x384xf32> to vector<1x384xf32>
    %c1_166 = arith.constant 1 : index
    %c0_167 = arith.constant 0 : index
    %c0_168 = arith.constant 0 : index
    %284 = vector.load %arg24[%c1_166, %c0_167, %c0_168] : memref<2x384x96xbf16, #tpu.memory_space<vmem>>, vector<1x384x96xbf16>
    %285 = vector.shape_cast %284 : vector<1x384x96xbf16> to vector<384x96xbf16>
    %c1_169 = arith.constant 1 : index
    %c0_170 = arith.constant 0 : index
    %c0_171 = arith.constant 0 : index
    %286 = vector.load %arg25[%c1_169, %c0_170, %c0_171] : memref<2x1x96xf32, #tpu.memory_space<vmem>>, vector<1x1x96xf32>
    %287 = vector.shape_cast %286 : vector<1x1x96xf32> to vector<1x96xf32>
    %cst_172 = arith.constant dense<0.000000e+00> : vector<16xf32>
    %288 = vector.multi_reduction <add>, %263, %cst_172 [1] : vector<16x96xf32> to vector<16xf32>
    %289 = vector.shape_cast %288 : vector<16xf32> to vector<16x1xf32>
    %cst_173 = arith.constant 9.600000e+01 : f32
    %290 = vector.broadcast %cst_173 : f32 to vector<16x1xf32>
    %291 = arith.divf %289, %290 : vector<16x1xf32>
    %292 = vector.broadcast %291 : vector<16x1xf32> to vector<16x96xf32>
    %293 = arith.subf %263, %292 : vector<16x96xf32>
    %294 = arith.mulf %293, %293 : vector<16x96xf32>
    %cst_174 = arith.constant dense<0.000000e+00> : vector<16xf32>
    %295 = vector.multi_reduction <add>, %294, %cst_174 [1] : vector<16x96xf32> to vector<16xf32>
    %296 = vector.shape_cast %295 : vector<16xf32> to vector<16x1xf32>
    %cst_175 = arith.constant 9.600000e+01 : f32
    %297 = vector.broadcast %cst_175 : f32 to vector<16x1xf32>
    %298 = arith.divf %296, %297 : vector<16x1xf32>
    %299 = vector.broadcast %291 : vector<16x1xf32> to vector<16x96xf32>
    %300 = arith.subf %263, %299 : vector<16x96xf32>
    %cst_176 = arith.constant 9.99999974E-6 : f32
    %301 = vector.broadcast %cst_176 : f32 to vector<16x1xf32>
    %302 = arith.addf %298, %301 : vector<16x1xf32>
    %303 = math.rsqrt %302 : vector<16x1xf32>
    %304 = vector.broadcast %303 : vector<16x1xf32> to vector<16x96xf32>
    %305 = arith.mulf %300, %304 : vector<16x96xf32>
    %306 = vector.broadcast %265 : vector<1x96xf32> to vector<16x96xf32>
    %307 = arith.mulf %305, %306 : vector<16x96xf32>
    %308 = vector.broadcast %267 : vector<1x96xf32> to vector<16x96xf32>
    %309 = arith.addf %307, %308 : vector<16x96xf32>
    %310 = arith.truncf %309 : vector<16x96xf32> to vector<16x96xbf16>
    %cst_177 = arith.constant dense<0.000000e+00> : vector<16x288xf32>
    %311 = tpu.matmul %310, %269, %cst_177 {dimension_numbers = #tpu.dot_dimension_numbers<[1], [0], [0], [1], [0, 0, 1, 1], [], []>} : vector<16x96xbf16>, vector<96x288xbf16>, vector<16x288xf32> -> vector<16x288xf32>
    %312 = vector.broadcast %271 : vector<1x288xf32> to vector<16x288xf32>
    %313 = arith.addf %311, %312 : vector<16x288xf32>
    %314 = vector.extract_strided_slice %313 {offsets = [0, 0], sizes = [16, 96], strides = [1, 1]} : vector<16x288xf32> to vector<16x96xf32>
    %cst_178 = arith.constant 0.204124153 : f32
    %315 = vector.broadcast %cst_178 : f32 to vector<16x96xf32>
    %316 = arith.mulf %314, %315 : vector<16x96xf32>
    %317 = vector.extract_strided_slice %313 {offsets = [0, 96], sizes = [16, 96], strides = [1, 1]} : vector<16x288xf32> to vector<16x96xf32>
    %318 = vector.extract_strided_slice %313 {offsets = [0, 192], sizes = [16, 96], strides = [1, 1]} : vector<16x288xf32> to vector<16x96xf32>
    %319 = vector.extract_strided_slice %316 {offsets = [0, 0], sizes = [16, 24], strides = [1, 1]} : vector<16x96xf32> to vector<16x24xf32>
    %320 = arith.truncf %319 : vector<16x24xf32> to vector<16x24xbf16>
    %321 = vector.extract_strided_slice %317 {offsets = [0, 0], sizes = [16, 24], strides = [1, 1]} : vector<16x96xf32> to vector<16x24xf32>
    %322 = arith.truncf %321 : vector<16x24xf32> to vector<16x24xbf16>
    %323 = vector.extract_strided_slice %318 {offsets = [0, 0], sizes = [16, 24], strides = [1, 1]} : vector<16x96xf32> to vector<16x24xf32>
    %324 = arith.truncf %323 : vector<16x24xf32> to vector<16x24xbf16>
    "tpu.trace_start"() <{level = 10 : i32, message = "qd,kd->qk"}> : () -> ()
    %cst_179 = arith.constant dense<0.000000e+00> : vector<16x16xf32>
    %325 = tpu.matmul %320, %322, %cst_179 {dimension_numbers = #tpu.dot_dimension_numbers<[1], [1], [0], [0], [0, 0, 1, 0], [], []>} : vector<16x24xbf16>, vector<16x24xbf16>, vector<16x16xf32> -> vector<16x16xf32>
    "tpu.trace_stop"() : () -> ()
    %326 = arith.addf %325, %0 : vector<16x16xf32>
    %cst_180 = arith.constant dense<0xFF800000> : vector<16xf32>
    %327 = vector.multi_reduction <maximumf>, %326, %cst_180 [1] : vector<16x16xf32> to vector<16xf32>
    %328 = vector.shape_cast %327 : vector<16xf32> to vector<16x1xf32>
    %329 = vector.broadcast %328 : vector<16x1xf32> to vector<16x16xf32>
    %330 = arith.subf %326, %329 : vector<16x16xf32>
    %331 = math.exp %330 : vector<16x16xf32>
    %cst_181 = arith.constant dense<0.000000e+00> : vector<16xf32>
    %332 = vector.multi_reduction <add>, %331, %cst_181 [1] : vector<16x16xf32> to vector<16xf32>
    %333 = vector.shape_cast %332 : vector<16xf32> to vector<16x1xf32>
    %334 = tpu.reciprocal %333 {approx = true} : vector<16x1xf32> -> vector<16x1xf32>
    %335 = vector.broadcast %334 : vector<16x1xf32> to vector<16x16xf32>
    %336 = arith.mulf %331, %335 : vector<16x16xf32>
    %337 = arith.truncf %336 : vector<16x16xf32> to vector<16x16xbf16>
    "tpu.trace_start"() <{level = 10 : i32, message = "qk,kd->qd"}> : () -> ()
    %cst_182 = arith.constant dense<0.000000e+00> : vector<16x24xf32>
    %338 = tpu.matmul %337, %324, %cst_182 {dimension_numbers = #tpu.dot_dimension_numbers<[1], [0], [0], [1], [0, 0, 1, 1], [], []>} : vector<16x16xbf16>, vector<16x24xbf16>, vector<16x24xf32> -> vector<16x24xf32>
    "tpu.trace_stop"() : () -> ()
    %339 = arith.truncf %338 : vector<16x24xf32> to vector<16x24xbf16>
    %340 = vector.extract_strided_slice %273 {offsets = [0, 0], sizes = [24, 96], strides = [1, 1]} : vector<96x96xbf16> to vector<24x96xbf16>
    %cst_183 = arith.constant dense<0.000000e+00> : vector<16x96xf32>
    %341 = tpu.matmul %339, %340, %cst_183 {dimension_numbers = #tpu.dot_dimension_numbers<[1], [0], [0], [1], [0, 0, 1, 1], [], []>} : vector<16x24xbf16>, vector<24x96xbf16>, vector<16x96xf32> -> vector<16x96xf32>
    %342 = vector.extract_strided_slice %316 {offsets = [0, 24], sizes = [16, 24], strides = [1, 1]} : vector<16x96xf32> to vector<16x24xf32>
    %343 = arith.truncf %342 : vector<16x24xf32> to vector<16x24xbf16>
    %344 = vector.extract_strided_slice %317 {offsets = [0, 24], sizes = [16, 24], strides = [1, 1]} : vector<16x96xf32> to vector<16x24xf32>
    %345 = arith.truncf %344 : vector<16x24xf32> to vector<16x24xbf16>
    %346 = vector.extract_strided_slice %318 {offsets = [0, 24], sizes = [16, 24], strides = [1, 1]} : vector<16x96xf32> to vector<16x24xf32>
    %347 = arith.truncf %346 : vector<16x24xf32> to vector<16x24xbf16>
    "tpu.trace_start"() <{level = 10 : i32, message = "qd,kd->qk"}> : () -> ()
    %cst_184 = arith.constant dense<0.000000e+00> : vector<16x16xf32>
    %348 = tpu.matmul %343, %345, %cst_184 {dimension_numbers = #tpu.dot_dimension_numbers<[1], [1], [0], [0], [0, 0, 1, 0], [], []>} : vector<16x24xbf16>, vector<16x24xbf16>, vector<16x16xf32> -> vector<16x16xf32>
    "tpu.trace_stop"() : () -> ()
    %349 = arith.addf %348, %0 : vector<16x16xf32>
    %cst_185 = arith.constant dense<0xFF800000> : vector<16xf32>
    %350 = vector.multi_reduction <maximumf>, %349, %cst_185 [1] : vector<16x16xf32> to vector<16xf32>
    %351 = vector.shape_cast %350 : vector<16xf32> to vector<16x1xf32>
    %352 = vector.broadcast %351 : vector<16x1xf32> to vector<16x16xf32>
    %353 = arith.subf %349, %352 : vector<16x16xf32>
    %354 = math.exp %353 : vector<16x16xf32>
    %cst_186 = arith.constant dense<0.000000e+00> : vector<16xf32>
    %355 = vector.multi_reduction <add>, %354, %cst_186 [1] : vector<16x16xf32> to vector<16xf32>
    %356 = vector.shape_cast %355 : vector<16xf32> to vector<16x1xf32>
    %357 = tpu.reciprocal %356 {approx = true} : vector<16x1xf32> -> vector<16x1xf32>
    %358 = vector.broadcast %357 : vector<16x1xf32> to vector<16x16xf32>
    %359 = arith.mulf %354, %358 : vector<16x16xf32>
    %360 = arith.truncf %359 : vector<16x16xf32> to vector<16x16xbf16>
    "tpu.trace_start"() <{level = 10 : i32, message = "qk,kd->qd"}> : () -> ()
    %cst_187 = arith.constant dense<0.000000e+00> : vector<16x24xf32>
    %361 = tpu.matmul %360, %347, %cst_187 {dimension_numbers = #tpu.dot_dimension_numbers<[1], [0], [0], [1], [0, 0, 1, 1], [], []>} : vector<16x16xbf16>, vector<16x24xbf16>, vector<16x24xf32> -> vector<16x24xf32>
    "tpu.trace_stop"() : () -> ()
    %362 = arith.truncf %361 : vector<16x24xf32> to vector<16x24xbf16>
    %363 = vector.extract_strided_slice %273 {offsets = [24, 0], sizes = [24, 96], strides = [1, 1]} : vector<96x96xbf16> to vector<24x96xbf16>
    %cst_188 = arith.constant dense<0.000000e+00> : vector<16x96xf32>
    %364 = tpu.matmul %362, %363, %cst_188 {dimension_numbers = #tpu.dot_dimension_numbers<[1], [0], [0], [1], [0, 0, 1, 1], [], []>} : vector<16x24xbf16>, vector<24x96xbf16>, vector<16x96xf32> -> vector<16x96xf32>
    %365 = arith.addf %341, %364 : vector<16x96xf32>
    %366 = vector.extract_strided_slice %316 {offsets = [0, 48], sizes = [16, 24], strides = [1, 1]} : vector<16x96xf32> to vector<16x24xf32>
    %367 = arith.truncf %366 : vector<16x24xf32> to vector<16x24xbf16>
    %368 = vector.extract_strided_slice %317 {offsets = [0, 48], sizes = [16, 24], strides = [1, 1]} : vector<16x96xf32> to vector<16x24xf32>
    %369 = arith.truncf %368 : vector<16x24xf32> to vector<16x24xbf16>
    %370 = vector.extract_strided_slice %318 {offsets = [0, 48], sizes = [16, 24], strides = [1, 1]} : vector<16x96xf32> to vector<16x24xf32>
    %371 = arith.truncf %370 : vector<16x24xf32> to vector<16x24xbf16>
    "tpu.trace_start"() <{level = 10 : i32, message = "qd,kd->qk"}> : () -> ()
    %cst_189 = arith.constant dense<0.000000e+00> : vector<16x16xf32>
    %372 = tpu.matmul %367, %369, %cst_189 {dimension_numbers = #tpu.dot_dimension_numbers<[1], [1], [0], [0], [0, 0, 1, 0], [], []>} : vector<16x24xbf16>, vector<16x24xbf16>, vector<16x16xf32> -> vector<16x16xf32>
    "tpu.trace_stop"() : () -> ()
    %373 = arith.addf %372, %0 : vector<16x16xf32>
    %cst_190 = arith.constant dense<0xFF800000> : vector<16xf32>
    %374 = vector.multi_reduction <maximumf>, %373, %cst_190 [1] : vector<16x16xf32> to vector<16xf32>
    %375 = vector.shape_cast %374 : vector<16xf32> to vector<16x1xf32>
    %376 = vector.broadcast %375 : vector<16x1xf32> to vector<16x16xf32>
    %377 = arith.subf %373, %376 : vector<16x16xf32>
    %378 = math.exp %377 : vector<16x16xf32>
    %cst_191 = arith.constant dense<0.000000e+00> : vector<16xf32>
    %379 = vector.multi_reduction <add>, %378, %cst_191 [1] : vector<16x16xf32> to vector<16xf32>
    %380 = vector.shape_cast %379 : vector<16xf32> to vector<16x1xf32>
    %381 = tpu.reciprocal %380 {approx = true} : vector<16x1xf32> -> vector<16x1xf32>
    %382 = vector.broadcast %381 : vector<16x1xf32> to vector<16x16xf32>
    %383 = arith.mulf %378, %382 : vector<16x16xf32>
    %384 = arith.truncf %383 : vector<16x16xf32> to vector<16x16xbf16>
    "tpu.trace_start"() <{level = 10 : i32, message = "qk,kd->qd"}> : () -> ()
    %cst_192 = arith.constant dense<0.000000e+00> : vector<16x24xf32>
    %385 = tpu.matmul %384, %371, %cst_192 {dimension_numbers = #tpu.dot_dimension_numbers<[1], [0], [0], [1], [0, 0, 1, 1], [], []>} : vector<16x16xbf16>, vector<16x24xbf16>, vector<16x24xf32> -> vector<16x24xf32>
    "tpu.trace_stop"() : () -> ()
    %386 = arith.truncf %385 : vector<16x24xf32> to vector<16x24xbf16>
    %387 = vector.extract_strided_slice %273 {offsets = [48, 0], sizes = [24, 96], strides = [1, 1]} : vector<96x96xbf16> to vector<24x96xbf16>
    %cst_193 = arith.constant dense<0.000000e+00> : vector<16x96xf32>
    %388 = tpu.matmul %386, %387, %cst_193 {dimension_numbers = #tpu.dot_dimension_numbers<[1], [0], [0], [1], [0, 0, 1, 1], [], []>} : vector<16x24xbf16>, vector<24x96xbf16>, vector<16x96xf32> -> vector<16x96xf32>
    %389 = arith.addf %365, %388 : vector<16x96xf32>
    %390 = vector.extract_strided_slice %316 {offsets = [0, 72], sizes = [16, 24], strides = [1, 1]} : vector<16x96xf32> to vector<16x24xf32>
    %391 = arith.truncf %390 : vector<16x24xf32> to vector<16x24xbf16>
    %392 = vector.extract_strided_slice %317 {offsets = [0, 72], sizes = [16, 24], strides = [1, 1]} : vector<16x96xf32> to vector<16x24xf32>
    %393 = arith.truncf %392 : vector<16x24xf32> to vector<16x24xbf16>
    %394 = vector.extract_strided_slice %318 {offsets = [0, 72], sizes = [16, 24], strides = [1, 1]} : vector<16x96xf32> to vector<16x24xf32>
    %395 = arith.truncf %394 : vector<16x24xf32> to vector<16x24xbf16>
    "tpu.trace_start"() <{level = 10 : i32, message = "qd,kd->qk"}> : () -> ()
    %cst_194 = arith.constant dense<0.000000e+00> : vector<16x16xf32>
    %396 = tpu.matmul %391, %393, %cst_194 {dimension_numbers = #tpu.dot_dimension_numbers<[1], [1], [0], [0], [0, 0, 1, 0], [], []>} : vector<16x24xbf16>, vector<16x24xbf16>, vector<16x16xf32> -> vector<16x16xf32>
    "tpu.trace_stop"() : () -> ()
    %397 = arith.addf %396, %0 : vector<16x16xf32>
    %cst_195 = arith.constant dense<0xFF800000> : vector<16xf32>
    %398 = vector.multi_reduction <maximumf>, %397, %cst_195 [1] : vector<16x16xf32> to vector<16xf32>
    %399 = vector.shape_cast %398 : vector<16xf32> to vector<16x1xf32>
    %400 = vector.broadcast %399 : vector<16x1xf32> to vector<16x16xf32>
    %401 = arith.subf %397, %400 : vector<16x16xf32>
    %402 = math.exp %401 : vector<16x16xf32>
    %cst_196 = arith.constant dense<0.000000e+00> : vector<16xf32>
    %403 = vector.multi_reduction <add>, %402, %cst_196 [1] : vector<16x16xf32> to vector<16xf32>
    %404 = vector.shape_cast %403 : vector<16xf32> to vector<16x1xf32>
    %405 = tpu.reciprocal %404 {approx = true} : vector<16x1xf32> -> vector<16x1xf32>
    %406 = vector.broadcast %405 : vector<16x1xf32> to vector<16x16xf32>
    %407 = arith.mulf %402, %406 : vector<16x16xf32>
    %408 = arith.truncf %407 : vector<16x16xf32> to vector<16x16xbf16>
    "tpu.trace_start"() <{level = 10 : i32, message = "qk,kd->qd"}> : () -> ()
    %cst_197 = arith.constant dense<0.000000e+00> : vector<16x24xf32>
    %409 = tpu.matmul %408, %395, %cst_197 {dimension_numbers = #tpu.dot_dimension_numbers<[1], [0], [0], [1], [0, 0, 1, 1], [], []>} : vector<16x16xbf16>, vector<16x24xbf16>, vector<16x24xf32> -> vector<16x24xf32>
    "tpu.trace_stop"() : () -> ()
    %410 = arith.truncf %409 : vector<16x24xf32> to vector<16x24xbf16>
    %411 = vector.extract_strided_slice %273 {offsets = [72, 0], sizes = [24, 96], strides = [1, 1]} : vector<96x96xbf16> to vector<24x96xbf16>
    %cst_198 = arith.constant dense<0.000000e+00> : vector<16x96xf32>
    %412 = tpu.matmul %410, %411, %cst_198 {dimension_numbers = #tpu.dot_dimension_numbers<[1], [0], [0], [1], [0, 0, 1, 1], [], []>} : vector<16x24xbf16>, vector<24x96xbf16>, vector<16x96xf32> -> vector<16x96xf32>
    %413 = arith.addf %389, %412 : vector<16x96xf32>
    %414 = vector.broadcast %275 : vector<1x96xf32> to vector<16x96xf32>
    %415 = arith.addf %413, %414 : vector<16x96xf32>
    %416 = arith.addf %263, %415 : vector<16x96xf32>
    %cst_199 = arith.constant dense<0.000000e+00> : vector<16xf32>
    %417 = vector.multi_reduction <add>, %416, %cst_199 [1] : vector<16x96xf32> to vector<16xf32>
    %418 = vector.shape_cast %417 : vector<16xf32> to vector<16x1xf32>
    %cst_200 = arith.constant 9.600000e+01 : f32
    %419 = vector.broadcast %cst_200 : f32 to vector<16x1xf32>
    %420 = arith.divf %418, %419 : vector<16x1xf32>
    %421 = vector.broadcast %420 : vector<16x1xf32> to vector<16x96xf32>
    %422 = arith.subf %416, %421 : vector<16x96xf32>
    %423 = arith.mulf %422, %422 : vector<16x96xf32>
    %cst_201 = arith.constant dense<0.000000e+00> : vector<16xf32>
    %424 = vector.multi_reduction <add>, %423, %cst_201 [1] : vector<16x96xf32> to vector<16xf32>
    %425 = vector.shape_cast %424 : vector<16xf32> to vector<16x1xf32>
    %cst_202 = arith.constant 9.600000e+01 : f32
    %426 = vector.broadcast %cst_202 : f32 to vector<16x1xf32>
    %427 = arith.divf %425, %426 : vector<16x1xf32>
    %428 = vector.broadcast %420 : vector<16x1xf32> to vector<16x96xf32>
    %429 = arith.subf %416, %428 : vector<16x96xf32>
    %cst_203 = arith.constant 9.99999974E-6 : f32
    %430 = vector.broadcast %cst_203 : f32 to vector<16x1xf32>
    %431 = arith.addf %427, %430 : vector<16x1xf32>
    %432 = math.rsqrt %431 : vector<16x1xf32>
    %433 = vector.broadcast %432 : vector<16x1xf32> to vector<16x96xf32>
    %434 = arith.mulf %429, %433 : vector<16x96xf32>
    %435 = vector.broadcast %277 : vector<1x96xf32> to vector<16x96xf32>
    %436 = arith.mulf %434, %435 : vector<16x96xf32>
    %437 = vector.broadcast %279 : vector<1x96xf32> to vector<16x96xf32>
    %438 = arith.addf %436, %437 : vector<16x96xf32>
    %439 = arith.truncf %438 : vector<16x96xf32> to vector<16x96xbf16>
    %cst_204 = arith.constant dense<0.000000e+00> : vector<16x384xf32>
    %440 = tpu.matmul %439, %281, %cst_204 {dimension_numbers = #tpu.dot_dimension_numbers<[1], [0], [0], [1], [0, 0, 1, 1], [], []>} : vector<16x96xbf16>, vector<96x384xbf16>, vector<16x384xf32> -> vector<16x384xf32>
    %441 = vector.broadcast %283 : vector<1x384xf32> to vector<16x384xf32>
    %442 = arith.addf %440, %441 : vector<16x384xf32>
    %cst_205 = arith.constant 1.702000e+00 : f32
    %443 = vector.broadcast %cst_205 : f32 to vector<16x384xf32>
    %444 = arith.mulf %443, %442 : vector<16x384xf32>
    %445 = arith.negf %444 : vector<16x384xf32>
    %446 = math.exp %445 : vector<16x384xf32>
    %cst_206 = arith.constant 1.000000e+00 : f32
    %447 = vector.broadcast %cst_206 : f32 to vector<16x384xf32>
    %448 = arith.addf %447, %446 : vector<16x384xf32>
    %449 = arith.divf %447, %448 : vector<16x384xf32>
    %450 = arith.mulf %442, %449 : vector<16x384xf32>
    %451 = arith.truncf %450 : vector<16x384xf32> to vector<16x384xbf16>
    %cst_207 = arith.constant dense<0.000000e+00> : vector<16x96xf32>
    %452 = tpu.matmul %451, %285, %cst_207 {dimension_numbers = #tpu.dot_dimension_numbers<[1], [0], [0], [1], [0, 0, 1, 1], [], []>} : vector<16x384xbf16>, vector<384x96xbf16>, vector<16x96xf32> -> vector<16x96xf32>
    %453 = vector.broadcast %287 : vector<1x96xf32> to vector<16x96xf32>
    %454 = arith.addf %452, %453 : vector<16x96xf32>
    %455 = arith.addf %416, %454 : vector<16x96xf32>
    %c0_208 = arith.constant 0 : index
    %c0_209 = arith.constant 0 : index
    %456 = vector.load %arg30[%c0_208, %c0_209] : memref<16x96xf32, #tpu.memory_space<vmem>>, vector<16x96xf32>
    tpu.vector_store %arg30[%c0_208, %c0_209], %455 {strides = array<i32>} : memref<16x96xf32, #tpu.memory_space<vmem>>, vector<16x96xf32>,
    %c0_210 = arith.constant 0 : index
    %c0_211 = arith.constant 0 : index
    %457 = vector.load %arg30[%c0_210, %c0_211] : memref<16x96xf32, #tpu.memory_space<vmem>>, vector<1x96xf32>
    %c8_212 = arith.constant 8 : index
    %c0_213 = arith.constant 0 : index
    %458 = vector.load %arg30[%c8_212, %c0_213] : memref<16x96xf32, #tpu.memory_space<vmem>>, vector<1x96xf32>
    %459 = tpu.concatenate %457, %458 in 0 : vector<1x96xf32>, vector<1x96xf32> -> vector<2x96xf32>
    %c0_214 = arith.constant 0 : index
    %c0_215 = arith.constant 0 : index
    %460 = vector.load %arg26[%c0_214, %c0_215] : memref<1x96xf32, #tpu.memory_space<vmem>>, vector<1x96xf32>
    %c0_216 = arith.constant 0 : index
    %c0_217 = arith.constant 0 : index
    %461 = vector.load %arg27[%c0_216, %c0_217] : memref<1x96xf32, #tpu.memory_space<vmem>>, vector<1x96xf32>
    %cst_218 = arith.constant dense<0.000000e+00> : vector<2xf32>
    %462 = vector.multi_reduction <add>, %459, %cst_218 [1] : vector<2x96xf32> to vector<2xf32>
    %463 = vector.shape_cast %462 : vector<2xf32> to vector<2x1xf32>
    %cst_219 = arith.constant 9.600000e+01 : f32
    %464 = vector.broadcast %cst_219 : f32 to vector<2x1xf32>
    %465 = arith.divf %463, %464 : vector<2x1xf32>
    %466 = vector.broadcast %465 : vector<2x1xf32> to vector<2x96xf32>
    %467 = arith.subf %459, %466 : vector<2x96xf32>
    %468 = arith.mulf %467, %467 : vector<2x96xf32>
    %cst_220 = arith.constant dense<0.000000e+00> : vector<2xf32>
    %469 = vector.multi_reduction <add>, %468, %cst_220 [1] : vector<2x96xf32> to vector<2xf32>
    %470 = vector.shape_cast %469 : vector<2xf32> to vector<2x1xf32>
    %cst_221 = arith.constant 9.600000e+01 : f32
    %471 = vector.broadcast %cst_221 : f32 to vector<2x1xf32>
    %472 = arith.divf %470, %471 : vector<2x1xf32>
    %473 = vector.broadcast %465 : vector<2x1xf32> to vector<2x96xf32>
    %474 = arith.subf %459, %473 : vector<2x96xf32>
    %cst_222 = arith.constant 9.99999974E-6 : f32
    %475 = vector.broadcast %cst_222 : f32 to vector<2x1xf32>
    %476 = arith.addf %472, %475 : vector<2x1xf32>
    %477 = math.rsqrt %476 : vector<2x1xf32>
    %478 = vector.broadcast %477 : vector<2x1xf32> to vector<2x96xf32>
    %479 = arith.mulf %474, %478 : vector<2x96xf32>
    %480 = vector.broadcast %460 : vector<1x96xf32> to vector<2x96xf32>
    %481 = arith.mulf %479, %480 : vector<2x96xf32>
    %482 = vector.broadcast %461 : vector<1x96xf32> to vector<2x96xf32>
    %483 = arith.addf %481, %482 : vector<2x96xf32>
    %c0_223 = arith.constant 0 : index
    %c0_224 = arith.constant 0 : index
    %484 = vector.load %arg28[%c0_223, %c0_224] : memref<96x64xbf16, #tpu.memory_space<vmem>>, vector<96x64xbf16>
    %485 = arith.truncf %483 : vector<2x96xf32> to vector<2x96xbf16>
    %cst_225 = arith.constant dense<0.000000e+00> : vector<2x64xf32>
    %486 = tpu.matmul %485, %484, %cst_225 {dimension_numbers = #tpu.dot_dimension_numbers<[1], [0], [0], [1], [0, 0, 1, 1], [], []>} : vector<2x96xbf16>, vector<96x64xbf16>, vector<2x64xf32> -> vector<2x64xf32>
    %c0_226 = arith.constant 0 : index
    %c0_227 = arith.constant 0 : index
    %487 = vector.load %arg29[%c0_226, %c0_227] : memref<2x64xf32, #tpu.memory_space<vmem>>, vector<2x64xf32>
    tpu.vector_store %arg29[%c0_226, %c0_227], %486 {strides = array<i32>} : memref<2x64xf32, #tpu.memory_space<vmem>>, vector<2x64xf32>,
    return
  }
  func.func @transform_0(%arg0: i32) -> (i32, i32) {
    %c0_i32 = arith.constant 0 : i32
    %c0_i32_0 = arith.constant 0 : i32
    %c0_i32_1 = arith.constant 0 : i32
    return %c0_i32, %c0_i32_0 : i32, i32
  }
  func.func @transform_1(%arg0: i32) -> (i32, i32) {
    %c0_i32 = arith.constant 0 : i32
    %c0_i32_0 = arith.constant 0 : i32
    %c0_i32_1 = arith.constant 0 : i32
    return %c0_i32, %c0_i32_0 : i32, i32
  }
  func.func @transform_2(%arg0: i32) -> (i32, i32) {
    %c0_i32 = arith.constant 0 : i32
    %c0_i32_0 = arith.constant 0 : i32
    %c0_i32_1 = arith.constant 0 : i32
    return %c0_i32, %c0_i32_0 : i32, i32
  }
  func.func @transform_3(%arg0: i32) -> (i32, i32) {
    %c0_i32 = arith.constant 0 : i32
    %c0_i32_0 = arith.constant 0 : i32
    %c0_i32_1 = arith.constant 0 : i32
    return %c0_i32, %c0_i32_0 : i32, i32
  }
  func.func @transform_4(%arg0: i32) -> (i32, i32) {
    %c0_i32 = arith.constant 0 : i32
    %c0_i32_0 = arith.constant 0 : i32
    %c0_i32_1 = arith.constant 0 : i32
    return %c0_i32, %c0_i32_0 : i32, i32
  }
  func.func @transform_5(%arg0: i32) -> (i32, i32) {
    %c0_i32 = arith.constant 0 : i32
    %c0_i32_0 = arith.constant 0 : i32
    %c0_i32_1 = arith.constant 0 : i32
    return %c0_i32, %c0_i32_0 : i32, i32
  }
  func.func @transform_6(%arg0: i32) -> (i32, i32) {
    %c0_i32 = arith.constant 0 : i32
    %c0_i32_0 = arith.constant 0 : i32
    %c0_i32_1 = arith.constant 0 : i32
    return %c0_i32, %c0_i32_0 : i32, i32
  }
  func.func @transform_7(%arg0: i32) -> (i32, i32) {
    %c0_i32 = arith.constant 0 : i32
    %c0_i32_0 = arith.constant 0 : i32
    %c0_i32_1 = arith.constant 0 : i32
    return %c0_i32, %c0_i32_0 : i32, i32
  }
  func.func @transform_8(%arg0: i32) -> (i32, i32) {
    %c0_i32 = arith.constant 0 : i32
    %c0_i32_0 = arith.constant 0 : i32
    %c0_i32_1 = arith.constant 0 : i32
    return %c0_i32, %c0_i32_0 : i32, i32
  }
  func.func @transform_9(%arg0: i32) -> (i32, i32) {
    %c0_i32 = arith.constant 0 : i32
    %c0_i32_0 = arith.constant 0 : i32
    %c0_i32_1 = arith.constant 0 : i32
    return %c0_i32, %c0_i32_0 : i32, i32
  }
  func.func @transform_10(%arg0: i32) -> (i32, i32, i32) {
    %c0_i32 = arith.constant 0 : i32
    %c0_i32_0 = arith.constant 0 : i32
    %c0_i32_1 = arith.constant 0 : i32
    %c0_i32_2 = arith.constant 0 : i32
    return %c0_i32, %c0_i32_0, %c0_i32_1 : i32, i32, i32
  }
  func.func @transform_11(%arg0: i32) -> (i32, i32, i32) {
    %c0_i32 = arith.constant 0 : i32
    %c0_i32_0 = arith.constant 0 : i32
    %c0_i32_1 = arith.constant 0 : i32
    %c0_i32_2 = arith.constant 0 : i32
    return %c0_i32, %c0_i32_0, %c0_i32_1 : i32, i32, i32
  }
  func.func @transform_12(%arg0: i32) -> (i32, i32, i32) {
    %c0_i32 = arith.constant 0 : i32
    %c0_i32_0 = arith.constant 0 : i32
    %c0_i32_1 = arith.constant 0 : i32
    %c0_i32_2 = arith.constant 0 : i32
    return %c0_i32, %c0_i32_0, %c0_i32_1 : i32, i32, i32
  }
  func.func @transform_13(%arg0: i32) -> (i32, i32, i32) {
    %c0_i32 = arith.constant 0 : i32
    %c0_i32_0 = arith.constant 0 : i32
    %c0_i32_1 = arith.constant 0 : i32
    %c0_i32_2 = arith.constant 0 : i32
    return %c0_i32, %c0_i32_0, %c0_i32_1 : i32, i32, i32
  }
  func.func @transform_14(%arg0: i32) -> (i32, i32, i32) {
    %c0_i32 = arith.constant 0 : i32
    %c0_i32_0 = arith.constant 0 : i32
    %c0_i32_1 = arith.constant 0 : i32
    %c0_i32_2 = arith.constant 0 : i32
    return %c0_i32, %c0_i32_0, %c0_i32_1 : i32, i32, i32
  }
  func.func @transform_15(%arg0: i32) -> (i32, i32, i32) {
    %c0_i32 = arith.constant 0 : i32
    %c0_i32_0 = arith.constant 0 : i32
    %c0_i32_1 = arith.constant 0 : i32
    %c0_i32_2 = arith.constant 0 : i32
    return %c0_i32, %c0_i32_0, %c0_i32_1 : i32, i32, i32
  }
  func.func @transform_16(%arg0: i32) -> (i32, i32, i32) {
    %c0_i32 = arith.constant 0 : i32
    %c0_i32_0 = arith.constant 0 : i32
    %c0_i32_1 = arith.constant 0 : i32
    %c0_i32_2 = arith.constant 0 : i32
    return %c0_i32, %c0_i32_0, %c0_i32_1 : i32, i32, i32
  }
  func.func @transform_17(%arg0: i32) -> (i32, i32, i32) {
    %c0_i32 = arith.constant 0 : i32
    %c0_i32_0 = arith.constant 0 : i32
    %c0_i32_1 = arith.constant 0 : i32
    %c0_i32_2 = arith.constant 0 : i32
    return %c0_i32, %c0_i32_0, %c0_i32_1 : i32, i32, i32
  }
  func.func @transform_18(%arg0: i32) -> (i32, i32, i32) {
    %c0_i32 = arith.constant 0 : i32
    %c0_i32_0 = arith.constant 0 : i32
    %c0_i32_1 = arith.constant 0 : i32
    %c0_i32_2 = arith.constant 0 : i32
    return %c0_i32, %c0_i32_0, %c0_i32_1 : i32, i32, i32
  }
  func.func @transform_19(%arg0: i32) -> (i32, i32, i32) {
    %c0_i32 = arith.constant 0 : i32
    %c0_i32_0 = arith.constant 0 : i32
    %c0_i32_1 = arith.constant 0 : i32
    %c0_i32_2 = arith.constant 0 : i32
    return %c0_i32, %c0_i32_0, %c0_i32_1 : i32, i32, i32
  }
  func.func @transform_20(%arg0: i32) -> (i32, i32, i32) {
    %c0_i32 = arith.constant 0 : i32
    %c0_i32_0 = arith.constant 0 : i32
    %c0_i32_1 = arith.constant 0 : i32
    %c0_i32_2 = arith.constant 0 : i32
    return %c0_i32, %c0_i32_0, %c0_i32_1 : i32, i32, i32
  }
  func.func @transform_21(%arg0: i32) -> (i32, i32, i32) {
    %c0_i32 = arith.constant 0 : i32
    %c0_i32_0 = arith.constant 0 : i32
    %c0_i32_1 = arith.constant 0 : i32
    %c0_i32_2 = arith.constant 0 : i32
    return %c0_i32, %c0_i32_0, %c0_i32_1 : i32, i32, i32
  }
  func.func @transform_22(%arg0: i32) -> (i32, i32, i32) {
    %c0_i32 = arith.constant 0 : i32
    %c0_i32_0 = arith.constant 0 : i32
    %c0_i32_1 = arith.constant 0 : i32
    %c0_i32_2 = arith.constant 0 : i32
    return %c0_i32, %c0_i32_0, %c0_i32_1 : i32, i32, i32
  }
  func.func @transform_23(%arg0: i32) -> (i32, i32, i32) {
    %c0_i32 = arith.constant 0 : i32
    %c0_i32_0 = arith.constant 0 : i32
    %c0_i32_1 = arith.constant 0 : i32
    %c0_i32_2 = arith.constant 0 : i32
    return %c0_i32, %c0_i32_0, %c0_i32_1 : i32, i32, i32
  }
  func.func @transform_24(%arg0: i32) -> (i32, i32, i32) {
    %c0_i32 = arith.constant 0 : i32
    %c0_i32_0 = arith.constant 0 : i32
    %c0_i32_1 = arith.constant 0 : i32
    %c0_i32_2 = arith.constant 0 : i32
    return %c0_i32, %c0_i32_0, %c0_i32_1 : i32, i32, i32
  }
  func.func @transform_25(%arg0: i32) -> (i32, i32) {
    %c0_i32 = arith.constant 0 : i32
    %c0_i32_0 = arith.constant 0 : i32
    %c0_i32_1 = arith.constant 0 : i32
    return %c0_i32, %c0_i32_0 : i32, i32
  }
  func.func @transform_26(%arg0: i32) -> (i32, i32) {
    %c0_i32 = arith.constant 0 : i32
    %c0_i32_0 = arith.constant 0 : i32
    %c0_i32_1 = arith.constant 0 : i32
    return %c0_i32, %c0_i32_0 : i32, i32
  }
  func.func @transform_27(%arg0: i32) -> (i32, i32) {
    %c0_i32 = arith.constant 0 : i32
    %c0_i32_0 = arith.constant 0 : i32
    %c0_i32_1 = arith.constant 0 : i32
    return %c0_i32, %c0_i32_0 : i32, i32
  }
  func.func @transform_28(%arg0: i32) -> (i32, i32) {
    %c0_i32 = arith.constant 0 : i32
    %c0_i32_0 = arith.constant 0 : i32
    %c0_i32_1 = arith.constant 0 : i32
    return %c0_i32, %c0_i32_0 : i32, i32
  }
}

module attributes {stable_mosaic.version = 11 : i64} {
  func.func @_clip_logits_kernel(%arg0: i32, %arg1: memref<2x64xf32, #tpu.memory_space<vmem>>, %arg2: memref<3x64xf32, #tpu.memory_space<vmem>>, %arg3: memref<1xf32, #tpu.memory_space<smem>>, %arg4: memref<2x3xf32, #tpu.memory_space<vmem>>) attributes {dimension_semantics = [#tpu.dimension_semantics<arbitrary>], iteration_bounds = array<i64: 1>, scalar_prefetch = 0 : i64, scratch_operands = 0 : i64, tpu.core_type = #tpu.core_type<tc>, window_params = [{pipeline_mode = #tpu.pipeline_mode<synchronous>, transform_indices = @transform_0, window_bounds = array<i64: 2, 64>}, {pipeline_mode = #tpu.pipeline_mode<synchronous>, transform_indices = @transform_1, window_bounds = array<i64: 3, 64>}, {transform_indices = @transform_2, window_bounds = array<i64: 1>}, {pipeline_mode = #tpu.pipeline_mode<synchronous>, transform_indices = @transform_3, window_bounds = array<i64: 2, 3>}]} {
    %c0 = arith.constant 0 : index
    %c0_0 = arith.constant 0 : index
    %0 = vector.load %arg1[%c0, %c0_0] : memref<2x64xf32, #tpu.memory_space<vmem>>, vector<2x64xf32>
    %c0_1 = arith.constant 0 : index
    %c0_2 = arith.constant 0 : index
    %1 = vector.load %arg2[%c0_1, %c0_2] : memref<3x64xf32, #tpu.memory_space<vmem>>, vector<3x64xf32>
    %2 = arith.mulf %0, %0 : vector<2x64xf32>
    %cst = arith.constant dense<0.000000e+00> : vector<2xf32>
    %3 = vector.multi_reduction <add>, %2, %cst [1] : vector<2x64xf32> to vector<2xf32>
    %4 = vector.shape_cast %3 : vector<2xf32> to vector<2x1xf32>
    %cst_3 = arith.constant 9.99999996E-13 : f32
    %5 = vector.broadcast %cst_3 : f32 to vector<2x1xf32>
    %6 = arith.addf %4, %5 : vector<2x1xf32>
    %7 = math.rsqrt %6 : vector<2x1xf32>
    %8 = vector.broadcast %7 : vector<2x1xf32> to vector<2x64xf32>
    %9 = arith.mulf %0, %8 : vector<2x64xf32>
    %10 = arith.mulf %1, %1 : vector<3x64xf32>
    %cst_4 = arith.constant dense<0.000000e+00> : vector<3xf32>
    %11 = vector.multi_reduction <add>, %10, %cst_4 [1] : vector<3x64xf32> to vector<3xf32>
    %12 = vector.shape_cast %11 : vector<3xf32> to vector<3x1xf32>
    %cst_5 = arith.constant 9.99999996E-13 : f32
    %13 = vector.broadcast %cst_5 : f32 to vector<3x1xf32>
    %14 = arith.addf %12, %13 : vector<3x1xf32>
    %15 = math.rsqrt %14 : vector<3x1xf32>
    %16 = vector.broadcast %15 : vector<3x1xf32> to vector<3x64xf32>
    %17 = arith.mulf %1, %16 : vector<3x64xf32>
    %18 = arith.truncf %9 : vector<2x64xf32> to vector<2x64xbf16>
    %19 = arith.truncf %17 : vector<3x64xf32> to vector<3x64xbf16>
    "tpu.trace_start"() <{level = 10 : i32, message = "bd,cd->bc"}> : () -> ()
    %cst_6 = arith.constant dense<0.000000e+00> : vector<2x3xf32>
    %20 = tpu.matmul %18, %19, %cst_6 {dimension_numbers = #tpu.dot_dimension_numbers<[1], [1], [0], [0], [0, 0, 1, 0], [], []>} : vector<2x64xbf16>, vector<3x64xbf16>, vector<2x3xf32> -> vector<2x3xf32>
    "tpu.trace_stop"() : () -> ()
    %c0_7 = arith.constant 0 : index
    %21 = memref.load %arg3[%c0_7] : memref<1xf32, #tpu.memory_space<smem>>
    %22 = vector.broadcast %21 : f32 to vector<2x3xf32>
    %23 = arith.mulf %22, %20 : vector<2x3xf32>
    %c0_8 = arith.constant 0 : index
    %c0_9 = arith.constant 0 : index
    %24 = vector.load %arg4[%c0_8, %c0_9] : memref<2x3xf32, #tpu.memory_space<vmem>>, vector<2x3xf32>
    tpu.vector_store %arg4[%c0_8, %c0_9], %23 {strides = array<i32>} : memref<2x3xf32, #tpu.memory_space<vmem>>, vector<2x3xf32>,
    return
  }
  func.func @transform_0(%arg0: i32) -> (i32, i32) {
    %c0_i32 = arith.constant 0 : i32
    %c0_i32_0 = arith.constant 0 : i32
    %c0_i32_1 = arith.constant 0 : i32
    return %c0_i32, %c0_i32_0 : i32, i32
  }
  func.func @transform_1(%arg0: i32) -> (i32, i32) {
    %c0_i32 = arith.constant 0 : i32
    %c0_i32_0 = arith.constant 0 : i32
    %c0_i32_1 = arith.constant 0 : i32
    return %c0_i32, %c0_i32_0 : i32, i32
  }
  func.func @transform_2(%arg0: i32) -> i32 {
    %c0_i32 = arith.constant 0 : i32
    %c0_i32_0 = arith.constant 0 : i32
    return %c0_i32 : i32
  }
  func.func @transform_3(%arg0: i32) -> (i32, i32) {
    %c0_i32 = arith.constant 0 : i32
    %c0_i32_0 = arith.constant 0 : i32
    %c0_i32_1 = arith.constant 0 : i32
    return %c0_i32, %c0_i32_0 : i32, i32
  }
}

module attributes {stable_mosaic.version = 11 : i64} {
  func.func @_text_encoder_kernel(%arg0: i32, %arg1: memref<24x64xf32, #tpu.memory_space<vmem>>, %arg2: memref<24x64xf32, #tpu.memory_space<vmem>>, %arg3: memref<24x24xf32, #tpu.memory_space<vmem>>, %arg4: memref<3xi32, #tpu.memory_space<smem>>, %arg5: memref<1x2x64xf32, #tpu.memory_space<vmem>>, %arg6: memref<2x1x64xf32, #tpu.memory_space<vmem>>, %arg7: memref<2x1x64xf32, #tpu.memory_space<vmem>>, %arg8: memref<2x64x192xbf16, #tpu.memory_space<vmem>>, %arg9: memref<2x1x192xf32, #tpu.memory_space<vmem>>, %arg10: memref<2x64x64xbf16, #tpu.memory_space<vmem>>, %arg11: memref<2x1x64xf32, #tpu.memory_space<vmem>>, %arg12: memref<2x1x64xf32, #tpu.memory_space<vmem>>, %arg13: memref<2x1x64xf32, #tpu.memory_space<vmem>>, %arg14: memref<2x64x256xbf16, #tpu.memory_space<vmem>>, %arg15: memref<2x1x256xf32, #tpu.memory_space<vmem>>, %arg16: memref<2x256x64xbf16, #tpu.memory_space<vmem>>, %arg17: memref<2x1x64xf32, #tpu.memory_space<vmem>>, %arg18: memref<1x64xf32, #tpu.memory_space<vmem>>, %arg19: memref<1x64xf32, #tpu.memory_space<vmem>>, %arg20: memref<64x64xbf16, #tpu.memory_space<vmem>>, %arg21: memref<3x64xf32, #tpu.memory_space<vmem>>, %arg22: memref<24x64xf32, #tpu.memory_space<vmem>>) attributes {dimension_semantics = [#tpu.dimension_semantics<arbitrary>], iteration_bounds = array<i64: 1>, scalar_prefetch = 0 : i64, scratch_operands = 1 : i64, tpu.core_type = #tpu.core_type<tc>, window_params = [{pipeline_mode = #tpu.pipeline_mode<synchronous>, transform_indices = @transform_0, window_bounds = array<i64: 24, 64>}, {pipeline_mode = #tpu.pipeline_mode<synchronous>, transform_indices = @transform_1, window_bounds = array<i64: 24, 64>}, {pipeline_mode = #tpu.pipeline_mode<synchronous>, transform_indices = @transform_2, window_bounds = array<i64: 24, 24>}, {transform_indices = @transform_3, window_bounds = array<i64: 3>}, {pipeline_mode = #tpu.pipeline_mode<synchronous>, transform_indices = @transform_4, window_bounds = array<i64: 1, 2, 64>}, {pipeline_mode = #tpu.pipeline_mode<synchronous>, transform_indices = @transform_5, window_bounds = array<i64: 2, 1, 64>}, {pipeline_mode = #tpu.pipeline_mode<synchronous>, transform_indices = @transform_6, window_bounds = array<i64: 2, 1, 64>}, {pipeline_mode = #tpu.pipeline_mode<synchronous>, transform_indices = @transform_7, window_bounds = array<i64: 2, 64, 192>}, {pipeline_mode = #tpu.pipeline_mode<synchronous>, transform_indices = @transform_8, window_bounds = array<i64: 2, 1, 192>}, {pipeline_mode = #tpu.pipeline_mode<synchronous>, transform_indices = @transform_9, window_bounds = array<i64: 2, 64, 64>}, {pipeline_mode = #tpu.pipeline_mode<synchronous>, transform_indices = @transform_10, window_bounds = array<i64: 2, 1, 64>}, {pipeline_mode = #tpu.pipeline_mode<synchronous>, transform_indices = @transform_11, window_bounds = array<i64: 2, 1, 64>}, {pipeline_mode = #tpu.pipeline_mode<synchronous>, transform_indices = @transform_12, window_bounds = array<i64: 2, 1, 64>}, {pipeline_mode = #tpu.pipeline_mode<synchronous>, transform_indices = @transform_13, window_bounds = array<i64: 2, 64, 256>}, {pipeline_mode = #tpu.pipeline_mode<synchronous>, transform_indices = @transform_14, window_bounds = array<i64: 2, 1, 256>}, {pipeline_mode = #tpu.pipeline_mode<synchronous>, transform_indices = @transform_15, window_bounds = array<i64: 2, 256, 64>}, {pipeline_mode = #tpu.pipeline_mode<synchronous>, transform_indices = @transform_16, window_bounds = array<i64: 2, 1, 64>}, {pipeline_mode = #tpu.pipeline_mode<synchronous>, transform_indices = @transform_17, window_bounds = array<i64: 1, 64>}, {pipeline_mode = #tpu.pipeline_mode<synchronous>, transform_indices = @transform_18, window_bounds = array<i64: 1, 64>}, {pipeline_mode = #tpu.pipeline_mode<synchronous>, transform_indices = @transform_19, window_bounds = array<i64: 64, 64>}, {pipeline_mode = #tpu.pipeline_mode<synchronous>, transform_indices = @transform_20, window_bounds = array<i64: 3, 64>}]} {
    %c0 = arith.constant 0 : index
    %c0_0 = arith.constant 0 : index
    %0 = vector.load %arg3[%c0, %c0_0] : memref<24x24xf32, #tpu.memory_space<vmem>>, vector<24x24xf32>
    %c0_1 = arith.constant 0 : index
    %c0_2 = arith.constant 0 : index
    %1 = vector.load %arg1[%c0_1, %c0_2] : memref<24x64xf32, #tpu.memory_space<vmem>>, vector<24x64xf32>
    %c0_3 = arith.constant 0 : index
    %c0_4 = arith.constant 0 : index
    %2 = vector.load %arg2[%c0_3, %c0_4] : memref<24x64xf32, #tpu.memory_space<vmem>>, vector<24x64xf32>
    %3 = arith.addf %1, %2 : vector<24x64xf32>
    %c0_5 = arith.constant 0 : index
    %c0_6 = arith.constant 0 : index
    %4 = vector.load %arg22[%c0_5, %c0_6] : memref<24x64xf32, #tpu.memory_space<vmem>>, vector<24x64xf32>
    tpu.vector_store %arg22[%c0_5, %c0_6], %3 {strides = array<i32>} : memref<24x64xf32, #tpu.memory_space<vmem>>, vector<24x64xf32>,
    %c0_7 = arith.constant 0 : index
    %c0_8 = arith.constant 0 : index
    %5 = vector.load %arg22[%c0_7, %c0_8] : memref<24x64xf32, #tpu.memory_space<vmem>>, vector<24x64xf32>
    %c0_9 = arith.constant 0 : index
    %c0_10 = arith.constant 0 : index
    %c0_11 = arith.constant 0 : index
    %6 = vector.load %arg6[%c0_9, %c0_10, %c0_11] : memref<2x1x64xf32, #tpu.memory_space<vmem>>, vector<1x1x64xf32>
    %7 = vector.shape_cast %6 : vector<1x1x64xf32> to vector<1x64xf32>
    %c0_12 = arith.constant 0 : index
    %c0_13 = arith.constant 0 : index
    %c0_14 = arith.constant 0 : index
    %8 = vector.load %arg7[%c0_12, %c0_13, %c0_14] : memref<2x1x64xf32, #tpu.memory_space<vmem>>, vector<1x1x64xf32>
    %9 = vector.shape_cast %8 : vector<1x1x64xf32> to vector<1x64xf32>
    %c0_15 = arith.constant 0 : index
    %c0_16 = arith.constant 0 : index
    %c0_17 = arith.constant 0 : index
    %10 = vector.load %arg8[%c0_15, %c0_16, %c0_17] : memref<2x64x192xbf16, #tpu.memory_space<vmem>>, vector<1x64x192xbf16>
    %11 = vector.shape_cast %10 : vector<1x64x192xbf16> to vector<64x192xbf16>
    %c0_18 = arith.constant 0 : index
    %c0_19 = arith.constant 0 : index
    %c0_20 = arith.constant 0 : index
    %12 = vector.load %arg9[%c0_18, %c0_19, %c0_20] : memref<2x1x192xf32, #tpu.memory_space<vmem>>, vector<1x1x192xf32>
    %13 = vector.shape_cast %12 : vector<1x1x192xf32> to vector<1x192xf32>
    %c0_21 = arith.constant 0 : index
    %c0_22 = arith.constant 0 : index
    %c0_23 = arith.constant 0 : index
    %14 = vector.load %arg10[%c0_21, %c0_22, %c0_23] : memref<2x64x64xbf16, #tpu.memory_space<vmem>>, vector<1x64x64xbf16>
    %15 = vector.shape_cast %14 : vector<1x64x64xbf16> to vector<64x64xbf16>
    %c0_24 = arith.constant 0 : index
    %c0_25 = arith.constant 0 : index
    %c0_26 = arith.constant 0 : index
    %16 = vector.load %arg11[%c0_24, %c0_25, %c0_26] : memref<2x1x64xf32, #tpu.memory_space<vmem>>, vector<1x1x64xf32>
    %17 = vector.shape_cast %16 : vector<1x1x64xf32> to vector<1x64xf32>
    %c0_27 = arith.constant 0 : index
    %c0_28 = arith.constant 0 : index
    %c0_29 = arith.constant 0 : index
    %18 = vector.load %arg12[%c0_27, %c0_28, %c0_29] : memref<2x1x64xf32, #tpu.memory_space<vmem>>, vector<1x1x64xf32>
    %19 = vector.shape_cast %18 : vector<1x1x64xf32> to vector<1x64xf32>
    %c0_30 = arith.constant 0 : index
    %c0_31 = arith.constant 0 : index
    %c0_32 = arith.constant 0 : index
    %20 = vector.load %arg13[%c0_30, %c0_31, %c0_32] : memref<2x1x64xf32, #tpu.memory_space<vmem>>, vector<1x1x64xf32>
    %21 = vector.shape_cast %20 : vector<1x1x64xf32> to vector<1x64xf32>
    %c0_33 = arith.constant 0 : index
    %c0_34 = arith.constant 0 : index
    %c0_35 = arith.constant 0 : index
    %22 = vector.load %arg14[%c0_33, %c0_34, %c0_35] : memref<2x64x256xbf16, #tpu.memory_space<vmem>>, vector<1x64x256xbf16>
    %23 = vector.shape_cast %22 : vector<1x64x256xbf16> to vector<64x256xbf16>
    %c0_36 = arith.constant 0 : index
    %c0_37 = arith.constant 0 : index
    %c0_38 = arith.constant 0 : index
    %24 = vector.load %arg15[%c0_36, %c0_37, %c0_38] : memref<2x1x256xf32, #tpu.memory_space<vmem>>, vector<1x1x256xf32>
    %25 = vector.shape_cast %24 : vector<1x1x256xf32> to vector<1x256xf32>
    %c0_39 = arith.constant 0 : index
    %c0_40 = arith.constant 0 : index
    %c0_41 = arith.constant 0 : index
    %26 = vector.load %arg16[%c0_39, %c0_40, %c0_41] : memref<2x256x64xbf16, #tpu.memory_space<vmem>>, vector<1x256x64xbf16>
    %27 = vector.shape_cast %26 : vector<1x256x64xbf16> to vector<256x64xbf16>
    %c0_42 = arith.constant 0 : index
    %c0_43 = arith.constant 0 : index
    %c0_44 = arith.constant 0 : index
    %28 = vector.load %arg17[%c0_42, %c0_43, %c0_44] : memref<2x1x64xf32, #tpu.memory_space<vmem>>, vector<1x1x64xf32>
    %29 = vector.shape_cast %28 : vector<1x1x64xf32> to vector<1x64xf32>
    %cst = arith.constant dense<0.000000e+00> : vector<24xf32>
    %30 = vector.multi_reduction <add>, %5, %cst [1] : vector<24x64xf32> to vector<24xf32>
    %31 = vector.shape_cast %30 : vector<24xf32> to vector<24x1xf32>
    %cst_45 = arith.constant 6.400000e+01 : f32
    %32 = vector.broadcast %cst_45 : f32 to vector<24x1xf32>
    %33 = arith.divf %31, %32 : vector<24x1xf32>
    %34 = vector.broadcast %33 : vector<24x1xf32> to vector<24x64xf32>
    %35 = arith.subf %5, %34 : vector<24x64xf32>
    %36 = arith.mulf %35, %35 : vector<24x64xf32>
    %cst_46 = arith.constant dense<0.000000e+00> : vector<24xf32>
    %37 = vector.multi_reduction <add>, %36, %cst_46 [1] : vector<24x64xf32> to vector<24xf32>
    %38 = vector.shape_cast %37 : vector<24xf32> to vector<24x1xf32>
    %cst_47 = arith.constant 6.400000e+01 : f32
    %39 = vector.broadcast %cst_47 : f32 to vector<24x1xf32>
    %40 = arith.divf %38, %39 : vector<24x1xf32>
    %41 = vector.broadcast %33 : vector<24x1xf32> to vector<24x64xf32>
    %42 = arith.subf %5, %41 : vector<24x64xf32>
    %cst_48 = arith.constant 9.99999974E-6 : f32
    %43 = vector.broadcast %cst_48 : f32 to vector<24x1xf32>
    %44 = arith.addf %40, %43 : vector<24x1xf32>
    %45 = math.rsqrt %44 : vector<24x1xf32>
    %46 = vector.broadcast %45 : vector<24x1xf32> to vector<24x64xf32>
    %47 = arith.mulf %42, %46 : vector<24x64xf32>
    %48 = vector.broadcast %7 : vector<1x64xf32> to vector<24x64xf32>
    %49 = arith.mulf %47, %48 : vector<24x64xf32>
    %50 = vector.broadcast %9 : vector<1x64xf32> to vector<24x64xf32>
    %51 = arith.addf %49, %50 : vector<24x64xf32>
    %52 = arith.truncf %51 : vector<24x64xf32> to vector<24x64xbf16>
    %cst_49 = arith.constant dense<0.000000e+00> : vector<24x192xf32>
    %53 = tpu.matmul %52, %11, %cst_49 {dimension_numbers = #tpu.dot_dimension_numbers<[1], [0], [0], [1], [0, 0, 1, 1], [], []>} : vector<24x64xbf16>, vector<64x192xbf16>, vector<24x192xf32> -> vector<24x192xf32>
    %54 = vector.broadcast %13 : vector<1x192xf32> to vector<24x192xf32>
    %55 = arith.addf %53, %54 : vector<24x192xf32>
    %56 = vector.extract_strided_slice %55 {offsets = [0, 0], sizes = [24, 64], strides = [1, 1]} : vector<24x192xf32> to vector<24x64xf32>
    %cst_50 = arith.constant 2.500000e-01 : f32
    %57 = vector.broadcast %cst_50 : f32 to vector<24x64xf32>
    %58 = arith.mulf %56, %57 : vector<24x64xf32>
    %59 = vector.extract_strided_slice %55 {offsets = [0, 64], sizes = [24, 64], strides = [1, 1]} : vector<24x192xf32> to vector<24x64xf32>
    %60 = vector.extract_strided_slice %55 {offsets = [0, 128], sizes = [24, 64], strides = [1, 1]} : vector<24x192xf32> to vector<24x64xf32>
    %61 = vector.extract_strided_slice %58 {offsets = [0, 0], sizes = [24, 16], strides = [1, 1]} : vector<24x64xf32> to vector<24x16xf32>
    %62 = arith.truncf %61 : vector<24x16xf32> to vector<24x16xbf16>
    %63 = vector.extract_strided_slice %59 {offsets = [0, 0], sizes = [24, 16], strides = [1, 1]} : vector<24x64xf32> to vector<24x16xf32>
    %64 = arith.truncf %63 : vector<24x16xf32> to vector<24x16xbf16>
    %65 = vector.extract_strided_slice %60 {offsets = [0, 0], sizes = [24, 16], strides = [1, 1]} : vector<24x64xf32> to vector<24x16xf32>
    %66 = arith.truncf %65 : vector<24x16xf32> to vector<24x16xbf16>
    "tpu.trace_start"() <{level = 10 : i32, message = "qd,kd->qk"}> : () -> ()
    %cst_51 = arith.constant dense<0.000000e+00> : vector<24x24xf32>
    %67 = tpu.matmul %62, %64, %cst_51 {dimension_numbers = #tpu.dot_dimension_numbers<[1], [1], [0], [0], [0, 0, 1, 0], [], []>} : vector<24x16xbf16>, vector<24x16xbf16>, vector<24x24xf32> -> vector<24x24xf32>
    "tpu.trace_stop"() : () -> ()
    %68 = arith.addf %67, %0 : vector<24x24xf32>
    %cst_52 = arith.constant dense<0xFF800000> : vector<24xf32>
    %69 = vector.multi_reduction <maximumf>, %68, %cst_52 [1] : vector<24x24xf32> to vector<24xf32>
    %70 = vector.shape_cast %69 : vector<24xf32> to vector<24x1xf32>
    %71 = vector.broadcast %70 : vector<24x1xf32> to vector<24x24xf32>
    %72 = arith.subf %68, %71 : vector<24x24xf32>
    %73 = math.exp %72 : vector<24x24xf32>
    %cst_53 = arith.constant dense<0.000000e+00> : vector<24xf32>
    %74 = vector.multi_reduction <add>, %73, %cst_53 [1] : vector<24x24xf32> to vector<24xf32>
    %75 = vector.shape_cast %74 : vector<24xf32> to vector<24x1xf32>
    %76 = tpu.reciprocal %75 {approx = true} : vector<24x1xf32> -> vector<24x1xf32>
    %77 = vector.broadcast %76 : vector<24x1xf32> to vector<24x24xf32>
    %78 = arith.mulf %73, %77 : vector<24x24xf32>
    %79 = arith.truncf %78 : vector<24x24xf32> to vector<24x24xbf16>
    "tpu.trace_start"() <{level = 10 : i32, message = "qk,kd->qd"}> : () -> ()
    %cst_54 = arith.constant dense<0.000000e+00> : vector<24x16xf32>
    %80 = tpu.matmul %79, %66, %cst_54 {dimension_numbers = #tpu.dot_dimension_numbers<[1], [0], [0], [1], [0, 0, 1, 1], [], []>} : vector<24x24xbf16>, vector<24x16xbf16>, vector<24x16xf32> -> vector<24x16xf32>
    "tpu.trace_stop"() : () -> ()
    %81 = arith.truncf %80 : vector<24x16xf32> to vector<24x16xbf16>
    %82 = vector.extract_strided_slice %15 {offsets = [0, 0], sizes = [16, 64], strides = [1, 1]} : vector<64x64xbf16> to vector<16x64xbf16>
    %cst_55 = arith.constant dense<0.000000e+00> : vector<24x64xf32>
    %83 = tpu.matmul %81, %82, %cst_55 {dimension_numbers = #tpu.dot_dimension_numbers<[1], [0], [0], [1], [0, 0, 1, 1], [], []>} : vector<24x16xbf16>, vector<16x64xbf16>, vector<24x64xf32> -> vector<24x64xf32>
    %84 = vector.extract_strided_slice %58 {offsets = [0, 16], sizes = [24, 16], strides = [1, 1]} : vector<24x64xf32> to vector<24x16xf32>
    %85 = arith.truncf %84 : vector<24x16xf32> to vector<24x16xbf16>
    %86 = vector.extract_strided_slice %59 {offsets = [0, 16], sizes = [24, 16], strides = [1, 1]} : vector<24x64xf32> to vector<24x16xf32>
    %87 = arith.truncf %86 : vector<24x16xf32> to vector<24x16xbf16>
    %88 = vector.extract_strided_slice %60 {offsets = [0, 16], sizes = [24, 16], strides = [1, 1]} : vector<24x64xf32> to vector<24x16xf32>
    %89 = arith.truncf %88 : vector<24x16xf32> to vector<24x16xbf16>
    "tpu.trace_start"() <{level = 10 : i32, message = "qd,kd->qk"}> : () -> ()
    %cst_56 = arith.constant dense<0.000000e+00> : vector<24x24xf32>
    %90 = tpu.matmul %85, %87, %cst_56 {dimension_numbers = #tpu.dot_dimension_numbers<[1], [1], [0], [0], [0, 0, 1, 0], [], []>} : vector<24x16xbf16>, vector<24x16xbf16>, vector<24x24xf32> -> vector<24x24xf32>
    "tpu.trace_stop"() : () -> ()
    %91 = arith.addf %90, %0 : vector<24x24xf32>
    %cst_57 = arith.constant dense<0xFF800000> : vector<24xf32>
    %92 = vector.multi_reduction <maximumf>, %91, %cst_57 [1] : vector<24x24xf32> to vector<24xf32>
    %93 = vector.shape_cast %92 : vector<24xf32> to vector<24x1xf32>
    %94 = vector.broadcast %93 : vector<24x1xf32> to vector<24x24xf32>
    %95 = arith.subf %91, %94 : vector<24x24xf32>
    %96 = math.exp %95 : vector<24x24xf32>
    %cst_58 = arith.constant dense<0.000000e+00> : vector<24xf32>
    %97 = vector.multi_reduction <add>, %96, %cst_58 [1] : vector<24x24xf32> to vector<24xf32>
    %98 = vector.shape_cast %97 : vector<24xf32> to vector<24x1xf32>
    %99 = tpu.reciprocal %98 {approx = true} : vector<24x1xf32> -> vector<24x1xf32>
    %100 = vector.broadcast %99 : vector<24x1xf32> to vector<24x24xf32>
    %101 = arith.mulf %96, %100 : vector<24x24xf32>
    %102 = arith.truncf %101 : vector<24x24xf32> to vector<24x24xbf16>
    "tpu.trace_start"() <{level = 10 : i32, message = "qk,kd->qd"}> : () -> ()
    %cst_59 = arith.constant dense<0.000000e+00> : vector<24x16xf32>
    %103 = tpu.matmul %102, %89, %cst_59 {dimension_numbers = #tpu.dot_dimension_numbers<[1], [0], [0], [1], [0, 0, 1, 1], [], []>} : vector<24x24xbf16>, vector<24x16xbf16>, vector<24x16xf32> -> vector<24x16xf32>
    "tpu.trace_stop"() : () -> ()
    %104 = arith.truncf %103 : vector<24x16xf32> to vector<24x16xbf16>
    %105 = vector.extract_strided_slice %15 {offsets = [16, 0], sizes = [16, 64], strides = [1, 1]} : vector<64x64xbf16> to vector<16x64xbf16>
    %cst_60 = arith.constant dense<0.000000e+00> : vector<24x64xf32>
    %106 = tpu.matmul %104, %105, %cst_60 {dimension_numbers = #tpu.dot_dimension_numbers<[1], [0], [0], [1], [0, 0, 1, 1], [], []>} : vector<24x16xbf16>, vector<16x64xbf16>, vector<24x64xf32> -> vector<24x64xf32>
    %107 = arith.addf %83, %106 : vector<24x64xf32>
    %108 = vector.extract_strided_slice %58 {offsets = [0, 32], sizes = [24, 16], strides = [1, 1]} : vector<24x64xf32> to vector<24x16xf32>
    %109 = arith.truncf %108 : vector<24x16xf32> to vector<24x16xbf16>
    %110 = vector.extract_strided_slice %59 {offsets = [0, 32], sizes = [24, 16], strides = [1, 1]} : vector<24x64xf32> to vector<24x16xf32>
    %111 = arith.truncf %110 : vector<24x16xf32> to vector<24x16xbf16>
    %112 = vector.extract_strided_slice %60 {offsets = [0, 32], sizes = [24, 16], strides = [1, 1]} : vector<24x64xf32> to vector<24x16xf32>
    %113 = arith.truncf %112 : vector<24x16xf32> to vector<24x16xbf16>
    "tpu.trace_start"() <{level = 10 : i32, message = "qd,kd->qk"}> : () -> ()
    %cst_61 = arith.constant dense<0.000000e+00> : vector<24x24xf32>
    %114 = tpu.matmul %109, %111, %cst_61 {dimension_numbers = #tpu.dot_dimension_numbers<[1], [1], [0], [0], [0, 0, 1, 0], [], []>} : vector<24x16xbf16>, vector<24x16xbf16>, vector<24x24xf32> -> vector<24x24xf32>
    "tpu.trace_stop"() : () -> ()
    %115 = arith.addf %114, %0 : vector<24x24xf32>
    %cst_62 = arith.constant dense<0xFF800000> : vector<24xf32>
    %116 = vector.multi_reduction <maximumf>, %115, %cst_62 [1] : vector<24x24xf32> to vector<24xf32>
    %117 = vector.shape_cast %116 : vector<24xf32> to vector<24x1xf32>
    %118 = vector.broadcast %117 : vector<24x1xf32> to vector<24x24xf32>
    %119 = arith.subf %115, %118 : vector<24x24xf32>
    %120 = math.exp %119 : vector<24x24xf32>
    %cst_63 = arith.constant dense<0.000000e+00> : vector<24xf32>
    %121 = vector.multi_reduction <add>, %120, %cst_63 [1] : vector<24x24xf32> to vector<24xf32>
    %122 = vector.shape_cast %121 : vector<24xf32> to vector<24x1xf32>
    %123 = tpu.reciprocal %122 {approx = true} : vector<24x1xf32> -> vector<24x1xf32>
    %124 = vector.broadcast %123 : vector<24x1xf32> to vector<24x24xf32>
    %125 = arith.mulf %120, %124 : vector<24x24xf32>
    %126 = arith.truncf %125 : vector<24x24xf32> to vector<24x24xbf16>
    "tpu.trace_start"() <{level = 10 : i32, message = "qk,kd->qd"}> : () -> ()
    %cst_64 = arith.constant dense<0.000000e+00> : vector<24x16xf32>
    %127 = tpu.matmul %126, %113, %cst_64 {dimension_numbers = #tpu.dot_dimension_numbers<[1], [0], [0], [1], [0, 0, 1, 1], [], []>} : vector<24x24xbf16>, vector<24x16xbf16>, vector<24x16xf32> -> vector<24x16xf32>
    "tpu.trace_stop"() : () -> ()
    %128 = arith.truncf %127 : vector<24x16xf32> to vector<24x16xbf16>
    %129 = vector.extract_strided_slice %15 {offsets = [32, 0], sizes = [16, 64], strides = [1, 1]} : vector<64x64xbf16> to vector<16x64xbf16>
    %cst_65 = arith.constant dense<0.000000e+00> : vector<24x64xf32>
    %130 = tpu.matmul %128, %129, %cst_65 {dimension_numbers = #tpu.dot_dimension_numbers<[1], [0], [0], [1], [0, 0, 1, 1], [], []>} : vector<24x16xbf16>, vector<16x64xbf16>, vector<24x64xf32> -> vector<24x64xf32>
    %131 = arith.addf %107, %130 : vector<24x64xf32>
    %132 = vector.extract_strided_slice %58 {offsets = [0, 48], sizes = [24, 16], strides = [1, 1]} : vector<24x64xf32> to vector<24x16xf32>
    %133 = arith.truncf %132 : vector<24x16xf32> to vector<24x16xbf16>
    %134 = vector.extract_strided_slice %59 {offsets = [0, 48], sizes = [24, 16], strides = [1, 1]} : vector<24x64xf32> to vector<24x16xf32>
    %135 = arith.truncf %134 : vector<24x16xf32> to vector<24x16xbf16>
    %136 = vector.extract_strided_slice %60 {offsets = [0, 48], sizes = [24, 16], strides = [1, 1]} : vector<24x64xf32> to vector<24x16xf32>
    %137 = arith.truncf %136 : vector<24x16xf32> to vector<24x16xbf16>
    "tpu.trace_start"() <{level = 10 : i32, message = "qd,kd->qk"}> : () -> ()
    %cst_66 = arith.constant dense<0.000000e+00> : vector<24x24xf32>
    %138 = tpu.matmul %133, %135, %cst_66 {dimension_numbers = #tpu.dot_dimension_numbers<[1], [1], [0], [0], [0, 0, 1, 0], [], []>} : vector<24x16xbf16>, vector<24x16xbf16>, vector<24x24xf32> -> vector<24x24xf32>
    "tpu.trace_stop"() : () -> ()
    %139 = arith.addf %138, %0 : vector<24x24xf32>
    %cst_67 = arith.constant dense<0xFF800000> : vector<24xf32>
    %140 = vector.multi_reduction <maximumf>, %139, %cst_67 [1] : vector<24x24xf32> to vector<24xf32>
    %141 = vector.shape_cast %140 : vector<24xf32> to vector<24x1xf32>
    %142 = vector.broadcast %141 : vector<24x1xf32> to vector<24x24xf32>
    %143 = arith.subf %139, %142 : vector<24x24xf32>
    %144 = math.exp %143 : vector<24x24xf32>
    %cst_68 = arith.constant dense<0.000000e+00> : vector<24xf32>
    %145 = vector.multi_reduction <add>, %144, %cst_68 [1] : vector<24x24xf32> to vector<24xf32>
    %146 = vector.shape_cast %145 : vector<24xf32> to vector<24x1xf32>
    %147 = tpu.reciprocal %146 {approx = true} : vector<24x1xf32> -> vector<24x1xf32>
    %148 = vector.broadcast %147 : vector<24x1xf32> to vector<24x24xf32>
    %149 = arith.mulf %144, %148 : vector<24x24xf32>
    %150 = arith.truncf %149 : vector<24x24xf32> to vector<24x24xbf16>
    "tpu.trace_start"() <{level = 10 : i32, message = "qk,kd->qd"}> : () -> ()
    %cst_69 = arith.constant dense<0.000000e+00> : vector<24x16xf32>
    %151 = tpu.matmul %150, %137, %cst_69 {dimension_numbers = #tpu.dot_dimension_numbers<[1], [0], [0], [1], [0, 0, 1, 1], [], []>} : vector<24x24xbf16>, vector<24x16xbf16>, vector<24x16xf32> -> vector<24x16xf32>
    "tpu.trace_stop"() : () -> ()
    %152 = arith.truncf %151 : vector<24x16xf32> to vector<24x16xbf16>
    %153 = vector.extract_strided_slice %15 {offsets = [48, 0], sizes = [16, 64], strides = [1, 1]} : vector<64x64xbf16> to vector<16x64xbf16>
    %cst_70 = arith.constant dense<0.000000e+00> : vector<24x64xf32>
    %154 = tpu.matmul %152, %153, %cst_70 {dimension_numbers = #tpu.dot_dimension_numbers<[1], [0], [0], [1], [0, 0, 1, 1], [], []>} : vector<24x16xbf16>, vector<16x64xbf16>, vector<24x64xf32> -> vector<24x64xf32>
    %155 = arith.addf %131, %154 : vector<24x64xf32>
    %156 = vector.broadcast %17 : vector<1x64xf32> to vector<24x64xf32>
    %157 = arith.addf %155, %156 : vector<24x64xf32>
    %158 = arith.addf %5, %157 : vector<24x64xf32>
    %cst_71 = arith.constant dense<0.000000e+00> : vector<24xf32>
    %159 = vector.multi_reduction <add>, %158, %cst_71 [1] : vector<24x64xf32> to vector<24xf32>
    %160 = vector.shape_cast %159 : vector<24xf32> to vector<24x1xf32>
    %cst_72 = arith.constant 6.400000e+01 : f32
    %161 = vector.broadcast %cst_72 : f32 to vector<24x1xf32>
    %162 = arith.divf %160, %161 : vector<24x1xf32>
    %163 = vector.broadcast %162 : vector<24x1xf32> to vector<24x64xf32>
    %164 = arith.subf %158, %163 : vector<24x64xf32>
    %165 = arith.mulf %164, %164 : vector<24x64xf32>
    %cst_73 = arith.constant dense<0.000000e+00> : vector<24xf32>
    %166 = vector.multi_reduction <add>, %165, %cst_73 [1] : vector<24x64xf32> to vector<24xf32>
    %167 = vector.shape_cast %166 : vector<24xf32> to vector<24x1xf32>
    %cst_74 = arith.constant 6.400000e+01 : f32
    %168 = vector.broadcast %cst_74 : f32 to vector<24x1xf32>
    %169 = arith.divf %167, %168 : vector<24x1xf32>
    %170 = vector.broadcast %162 : vector<24x1xf32> to vector<24x64xf32>
    %171 = arith.subf %158, %170 : vector<24x64xf32>
    %cst_75 = arith.constant 9.99999974E-6 : f32
    %172 = vector.broadcast %cst_75 : f32 to vector<24x1xf32>
    %173 = arith.addf %169, %172 : vector<24x1xf32>
    %174 = math.rsqrt %173 : vector<24x1xf32>
    %175 = vector.broadcast %174 : vector<24x1xf32> to vector<24x64xf32>
    %176 = arith.mulf %171, %175 : vector<24x64xf32>
    %177 = vector.broadcast %19 : vector<1x64xf32> to vector<24x64xf32>
    %178 = arith.mulf %176, %177 : vector<24x64xf32>
    %179 = vector.broadcast %21 : vector<1x64xf32> to vector<24x64xf32>
    %180 = arith.addf %178, %179 : vector<24x64xf32>
    %181 = arith.truncf %180 : vector<24x64xf32> to vector<24x64xbf16>
    %cst_76 = arith.constant dense<0.000000e+00> : vector<24x256xf32>
    %182 = tpu.matmul %181, %23, %cst_76 {dimension_numbers = #tpu.dot_dimension_numbers<[1], [0], [0], [1], [0, 0, 1, 1], [], []>} : vector<24x64xbf16>, vector<64x256xbf16>, vector<24x256xf32> -> vector<24x256xf32>
    %183 = vector.broadcast %25 : vector<1x256xf32> to vector<24x256xf32>
    %184 = arith.addf %182, %183 : vector<24x256xf32>
    %cst_77 = arith.constant 1.702000e+00 : f32
    %185 = vector.broadcast %cst_77 : f32 to vector<24x256xf32>
    %186 = arith.mulf %185, %184 : vector<24x256xf32>
    %187 = arith.negf %186 : vector<24x256xf32>
    %188 = math.exp %187 : vector<24x256xf32>
    %cst_78 = arith.constant 1.000000e+00 : f32
    %189 = vector.broadcast %cst_78 : f32 to vector<24x256xf32>
    %190 = arith.addf %189, %188 : vector<24x256xf32>
    %191 = arith.divf %189, %190 : vector<24x256xf32>
    %192 = arith.mulf %184, %191 : vector<24x256xf32>
    %193 = arith.truncf %192 : vector<24x256xf32> to vector<24x256xbf16>
    %cst_79 = arith.constant dense<0.000000e+00> : vector<24x64xf32>
    %194 = tpu.matmul %193, %27, %cst_79 {dimension_numbers = #tpu.dot_dimension_numbers<[1], [0], [0], [1], [0, 0, 1, 1], [], []>} : vector<24x256xbf16>, vector<256x64xbf16>, vector<24x64xf32> -> vector<24x64xf32>
    %195 = vector.broadcast %29 : vector<1x64xf32> to vector<24x64xf32>
    %196 = arith.addf %194, %195 : vector<24x64xf32>
    %197 = arith.addf %158, %196 : vector<24x64xf32>
    %c0_80 = arith.constant 0 : index
    %c0_81 = arith.constant 0 : index
    %198 = vector.load %arg22[%c0_80, %c0_81] : memref<24x64xf32, #tpu.memory_space<vmem>>, vector<24x64xf32>
    tpu.vector_store %arg22[%c0_80, %c0_81], %197 {strides = array<i32>} : memref<24x64xf32, #tpu.memory_space<vmem>>, vector<24x64xf32>,
    %c0_82 = arith.constant 0 : index
    %c0_83 = arith.constant 0 : index
    %c0_84 = arith.constant 0 : index
    %199 = vector.load %arg5[%c0_82, %c0_83, %c0_84] : memref<1x2x64xf32, #tpu.memory_space<vmem>>, vector<1x2x64xf32>
    %200 = vector.shape_cast %199 : vector<1x2x64xf32> to vector<2x64xf32>
    %c1 = arith.constant 1 : index
    %c0_85 = arith.constant 0 : index
    %201 = vector.load %arg22[%c1, %c0_85] : memref<24x64xf32, #tpu.memory_space<vmem>>, vector<2x64xf32>
    tpu.vector_store %arg22[%c1, %c0_85], %200 {strides = array<i32>} : memref<24x64xf32, #tpu.memory_space<vmem>>, vector<2x64xf32>,
    %c9 = arith.constant 9 : index
    %c0_86 = arith.constant 0 : index
    %202 = vector.load %arg22[%c9, %c0_86] : memref<24x64xf32, #tpu.memory_space<vmem>>, vector<2x64xf32>
    tpu.vector_store %arg22[%c9, %c0_86], %200 {strides = array<i32>} : memref<24x64xf32, #tpu.memory_space<vmem>>, vector<2x64xf32>,
    %c17 = arith.constant 17 : index
    %c0_87 = arith.constant 0 : index
    %203 = vector.load %arg22[%c17, %c0_87] : memref<24x64xf32, #tpu.memory_space<vmem>>, vector<2x64xf32>
    tpu.vector_store %arg22[%c17, %c0_87], %200 {strides = array<i32>} : memref<24x64xf32, #tpu.memory_space<vmem>>, vector<2x64xf32>,
    %c0_88 = arith.constant 0 : index
    %c0_89 = arith.constant 0 : index
    %204 = vector.load %arg22[%c0_88, %c0_89] : memref<24x64xf32, #tpu.memory_space<vmem>>, vector<24x64xf32>
    %c1_90 = arith.constant 1 : index
    %c0_91 = arith.constant 0 : index
    %c0_92 = arith.constant 0 : index
    %205 = vector.load %arg6[%c1_90, %c0_91, %c0_92] : memref<2x1x64xf32, #tpu.memory_space<vmem>>, vector<1x1x64xf32>
    %206 = vector.shape_cast %205 : vector<1x1x64xf32> to vector<1x64xf32>
    %c1_93 = arith.constant 1 : index
    %c0_94 = arith.constant 0 : index
    %c0_95 = arith.constant 0 : index
    %207 = vector.load %arg7[%c1_93, %c0_94, %c0_95] : memref<2x1x64xf32, #tpu.memory_space<vmem>>, vector<1x1x64xf32>
    %208 = vector.shape_cast %207 : vector<1x1x64xf32> to vector<1x64xf32>
    %c1_96 = arith.constant 1 : index
    %c0_97 = arith.constant 0 : index
    %c0_98 = arith.constant 0 : index
    %209 = vector.load %arg8[%c1_96, %c0_97, %c0_98] : memref<2x64x192xbf16, #tpu.memory_space<vmem>>, vector<1x64x192xbf16>
    %210 = vector.shape_cast %209 : vector<1x64x192xbf16> to vector<64x192xbf16>
    %c1_99 = arith.constant 1 : index
    %c0_100 = arith.constant 0 : index
    %c0_101 = arith.constant 0 : index
    %211 = vector.load %arg9[%c1_99, %c0_100, %c0_101] : memref<2x1x192xf32, #tpu.memory_space<vmem>>, vector<1x1x192xf32>
    %212 = vector.shape_cast %211 : vector<1x1x192xf32> to vector<1x192xf32>
    %c1_102 = arith.constant 1 : index
    %c0_103 = arith.constant 0 : index
    %c0_104 = arith.constant 0 : index
    %213 = vector.load %arg10[%c1_102, %c0_103, %c0_104] : memref<2x64x64xbf16, #tpu.memory_space<vmem>>, vector<1x64x64xbf16>
    %214 = vector.shape_cast %213 : vector<1x64x64xbf16> to vector<64x64xbf16>
    %c1_105 = arith.constant 1 : index
    %c0_106 = arith.constant 0 : index
    %c0_107 = arith.constant 0 : index
    %215 = vector.load %arg11[%c1_105, %c0_106, %c0_107] : memref<2x1x64xf32, #tpu.memory_space<vmem>>, vector<1x1x64xf32>
    %216 = vector.shape_cast %215 : vector<1x1x64xf32> to vector<1x64xf32>
    %c1_108 = arith.constant 1 : index
    %c0_109 = arith.constant 0 : index
    %c0_110 = arith.constant 0 : index
    %217 = vector.load %arg12[%c1_108, %c0_109, %c0_110] : memref<2x1x64xf32, #tpu.memory_space<vmem>>, vector<1x1x64xf32>
    %218 = vector.shape_cast %217 : vector<1x1x64xf32> to vector<1x64xf32>
    %c1_111 = arith.constant 1 : index
    %c0_112 = arith.constant 0 : index
    %c0_113 = arith.constant 0 : index
    %219 = vector.load %arg13[%c1_111, %c0_112, %c0_113] : memref<2x1x64xf32, #tpu.memory_space<vmem>>, vector<1x1x64xf32>
    %220 = vector.shape_cast %219 : vector<1x1x64xf32> to vector<1x64xf32>
    %c1_114 = arith.constant 1 : index
    %c0_115 = arith.constant 0 : index
    %c0_116 = arith.constant 0 : index
    %221 = vector.load %arg14[%c1_114, %c0_115, %c0_116] : memref<2x64x256xbf16, #tpu.memory_space<vmem>>, vector<1x64x256xbf16>
    %222 = vector.shape_cast %221 : vector<1x64x256xbf16> to vector<64x256xbf16>
    %c1_117 = arith.constant 1 : index
    %c0_118 = arith.constant 0 : index
    %c0_119 = arith.constant 0 : index
    %223 = vector.load %arg15[%c1_117, %c0_118, %c0_119] : memref<2x1x256xf32, #tpu.memory_space<vmem>>, vector<1x1x256xf32>
    %224 = vector.shape_cast %223 : vector<1x1x256xf32> to vector<1x256xf32>
    %c1_120 = arith.constant 1 : index
    %c0_121 = arith.constant 0 : index
    %c0_122 = arith.constant 0 : index
    %225 = vector.load %arg16[%c1_120, %c0_121, %c0_122] : memref<2x256x64xbf16, #tpu.memory_space<vmem>>, vector<1x256x64xbf16>
    %226 = vector.shape_cast %225 : vector<1x256x64xbf16> to vector<256x64xbf16>
    %c1_123 = arith.constant 1 : index
    %c0_124 = arith.constant 0 : index
    %c0_125 = arith.constant 0 : index
    %227 = vector.load %arg17[%c1_123, %c0_124, %c0_125] : memref<2x1x64xf32, #tpu.memory_space<vmem>>, vector<1x1x64xf32>
    %228 = vector.shape_cast %227 : vector<1x1x64xf32> to vector<1x64xf32>
    %cst_126 = arith.constant dense<0.000000e+00> : vector<24xf32>
    %229 = vector.multi_reduction <add>, %204, %cst_126 [1] : vector<24x64xf32> to vector<24xf32>
    %230 = vector.shape_cast %229 : vector<24xf32> to vector<24x1xf32>
    %cst_127 = arith.constant 6.400000e+01 : f32
    %231 = vector.broadcast %cst_127 : f32 to vector<24x1xf32>
    %232 = arith.divf %230, %231 : vector<24x1xf32>
    %233 = vector.broadcast %232 : vector<24x1xf32> to vector<24x64xf32>
    %234 = arith.subf %204, %233 : vector<24x64xf32>
    %235 = arith.mulf %234, %234 : vector<24x64xf32>
    %cst_128 = arith.constant dense<0.000000e+00> : vector<24xf32>
    %236 = vector.multi_reduction <add>, %235, %cst_128 [1] : vector<24x64xf32> to vector<24xf32>
    %237 = vector.shape_cast %236 : vector<24xf32> to vector<24x1xf32>
    %cst_129 = arith.constant 6.400000e+01 : f32
    %238 = vector.broadcast %cst_129 : f32 to vector<24x1xf32>
    %239 = arith.divf %237, %238 : vector<24x1xf32>
    %240 = vector.broadcast %232 : vector<24x1xf32> to vector<24x64xf32>
    %241 = arith.subf %204, %240 : vector<24x64xf32>
    %cst_130 = arith.constant 9.99999974E-6 : f32
    %242 = vector.broadcast %cst_130 : f32 to vector<24x1xf32>
    %243 = arith.addf %239, %242 : vector<24x1xf32>
    %244 = math.rsqrt %243 : vector<24x1xf32>
    %245 = vector.broadcast %244 : vector<24x1xf32> to vector<24x64xf32>
    %246 = arith.mulf %241, %245 : vector<24x64xf32>
    %247 = vector.broadcast %206 : vector<1x64xf32> to vector<24x64xf32>
    %248 = arith.mulf %246, %247 : vector<24x64xf32>
    %249 = vector.broadcast %208 : vector<1x64xf32> to vector<24x64xf32>
    %250 = arith.addf %248, %249 : vector<24x64xf32>
    %251 = arith.truncf %250 : vector<24x64xf32> to vector<24x64xbf16>
    %cst_131 = arith.constant dense<0.000000e+00> : vector<24x192xf32>
    %252 = tpu.matmul %251, %210, %cst_131 {dimension_numbers = #tpu.dot_dimension_numbers<[1], [0], [0], [1], [0, 0, 1, 1], [], []>} : vector<24x64xbf16>, vector<64x192xbf16>, vector<24x192xf32> -> vector<24x192xf32>
    %253 = vector.broadcast %212 : vector<1x192xf32> to vector<24x192xf32>
    %254 = arith.addf %252, %253 : vector<24x192xf32>
    %255 = vector.extract_strided_slice %254 {offsets = [0, 0], sizes = [24, 64], strides = [1, 1]} : vector<24x192xf32> to vector<24x64xf32>
    %cst_132 = arith.constant 2.500000e-01 : f32
    %256 = vector.broadcast %cst_132 : f32 to vector<24x64xf32>
    %257 = arith.mulf %255, %256 : vector<24x64xf32>
    %258 = vector.extract_strided_slice %254 {offsets = [0, 64], sizes = [24, 64], strides = [1, 1]} : vector<24x192xf32> to vector<24x64xf32>
    %259 = vector.extract_strided_slice %254 {offsets = [0, 128], sizes = [24, 64], strides = [1, 1]} : vector<24x192xf32> to vector<24x64xf32>
    %260 = vector.extract_strided_slice %257 {offsets = [0, 0], sizes = [24, 16], strides = [1, 1]} : vector<24x64xf32> to vector<24x16xf32>
    %261 = arith.truncf %260 : vector<24x16xf32> to vector<24x16xbf16>
    %262 = vector.extract_strided_slice %258 {offsets = [0, 0], sizes = [24, 16], strides = [1, 1]} : vector<24x64xf32> to vector<24x16xf32>
    %263 = arith.truncf %262 : vector<24x16xf32> to vector<24x16xbf16>
    %264 = vector.extract_strided_slice %259 {offsets = [0, 0], sizes = [24, 16], strides = [1, 1]} : vector<24x64xf32> to vector<24x16xf32>
    %265 = arith.truncf %264 : vector<24x16xf32> to vector<24x16xbf16>
    "tpu.trace_start"() <{level = 10 : i32, message = "qd,kd->qk"}> : () -> ()
    %cst_133 = arith.constant dense<0.000000e+00> : vector<24x24xf32>
    %266 = tpu.matmul %261, %263, %cst_133 {dimension_numbers = #tpu.dot_dimension_numbers<[1], [1], [0], [0], [0, 0, 1, 0], [], []>} : vector<24x16xbf16>, vector<24x16xbf16>, vector<24x24xf32> -> vector<24x24xf32>
    "tpu.trace_stop"() : () -> ()
    %267 = arith.addf %266, %0 : vector<24x24xf32>
    %cst_134 = arith.constant dense<0xFF800000> : vector<24xf32>
    %268 = vector.multi_reduction <maximumf>, %267, %cst_134 [1] : vector<24x24xf32> to vector<24xf32>
    %269 = vector.shape_cast %268 : vector<24xf32> to vector<24x1xf32>
    %270 = vector.broadcast %269 : vector<24x1xf32> to vector<24x24xf32>
    %271 = arith.subf %267, %270 : vector<24x24xf32>
    %272 = math.exp %271 : vector<24x24xf32>
    %cst_135 = arith.constant dense<0.000000e+00> : vector<24xf32>
    %273 = vector.multi_reduction <add>, %272, %cst_135 [1] : vector<24x24xf32> to vector<24xf32>
    %274 = vector.shape_cast %273 : vector<24xf32> to vector<24x1xf32>
    %275 = tpu.reciprocal %274 {approx = true} : vector<24x1xf32> -> vector<24x1xf32>
    %276 = vector.broadcast %275 : vector<24x1xf32> to vector<24x24xf32>
    %277 = arith.mulf %272, %276 : vector<24x24xf32>
    %278 = arith.truncf %277 : vector<24x24xf32> to vector<24x24xbf16>
    "tpu.trace_start"() <{level = 10 : i32, message = "qk,kd->qd"}> : () -> ()
    %cst_136 = arith.constant dense<0.000000e+00> : vector<24x16xf32>
    %279 = tpu.matmul %278, %265, %cst_136 {dimension_numbers = #tpu.dot_dimension_numbers<[1], [0], [0], [1], [0, 0, 1, 1], [], []>} : vector<24x24xbf16>, vector<24x16xbf16>, vector<24x16xf32> -> vector<24x16xf32>
    "tpu.trace_stop"() : () -> ()
    %280 = arith.truncf %279 : vector<24x16xf32> to vector<24x16xbf16>
    %281 = vector.extract_strided_slice %214 {offsets = [0, 0], sizes = [16, 64], strides = [1, 1]} : vector<64x64xbf16> to vector<16x64xbf16>
    %cst_137 = arith.constant dense<0.000000e+00> : vector<24x64xf32>
    %282 = tpu.matmul %280, %281, %cst_137 {dimension_numbers = #tpu.dot_dimension_numbers<[1], [0], [0], [1], [0, 0, 1, 1], [], []>} : vector<24x16xbf16>, vector<16x64xbf16>, vector<24x64xf32> -> vector<24x64xf32>
    %283 = vector.extract_strided_slice %257 {offsets = [0, 16], sizes = [24, 16], strides = [1, 1]} : vector<24x64xf32> to vector<24x16xf32>
    %284 = arith.truncf %283 : vector<24x16xf32> to vector<24x16xbf16>
    %285 = vector.extract_strided_slice %258 {offsets = [0, 16], sizes = [24, 16], strides = [1, 1]} : vector<24x64xf32> to vector<24x16xf32>
    %286 = arith.truncf %285 : vector<24x16xf32> to vector<24x16xbf16>
    %287 = vector.extract_strided_slice %259 {offsets = [0, 16], sizes = [24, 16], strides = [1, 1]} : vector<24x64xf32> to vector<24x16xf32>
    %288 = arith.truncf %287 : vector<24x16xf32> to vector<24x16xbf16>
    "tpu.trace_start"() <{level = 10 : i32, message = "qd,kd->qk"}> : () -> ()
    %cst_138 = arith.constant dense<0.000000e+00> : vector<24x24xf32>
    %289 = tpu.matmul %284, %286, %cst_138 {dimension_numbers = #tpu.dot_dimension_numbers<[1], [1], [0], [0], [0, 0, 1, 0], [], []>} : vector<24x16xbf16>, vector<24x16xbf16>, vector<24x24xf32> -> vector<24x24xf32>
    "tpu.trace_stop"() : () -> ()
    %290 = arith.addf %289, %0 : vector<24x24xf32>
    %cst_139 = arith.constant dense<0xFF800000> : vector<24xf32>
    %291 = vector.multi_reduction <maximumf>, %290, %cst_139 [1] : vector<24x24xf32> to vector<24xf32>
    %292 = vector.shape_cast %291 : vector<24xf32> to vector<24x1xf32>
    %293 = vector.broadcast %292 : vector<24x1xf32> to vector<24x24xf32>
    %294 = arith.subf %290, %293 : vector<24x24xf32>
    %295 = math.exp %294 : vector<24x24xf32>
    %cst_140 = arith.constant dense<0.000000e+00> : vector<24xf32>
    %296 = vector.multi_reduction <add>, %295, %cst_140 [1] : vector<24x24xf32> to vector<24xf32>
    %297 = vector.shape_cast %296 : vector<24xf32> to vector<24x1xf32>
    %298 = tpu.reciprocal %297 {approx = true} : vector<24x1xf32> -> vector<24x1xf32>
    %299 = vector.broadcast %298 : vector<24x1xf32> to vector<24x24xf32>
    %300 = arith.mulf %295, %299 : vector<24x24xf32>
    %301 = arith.truncf %300 : vector<24x24xf32> to vector<24x24xbf16>
    "tpu.trace_start"() <{level = 10 : i32, message = "qk,kd->qd"}> : () -> ()
    %cst_141 = arith.constant dense<0.000000e+00> : vector<24x16xf32>
    %302 = tpu.matmul %301, %288, %cst_141 {dimension_numbers = #tpu.dot_dimension_numbers<[1], [0], [0], [1], [0, 0, 1, 1], [], []>} : vector<24x24xbf16>, vector<24x16xbf16>, vector<24x16xf32> -> vector<24x16xf32>
    "tpu.trace_stop"() : () -> ()
    %303 = arith.truncf %302 : vector<24x16xf32> to vector<24x16xbf16>
    %304 = vector.extract_strided_slice %214 {offsets = [16, 0], sizes = [16, 64], strides = [1, 1]} : vector<64x64xbf16> to vector<16x64xbf16>
    %cst_142 = arith.constant dense<0.000000e+00> : vector<24x64xf32>
    %305 = tpu.matmul %303, %304, %cst_142 {dimension_numbers = #tpu.dot_dimension_numbers<[1], [0], [0], [1], [0, 0, 1, 1], [], []>} : vector<24x16xbf16>, vector<16x64xbf16>, vector<24x64xf32> -> vector<24x64xf32>
    %306 = arith.addf %282, %305 : vector<24x64xf32>
    %307 = vector.extract_strided_slice %257 {offsets = [0, 32], sizes = [24, 16], strides = [1, 1]} : vector<24x64xf32> to vector<24x16xf32>
    %308 = arith.truncf %307 : vector<24x16xf32> to vector<24x16xbf16>
    %309 = vector.extract_strided_slice %258 {offsets = [0, 32], sizes = [24, 16], strides = [1, 1]} : vector<24x64xf32> to vector<24x16xf32>
    %310 = arith.truncf %309 : vector<24x16xf32> to vector<24x16xbf16>
    %311 = vector.extract_strided_slice %259 {offsets = [0, 32], sizes = [24, 16], strides = [1, 1]} : vector<24x64xf32> to vector<24x16xf32>
    %312 = arith.truncf %311 : vector<24x16xf32> to vector<24x16xbf16>
    "tpu.trace_start"() <{level = 10 : i32, message = "qd,kd->qk"}> : () -> ()
    %cst_143 = arith.constant dense<0.000000e+00> : vector<24x24xf32>
    %313 = tpu.matmul %308, %310, %cst_143 {dimension_numbers = #tpu.dot_dimension_numbers<[1], [1], [0], [0], [0, 0, 1, 0], [], []>} : vector<24x16xbf16>, vector<24x16xbf16>, vector<24x24xf32> -> vector<24x24xf32>
    "tpu.trace_stop"() : () -> ()
    %314 = arith.addf %313, %0 : vector<24x24xf32>
    %cst_144 = arith.constant dense<0xFF800000> : vector<24xf32>
    %315 = vector.multi_reduction <maximumf>, %314, %cst_144 [1] : vector<24x24xf32> to vector<24xf32>
    %316 = vector.shape_cast %315 : vector<24xf32> to vector<24x1xf32>
    %317 = vector.broadcast %316 : vector<24x1xf32> to vector<24x24xf32>
    %318 = arith.subf %314, %317 : vector<24x24xf32>
    %319 = math.exp %318 : vector<24x24xf32>
    %cst_145 = arith.constant dense<0.000000e+00> : vector<24xf32>
    %320 = vector.multi_reduction <add>, %319, %cst_145 [1] : vector<24x24xf32> to vector<24xf32>
    %321 = vector.shape_cast %320 : vector<24xf32> to vector<24x1xf32>
    %322 = tpu.reciprocal %321 {approx = true} : vector<24x1xf32> -> vector<24x1xf32>
    %323 = vector.broadcast %322 : vector<24x1xf32> to vector<24x24xf32>
    %324 = arith.mulf %319, %323 : vector<24x24xf32>
    %325 = arith.truncf %324 : vector<24x24xf32> to vector<24x24xbf16>
    "tpu.trace_start"() <{level = 10 : i32, message = "qk,kd->qd"}> : () -> ()
    %cst_146 = arith.constant dense<0.000000e+00> : vector<24x16xf32>
    %326 = tpu.matmul %325, %312, %cst_146 {dimension_numbers = #tpu.dot_dimension_numbers<[1], [0], [0], [1], [0, 0, 1, 1], [], []>} : vector<24x24xbf16>, vector<24x16xbf16>, vector<24x16xf32> -> vector<24x16xf32>
    "tpu.trace_stop"() : () -> ()
    %327 = arith.truncf %326 : vector<24x16xf32> to vector<24x16xbf16>
    %328 = vector.extract_strided_slice %214 {offsets = [32, 0], sizes = [16, 64], strides = [1, 1]} : vector<64x64xbf16> to vector<16x64xbf16>
    %cst_147 = arith.constant dense<0.000000e+00> : vector<24x64xf32>
    %329 = tpu.matmul %327, %328, %cst_147 {dimension_numbers = #tpu.dot_dimension_numbers<[1], [0], [0], [1], [0, 0, 1, 1], [], []>} : vector<24x16xbf16>, vector<16x64xbf16>, vector<24x64xf32> -> vector<24x64xf32>
    %330 = arith.addf %306, %329 : vector<24x64xf32>
    %331 = vector.extract_strided_slice %257 {offsets = [0, 48], sizes = [24, 16], strides = [1, 1]} : vector<24x64xf32> to vector<24x16xf32>
    %332 = arith.truncf %331 : vector<24x16xf32> to vector<24x16xbf16>
    %333 = vector.extract_strided_slice %258 {offsets = [0, 48], sizes = [24, 16], strides = [1, 1]} : vector<24x64xf32> to vector<24x16xf32>
    %334 = arith.truncf %333 : vector<24x16xf32> to vector<24x16xbf16>
    %335 = vector.extract_strided_slice %259 {offsets = [0, 48], sizes = [24, 16], strides = [1, 1]} : vector<24x64xf32> to vector<24x16xf32>
    %336 = arith.truncf %335 : vector<24x16xf32> to vector<24x16xbf16>
    "tpu.trace_start"() <{level = 10 : i32, message = "qd,kd->qk"}> : () -> ()
    %cst_148 = arith.constant dense<0.000000e+00> : vector<24x24xf32>
    %337 = tpu.matmul %332, %334, %cst_148 {dimension_numbers = #tpu.dot_dimension_numbers<[1], [1], [0], [0], [0, 0, 1, 0], [], []>} : vector<24x16xbf16>, vector<24x16xbf16>, vector<24x24xf32> -> vector<24x24xf32>
    "tpu.trace_stop"() : () -> ()
    %338 = arith.addf %337, %0 : vector<24x24xf32>
    %cst_149 = arith.constant dense<0xFF800000> : vector<24xf32>
    %339 = vector.multi_reduction <maximumf>, %338, %cst_149 [1] : vector<24x24xf32> to vector<24xf32>
    %340 = vector.shape_cast %339 : vector<24xf32> to vector<24x1xf32>
    %341 = vector.broadcast %340 : vector<24x1xf32> to vector<24x24xf32>
    %342 = arith.subf %338, %341 : vector<24x24xf32>
    %343 = math.exp %342 : vector<24x24xf32>
    %cst_150 = arith.constant dense<0.000000e+00> : vector<24xf32>
    %344 = vector.multi_reduction <add>, %343, %cst_150 [1] : vector<24x24xf32> to vector<24xf32>
    %345 = vector.shape_cast %344 : vector<24xf32> to vector<24x1xf32>
    %346 = tpu.reciprocal %345 {approx = true} : vector<24x1xf32> -> vector<24x1xf32>
    %347 = vector.broadcast %346 : vector<24x1xf32> to vector<24x24xf32>
    %348 = arith.mulf %343, %347 : vector<24x24xf32>
    %349 = arith.truncf %348 : vector<24x24xf32> to vector<24x24xbf16>
    "tpu.trace_start"() <{level = 10 : i32, message = "qk,kd->qd"}> : () -> ()
    %cst_151 = arith.constant dense<0.000000e+00> : vector<24x16xf32>
    %350 = tpu.matmul %349, %336, %cst_151 {dimension_numbers = #tpu.dot_dimension_numbers<[1], [0], [0], [1], [0, 0, 1, 1], [], []>} : vector<24x24xbf16>, vector<24x16xbf16>, vector<24x16xf32> -> vector<24x16xf32>
    "tpu.trace_stop"() : () -> ()
    %351 = arith.truncf %350 : vector<24x16xf32> to vector<24x16xbf16>
    %352 = vector.extract_strided_slice %214 {offsets = [48, 0], sizes = [16, 64], strides = [1, 1]} : vector<64x64xbf16> to vector<16x64xbf16>
    %cst_152 = arith.constant dense<0.000000e+00> : vector<24x64xf32>
    %353 = tpu.matmul %351, %352, %cst_152 {dimension_numbers = #tpu.dot_dimension_numbers<[1], [0], [0], [1], [0, 0, 1, 1], [], []>} : vector<24x16xbf16>, vector<16x64xbf16>, vector<24x64xf32> -> vector<24x64xf32>
    %354 = arith.addf %330, %353 : vector<24x64xf32>
    %355 = vector.broadcast %216 : vector<1x64xf32> to vector<24x64xf32>
    %356 = arith.addf %354, %355 : vector<24x64xf32>
    %357 = arith.addf %204, %356 : vector<24x64xf32>
    %cst_153 = arith.constant dense<0.000000e+00> : vector<24xf32>
    %358 = vector.multi_reduction <add>, %357, %cst_153 [1] : vector<24x64xf32> to vector<24xf32>
    %359 = vector.shape_cast %358 : vector<24xf32> to vector<24x1xf32>
    %cst_154 = arith.constant 6.400000e+01 : f32
    %360 = vector.broadcast %cst_154 : f32 to vector<24x1xf32>
    %361 = arith.divf %359, %360 : vector<24x1xf32>
    %362 = vector.broadcast %361 : vector<24x1xf32> to vector<24x64xf32>
    %363 = arith.subf %357, %362 : vector<24x64xf32>
    %364 = arith.mulf %363, %363 : vector<24x64xf32>
    %cst_155 = arith.constant dense<0.000000e+00> : vector<24xf32>
    %365 = vector.multi_reduction <add>, %364, %cst_155 [1] : vector<24x64xf32> to vector<24xf32>
    %366 = vector.shape_cast %365 : vector<24xf32> to vector<24x1xf32>
    %cst_156 = arith.constant 6.400000e+01 : f32
    %367 = vector.broadcast %cst_156 : f32 to vector<24x1xf32>
    %368 = arith.divf %366, %367 : vector<24x1xf32>
    %369 = vector.broadcast %361 : vector<24x1xf32> to vector<24x64xf32>
    %370 = arith.subf %357, %369 : vector<24x64xf32>
    %cst_157 = arith.constant 9.99999974E-6 : f32
    %371 = vector.broadcast %cst_157 : f32 to vector<24x1xf32>
    %372 = arith.addf %368, %371 : vector<24x1xf32>
    %373 = math.rsqrt %372 : vector<24x1xf32>
    %374 = vector.broadcast %373 : vector<24x1xf32> to vector<24x64xf32>
    %375 = arith.mulf %370, %374 : vector<24x64xf32>
    %376 = vector.broadcast %218 : vector<1x64xf32> to vector<24x64xf32>
    %377 = arith.mulf %375, %376 : vector<24x64xf32>
    %378 = vector.broadcast %220 : vector<1x64xf32> to vector<24x64xf32>
    %379 = arith.addf %377, %378 : vector<24x64xf32>
    %380 = arith.truncf %379 : vector<24x64xf32> to vector<24x64xbf16>
    %cst_158 = arith.constant dense<0.000000e+00> : vector<24x256xf32>
    %381 = tpu.matmul %380, %222, %cst_158 {dimension_numbers = #tpu.dot_dimension_numbers<[1], [0], [0], [1], [0, 0, 1, 1], [], []>} : vector<24x64xbf16>, vector<64x256xbf16>, vector<24x256xf32> -> vector<24x256xf32>
    %382 = vector.broadcast %224 : vector<1x256xf32> to vector<24x256xf32>
    %383 = arith.addf %381, %382 : vector<24x256xf32>
    %cst_159 = arith.constant 1.702000e+00 : f32
    %384 = vector.broadcast %cst_159 : f32 to vector<24x256xf32>
    %385 = arith.mulf %384, %383 : vector<24x256xf32>
    %386 = arith.negf %385 : vector<24x256xf32>
    %387 = math.exp %386 : vector<24x256xf32>
    %cst_160 = arith.constant 1.000000e+00 : f32
    %388 = vector.broadcast %cst_160 : f32 to vector<24x256xf32>
    %389 = arith.addf %388, %387 : vector<24x256xf32>
    %390 = arith.divf %388, %389 : vector<24x256xf32>
    %391 = arith.mulf %383, %390 : vector<24x256xf32>
    %392 = arith.truncf %391 : vector<24x256xf32> to vector<24x256xbf16>
    %cst_161 = arith.constant dense<0.000000e+00> : vector<24x64xf32>
    %393 = tpu.matmul %392, %226, %cst_161 {dimension_numbers = #tpu.dot_dimension_numbers<[1], [0], [0], [1], [0, 0, 1, 1], [], []>} : vector<24x256xbf16>, vector<256x64xbf16>, vector<24x64xf32> -> vector<24x64xf32>
    %394 = vector.broadcast %228 : vector<1x64xf32> to vector<24x64xf32>
    %395 = arith.addf %393, %394 : vector<24x64xf32>
    %396 = arith.addf %357, %395 : vector<24x64xf32>
    %c0_162 = arith.constant 0 : index
    %c0_163 = arith.constant 0 : index
    %397 = vector.load %arg22[%c0_162, %c0_163] : memref<24x64xf32, #tpu.memory_space<vmem>>, vector<24x64xf32>
    tpu.vector_store %arg22[%c0_162, %c0_163], %396 {strides = array<i32>} : memref<24x64xf32, #tpu.memory_space<vmem>>, vector<24x64xf32>,
    %c0_164 = arith.constant 0 : index
    %c0_165 = arith.constant 0 : index
    %398 = vector.load %arg22[%c0_164, %c0_165] : memref<24x64xf32, #tpu.memory_space<vmem>>, vector<24x64xf32>
    %c0_166 = arith.constant 0 : index
    %c0_167 = arith.constant 0 : index
    %399 = vector.load %arg18[%c0_166, %c0_167] : memref<1x64xf32, #tpu.memory_space<vmem>>, vector<1x64xf32>
    %c0_168 = arith.constant 0 : index
    %c0_169 = arith.constant 0 : index
    %400 = vector.load %arg19[%c0_168, %c0_169] : memref<1x64xf32, #tpu.memory_space<vmem>>, vector<1x64xf32>
    %cst_170 = arith.constant dense<0.000000e+00> : vector<24xf32>
    %401 = vector.multi_reduction <add>, %398, %cst_170 [1] : vector<24x64xf32> to vector<24xf32>
    %402 = vector.shape_cast %401 : vector<24xf32> to vector<24x1xf32>
    %cst_171 = arith.constant 6.400000e+01 : f32
    %403 = vector.broadcast %cst_171 : f32 to vector<24x1xf32>
    %404 = arith.divf %402, %403 : vector<24x1xf32>
    %405 = vector.broadcast %404 : vector<24x1xf32> to vector<24x64xf32>
    %406 = arith.subf %398, %405 : vector<24x64xf32>
    %407 = arith.mulf %406, %406 : vector<24x64xf32>
    %cst_172 = arith.constant dense<0.000000e+00> : vector<24xf32>
    %408 = vector.multi_reduction <add>, %407, %cst_172 [1] : vector<24x64xf32> to vector<24xf32>
    %409 = vector.shape_cast %408 : vector<24xf32> to vector<24x1xf32>
    %cst_173 = arith.constant 6.400000e+01 : f32
    %410 = vector.broadcast %cst_173 : f32 to vector<24x1xf32>
    %411 = arith.divf %409, %410 : vector<24x1xf32>
    %412 = vector.broadcast %404 : vector<24x1xf32> to vector<24x64xf32>
    %413 = arith.subf %398, %412 : vector<24x64xf32>
    %cst_174 = arith.constant 9.99999974E-6 : f32
    %414 = vector.broadcast %cst_174 : f32 to vector<24x1xf32>
    %415 = arith.addf %411, %414 : vector<24x1xf32>
    %416 = math.rsqrt %415 : vector<24x1xf32>
    %417 = vector.broadcast %416 : vector<24x1xf32> to vector<24x64xf32>
    %418 = arith.mulf %413, %417 : vector<24x64xf32>
    %419 = vector.broadcast %399 : vector<1x64xf32> to vector<24x64xf32>
    %420 = arith.mulf %418, %419 : vector<24x64xf32>
    %421 = vector.broadcast %400 : vector<1x64xf32> to vector<24x64xf32>
    %422 = arith.addf %420, %421 : vector<24x64xf32>
    %c0_175 = arith.constant 0 : index
    %c0_176 = arith.constant 0 : index
    %423 = vector.load %arg22[%c0_175, %c0_176] : memref<24x64xf32, #tpu.memory_space<vmem>>, vector<24x64xf32>
    tpu.vector_store %arg22[%c0_175, %c0_176], %422 {strides = array<i32>} : memref<24x64xf32, #tpu.memory_space<vmem>>, vector<24x64xf32>,
    %c0_177 = arith.constant 0 : index
    %424 = memref.load %arg4[%c0_177] : memref<3xi32, #tpu.memory_space<smem>>
    %c0_i32 = arith.constant 0 : i32
    %425 = arith.addi %c0_i32, %424 : i32
    %426 = arith.index_cast %425 : i32 to index
    %c0_178 = arith.constant 0 : index
    %427 = vector.load %arg22[%426, %c0_178] : memref<24x64xf32, #tpu.memory_space<vmem>>, vector<1x64xf32>
    %c1_179 = arith.constant 1 : index
    %428 = memref.load %arg4[%c1_179] : memref<3xi32, #tpu.memory_space<smem>>
    %c8_i32 = arith.constant 8 : i32
    %429 = arith.addi %c8_i32, %428 : i32
    %430 = arith.index_cast %429 : i32 to index
    %c0_180 = arith.constant 0 : index
    %431 = vector.load %arg22[%430, %c0_180] : memref<24x64xf32, #tpu.memory_space<vmem>>, vector<1x64xf32>
    %c2 = arith.constant 2 : index
    %432 = memref.load %arg4[%c2] : memref<3xi32, #tpu.memory_space<smem>>
    %c16_i32 = arith.constant 16 : i32
    %433 = arith.addi %c16_i32, %432 : i32
    %434 = arith.index_cast %433 : i32 to index
    %c0_181 = arith.constant 0 : index
    %435 = vector.load %arg22[%434, %c0_181] : memref<24x64xf32, #tpu.memory_space<vmem>>, vector<1x64xf32>
    %436 = tpu.concatenate %427, %431, %435 in 0 : vector<1x64xf32>, vector<1x64xf32>, vector<1x64xf32> -> vector<3x64xf32>
    %c0_182 = arith.constant 0 : index
    %c0_183 = arith.constant 0 : index
    %437 = vector.load %arg20[%c0_182, %c0_183] : memref<64x64xbf16, #tpu.memory_space<vmem>>, vector<64x64xbf16>
    %438 = arith.truncf %436 : vector<3x64xf32> to vector<3x64xbf16>
    %cst_184 = arith.constant dense<0.000000e+00> : vector<3x64xf32>
    %439 = tpu.matmul %438, %437, %cst_184 {dimension_numbers = #tpu.dot_dimension_numbers<[1], [0], [0], [1], [0, 0, 1, 1], [], []>} : vector<3x64xbf16>, vector<64x64xbf16>, vector<3x64xf32> -> vector<3x64xf32>
    %c0_185 = arith.constant 0 : index
    %c0_186 = arith.constant 0 : index
    %440 = vector.load %arg21[%c0_185, %c0_186] : memref<3x64xf32, #tpu.memory_space<vmem>>, vector<3x64xf32>
    tpu.vector_store %arg21[%c0_185, %c0_186], %439 {strides = array<i32>} : memref<3x64xf32, #tpu.memory_space<vmem>>, vector<3x64xf32>,
    return
  }
  func.func @transform_0(%arg0: i32) -> (i32, i32) {
    %c0_i32 = arith.constant 0 : i32
    %c0_i32_0 = arith.constant 0 : i32
    %c0_i32_1 = arith.constant 0 : i32
    return %c0_i32, %c0_i32_0 : i32, i32
  }
  func.func @transform_1(%arg0: i32) -> (i32, i32) {
    %c0_i32 = arith.constant 0 : i32
    %c0_i32_0 = arith.constant 0 : i32
    %c0_i32_1 = arith.constant 0 : i32
    return %c0_i32, %c0_i32_0 : i32, i32
  }
  func.func @transform_2(%arg0: i32) -> (i32, i32) {
    %c0_i32 = arith.constant 0 : i32
    %c0_i32_0 = arith.constant 0 : i32
    %c0_i32_1 = arith.constant 0 : i32
    return %c0_i32, %c0_i32_0 : i32, i32
  }
  func.func @transform_3(%arg0: i32) -> i32 {
    %c0_i32 = arith.constant 0 : i32
    %c0_i32_0 = arith.constant 0 : i32
    return %c0_i32 : i32
  }
  func.func @transform_4(%arg0: i32) -> (i32, i32, i32) {
    %c0_i32 = arith.constant 0 : i32
    %c0_i32_0 = arith.constant 0 : i32
    %c0_i32_1 = arith.constant 0 : i32
    %c0_i32_2 = arith.constant 0 : i32
    return %c0_i32, %c0_i32_0, %c0_i32_1 : i32, i32, i32
  }
  func.func @transform_5(%arg0: i32) -> (i32, i32, i32) {
    %c0_i32 = arith.constant 0 : i32
    %c0_i32_0 = arith.constant 0 : i32
    %c0_i32_1 = arith.constant 0 : i32
    %c0_i32_2 = arith.constant 0 : i32
    return %c0_i32, %c0_i32_0, %c0_i32_1 : i32, i32, i32
  }
  func.func @transform_6(%arg0: i32) -> (i32, i32, i32) {
    %c0_i32 = arith.constant 0 : i32
    %c0_i32_0 = arith.constant 0 : i32
    %c0_i32_1 = arith.constant 0 : i32
    %c0_i32_2 = arith.constant 0 : i32
    return %c0_i32, %c0_i32_0, %c0_i32_1 : i32, i32, i32
  }
  func.func @transform_7(%arg0: i32) -> (i32, i32, i32) {
    %c0_i32 = arith.constant 0 : i32
    %c0_i32_0 = arith.constant 0 : i32
    %c0_i32_1 = arith.constant 0 : i32
    %c0_i32_2 = arith.constant 0 : i32
    return %c0_i32, %c0_i32_0, %c0_i32_1 : i32, i32, i32
  }
  func.func @transform_8(%arg0: i32) -> (i32, i32, i32) {
    %c0_i32 = arith.constant 0 : i32
    %c0_i32_0 = arith.constant 0 : i32
    %c0_i32_1 = arith.constant 0 : i32
    %c0_i32_2 = arith.constant 0 : i32
    return %c0_i32, %c0_i32_0, %c0_i32_1 : i32, i32, i32
  }
  func.func @transform_9(%arg0: i32) -> (i32, i32, i32) {
    %c0_i32 = arith.constant 0 : i32
    %c0_i32_0 = arith.constant 0 : i32
    %c0_i32_1 = arith.constant 0 : i32
    %c0_i32_2 = arith.constant 0 : i32
    return %c0_i32, %c0_i32_0, %c0_i32_1 : i32, i32, i32
  }
  func.func @transform_10(%arg0: i32) -> (i32, i32, i32) {
    %c0_i32 = arith.constant 0 : i32
    %c0_i32_0 = arith.constant 0 : i32
    %c0_i32_1 = arith.constant 0 : i32
    %c0_i32_2 = arith.constant 0 : i32
    return %c0_i32, %c0_i32_0, %c0_i32_1 : i32, i32, i32
  }
  func.func @transform_11(%arg0: i32) -> (i32, i32, i32) {
    %c0_i32 = arith.constant 0 : i32
    %c0_i32_0 = arith.constant 0 : i32
    %c0_i32_1 = arith.constant 0 : i32
    %c0_i32_2 = arith.constant 0 : i32
    return %c0_i32, %c0_i32_0, %c0_i32_1 : i32, i32, i32
  }
  func.func @transform_12(%arg0: i32) -> (i32, i32, i32) {
    %c0_i32 = arith.constant 0 : i32
    %c0_i32_0 = arith.constant 0 : i32
    %c0_i32_1 = arith.constant 0 : i32
    %c0_i32_2 = arith.constant 0 : i32
    return %c0_i32, %c0_i32_0, %c0_i32_1 : i32, i32, i32
  }
  func.func @transform_13(%arg0: i32) -> (i32, i32, i32) {
    %c0_i32 = arith.constant 0 : i32
    %c0_i32_0 = arith.constant 0 : i32
    %c0_i32_1 = arith.constant 0 : i32
    %c0_i32_2 = arith.constant 0 : i32
    return %c0_i32, %c0_i32_0, %c0_i32_1 : i32, i32, i32
  }
  func.func @transform_14(%arg0: i32) -> (i32, i32, i32) {
    %c0_i32 = arith.constant 0 : i32
    %c0_i32_0 = arith.constant 0 : i32
    %c0_i32_1 = arith.constant 0 : i32
    %c0_i32_2 = arith.constant 0 : i32
    return %c0_i32, %c0_i32_0, %c0_i32_1 : i32, i32, i32
  }
  func.func @transform_15(%arg0: i32) -> (i32, i32, i32) {
    %c0_i32 = arith.constant 0 : i32
    %c0_i32_0 = arith.constant 0 : i32
    %c0_i32_1 = arith.constant 0 : i32
    %c0_i32_2 = arith.constant 0 : i32
    return %c0_i32, %c0_i32_0, %c0_i32_1 : i32, i32, i32
  }
  func.func @transform_16(%arg0: i32) -> (i32, i32, i32) {
    %c0_i32 = arith.constant 0 : i32
    %c0_i32_0 = arith.constant 0 : i32
    %c0_i32_1 = arith.constant 0 : i32
    %c0_i32_2 = arith.constant 0 : i32
    return %c0_i32, %c0_i32_0, %c0_i32_1 : i32, i32, i32
  }
  func.func @transform_17(%arg0: i32) -> (i32, i32) {
    %c0_i32 = arith.constant 0 : i32
    %c0_i32_0 = arith.constant 0 : i32
    %c0_i32_1 = arith.constant 0 : i32
    return %c0_i32, %c0_i32_0 : i32, i32
  }
  func.func @transform_18(%arg0: i32) -> (i32, i32) {
    %c0_i32 = arith.constant 0 : i32
    %c0_i32_0 = arith.constant 0 : i32
    %c0_i32_1 = arith.constant 0 : i32
    return %c0_i32, %c0_i32_0 : i32, i32
  }
  func.func @transform_19(%arg0: i32) -> (i32, i32) {
    %c0_i32 = arith.constant 0 : i32
    %c0_i32_0 = arith.constant 0 : i32
    %c0_i32_1 = arith.constant 0 : i32
    return %c0_i32, %c0_i32_0 : i32, i32
  }
  func.func @transform_20(%arg0: i32) -> (i32, i32) {
    %c0_i32 = arith.constant 0 : i32
    %c0_i32_0 = arith.constant 0 : i32
    %c0_i32_1 = arith.constant 0 : i32
    return %c0_i32, %c0_i32_0 : i32, i32
  }
}

</mosaic_0001>

<bundles_post_ra>
// kernel: custom_clip_forward.5
= control target key start
LH: loop header
LB: loop body
LE: loop exit
PB: predicated region body
PF: predicated region fallthrough
CT: control target
= control target key end

     0   :  { %vm28_vm0 = vcmask 518144   ;;  %s187_s0 = inlined_call_operand.vmem [shape: f32[2,64], index: 0, kind: input, shape index: {}]   ;;  %s188_s1 = inlined_call_operand.vmem [shape: f32[3,64], index: 1, kind: input, shape index: {}]   ;;  %s189_s2 = inlined_call_operand.<no memory space> [shape: f32[1], index: 2, kind: input, shape index: {}]   ;;  %s190_s3 = inlined_call_operand.hbm [shape: f32[2,3], index: 3, kind: output, shape index: {}]  }
   0x1   :  { %v18_v0 = vld [vmem:[%s188_s1] sm:$0x7] }
   0x2   :  { %v17_v1 = vld [vmem:[%s187_s0] sm:$0x3]  ;;  %v27_v2 = vmul.f32 %v18_v0, %v18_v0 }
   0x3   :  { %v19_v3 = vmul.f32 %v17_v1, %v17_v1 }
   0x4   :  { %9 = vsyncpa [#allocation4], 0  ;;  %vm20_vm1 = vcmask 517120   ;;  %v29_v4 = vsel %vm28_vm0, %v27_v2, 0.0  ;;  %v143_v6 = vmov 0.0   ;;  %vm144_vm2 = vmmov 0  }
   0x5   :  { %30 = vadd.xlane.f32.xlu0 %v29_v4  ;;  %v21_v5 = vsel %vm20_vm1, %v19_v3, 0.0  ;;  %106 = vmatprep.subr.bf16.mxu0 %v143_v6  ;;  %vm37_vm3 = vcmask 523264   ;;  %v85_v18 = vstv %s189_s2  ;;  %s145_s16 = smov [#allocation3]   ;;  %vm87_vm4 = vcmask 17408  }
   0x6   :  { %108 = vmatprep.mubr.msk.bf16.mxu0 %vm144_vm2, %v143_v6  ;;  %s95_s17 = sshll.u32 %s145_s16, 4  ;;  %s96_s17 = int_to_ptr.vmem [resolvable:$true] %s95_s17 }
   0x7   :  { %s119_s18 = scalar_lea.vmem %s96_s17, 32  ;;  %p124_p1 = scmp.lt.s32.totalorder %s96_s17, %s96_s17 }
   0x8   :  { %p120_p0 = scmp.ne.s32.totalorder %s96_s17, %s119_s18  ;;  %p125_p2 = scmp.lt.s32.totalorder %s119_s18, %s119_s18 }
   0x9   :  { %22 = vadd.xlane.f32.xlu0 %v21_v5 }
   0xa   :  { %p126_p3 = por %p125_p2, %p124_p1 }
   0xc   :  { %p127_p4 = pnand %p126_p3, %p120_p0 }
  0x92   :  { %v31_v7 = vpop.xlane.xlu0 %30 }
  0x93   :  { %v32_v8 = vadd.f32 1e-12, %v31_v7 }
  0x95   :  { %115 = vrsqrt.f32 %v32_v8 }
  0x96   :  { %v23_v9 = vpop.xlane.xlu0 %22 }
  0x97   :  { %v24_v10 = vadd.f32 1e-12, %v23_v9 }
  0x99   :  { %117 = vrsqrt.f32 %v24_v10 }
  0x9f   :  { %v116_v11 = vpop.eup %115 }
  0xa0   :  { %v34_v12 = vmul.f32 %v116_v11, %v18_v0 }
  0xa2   :  { %v36_v13 = vpack.c.bf16 %v34_v12, %v34_v12 }
  0xa3   :  { %v118_v14 = vpop.eup %117 }
  0xa4   :  { %v42_v15 = vsel %vm37_vm3, %v36_v13, 0  ;;  %v26_v16 = vmul.f32 %v118_v14, %v17_v1 }
  0xa5   :  { %107 = vmatpush3.bf16.xpose.msra.mxu0 %v42_v15 }
  0xa6   :  { %v35_v17 = vpack.c.bf16 %v26_v16, %v26_v16 }
  0xac   :  { %109 = vmatmul.mubr.msk.bf16.vlgmr.msra.gmra.mrb[0].mxu0 %vm37_vm3, %v35_v17 }
 0x17f   :  { %v78_v19 = vpop.f32.mrb[0].mxu0 }
 0x180   :  { %v86_v20 = vmul.f32 %v85_v18, %v78_v19  ;;  %v110_v21 = vpop.f32.mrb[1].mxu0 }
 0x181   :  { %v81_v22 = vpop.f32.mrb[2].mxu0 }
 0x182   :  { %v111_v23 = vpop.f32.mrb[3].mxu0  ;;  %88 = vst.msk [vmem:[#allocation3] sm:$0x3] %vm87_vm4, %v86_v20 }
 0x183   :  { %130 = shalt.err (!%p127_p4)
}
 0x184   :  { %s131_s2 = scalar_lea.hbm %s190_s3, 32 }
 0x185   :  { %p132_p5 = scmp.ne.s32.totalorder %s190_s3, %s131_s2  ;;  %p135_p6 = scmp.lt.u32.totalorder %s131_s2, %s190_s3 }
 0x187   :  { %p137_p7 = pnand %p135_p6, %p132_p5 }
 0x189   :  { %140 = shalt.err (!%p137_p7)
}
 0x18a   :  { %98 = dma.vmem_to_hbm [thread:$0]  %s96_s17, 32, %s190_s3, [#allocation4]  }
 0x18b   :  { %141 = dma.done.wait [#allocation4], 32  }
 0x18c   :  { %142 = vsyncadd [#allocation4], 4294967264 }
 0x18d   :  { %102 = vsyncpa [#allocation4], 1 }

// kernel: custom_clip_forward.3
= control target key start
LH: loop header
LB: loop body
LE: loop exit
PB: predicated region body
PF: predicated region fallthrough
CT: control target
= control target key end

     0   :  { %s5144_s0 = inlined_call_operand.vmem [shape: f32[24,64], index: 0, kind: input, shape index: {}]   ;;  %s5145_s1 = inlined_call_operand.vmem [shape: f32[24,64], index: 1, kind: input, shape index: {}]   ;;  %s5146_s2 = inlined_call_operand.vmem [shape: f32[24,24], index: 2, kind: input, shape index: {}]   ;;  %s5147_s3 = inlined_call_operand.vmem [shape: s32[3], index: 3, kind: input, shape index: {}]   ;;  %s5148_s4 = inlined_call_operand.vmem [shape: f32[1,2,64], index: 4, kind: input, shape index: {}]   ;;  %s5149_s5 = inlined_call_operand.vmem [shape: f32[2,1,64], index: 5, kind: input, shape index: {}]   ;;  %s5150_s6 = inlined_call_operand.vmem [shape: f32[2,1,64], index: 6, kind: input, shape index: {}]   ;;  %s5151_s7 = inlined_call_operand.vmem [shape: bf16[2,64,192], index: 7, kind: input, shape index: {}]   ;;  %s5152_s8 = inlined_call_operand.vmem [shape: f32[2,1,192], index: 8, kind: input, shape index: {}]   ;;  %s5153_s9 = inlined_call_operand.vmem [shape: bf16[2,64,64], index: 9, kind: input, shape index: {}]   ;;  %s5154_s10 = inlined_call_operand.vmem [shape: f32[2,1,64], index: 10, kind: input, shape index: {}]   ;;  %s5155_s11 = inlined_call_operand.vmem [shape: f32[2,1,64], index: 11, kind: input, shape index: {}]   ;;  %s5156_s12 = inlined_call_operand.vmem [shape: f32[2,1,64], index: 12, kind: input, shape index: {}]   ;;  %s5157_s13 = inlined_call_operand.vmem [shape: bf16[2,64,256], index: 13, kind: input, shape index: {}]   ;;  %s5158_s14 = inlined_call_operand.vmem [shape: f32[2,1,256], index: 14, kind: input, shape index: {}]   ;;  %s5159_s15 = inlined_call_operand.vmem [shape: bf16[2,256,64], index: 15, kind: input, shape index: {}]   ;;  %s5160_s16 = inlined_call_operand.vmem [shape: f32[2,1,64], index: 16, kind: input, shape index: {}]   ;;  %s5161_s17 = inlined_call_operand.vmem [shape: f32[1,64], index: 17, kind: input, shape index: {}]   ;;  %s5162_s18 = inlined_call_operand.vmem [shape: f32[1,64], index: 18, kind: input, shape index: {}]   ;;  %s5163_s19 = inlined_call_operand.vmem [shape: bf16[64,64], index: 19, kind: input, shape index: {}]   ;;  %s5164_s20 = inlined_call_operand.vmem [shape: f32[3,64], index: 20, kind: output, shape index: {}]  }
   0x1   :  { %5174 = sst [smem:[#allocation6_spill]] %s5144_s0 }
   0x2   :  { %5175 = sst [smem:[#allocation7_spill]] %s5145_s1 }
   0x3   :  { %5176 = sst [smem:[#allocation8_spill]] %s5146_s2 }
   0x4   :  { %5177 = sst [smem:[#allocation9_spill]] %s5147_s3 }
   0x5   :  { %5178 = sst [smem:[#allocation10_spill]] %s5148_s4 }
   0x6   :  { %25 = vsyncpa [#allocation4], 0  ;;  %s5179_s23 = sld [smem:[#allocation9_spill]] }
   0xc   :  { %s38_s24 = sshll.u32 %s5179_s23, 4  ;;  %s39_s24 = int_to_ptr.vmem [resolvable:$true] %s38_s24 }
   0xd   :  { %s4243_s2 = scalar_lea.vmem %s39_s24, 16  ;;  %p4248_p1 = scmp.lt.s32.totalorder %s39_s24, %s39_s24 }
   0xe   :  { %p4244_p0 = scmp.ne.s32.totalorder %s39_s24, %s4243_s2  ;;  %p4249_p2 = scmp.lt.s32.totalorder %s4243_s2, %s4243_s2 }
  0x10   :  { %p4250_p3 = por %p4249_p2, %p4248_p1 }
  0x12   :  { %p4251_p4 = pnand %p4250_p3, %p4244_p0 }
  0x14   :  { %4254 = shalt.err (!%p4251_p4)
}
  0x15   :  { %s4257_s25 = smov [#allocation3]  }
  0x16   :  { %41 = dma.vmem_to_smem %s39_s24, 16, %s4257_s25, [#allocation4]  }
  0x17   :  { %4255 = dma.done.wait [#allocation4], 16  }
  0x18   :  { %4256 = vsyncadd [#allocation4], 4294967280 }
  0x19   :  { %77 = sfence }
  0x1a   :  { %s5180_s27 = sld [smem:[#allocation6_spill]]  ;;  %s5181_s29 = sld [smem:[#allocation7_spill]]  ;;  %vm91_vm0 = vcmask 523264   ;;  %v3971_v30 = vld [vmem:[%s5151_s7 + $0x4] ss:$8 sps:$4 sm:$0xff]   ;;  %v4258_v34 = vmov 0  }
  0x1b   :  { %v3973_v31 = vld [vmem:[%s5151_s7] ss:$8 sps:$4 sm:$0xff]   ;;  %v3974_v32 = vld [vmem:[%s5151_s7 + $0x14] ss:$8 sps:$4 sm:$0xff]   ;;  %279 = vmatprep.subr.bf16.mxu0 %v3971_v30  ;;  %v3976_v33 = vld [vmem:[%s5151_s7 + $0x10] ss:$8 sps:$4 sm:$0xff]   ;;  %311 = vmatprep.mubr.bf16.mxu0 %v4258_v34 }
  0x1c   :  { %280 = vmatpush1.bf16.msra.mxu0 %v3973_v31  ;;  %v3977_v35 = vld [vmem:[%s5151_s7 + $0x24] ss:$8 sps:$4 sm:$0xff]   ;;  %v3979_v36 = vld [vmem:[%s5151_s7 + $0x20] ss:$8 sps:$4 sm:$0xff]   ;;  %v3980_v37 = vld [vmem:[%s5151_s7 + $0x34] ss:$8 sps:$4 sm:$0xff]  }
  0x1d   :  { %281 = vmatprep.subr.bf16.mxu0 %v3974_v32  ;;  %v3982_v38 = vld [vmem:[%s5151_s7 + $0x30] ss:$8 sps:$4 sm:$0xff]   ;;  %v3372_v50 = vld [vmem:[%s5149_s5] ss:$0 sm:$0xff]  ;;  %vm345_vm1 = vcmask 130048   ;;  %s4259_s30 = smov 64  }
  0x1e   :  { %v3373_v55 = vld [vmem:[%s5150_s6] ss:$0 sm:$0xff]  ;;  %s4260_s0 = smov 112   ;;  %s4261_s21 = smov 32   ;;  %vm448_vm2 = vcmask 1043456   ;;  %vm406_vm3 = vcmask 195584  }
  0x1f   :  { %s4262_s1 = smov 48   ;;  %s5172_s22 = smov 96   ;;  %vm1641_vm4 = vcmask 517120   ;;  %vm4267_vm5 = vmmov 0   ;;  %vm3280_vm6 = vcmask 1040384   ;;  %vm3282_vm7 = vcmask 1041408  }
  0x20   :  { %v82_v0 = vld [vmem:[%s5180_s27] sm:$0xff]  ;;  %v84_v2 = vld [vmem:[%s5180_s27 + $0x10] sm:$0xff]  ;;  %v83_v5 = vld [vmem:[%s5180_s27 + $0x8] sm:$0xff]  ;;  %282 = vmatpush1.bf16.msra.mxu0 %v3976_v33  ;;  %s5182_s2 = sld [smem:[#allocation8_spill]]  ;;  %s5170_s28 = smov 16   ;;  %vm3360_vm8 = vcmask 518144  }
  0x21   :  { %v85_v1 = vld [vmem:[%s5181_s29] sm:$0xff]  ;;  %v87_v4 = vld [vmem:[%s5181_s29 + $0x10] sm:$0xff]  ;;  %v86_v6 = vld [vmem:[%s5181_s29 + $0x8] sm:$0xff]  ;;  %283 = vmatprep.subr.bf16.mxu0 %v3977_v35  ;;  %s5168_s4 = smov 80   ;;  %s5185_s3 = smov 16  }
  0x22   :  { %v88_v3 = vadd.f32 %v85_v1, %v82_v0  ;;  %v90_v7 = vadd.f32 %v87_v4, %v84_v2  ;;  %v89_v8 = vadd.f32 %v86_v6, %v83_v5  ;;  %v223_v0 = vlaneseq  ;;  %s5186_s26 = smov 80  }
  0x24   :  { %92 = vst.msk [vmem:[#allocation2] sm:$0xff] %vm91_vm0, %v88_v3  ;;  %94 = vst.msk [vmem:[#allocation2 + $0x10] sm:$0xff] %vm91_vm0, %v90_v7  ;;  %284 = vmatpush1.bf16.msra.mxu0 %v3979_v36  ;;  %v224_v1 = vshrl.u32 %v223_v0, 7  ;;  %v108_v3 = vld [vmem:[%s5152_s8] sm:$0x3] }
  0x25   :  { %93 = vst.msk [vmem:[#allocation2 + $0x8] sm:$0xff] %vm91_vm0, %v89_v8  ;;  %285 = vmatprep.subr.bf16.mxu0 %v3980_v37 }
  0x26   :  { %v4437_v2 = vsub.s32 0, %v224_v1  ;;  %v4442_v4 = vsub.s32 1, %v224_v1 }
  0x28   :  { %286 = vmatpush1.bf16.msra.mxu0 %v3982_v38  ;;  %v226_v5 = vrot.slane %v108_v3, %v4437_v2  ;;  %v230_v7 = vrot.slane %v108_v3, %v4442_v4 }
  0x2b   :  { %v95_v9 = vld [vmem:[#allocation2] sm:$0xff]  ;;  %v97_v11 = vld [vmem:[#allocation2 + $0x10] sm:$0xff] }
  0x2c   :  { %v162_v10 = vsel %vm91_vm0, %v95_v9, 0.0  ;;  %v96_v12 = vld [vmem:[#allocation2 + $0x8] sm:$0xff]  ;;  %v168_v13 = vsel %vm91_vm0, %v97_v11, 0.0 }
  0x2d   :  { %163 = vadd.xlane.f32.xlu0 %v162_v10  ;;  %v165_v14 = vsel %vm91_vm0, %v96_v12, 0.0  ;;  %169 = vadd.xlane.f32.xlu1 %v168_v13 }
  0x31   :  { %166 = vadd.xlane.f32.xlu0 %v165_v14 }
  0xba   :  { %v164_v15 = vpop.xlane.xlu0 %163  ;;  %v170_v17 = vpop.xlane.xlu1 %169 }
  0xbb   :  { %v172_v16 = vmul.f32 0.015625, %v164_v15  ;;  %v174_v18 = vmul.f32 0.015625, %v170_v17 }
  0xbd   :  { %v175_v19 = vsub.f32 %v95_v9, %v172_v16  ;;  %v177_v20 = vsub.f32 %v97_v11, %v174_v18 }
  0xbe   :  { %v167_v21 = vpop.xlane.xlu0 %166 }
  0xbf   :  { %v173_v22 = vmul.f32 0.015625, %v167_v21  ;;  %v178_v23 = vmul.f32 %v175_v19, %v175_v19  ;;  %v180_v24 = vmul.f32 %v177_v20, %v177_v20 }
  0xc1   :  { %v176_v25 = vsub.f32 %v96_v12, %v173_v22  ;;  %v181_v26 = vsel %vm91_vm0, %v178_v23, 0.0  ;;  %v187_v27 = vsel %vm91_vm0, %v180_v24, 0.0 }
  0xc2   :  { %182 = vadd.xlane.f32.xlu1 %v181_v26 }
  0xc3   :  { %v179_v28 = vmul.f32 %v176_v25, %v176_v25 }
  0xc5   :  { %v184_v29 = vsel %vm91_vm0, %v179_v28, 0.0 }
  0xc6   :  { %188 = vadd.xlane.f32.xlu1 %v187_v27  ;;  %185 = vadd.xlane.f32.xlu0 %v184_v29 }
 0x14f   :  { %v183_v39 = vpop.xlane.xlu1 %182 }
 0x150   :  { %v190_v40 = vmul.f32 0.015625, %v183_v39 }
 0x152   :  { %v193_v41 = vadd.f32 1e-05, %v190_v40 }
 0x153   :  { %v189_v42 = vpop.xlane.xlu1 %188  ;;  %v186_v43 = vpop.xlane.xlu0 %185 }
 0x154   :  { %4063 = vrsqrt.f32 %v193_v41  ;;  %v192_v44 = vmul.f32 0.015625, %v189_v42  ;;  %v191_v45 = vmul.f32 0.015625, %v186_v43 }
 0x156   :  { %v195_v46 = vadd.f32 1e-05, %v192_v44  ;;  %v194_v47 = vadd.f32 1e-05, %v191_v45 }
 0x158   :  { %4065 = vrsqrt.f32 %v195_v46 }
 0x159   :  { %4067 = vrsqrt.f32 %v194_v47 }
 0x15e   :  { %v4064_v48 = vpop.eup %4063 }
 0x15f   :  { %v199_v49 = vmul.f32 %v4064_v48, %v175_v19  ;;  %v4507_v48 = vld [vmem:[%s5182_s2] sm:$0xff] }
 0x161   :  { %v208_v54 = vmul.f32 %v3372_v50, %v199_v49 }
 0x162   :  { %v4066_v51 = vpop.eup %4065 }
 0x163   :  { %v4068_v52 = vpop.eup %4067  ;;  %v201_v57 = vmul.f32 %v4066_v51, %v177_v20  ;;  %v217_v58 = vadd.f32 %v3373_v55, %v208_v54 }
 0x164   :  { %v200_v53 = vmul.f32 %v4068_v52, %v176_v25  ;;  %v4517_v52 = vld [vmem:[%s5182_s2 + $0x8] sm:$0xff] }
 0x165   :  { %v210_v61 = vmul.f32 %v3372_v50, %v201_v57 }
 0x166   :  { %v209_v56 = vmul.f32 %v3372_v50, %v200_v53  ;;  %v4512_v50 = vld [vmem:[%s5182_s2 + $0x10] sm:$0xff] }
 0x167   :  { %v219_v62 = vadd.f32 %v3373_v55, %v210_v61 }
 0x168   :  { %v218_v59 = vadd.f32 %v3373_v55, %v209_v56 }
 0x169   :  { %v221_v63 = vpack.c.bf16 %v219_v62, %v219_v62 }
 0x16a   :  { %v220_v60 = vpack.c.bf16 %v218_v59, %v217_v58 }
 0x16c   :  { %3382 = vmatmul.mubr.msk.bf16.vlgmr.msra.gmra.mrb[0].mxu0 %vm91_vm0, %v220_v60 }
 0x16d   :  { %321 = vmatprep.mubr.bf16.mxu0 %v4258_v34 }
 0x174   :  { %3383 = vmatmul.mubr.msk.bf16.gmra.mrb[4].mxu0 %vm91_vm0, %v221_v63 }
 0x23f   :  { %v313_v6 = vpop.f32.mrb[0].mxu0 }
 0x240   :  { %v314_v8 = vadd.f32 %v313_v6, %v226_v5  ;;  %v315_v9 = vpop.f32.mrb[1].mxu0 }
 0x241   :  { %v317_v10 = vpop.f32.mrb[2].mxu0  ;;  %v316_v13 = vadd.f32 %v315_v9, %v230_v7 }
 0x242   :  { %v318_v11 = vadd.f32 %v317_v10, %v226_v5  ;;  %v319_v12 = vpop.f32.mrb[3].mxu0  ;;  %v330_v15 = vmul.f32 0.25, %v314_v8 }
 0x243   :  { %v320_v14 = vadd.f32 %v319_v12, %v230_v7 }
 0x244   :  { %v331_v16 = vmul.f32 0.25, %v318_v11  ;;  %v4446_v17 = vpack.c.bf16 %v318_v11, %v314_v8 }
 0x245   :  { %v4448_v18 = vpack.c.bf16 %v320_v14, %v316_v13 }
 0x246   :  { %v4450_v19 = vpack.c.bf16 %v331_v16, %v330_v15  ;;  %341 = vrot.lane.b32.xlu0 %v4446_v17, %s4259_s30 }
 0x247   :  { %v323_v20 = vpop.f32.mrb[4].mxu0 }
 0x248   :  { %v324_v21 = vadd.f32 %v323_v20, %v226_v5  ;;  %v325_v22 = vpop.f32.mrb[5].mxu0  ;;  %3752 = vmatprep.mubr.msk.bf16.mxu1 %vm345_vm1, %v4450_v19 }
 0x249   :  { %v327_v23 = vpop.f32.mrb[6].mxu0  ;;  %v326_v36 = vadd.f32 %v325_v22, %v230_v7 }
 0x24a   :  { %v4456_v24 = vpack.c.bf16 %v324_v21, %v324_v21  ;;  %v328_v25 = vpop.f32.mrb[7].mxu0  ;;  %504 = vrot.lane.b32.xlu0 %v4450_v19, %s4260_s0  ;;  %v332_v26 = vmul.f32 0.25, %v324_v21 }
 0x24b   :  { %v4487_v38 = vpack.c.bf16 %v326_v36, %v326_v36 }
 0x24c   :  { %343 = vrot.lane.b32.xlu1 %v4456_v24, %s4259_s30  ;;  %v4470_v27 = vpack.c.bf16 %v332_v26, %v332_v26 }
 0x24d   :  { %v450_v41 = vsel %vm448_vm2, %v4487_v38, 0 }
 0x24e   :  { %797 = vrot.lane.b32.xlu0 %v4446_v17, %s4261_s21 }
 0x250   :  { %508 = vrot.lane.b32.xlu1 %v4446_v17, %s4262_s1 }
 0x252   :  { %793 = vrot.lane.b32.xlu0 %v4450_v19, %s5172_s22 }
 0x254   :  { %510 = vrot.lane.b32.xlu1 %v4456_v24, %s4262_s1 }
 0x258   :  { %506 = vrot.lane.b32.xlu1 %v4470_v27, %s4260_s0 }
 0x25c   :  { %799 = vrot.lane.b32.xlu1 %v4456_v24, %s4261_s21 }
 0x260   :  { %795 = vrot.lane.b32.xlu1 %v4470_v27, %s5172_s22 }
 0x2b8   :  { %v342_v28 = vpop.permute.xlu0 %341 }
 0x2b9   :  { %3936 = vmatprep.subr.msk.bf16.mxu1 %vm345_vm1, %v342_v28  ;;  %v353_v29 = vsel %vm345_vm1, %v342_v28, 0 }
 0x2ba   :  { %3749 = vmatpush3.bf16.xpose.msra.mxu1 %v353_v29 }
 0x2bc   :  { %v505_v30 = vpop.permute.xlu0 %504 }
 0x2bd   :  { %3768 = vmatprep.mubr.msk.bf16.mxu0 %vm345_vm1, %v505_v30 }
 0x2be   :  { %v344_v31 = vpop.permute.xlu1 %343 }
 0x2bf   :  { %3937 = vmatprep.subr.msk.bf16.mxu1 %vm345_vm1, %v344_v31  ;;  %v356_v32 = vsel %vm345_vm1, %v344_v31, 0 }
 0x2c0   :  { %v798_v40 = vpop.permute.xlu0 %797 }
 0x2c1   :  { %v808_v44 = vsel %vm345_vm1, %v798_v40, 0 }
 0x2c2   :  { %v509_v33 = vpop.permute.xlu1 %508  ;;  %3751 = vmatpush3.bf16.xpose.msra.mxu1 %v356_v32 }
 0x2c3   :  { %3756 = vmatprep.subr.bf16.mxu1 %v4448_v18  ;;  %3939 = vmatprep.subr.msk.bf16.mxu0 %vm345_vm1, %v509_v33  ;;  %v519_v35 = vsel %vm345_vm1, %v509_v33, 0 }
 0x2c4   :  { %3765 = vmatpush3.bf16.xpose.msra.mxu0 %v519_v35  ;;  %v794_v43 = vpop.permute.xlu0 %793 }
 0x2c6   :  { %v511_v37 = vpop.permute.xlu1 %510 }
 0x2c7   :  { %3940 = vmatprep.subr.msk.bf16.mxu0 %vm345_vm1, %v511_v37  ;;  %v522_v39 = vsel %vm345_vm1, %v511_v37, 0 }
 0x2c9   :  { %3753 = vmatmul.mubr.msk.bf16.vlgmr.msra.gmra.mrb[0].mxu1 %vm345_vm1, %v4470_v27 }
 0x2ca   :  { %3757 = vmatpush3.bf16.msra.mxu1 %v4448_v18  ;;  %v507_v42 = vpop.permute.xlu1 %506 }
 0x2cb   :  { %3938 = vmatprep.subr.msk.bf16.mxu1 %vm448_vm2, %v4487_v38 }
 0x2cc   :  { %3767 = vmatpush3.bf16.xpose.msra.mxu0 %v522_v39 }
 0x2cd   :  { %3942 = vmatprep.subr.msk.bf16.mxu0 %vm345_vm1, %v798_v40 }
 0x2ce   :  { %3759 = vmatpush3.bf16.msra.mxu1 %v450_v41  ;;  %v800_v45 = vpop.permute.xlu1 %799 }
 0x2cf   :  { %v811_v46 = vsel %vm345_vm1, %v800_v45, 0 }
 0x2d2   :  { %v796_v47 = vpop.permute.xlu1 %795 }
 0x2d3   :  { %3769 = vmatmul.mubr.msk.bf16.vlgmr.msra.gmra.mrb[8].mxu0 %vm345_vm1, %v507_v42 }
 0x2d4   :  { %3793 = vmatpush3.bf16.xpose.msra.mxu0 %v808_v44  ;;  %3796 = vmatprep.mubr.msk.bf16.mxu0 %vm345_vm1, %v794_v43 }
 0x2d5   :  { %3943 = vmatprep.subr.msk.bf16.mxu0 %vm345_vm1, %v800_v45 }
 0x2dc   :  { %3795 = vmatpush3.bf16.xpose.msra.mxu0 %v811_v46 }
 0x2e3   :  { %3797 = vmatmul.mubr.msk.bf16.vlgmr.msra.gmra.mrb[12].mxu0 %vm345_vm1, %v796_v47 }
 0x39c   :  { %v3754_v49 = vpop.f32.mrb[0].mxu1 }
 0x39d   :  { %v392_v51 = vpop.f32.mrb[1].mxu1  ;;  %v401_v56 = vadd.f32 %v3754_v49, %v4512_v50 }
 0x39e   :  { %v393_v53 = vadd.f32 %v392_v51, %v4507_v48  ;;  %v3755_v54 = vpop.f32.mrb[2].mxu1 }
 0x39f   :  { %v395_v55 = vpop.f32.mrb[3].mxu1  ;;  %v413_v60 = vsel %vm406_vm3, %v401_v56, -inf }
 0x3a0   :  { %v396_v57 = vadd.f32 %v395_v55, %v4517_v52  ;;  %v407_v58 = vsel %vm406_vm3, %v393_v53, -inf }
 0x3a1   :  { %408 = vmax.xlane.f32.xlu0 %v407_v58 }
 0x3a2   :  { %v410_v59 = vsel %vm406_vm3, %v396_v57, -inf }
 0x3a3   :  { %411 = vmax.xlane.f32.xlu1 %v410_v59 }
 0x3a5   :  { %414 = vmax.xlane.f32.xlu0 %v413_v60 }
 0x3a6   :  { %v3770_v61 = vpop.f32.mrb[8].mxu0 }
 0x3a7   :  { %v567_v62 = vadd.f32 %v3770_v61, %v4512_v50  ;;  %v558_v63 = vpop.f32.mrb[9].mxu0 }
 0x3a8   :  { %v559_v0 = vadd.f32 %v558_v63, %v4507_v48  ;;  %v3771_v1 = vpop.f32.mrb[10].mxu0 }
 0x3a9   :  { %v561_v3 = vpop.f32.mrb[11].mxu0  ;;  %v578_v5 = vsel %vm406_vm3, %v567_v62, -inf }
 0x3aa   :  { %v562_v6 = vadd.f32 %v561_v3, %v4517_v52  ;;  %579 = vmax.xlane.f32.xlu1 %v578_v5  ;;  %v572_v7 = vsel %vm406_vm3, %v559_v0, -inf }
 0x3ab   :  { %573 = vmax.xlane.f32.xlu0 %v572_v7 }
 0x3ac   :  { %v575_v8 = vsel %vm406_vm3, %v562_v6, -inf }
 0x3af   :  { %576 = vmax.xlane.f32.xlu0 %v575_v8 }
 0x3b6   :  { %v3798_v9 = vpop.f32.mrb[12].mxu0 }
 0x3b7   :  { %v847_v10 = vpop.f32.mrb[13].mxu0  ;;  %v4559_v54 = vadd.f32 %v3798_v9, %v4512_v50 }
 0x3b8   :  { %v3799_v11 = vpop.f32.mrb[14].mxu0 }
 0x3b9   :  { %v850_v12 = vpop.f32.mrb[15].mxu0 }
 0x42e   :  { %v409_v13 = vpop.xlane.xlu0 %408 }
 0x42f   :  { %v416_v14 = vsub.f32 %v393_v53, %v409_v13  ;;  %v4556_v53 = vadd.f32 %v847_v10, %v4507_v48 }
 0x430   :  { %v412_v16 = vpop.xlane.xlu1 %411 }
 0x431   :  { %v419_v21 = vmul.f32 1.442695, %v416_v14  ;;  %v417_v29 = vsub.f32 %v396_v57, %v412_v16  ;;  %v861_v55 = vsel %vm406_vm3, %v4556_v53, -inf }
 0x432   :  { %v415_v15 = vpop.xlane.xlu0 %414 }
 0x433   :  { %v418_v20 = vsub.f32 %v401_v56, %v415_v15  ;;  %v421_v35 = vmul.f32 1.442695, %v417_v29 }
 0x435   :  { %v423_v22 = vmul.f32 1.442695, %v418_v20 }
 0x437   :  { %4069 = vpow2.f32 %v423_v22  ;;  %v580_v23 = vpop.xlane.xlu1 %579 }
 0x438   :  { %v583_v25 = vsub.f32 %v567_v62, %v580_v23  ;;  %v574_v26 = vpop.xlane.xlu0 %573  ;;  %4071 = vpow2.f32 %v419_v21 }
 0x439   :  { %v581_v28 = vsub.f32 %v559_v0, %v574_v26 }
 0x43a   :  { %v588_v30 = vmul.f32 1.442695, %v583_v25 }
 0x43b   :  { %v584_v31 = vmul.f32 1.442695, %v581_v28 }
 0x43c   :  { %4073 = vpow2.f32 %v588_v30  ;;  %v577_v32 = vpop.xlane.xlu0 %576 }
 0x43d   :  { %v582_v33 = vsub.f32 %v562_v6, %v577_v32  ;;  %4075 = vpow2.f32 %v584_v31 }
 0x43f   :  { %v586_v36 = vmul.f32 1.442695, %v582_v33 }
 0x441   :  { %v4531_v37 = vpop.eup %4069  ;;  %4077 = vpow2.f32 %v586_v36 }
 0x442   :  { %4079 = vpow2.f32 %v421_v35  ;;  %v431_v39 = vsel %vm406_vm3, %v4531_v37, 0.0  ;;  %v4072_v40 = vpop.eup %4071 }
 0x443   :  { %432 = vadd.xlane.f32.xlu0 %v431_v39  ;;  %v425_v42 = vsel %vm406_vm3, %v4072_v40, 0.0 }
 0x446   :  { %v4535_v41 = vpop.eup %4073 }
 0x447   :  { %426 = vadd.xlane.f32.xlu0 %v425_v42  ;;  %v596_v43 = vsel %vm406_vm3, %v4535_v41, 0.0  ;;  %v4076_v44 = vpop.eup %4075 }
 0x448   :  { %597 = vadd.xlane.f32.xlu1 %v596_v43  ;;  %v590_v46 = vsel %vm406_vm3, %v4076_v44, 0.0 }
 0x44b   :  { %v4078_v45 = vpop.eup %4077 }
 0x44c   :  { %v4080_v47 = vpop.eup %4079  ;;  %591 = vadd.xlane.f32.xlu1 %v590_v46  ;;  %v593_v49 = vsel %vm406_vm3, %v4078_v45, 0.0  ;;  %v3983_v46 = vld [vmem:[%s5153_s9 + $0x8] sm:$0xff]  }
 0x44d   :  { %594 = vadd.xlane.f32.xlu0 %v593_v49  ;;  %v428_v51 = vsel %vm406_vm3, %v4080_v47, 0.0 }
 0x450   :  { %429 = vadd.xlane.f32.xlu1 %v428_v51 }
 0x461   :  { %611 = vrot.lane.b32.xlu1 %v4487_v38, %s4260_s0 }
 0x463   :  { %609 = vrot.lane.b32.xlu0 %v4448_v18, %s4260_s0 }
 0x465   :  { %1027 = vrot.lane.b32.xlu1 %v4446_v17, %s5170_s28  ;;  %v867_v17 = vsel %vm406_vm3, %v4559_v54, -inf }
 0x467   :  { %1023 = vrot.lane.b32.xlu0 %v4450_v19, %s5168_s4  ;;  %v4566_v19 = vadd.f32 %v850_v12, %v4517_v52 }
 0x469   :  { %1029 = vrot.lane.b32.xlu1 %v4456_v24, %s5170_s28  ;;  %v864_v24 = vsel %vm406_vm3, %v4566_v19, -inf }
 0x46d   :  { %1025 = vrot.lane.b32.xlu1 %v4470_v27, %s5168_s4 }
 0x486   :  { %862 = vmax.xlane.f32.xlu0 %v861_v55 }
 0x48a   :  { %868 = vmax.xlane.f32.xlu0 %v867_v17 }
 0x491   :  { %865 = vmax.xlane.f32.xlu1 %v864_v24 }
 0x4d0   :  { %v433_v27 = vpop.xlane.xlu0 %432 }
 0x4d1   :  { %4081 = vrcp.f32 %v433_v27 }
 0x4d4   :  { %v427_v57 = vpop.xlane.xlu0 %426 }
 0x4d5   :  { %v598_v56 = vpop.xlane.xlu1 %597  ;;  %4083 = vrcp.f32 %v427_v57 }
 0x4d9   :  { %v592_v58 = vpop.xlane.xlu1 %591 }
 0x4da   :  { %v595_v59 = vpop.xlane.xlu0 %594  ;;  %4085 = vrcp.f32 %v592_v58 }
 0x4db   :  { %4087 = vrcp.f32 %v595_v59  ;;  %v4082_v0 = vpop.eup %4081 }
 0x4dc   :  { %v439_v9 = vmul.f32 %v4082_v0, %v4531_v37 }
 0x4dd   :  { %v430_v60 = vpop.xlane.xlu1 %429 }
 0x4de   :  { %4089 = vrcp.f32 %v430_v60  ;;  %v610_v61 = vpop.permute.xlu0 %609  ;;  %v441_v16 = vpack.c.bf16 %v439_v9, %v439_v9 }
 0x4df   :  { %3772 = vmatprep.subr.bf16.mxu1 %v610_v61  ;;  %4091 = vrcp.f32 %v598_v56  ;;  %v4084_v1 = vpop.eup %4083 }
 0x4e0   :  { %v437_v11 = vmul.f32 %v4084_v1, %v4072_v40 }
 0x4e1   :  { %v612_v62 = vpop.permute.xlu1 %611 }
 0x4e2   :  { %v1024_v63 = vpop.permute.xlu0 %1023  ;;  %v621_v25 = vsel %vm448_vm2, %v612_v62, 0 }
 0x4e3   :  { %3818 = vmatprep.mubr.msk.bf16.mxu0 %vm345_vm1, %v1024_v63 }
 0x4e4   :  { %v4086_v3 = vpop.eup %4085 }
 0x4e5   :  { %v1028_v5 = vpop.permute.xlu1 %1027  ;;  %v4088_v6 = vpop.eup %4087  ;;  %v602_v13 = vmul.f32 %v4086_v3, %v4076_v44 }
 0x4e6   :  { %v1038_v7 = vsel %vm345_vm1, %v1028_v5, 0  ;;  %3945 = vmatprep.subr.msk.bf16.mxu0 %vm345_vm1, %v1028_v5  ;;  %v603_v14 = vmul.f32 %v4088_v6, %v4078_v45 }
 0x4e7   :  { %3815 = vmatpush3.bf16.xpose.msra.mxu0 %v1038_v7 }
 0x4e8   :  { %v4090_v8 = vpop.eup %4089  ;;  %v605_v21 = vpack.c.bf16 %v603_v14, %v602_v13 }
 0x4e9   :  { %v1030_v10 = vpop.permute.xlu1 %1029  ;;  %v438_v12 = vmul.f32 %v4090_v8, %v4080_v47  ;;  %v4092_v20 = vpop.eup %4091  ;;  %v3984_v47 = vld [vmem:[%s5153_s9] sm:$0xff]  }
 0x4ea   :  { %3946 = vmatprep.subr.msk.bf16.mxu0 %vm345_vm1, %v1030_v10  ;;  %v1041_v22 = vsel %vm345_vm1, %v1030_v10, 0  ;;  %v604_v23 = vmul.f32 %v4092_v20, %v4535_v41 }
 0x4eb   :  { %v440_v15 = vpack.c.bf16 %v438_v12, %v437_v11 }
 0x4ec   :  { %v606_v26 = vpack.c.bf16 %v604_v23, %v604_v23 }
 0x4ed   :  { %3760 = vmatprep.mubr.msk.bf16.mxu1 %vm406_vm3, %v440_v15  ;;  %v1026_v28 = vpop.permute.xlu1 %1025 }
 0x4ee   :  { %3761 = vmatmul.mubr.msk.bf16.vlgmr.msra.gmra.mrb[4].mxu1 %vm406_vm3, %v441_v16 }
 0x4ef   :  { %3773 = vmatpush3.bf16.msra.mxu1 %v610_v61  ;;  %3776 = vmatprep.mubr.msk.bf16.mxu1 %vm406_vm3, %v605_v21  ;;  %v3985_v21 = vld [vmem:[%s5153_s9 + $0x10] sm:$0xff]  }
 0x4f0   :  { %3941 = vmatprep.subr.msk.bf16.mxu1 %vm448_vm2, %v612_v62  ;;  %3817 = vmatpush3.bf16.xpose.msra.mxu0 %v1041_v22 }
 0x4f3   :  { %3775 = vmatpush3.bf16.msra.mxu1 %v621_v25 }
 0x4f4   :  { %3780 = vmatprep.subr.bf16.mxu1 %v3983_v46 }
 0x4f6   :  { %3777 = vmatmul.mubr.msk.bf16.vlgmr.msra.gmra.mrb[8].mxu1 %vm406_vm3, %v606_v26 }
 0x4f7   :  { %3819 = vmatmul.mubr.msk.bf16.vlgmr.msra.gmra.mrb[16].mxu0 %vm345_vm1, %v1026_v28  ;;  %3781 = vmatpush3.bf16.msra.mxu1 %v3983_v46 }
 0x4f8   :  { %1413 = vmatprep.mubr.bf16.mxu0 %v4258_v34  ;;  %3786 = vmatprep.subr.bf16.mxu1 %v3984_v47 }
 0x513   :  { %v863_v29 = vpop.xlane.xlu0 %862 }
 0x514   :  { %v870_v30 = vsub.f32 %v4556_v53, %v863_v29 }
 0x516   :  { %v873_v31 = vmul.f32 1.442695, %v870_v30 }
 0x517   :  { %v869_v32 = vpop.xlane.xlu0 %868 }
 0x518   :  { %4093 = vpow2.f32 %v873_v31  ;;  %v872_v33 = vsub.f32 %v4559_v54, %v869_v32 }
 0x51a   :  { %v877_v35 = vmul.f32 1.442695, %v872_v33 }
 0x51c   :  { %4095 = vpow2.f32 %v877_v35 }
 0x51e   :  { %v866_v36 = vpop.xlane.xlu1 %865 }
 0x51f   :  { %v871_v37 = vsub.f32 %v4566_v19, %v866_v36 }
 0x521   :  { %v875_v39 = vmul.f32 1.442695, %v871_v37 }
 0x522   :  { %v4094_v40 = vpop.eup %4093 }
 0x523   :  { %4097 = vpow2.f32 %v875_v39  ;;  %v879_v41 = vsel %vm406_vm3, %v4094_v40, 0.0 }
 0x524   :  { %880 = vadd.xlane.f32.xlu0 %v879_v41 }
 0x526   :  { %v4096_v42 = vpop.eup %4095 }
 0x527   :  { %v885_v43 = vsel %vm406_vm3, %v4096_v42, 0.0 }
 0x528   :  { %886 = vadd.xlane.f32.xlu1 %v885_v43 }
 0x52d   :  { %v4098_v44 = vpop.eup %4097 }
 0x52e   :  { %v882_v45 = vsel %vm406_vm3, %v4098_v44, 0.0 }
 0x52f   :  { %883 = vadd.xlane.f32.xlu0 %v882_v45 }
 0x539   :  { %898 = vrot.lane.b32.xlu1 %v4487_v38, %s5172_s22 }
 0x545   :  { %896 = vrot.lane.b32.xlu0 %v4448_v18, %s5172_s22  ;;  %s3590_s22 = sld [smem:[#allocation3 + $0x1]] }
 0x5b1   :  { %v881_v49 = vpop.xlane.xlu0 %880 }
 0x5b5   :  { %v887_v24 = vpop.xlane.xlu1 %886 }
 0x5bc   :  { %v884_v54 = vpop.xlane.xlu0 %883 }
 0x5bd   :  { %4099 = vrcp.f32 %v884_v54 }
 0x5be   :  { %4101 = vrcp.f32 %v881_v49 }
 0x5bf   :  { %4103 = vrcp.f32 %v887_v24 }
 0x5c0   :  { %v897_v8 = vpop.permute.xlu0 %896 }
 0x5c1   :  { %v3762_v51 = vpop.f32.mrb[4].mxu1 }
 0x5c2   :  { %v486_v53 = vpop.f32.mrb[5].mxu1  ;;  %v501_v12 = vpack.c.bf16 %v3762_v51, %v3762_v51 }
 0x5c3   :  { %v3763_v55 = vpop.f32.mrb[6].mxu1 }
 0x5c4   :  { %v489_v17 = vpop.f32.mrb[7].mxu1 }
 0x5c5   :  { %v500_v19 = vpack.c.bf16 %v489_v17, %v486_v53 }
 0x5c7   :  { %v4100_v6 = vpop.eup %4099 }
 0x5c8   :  { %v4102_v9 = vpop.eup %4101 }
 0x5c9   :  { %v3778_v27 = vpop.f32.mrb[8].mxu1  ;;  %v891_v11 = vmul.f32 %v4102_v9, %v4094_v40  ;;  %v4104_v13 = vpop.eup %4103 }
 0x5ca   :  { %v3820_v56 = vpop.f32.mrb[16].mxu0  ;;  %v657_v57 = vpop.f32.mrb[9].mxu1  ;;  %v672_v1 = vpack.c.bf16 %v3778_v27, %v3778_v27  ;;  %v893_v15 = vmul.f32 %v4104_v13, %v4096_v42 }
 0x5cb   :  { %v1077_v58 = vpop.f32.mrb[17].mxu0  ;;  %v3779_v59 = vpop.f32.mrb[10].mxu1  ;;  %v1086_v7 = vadd.f32 %v3820_v56, %v4512_v50 }
 0x5cc   :  { %v1078_v60 = vadd.f32 %v1077_v58, %v4507_v48  ;;  %v3821_v61 = vpop.f32.mrb[18].mxu0  ;;  %v660_v62 = vpop.f32.mrb[11].mxu1  ;;  %v895_v20 = vpack.c.bf16 %v893_v15, %v893_v15 }
 0x5cd   :  { %v671_v63 = vpack.c.bf16 %v660_v62, %v657_v57  ;;  %v1080_v0 = vpop.f32.mrb[19].mxu0  ;;  %v1097_v10 = vsel %vm406_vm3, %v1086_v7, -inf  ;;  %v899_v50 = vpop.permute.xlu1 %898 }
 0x5ce   :  { %v1081_v3 = vadd.f32 %v1080_v0, %v4517_v52  ;;  %v1091_v5 = vsel %vm406_vm3, %v1078_v60, -inf  ;;  %v892_v52 = vmul.f32 %v4100_v6, %v4098_v44  ;;  %v908_v16 = vsel %vm448_vm2, %v899_v50, 0 }
 0x5cf   :  { %1092 = vmax.xlane.f32.xlu1 %v1091_v5  ;;  %3782 = vmatprep.mubr.msk.bf16.mxu1 %vm345_vm1, %v671_v63  ;;  %v3986_v5 = vld [vmem:[%s5153_s9 + $0x18] sm:$0xff]  }
 0x5d0   :  { %3783 = vmatmul.mubr.msk.bf16.vlgmr.msra.gmra.mrb[12].mxu1 %vm345_vm1, %v672_v1  ;;  %v1094_v48 = vsel %vm406_vm3, %v1081_v3, -inf  ;;  %v894_v14 = vpack.c.bf16 %v892_v52, %v891_v11 }
 0x5d1   :  { %3787 = vmatpush3.bf16.msra.mxu1 %v3984_v47  ;;  %1095 = vmax.xlane.f32.xlu0 %v1094_v48 }
 0x5d2   :  { %3788 = vmatprep.mubr.msk.bf16.mxu1 %vm345_vm1, %v500_v19  ;;  %3800 = vmatprep.subr.bf16.mxu1 %v897_v8 }
 0x5d5   :  { %1098 = vmax.xlane.f32.xlu0 %v1097_v10 }
 0x5d8   :  { %3789 = vmatmul.mubr.msk.bf16.vlgmr.msra.gmra.mrb[16].mxu1 %vm345_vm1, %v501_v12 }
 0x5d9   :  { %3801 = vmatpush3.bf16.msra.mxu1 %v897_v8  ;;  %3804 = vmatprep.mubr.msk.bf16.mxu1 %vm406_vm3, %v894_v14 }
 0x5da   :  { %3944 = vmatprep.subr.msk.bf16.mxu1 %vm448_vm2, %v899_v50 }
 0x5dd   :  { %3803 = vmatpush3.bf16.msra.mxu1 %v908_v16 }
 0x5de   :  { %3808 = vmatprep.subr.bf16.mxu1 %v3985_v21 }
 0x5e0   :  { %3805 = vmatmul.mubr.msk.bf16.vlgmr.msra.gmra.mrb[20].mxu1 %vm406_vm3, %v895_v20 }
 0x5e1   :  { %3809 = vmatpush3.bf16.msra.mxu1 %v3985_v21 }
 0x65c   :  { %v1093_v22 = vpop.xlane.xlu1 %1092 }
 0x65d   :  { %v1100_v26 = vsub.f32 %v1078_v60, %v1093_v22  ;;  %v3412_v22 = vld [vmem:[%s5154_s10] ss:$0 sm:$0xff] }
 0x65e   :  { %v1096_v23 = vpop.xlane.xlu0 %1095 }
 0x65f   :  { %v1101_v25 = vsub.f32 %v1081_v3, %v1096_v23  ;;  %v1103_v31 = vmul.f32 1.442695, %v1100_v26 }
 0x661   :  { %v1105_v28 = vmul.f32 1.442695, %v1101_v25 }
 0x662   :  { %v1099_v29 = vpop.xlane.xlu0 %1098 }
 0x663   :  { %4105 = vpow2.f32 %v1105_v28  ;;  %v1102_v30 = vsub.f32 %v1086_v7, %v1099_v29 }
 0x665   :  { %v1107_v32 = vmul.f32 1.442695, %v1102_v30 }
 0x667   :  { %4107 = vpow2.f32 %v1107_v32 }
 0x668   :  { %4109 = vpow2.f32 %v1103_v31 }
 0x66d   :  { %v4106_v33 = vpop.eup %4105 }
 0x66e   :  { %v1112_v35 = vsel %vm406_vm3, %v4106_v33, 0.0 }
 0x66f   :  { %1113 = vadd.xlane.f32.xlu0 %v1112_v35 }
 0x671   :  { %v4108_v36 = vpop.eup %4107 }
 0x672   :  { %v1115_v37 = vsel %vm406_vm3, %v4108_v36, 0.0  ;;  %v4110_v39 = vpop.eup %4109 }
 0x673   :  { %1116 = vadd.xlane.f32.xlu1 %v1115_v37  ;;  %v1109_v40 = vsel %vm406_vm3, %v4110_v39, 0.0  ;;  %v4238_v37 = vld [vmem:[#allocation2 + $0x8] sm:$0xff] }
 0x677   :  { %1110 = vadd.xlane.f32.xlu1 %v1109_v40 }
 0x685   :  { %1126 = vrot.lane.b32.xlu0 %v4448_v18, %s5168_s4 }
 0x688   :  { %1128 = vrot.lane.b32.xlu1 %v4487_v38, %s5168_s4  ;;  %s5183_s4 = sld [smem:[#allocation10_spill]] }
 0x6a3   :  { %v3784_v41 = vpop.f32.mrb[12].mxu1 }
 0x6a4   :  { %v719_v42 = vpop.f32.mrb[13].mxu1 }
 0x6a5   :  { %v3785_v43 = vpop.f32.mrb[14].mxu1 }
 0x6a6   :  { %v722_v44 = vpop.f32.mrb[15].mxu1 }
 0x6ab   :  { %v3790_v45 = vpop.f32.mrb[16].mxu1 }
 0x6ac   :  { %v788_v46 = vadd.f32 %v3790_v45, %v3784_v41  ;;  %v779_v47 = vpop.f32.mrb[17].mxu1  ;;  %v4239_v41 = vld [vmem:[#allocation2 + $0x10] sm:$0xff] }
 0x6ad   :  { %v780_v49 = vadd.f32 %v779_v47, %v719_v42  ;;  %v3791_v51 = vpop.f32.mrb[18].mxu1 }
 0x6ae   :  { %v782_v53 = vpop.f32.mrb[19].mxu1 }
 0x6af   :  { %v783_v54 = vadd.f32 %v782_v53, %v722_v44 }
 0x6b3   :  { %v3806_v55 = vpop.f32.mrb[20].mxu1 }
 0x6b4   :  { %v944_v17 = vpop.f32.mrb[21].mxu1  ;;  %v959_v18 = vpack.c.bf16 %v3806_v55, %v3806_v55 }
 0x6b5   :  { %v3807_v19 = vpop.f32.mrb[22].mxu1 }
 0x6b6   :  { %v947_v24 = vpop.f32.mrb[23].mxu1 }
 0x6b7   :  { %v958_v27 = vpack.c.bf16 %v947_v24, %v944_v17 }
 0x6b9   :  { %3810 = vmatprep.mubr.msk.bf16.mxu1 %vm345_vm1, %v958_v27 }
 0x6ba   :  { %3811 = vmatmul.mubr.msk.bf16.vlgmr.msra.gmra.mrb[24].mxu1 %vm345_vm1, %v959_v18 }
 0x6fc   :  { %v1114_v38 = vpop.xlane.xlu0 %1113 }
 0x700   :  { %v1117_v56 = vpop.xlane.xlu1 %1116  ;;  %v1127_v57 = vpop.permute.xlu0 %1126 }
 0x701   :  { %3822 = vmatprep.subr.bf16.mxu1 %v1127_v57  ;;  %4111 = vrcp.f32 %v1117_v56 }
 0x702   :  { %3823 = vmatpush3.bf16.msra.mxu1 %v1127_v57  ;;  %4113 = vrcp.f32 %v1114_v38  ;;  %v3989_v57 = vld [vmem:[%s5157_s13 + $0x4] ss:$8 sps:$4 sm:$0xff]  }
 0x703   :  { %1381 = vmatprep.subr.bf16.mxu0 %v3989_v57 }
 0x704   :  { %v1111_v58 = vpop.xlane.xlu1 %1110 }
 0x705   :  { %4115 = vrcp.f32 %v1111_v58  ;;  %v3987_v58 = vld [vmem:[%s5157_s13] ss:$8 sps:$4 sm:$0xff]  }
 0x706   :  { %1382 = vmatpush1.bf16.msra.mxu0 %v3987_v58 }
 0x708   :  { %v1129_v59 = vpop.permute.xlu1 %1128 }
 0x709   :  { %v1138_v60 = vsel %vm448_vm2, %v1129_v59, 0  ;;  %3947 = vmatprep.subr.msk.bf16.mxu1 %vm448_vm2, %v1129_v59  ;;  %v3992_v59 = vld [vmem:[%s5157_s13 + $0x14] ss:$8 sps:$4 sm:$0xff]  }
 0x70a   :  { %3825 = vmatpush3.bf16.msra.mxu1 %v1138_v60  ;;  %v3990_v60 = vld [vmem:[%s5157_s13 + $0x10] ss:$8 sps:$4 sm:$0xff]   ;;  %1383 = vmatprep.subr.bf16.mxu0 %v3992_v59 }
 0x70b   :  { %v4112_v61 = vpop.eup %4111  ;;  %3830 = vmatprep.subr.bf16.mxu1 %v3986_v5  ;;  %1384 = vmatpush1.bf16.msra.mxu0 %v3990_v60 }
 0x70c   :  { %v4114_v62 = vpop.eup %4113  ;;  %v1123_v0 = vmul.f32 %v4112_v61, %v4108_v36  ;;  %v3995_v61 = vld [vmem:[%s5157_s13 + $0x24] ss:$8 sps:$4 sm:$0xff]  }
 0x70d   :  { %v1122_v3 = vmul.f32 %v4114_v62, %v4106_v33  ;;  %v4237_v33 = vld [vmem:[#allocation2] sm:$0xff]  ;;  %1385 = vmatprep.subr.bf16.mxu0 %v3995_v61 }
 0x70e   :  { %v1125_v7 = vpack.c.bf16 %v1123_v0, %v1123_v0  ;;  %v3993_v62 = vld [vmem:[%s5157_s13 + $0x20] ss:$8 sps:$4 sm:$0xff]   ;;  %v3998_v0 = vld [vmem:[%s5157_s13 + $0x34] ss:$8 sps:$4 sm:$0xff]  }
 0x70f   :  { %v4116_v63 = vpop.eup %4115  ;;  %1386 = vmatpush1.bf16.msra.mxu0 %v3993_v62 }
 0x710   :  { %v1121_v1 = vmul.f32 %v4116_v63, %v4110_v39  ;;  %v3996_v63 = vld [vmem:[%s5157_s13 + $0x30] ss:$8 sps:$4 sm:$0xff]   ;;  %1387 = vmatprep.subr.bf16.mxu0 %v3998_v0 }
 0x712   :  { %v1124_v6 = vpack.c.bf16 %v1122_v3, %v1121_v1 }
 0x713   :  { %1388 = vmatpush1.bf16.msra.mxu0 %v3996_v63 }
 0x714   :  { %3826 = vmatprep.mubr.msk.bf16.mxu1 %vm406_vm3, %v1124_v6 }
 0x715   :  { %3827 = vmatmul.mubr.msk.bf16.vlgmr.msra.gmra.mrb[28].mxu1 %vm406_vm3, %v1125_v7 }
 0x716   :  { %3831 = vmatpush3.bf16.msra.mxu1 %v3986_v5 }
 0x78d   :  { %v3812_v48 = vpop.f32.mrb[24].mxu1 }
 0x78e   :  { %v1022_v8 = vadd.f32 %v3812_v48, %v788_v46  ;;  %v1006_v9 = vpop.f32.mrb[25].mxu1 }
 0x78f   :  { %v1020_v52 = vadd.f32 %v1006_v9, %v780_v49  ;;  %v3813_v10 = vpop.f32.mrb[26].mxu1 }
 0x790   :  { %v1009_v11 = vpop.f32.mrb[27].mxu1 }
 0x791   :  { %v1021_v12 = vadd.f32 %v1009_v11, %v783_v54  ;;  %v3413_v11 = vld [vmem:[%s5155_s11] ss:$0 sm:$0xff] }
 0x7e8   :  { %v3828_v13 = vpop.f32.mrb[28].mxu1 }
 0x7e9   :  { %v1174_v14 = vpop.f32.mrb[29].mxu1  ;;  %v1189_v20 = vpack.c.bf16 %v3828_v13, %v3828_v13 }
 0x7ea   :  { %v3829_v50 = vpop.f32.mrb[30].mxu1 }
 0x7eb   :  { %v1177_v15 = vpop.f32.mrb[31].mxu1 }
 0x7ec   :  { %v1188_v16 = vpack.c.bf16 %v1177_v15, %v1174_v14  ;;  %v3414_v15 = vld [vmem:[%s5156_s12] ss:$0 sm:$0xff] }
 0x7ee   :  { %3832 = vmatprep.mubr.msk.bf16.mxu1 %vm345_vm1, %v1188_v16 }
 0x7ef   :  { %3833 = vmatmul.mubr.msk.bf16.vlgmr.msra.gmra.mrb[32].mxu1 %vm345_vm1, %v1189_v20 }
 0x8c2   :  { %v3834_v21 = vpop.f32.mrb[32].mxu1 }
 0x8c3   :  { %v1252_v23 = vadd.f32 %v3834_v21, %v1022_v8  ;;  %v1236_v25 = vpop.f32.mrb[33].mxu1 }
 0x8c4   :  { %v1250_v26 = vadd.f32 %v1236_v25, %v1020_v52  ;;  %v3835_v28 = vpop.f32.mrb[34].mxu1 }
 0x8c5   :  { %v1239_v29 = vpop.f32.mrb[35].mxu1  ;;  %v1261_v32 = vadd.f32 %v3412_v22, %v1252_v23 }
 0x8c6   :  { %v1259_v30 = vadd.f32 %v3412_v22, %v1250_v26  ;;  %v1251_v31 = vadd.f32 %v1239_v29, %v1021_v12 }
 0x8c7   :  { %v4645_v42 = vadd.f32 %v4239_v41, %v1261_v32  ;;  %v4001_v32 = vld [vmem:[%s5159_s15 + $0x48] sm:$0xff]   ;;  %v4006_v41 = vld [vmem:[%s5159_s15 + $0x18] sm:$0xff]  }
 0x8c8   :  { %v4639_v35 = vadd.f32 %v4237_v33, %v1259_v30  ;;  %v1260_v36 = vadd.f32 %v3412_v22, %v1251_v31  ;;  %v3999_v30 = vld [vmem:[%s5159_s15 + $0x40] sm:$0xff]   ;;  %v4002_v33 = vld [vmem:[%s5159_s15 + $0x8] sm:$0xff]  }
 0x8c9   :  { %v1271_v44 = vsel %vm91_vm0, %v4645_v42, 0.0  ;;  %v4000_v31 = vld [vmem:[%s5159_s15] sm:$0xff]   ;;  %3643 = vmatprep.subr.bf16.mxu1 %v3999_v30 }
 0x8ca   :  { %v4641_v39 = vadd.f32 %v4238_v37, %v1260_v36  ;;  %v1265_v40 = vsel %vm91_vm0, %v4639_v35, 0.0  ;;  %3644 = vmatpush3.bf16.msra.mxu1 %v4000_v31  ;;  %v4003_v36 = vld [vmem:[%s5159_s15 + $0x50] sm:$0xff]  }
 0x8cb   :  { %1266 = vadd.xlane.f32.xlu1 %v1265_v40  ;;  %3645 = vmatprep.subr.bf16.mxu1 %v4001_v32  ;;  %v4004_v37 = vld [vmem:[%s5159_s15 + $0x10] sm:$0xff]   ;;  %v4005_v40 = vld [vmem:[%s5159_s15 + $0x58] sm:$0xff]  }
 0x8cc   :  { %v1268_v43 = vsel %vm91_vm0, %v4641_v39, 0.0 }
 0x8cd   :  { %1269 = vadd.xlane.f32.xlu0 %v1268_v43  ;;  %v4007_v43 = vld [vmem:[%s5159_s15 + $0x60] sm:$0xff]  }
 0x8ce   :  { %3646 = vmatpush3.bf16.msra.mxu1 %v4002_v33 }
 0x8cf   :  { %3647 = vmatprep.subr.bf16.mxu1 %v4003_v36 }
 0x8d1   :  { %1272 = vadd.xlane.f32.xlu0 %v1271_v44  ;;  %v4008_v44 = vld [vmem:[%s5159_s15 + $0x20] sm:$0xff]  }
 0x8d2   :  { %3648 = vmatpush3.bf16.msra.mxu1 %v4004_v37 }
 0x8d3   :  { %3649 = vmatprep.subr.bf16.mxu1 %v4005_v40 }
 0x8d6   :  { %3650 = vmatpush3.bf16.msra.mxu1 %v4006_v41 }
 0x8d7   :  { %3651 = vmatprep.subr.bf16.mxu1 %v4007_v43 }
 0x8da   :  { %3652 = vmatpush3.bf16.msra.mxu1 %v4008_v44 }
 0x958   :  { %v1267_v45 = vpop.xlane.xlu1 %1266 }
 0x959   :  { %v1274_v46 = vmul.f32 0.015625, %v1267_v45  ;;  %v4009_v45 = vld [vmem:[%s5159_s15 + $0x68] sm:$0xff]  }
 0x95a   :  { %v1270_v47 = vpop.xlane.xlu0 %1269  ;;  %3653 = vmatprep.subr.bf16.mxu1 %v4009_v45 }
 0x95b   :  { %v1277_v49 = vsub.f32 %v4639_v35, %v1274_v46  ;;  %v1275_v51 = vmul.f32 0.015625, %v1270_v47  ;;  %v4010_v46 = vld [vmem:[%s5159_s15 + $0x28] sm:$0xff]   ;;  %v4011_v47 = vld [vmem:[%s5159_s15 + $0x70] sm:$0xff]  }
 0x95c   :  { %3654 = vmatpush3.bf16.msra.mxu1 %v4010_v46 }
 0x95d   :  { %v1278_v53 = vsub.f32 %v4641_v39, %v1275_v51  ;;  %v1280_v54 = vmul.f32 %v1277_v49, %v1277_v49  ;;  %3655 = vmatprep.subr.bf16.mxu1 %v4011_v47  ;;  %v4013_v51 = vld [vmem:[%s5159_s15 + $0x78] sm:$0xff]  }
 0x95e   :  { %v1273_v55 = vpop.xlane.xlu0 %1272 }
 0x95f   :  { %v1276_v17 = vmul.f32 0.015625, %v1273_v55  ;;  %v1283_v19 = vsel %vm91_vm0, %v1280_v54, 0.0  ;;  %v1281_v24 = vmul.f32 %v1278_v53, %v1278_v53  ;;  %v128_v54 = vld [vmem:[%s5158_s14] sm:$0x3] }
 0x960   :  { %1284 = vadd.xlane.f32.xlu1 %v1283_v19  ;;  %v1328_v55 = vrot.slane %v128_v54, %v4437_v2 }
 0x961   :  { %v1279_v27 = vsub.f32 %v4645_v42, %v1276_v17  ;;  %v1286_v18 = vsel %vm91_vm0, %v1281_v24, 0.0  ;;  %v1332_v17 = vrot.slane %v128_v54, %v4442_v4  ;;  %v3431_v54 = vld [vmem:[%s5160_s16] ss:$0 sm:$0xff] }
 0x962   :  { %1287 = vadd.xlane.f32.xlu0 %v1286_v18 }
 0x963   :  { %v1282_v38 = vmul.f32 %v1279_v27, %v1279_v27 }
 0x965   :  { %v1289_v56 = vsel %vm91_vm0, %v1282_v38, 0.0 }
 0x966   :  { %1290 = vadd.xlane.f32.xlu1 %v1289_v56 }
 0x9ed   :  { %v1285_v1 = vpop.xlane.xlu1 %1284 }
 0x9ee   :  { %v1292_v3 = vmul.f32 0.015625, %v1285_v1 }
 0x9ef   :  { %v1288_v5 = vpop.xlane.xlu0 %1287 }
 0x9f0   :  { %v1295_v6 = vadd.f32 1e-05, %v1292_v3  ;;  %v1293_v7 = vmul.f32 0.015625, %v1288_v5 }
 0x9f2   :  { %4117 = vrsqrt.f32 %v1295_v6  ;;  %v1296_v48 = vadd.f32 1e-05, %v1293_v7 }
 0x9f3   :  { %v1291_v8 = vpop.xlane.xlu1 %1290 }
 0x9f4   :  { %4119 = vrsqrt.f32 %v1296_v48  ;;  %v1294_v9 = vmul.f32 0.015625, %v1291_v8 }
 0x9f6   :  { %v1297_v52 = vadd.f32 1e-05, %v1294_v9 }
 0x9f8   :  { %4121 = vrsqrt.f32 %v1297_v52 }
 0x9fc   :  { %v4118_v10 = vpop.eup %4117 }
 0x9fd   :  { %v1301_v12 = vmul.f32 %v4118_v10, %v1277_v49  ;;  %v4012_v49 = vld [vmem:[%s5159_s15 + $0x30] sm:$0xff]  }
 0x9fe   :  { %v4120_v13 = vpop.eup %4119  ;;  %3656 = vmatpush3.bf16.msra.mxu1 %v4012_v49 }
 0x9ff   :  { %v1310_v14 = vmul.f32 %v3413_v11, %v1301_v12  ;;  %v1302_v50 = vmul.f32 %v4120_v13, %v1278_v53  ;;  %v4014_v53 = vld [vmem:[%s5159_s15 + $0x38] sm:$0xff]   ;;  %3657 = vmatprep.subr.bf16.mxu1 %v4013_v51 }
 0xa01   :  { %v1311_v16 = vmul.f32 %v3413_v11, %v1302_v50  ;;  %v1319_v21 = vadd.f32 %v3414_v15, %v1310_v14 }
 0xa02   :  { %v4122_v20 = vpop.eup %4121  ;;  %3658 = vmatpush3.bf16.msra.mxu1 %v4014_v53 }
 0xa03   :  { %v1320_v22 = vadd.f32 %v3414_v15, %v1311_v16  ;;  %v1303_v23 = vmul.f32 %v4122_v20, %v1279_v27 }
 0xa05   :  { %v1322_v25 = vpack.c.bf16 %v1320_v22, %v1319_v21  ;;  %v1312_v26 = vmul.f32 %v3413_v11, %v1303_v23 }
 0xa07   :  { %3423 = vmatmul.mubr.msk.bf16.vlgmr.msra.gmra.mrb[20].mxu0 %vm91_vm0, %v1322_v25  ;;  %v1321_v28 = vadd.f32 %v3414_v15, %v1312_v26 }
 0xa08   :  { %1423 = vmatprep.mubr.bf16.mxu0 %v4258_v34 }
 0xa09   :  { %v1323_v29 = vpack.c.bf16 %v1321_v28, %v1321_v28 }
 0xa0f   :  { %3424 = vmatmul.mubr.msk.bf16.gmra.mrb[24].mxu0 %vm91_vm0, %v1323_v29 }
 0xa10   :  { %1872 = vmatprep.mubr.bf16.mxu0 %v4258_v34 }
 0xada   :  { %v1415_v19 = vpop.f32.mrb[20].mxu0 }
 0xadb   :  { %v1416_v24 = vadd.f32 %v1415_v19, %v1328_v55  ;;  %v1417_v27 = vpop.f32.mrb[21].mxu0 }
 0xadc   :  { %v1418_v18 = vadd.f32 %v1417_v27, %v1332_v17  ;;  %v1419_v38 = vpop.f32.mrb[22].mxu0 }
 0xadd   :  { %v3425_v56 = vmul.f32 -1.702, %v1416_v24  ;;  %v1420_v57 = vadd.f32 %v1419_v38, %v1328_v55  ;;  %v1421_v58 = vpop.f32.mrb[23].mxu0 }
 0xade   :  { %v3426_v59 = vmul.f32 -1.702, %v1418_v18  ;;  %v1422_v60 = vadd.f32 %v1421_v58, %v1332_v17 }
 0xadf   :  { %v1444_v61 = vmul.f32 1.442695, %v3425_v56  ;;  %v3427_v62 = vmul.f32 -1.702, %v1420_v57  ;;  %v1640_v56 = vld [vmem:[%s5183_s4] sm:$0x3] }
 0xae0   :  { %v1446_v63 = vmul.f32 1.442695, %v3426_v59  ;;  %v3428_v0 = vmul.f32 -1.702, %v1422_v60 }
 0xae1   :  { %4123 = vpow2.f32 %v1444_v61  ;;  %v1448_v1 = vmul.f32 1.442695, %v3427_v62 }
 0xae2   :  { %4125 = vpow2.f32 %v1446_v63  ;;  %v1450_v3 = vmul.f32 1.442695, %v3428_v0  ;;  %v1425_v5 = vpop.f32.mrb[24].mxu0 }
 0xae3   :  { %4127 = vpow2.f32 %v1448_v1  ;;  %v1426_v6 = vadd.f32 %v1425_v5, %v1328_v55  ;;  %v1427_v7 = vpop.f32.mrb[25].mxu0 }
 0xae4   :  { %4129 = vpow2.f32 %v1450_v3  ;;  %v1428_v48 = vadd.f32 %v1427_v7, %v1332_v17  ;;  %v1429_v8 = vpop.f32.mrb[26].mxu0 }
 0xae5   :  { %v3429_v9 = vmul.f32 -1.702, %v1426_v6  ;;  %v1430_v52 = vpop.f32.mrb[27].mxu0 }
 0xae6   :  { %v3430_v10 = vmul.f32 -1.702, %v1428_v48 }
 0xae7   :  { %v1452_v11 = vmul.f32 1.442695, %v3429_v9 }
 0xae8   :  { %v1454_v12 = vmul.f32 1.442695, %v3430_v10 }
 0xae9   :  { %4131 = vpow2.f32 %v1452_v11 }
 0xaea   :  { %4133 = vpow2.f32 %v1454_v12 }
 0xaeb   :  { %v4124_v13 = vpop.eup %4123 }
 0xaec   :  { %v4126_v14 = vpop.eup %4125  ;;  %v1456_v50 = vadd.f32 1.0, %v4124_v13 }
 0xaed   :  { %v4128_v15 = vpop.eup %4127  ;;  %v1457_v16 = vadd.f32 1.0, %v4126_v14 }
 0xaee   :  { %v4130_v20 = vpop.eup %4129  ;;  %4135 = vrcp.f32 %v1456_v50  ;;  %v1458_v21 = vadd.f32 1.0, %v4128_v15 }
 0xaef   :  { %4137 = vrcp.f32 %v1457_v16  ;;  %v1459_v22 = vadd.f32 1.0, %v4130_v20 }
 0xaf0   :  { %4139 = vrcp.f32 %v1458_v21 }
 0xaf1   :  { %4141 = vrcp.f32 %v1459_v22  ;;  %v4017_v22 = vld [vmem:[%s5151_s7 + $0x44] ss:$8 sps:$4 sm:$0xff]  }
 0xaf2   :  { %1840 = vmatprep.subr.bf16.mxu0 %v4017_v22 }
 0xaf3   :  { %v4132_v23 = vpop.eup %4131 }
 0xaf4   :  { %v4134_v25 = vpop.eup %4133  ;;  %v1460_v26 = vadd.f32 1.0, %v4132_v23  ;;  %v4015_v23 = vld [vmem:[%s5151_s7 + $0x40] ss:$8 sps:$4 sm:$0xff]  }
 0xaf5   :  { %v1461_v28 = vadd.f32 1.0, %v4134_v25  ;;  %1841 = vmatpush1.bf16.msra.mxu0 %v4015_v23  ;;  %v4020_v25 = vld [vmem:[%s5151_s7 + $0x54] ss:$8 sps:$4 sm:$0xff]  }
 0xaf6   :  { %4143 = vrcp.f32 %v1460_v26  ;;  %v4018_v26 = vld [vmem:[%s5151_s7 + $0x50] ss:$8 sps:$4 sm:$0xff]   ;;  %1842 = vmatprep.subr.bf16.mxu0 %v4020_v25 }
 0xaf7   :  { %4145 = vrcp.f32 %v1461_v28  ;;  %v4023_v28 = vld [vmem:[%s5151_s7 + $0x64] ss:$8 sps:$4 sm:$0xff]  }
 0xaf8   :  { %v4136_v29 = vpop.eup %4135 }
 0xaf9   :  { %v4138_v30 = vpop.eup %4137  ;;  %v1474_v33 = vmul.f32 %v4136_v29, %v1416_v24  ;;  %1843 = vmatpush1.bf16.msra.mxu0 %v4018_v26  ;;  %v4021_v29 = vld [vmem:[%s5151_s7 + $0x60] ss:$8 sps:$4 sm:$0xff]  }
 0xafa   :  { %v4140_v31 = vpop.eup %4139  ;;  %v1475_v37 = vmul.f32 %v4138_v30, %v1418_v18  ;;  %1844 = vmatprep.subr.bf16.mxu0 %v4023_v28  ;;  %v4026_v30 = vld [vmem:[%s5151_s7 + $0x74] ss:$8 sps:$4 sm:$0xff]  }
 0xafb   :  { %v4142_v32 = vpop.eup %4141  ;;  %v1476_v36 = vmul.f32 %v4140_v31, %v1420_v57  ;;  %v4024_v31 = vld [vmem:[%s5151_s7 + $0x70] ss:$8 sps:$4 sm:$0xff]   ;;  %s3263_s7 = sld [smem:[#allocation3]] }
 0xafc   :  { %v1477_v40 = vmul.f32 %v4142_v32, %v1422_v60 }
 0xafd   :  { %v1480_v41 = vpack.c.bf16 %v1476_v36, %v1474_v33  ;;  %1845 = vmatpush1.bf16.msra.mxu0 %v4021_v29 }
 0xafe   :  { %v1481_v43 = vpack.c.bf16 %v1477_v40, %v1475_v37  ;;  %1846 = vmatprep.subr.bf16.mxu0 %v4026_v30 }
 0xb00   :  { %v4144_v44 = vpop.eup %4143  ;;  %1618 = vmatprep.mubr.bf16.mxu1 %v1481_v43 }
 0xb01   :  { %v4146_v45 = vpop.eup %4145  ;;  %1619 = vmatmul.mubr.bf16.vlgmr.msra.gmra.mrb[36].mxu1 %v1480_v41  ;;  %v1478_v47 = vmul.f32 %v4144_v44, %v1426_v6  ;;  %1847 = vmatpush1.bf16.msra.mxu0 %v4024_v31  ;;  %s3264_s28 = scalar_lea.vmem [#allocation2], %s3263_s7 }
 0xb02   :  { %v1479_v46 = vmul.f32 %v4146_v45, %v1428_v48 }
 0xb03   :  { %v1482_v51 = vpack.c.bf16 %v1478_v47, %v1478_v47  ;;  %v3512_v47 = vld [vmem:[%s5149_s5 + $0x1] ss:$0 sm:$0xff] }
 0xb04   :  { %v1483_v49 = vpack.c.bf16 %v1479_v46, %v1479_v46 }
 0xb06   :  { %1626 = vmatprep.mubr.bf16.mxu1 %v1483_v49 }
 0xb09   :  { %1627 = vmatmul.mubr.bf16.gmra.mrb[40].mxu1 %v1482_v51 }
 0xbd4   :  { %v3659_v53 = vpop.f32.mrb[36].mxu1 }
 0xbd5   :  { %v3660_v55 = vpop.f32.mrb[37].mxu1 }
 0xbd6   :  { %v3661_v17 = vadd.f32 %v3660_v55, %v3659_v53  ;;  %v3662_v19 = vpop.f32.mrb[38].mxu1  ;;  %v3513_v55 = vld [vmem:[%s5150_s6 + $0x1] ss:$0 sm:$0xff] }
 0xbd7   :  { %v3663_v24 = vpop.f32.mrb[39].mxu1 }
 0xbd8   :  { %v1621_v27 = vadd.f32 %v3661_v17, %v3431_v54  ;;  %v3664_v18 = vadd.f32 %v3663_v24, %v3662_v19 }
 0xbda   :  { %v1634_v38 = vadd.f32 %v1621_v27, %v4639_v35  ;;  %v1624_v57 = vadd.f32 %v3664_v18, %v3431_v54 }
 0xbdc   :  { %1637 = vst.msk [vmem:[#allocation2] sm:$0xff] %vm91_vm0, %v1634_v38  ;;  %v1635_v58 = vadd.f32 %v1624_v57, %v4641_v39  ;;  %v3665_v59 = vpop.f32.mrb[40].mxu1 }
 0xbdd   :  { %1642 = vst.msk [vmem:[#allocation2 + $0x1] sm:$0x3] %vm1641_vm4, %v1640_v56  ;;  %v3666_v60 = vpop.f32.mrb[41].mxu1 }
 0xbde   :  { %1638 = vst.msk [vmem:[#allocation2 + $0x8] sm:$0xff] %vm91_vm0, %v1635_v58  ;;  %v3667_v61 = vadd.f32 %v3666_v60, %v3665_v59  ;;  %v3668_v62 = vpop.f32.mrb[42].mxu1  ;;  %v3458_v59 = vld [vmem:[%s5152_s8 + $0x2] sm:$0x3] }
 0xbdf   :  { %1643 = vst.msk [vmem:[#allocation2 + $0x9] sm:$0x3] %vm1641_vm4, %v1640_v56  ;;  %v3669_v35 = vpop.f32.mrb[43].mxu1  ;;  %v1787_v60 = vrot.slane %v3458_v59, %v4437_v2  ;;  %v1791_v62 = vrot.slane %v3458_v59, %v4442_v4 }
 0xbe0   :  { %v1629_v63 = vadd.f32 %v3667_v61, %v3431_v54 }
 0xbe2   :  { %v1636_v0 = vadd.f32 %v1629_v63, %v4645_v42 }
 0xbe4   :  { %1639 = vst.msk [vmem:[#allocation2 + $0x10] sm:$0xff] %vm91_vm0, %v1636_v0  ;;  %v4758_v1 = vld [vmem:[#allocation2] sm:$0xff] }
 0xbe5   :  { %1644 = vst.msk [vmem:[#allocation2 + $0x11] sm:$0x3] %vm1641_vm4, %v1640_v56  ;;  %v1724_v39 = vsel %vm91_vm0, %v4758_v1, 0.0 }
 0xbe6   :  { %1725 = vadd.xlane.f32.xlu0 %v1724_v39  ;;  %v4763_v3 = vld [vmem:[#allocation2 + $0x8] sm:$0xff] }
 0xbe7   :  { %v1727_v5 = vsel %vm91_vm0, %v4763_v3, 0.0 }
 0xbe8   :  { %1728 = vadd.xlane.f32.xlu1 %v1727_v5 }
 0xbec   :  { %v4767_v6 = vld [vmem:[#allocation2 + $0x10] sm:$0xff] }
 0xbed   :  { %v1730_v42 = vsel %vm91_vm0, %v4767_v6, 0.0 }
 0xbee   :  { %1731 = vadd.xlane.f32.xlu0 %v1730_v42 }
 0xc73   :  { %v1726_v7 = vpop.xlane.xlu0 %1725 }
 0xc74   :  { %v1733_v48 = vmul.f32 0.015625, %v1726_v7 }
 0xc75   :  { %v1729_v8 = vpop.xlane.xlu1 %1728 }
 0xc76   :  { %v1736_v9 = vsub.f32 %v4758_v1, %v1733_v48  ;;  %v1734_v52 = vmul.f32 0.015625, %v1729_v8 }
 0xc78   :  { %v1737_v10 = vsub.f32 %v4763_v3, %v1734_v52  ;;  %v1739_v11 = vmul.f32 %v1736_v9, %v1736_v9 }
 0xc7a   :  { %v1742_v12 = vsel %vm91_vm0, %v1739_v11, 0.0  ;;  %v1740_v13 = vmul.f32 %v1737_v10, %v1737_v10 }
 0xc7b   :  { %1743 = vadd.xlane.f32.xlu1 %v1742_v12  ;;  %v1732_v14 = vpop.xlane.xlu0 %1731 }
 0xc7c   :  { %v1735_v50 = vmul.f32 0.015625, %v1732_v14  ;;  %v1745_v15 = vsel %vm91_vm0, %v1740_v13, 0.0 }
 0xc7d   :  { %1746 = vadd.xlane.f32.xlu0 %v1745_v15 }
 0xc7e   :  { %v1738_v16 = vsub.f32 %v4767_v6, %v1735_v50 }
 0xc80   :  { %v1741_v20 = vmul.f32 %v1738_v16, %v1738_v16 }
 0xc82   :  { %v1748_v21 = vsel %vm91_vm0, %v1741_v20, 0.0 }
 0xc83   :  { %1749 = vadd.xlane.f32.xlu1 %v1748_v21 }
 0xd08   :  { %v1744_v32 = vpop.xlane.xlu1 %1743 }
 0xd09   :  { %v1751_v33 = vmul.f32 0.015625, %v1744_v32 }
 0xd0a   :  { %v1747_v36 = vpop.xlane.xlu0 %1746 }
 0xd0b   :  { %v1754_v37 = vadd.f32 1e-05, %v1751_v33  ;;  %v1752_v40 = vmul.f32 0.015625, %v1747_v36 }
 0xd0d   :  { %4147 = vrsqrt.f32 %v1754_v37  ;;  %v1755_v41 = vadd.f32 1e-05, %v1752_v40 }
 0xd0f   :  { %4149 = vrsqrt.f32 %v1755_v41 }
 0xd10   :  { %v1750_v43 = vpop.xlane.xlu1 %1749 }
 0xd11   :  { %v1753_v44 = vmul.f32 0.015625, %v1750_v43  ;;  %v4862_v43 = vld [vmem:[%s5182_s2] sm:$0xff] }
 0xd13   :  { %v1756_v45 = vadd.f32 1e-05, %v1753_v44 }
 0xd15   :  { %4151 = vrsqrt.f32 %v1756_v45 }
 0xd17   :  { %v4148_v46 = vpop.eup %4147 }
 0xd18   :  { %v1760_v49 = vmul.f32 %v4148_v46, %v1736_v9 }
 0xd19   :  { %v4150_v51 = vpop.eup %4149 }
 0xd1a   :  { %v1769_v53 = vmul.f32 %v3512_v47, %v1760_v49  ;;  %v1761_v54 = vmul.f32 %v4150_v51, %v1737_v10  ;;  %v4874_v51 = vld [vmem:[%s5182_s2 + $0x8] sm:$0xff] }
 0xd1c   :  { %v1770_v17 = vmul.f32 %v3512_v47, %v1761_v54  ;;  %v1778_v19 = vadd.f32 %v3513_v55, %v1769_v53 }
 0xd1e   :  { %v1779_v24 = vadd.f32 %v3513_v55, %v1770_v17 }
 0xd1f   :  { %v4152_v27 = vpop.eup %4151 }
 0xd20   :  { %v1781_v18 = vpack.c.bf16 %v1779_v24, %v1778_v19  ;;  %v1762_v38 = vmul.f32 %v4152_v27, %v1738_v16 }
 0xd22   :  { %3522 = vmatmul.mubr.msk.bf16.vlgmr.msra.gmra.mrb[28].mxu0 %vm91_vm0, %v1781_v18  ;;  %v1771_v56 = vmul.f32 %v3512_v47, %v1762_v38  ;;  %v4868_v47 = vld [vmem:[%s5182_s2 + $0x10] sm:$0xff]  ;;  %s5184_s2 = smov 96  }
 0xd23   :  { %1882 = vmatprep.mubr.bf16.mxu0 %v4258_v34 }
 0xd24   :  { %v1780_v57 = vadd.f32 %v3513_v55, %v1771_v56 }
 0xd26   :  { %v1782_v58 = vpack.c.bf16 %v1780_v57, %v1780_v57 }
 0xd2a   :  { %3523 = vmatmul.mubr.msk.bf16.gmra.mrb[32].mxu0 %vm91_vm0, %v1782_v58 }
 0xdf5   :  { %v1874_v61 = vpop.f32.mrb[28].mxu0 }
 0xdf6   :  { %v1875_v35 = vadd.f32 %v1874_v61, %v1787_v60  ;;  %v1876_v63 = vpop.f32.mrb[29].mxu0 }
 0xdf7   :  { %v1878_v0 = vpop.f32.mrb[30].mxu0  ;;  %v1877_v42 = vadd.f32 %v1876_v63, %v1791_v62 }
 0xdf8   :  { %v1879_v39 = vadd.f32 %v1878_v0, %v1787_v60  ;;  %v1880_v5 = vpop.f32.mrb[31].mxu0  ;;  %v1891_v48 = vmul.f32 0.25, %v1875_v35 }
 0xdf9   :  { %v1881_v7 = vadd.f32 %v1880_v5, %v1791_v62 }
 0xdfa   :  { %v1892_v8 = vmul.f32 0.25, %v1879_v39  ;;  %v4815_v9 = vpack.c.bf16 %v1879_v39, %v1875_v35 }
 0xdfb   :  { %v4817_v52 = vpack.c.bf16 %v1881_v7, %v1877_v42 }
 0xdfc   :  { %v4819_v10 = vpack.c.bf16 %v1892_v8, %v1891_v48  ;;  %1902 = vrot.lane.b32.xlu0 %v4815_v9, %s4259_s30 }
 0xdfd   :  { %v1884_v11 = vpop.f32.mrb[32].mxu0  ;;  %3844 = vmatprep.subr.bf16.mxu1 %v4817_v52 }
 0xdfe   :  { %v1885_v12 = vadd.f32 %v1884_v11, %v1787_v60  ;;  %v1886_v13 = vpop.f32.mrb[33].mxu0  ;;  %3840 = vmatprep.mubr.msk.bf16.mxu0 %vm345_vm1, %v4819_v10  ;;  %3845 = vmatpush3.bf16.msra.mxu1 %v4817_v52 }
 0xdff   :  { %v1887_v14 = vadd.f32 %v1886_v13, %v1791_v62  ;;  %v1888_v50 = vpop.f32.mrb[34].mxu0 }
 0xe00   :  { %v4827_v15 = vpack.c.bf16 %v1885_v12, %v1885_v12  ;;  %v1889_v16 = vpop.f32.mrb[35].mxu0  ;;  %2062 = vrot.lane.b32.xlu0 %v4819_v10, %s4260_s0  ;;  %v1893_v22 = vmul.f32 0.25, %v1885_v12 }
 0xe01   :  { %v4831_v20 = vpack.c.bf16 %v1887_v14, %v1887_v14 }
 0xe02   :  { %1904 = vrot.lane.b32.xlu1 %v4827_v15, %s4259_s30  ;;  %v4843_v23 = vpack.c.bf16 %v1893_v22, %v1893_v22 }
 0xe03   :  { %3950 = vmatprep.subr.msk.bf16.mxu1 %vm448_vm2, %v4831_v20  ;;  %v2008_v21 = vsel %vm448_vm2, %v4831_v20, 0 }
 0xe04   :  { %3847 = vmatpush3.bf16.msra.mxu1 %v2008_v21 }
 0xe06   :  { %2066 = vrot.lane.b32.xlu1 %v4815_v9, %s4262_s1 }
 0xe0a   :  { %2068 = vrot.lane.b32.xlu1 %v4827_v15, %s4262_s1 }
 0xe0e   :  { %2064 = vrot.lane.b32.xlu1 %v4843_v23, %s4260_s0 }
 0xe6e   :  { %v1903_v25 = vpop.permute.xlu0 %1902 }
 0xe6f   :  { %v1913_v26 = vsel %vm345_vm1, %v1903_v25, 0  ;;  %3948 = vmatprep.subr.msk.bf16.mxu0 %vm345_vm1, %v1903_v25 }
 0xe70   :  { %3837 = vmatpush3.bf16.xpose.msra.mxu0 %v1913_v26 }
 0xe72   :  { %v2063_v31 = vpop.permute.xlu0 %2062 }
 0xe74   :  { %v1905_v28 = vpop.permute.xlu1 %1904 }
 0xe75   :  { %3949 = vmatprep.subr.msk.bf16.mxu0 %vm345_vm1, %v1905_v28  ;;  %v1916_v29 = vsel %vm345_vm1, %v1905_v28, 0 }
 0xe78   :  { %v2067_v30 = vpop.permute.xlu1 %2066  ;;  %3839 = vmatpush3.bf16.xpose.msra.mxu0 %v1916_v29 }
 0xe79   :  { %3951 = vmatprep.subr.msk.bf16.mxu0 %vm345_vm1, %v2067_v30  ;;  %v2077_v32 = vsel %vm345_vm1, %v2067_v30, 0 }
 0xe7c   :  { %v2069_v33 = vpop.permute.xlu1 %2068 }
 0xe7d   :  { %v2080_v36 = vsel %vm345_vm1, %v2069_v33, 0 }
 0xe7f   :  { %3841 = vmatmul.mubr.msk.bf16.vlgmr.msra.gmra.mrb[36].mxu0 %vm345_vm1, %v4843_v23 }
 0xe80   :  { %3853 = vmatpush3.bf16.xpose.msra.mxu0 %v2077_v32  ;;  %3856 = vmatprep.mubr.msk.bf16.mxu0 %vm345_vm1, %v2063_v31  ;;  %v2065_v37 = vpop.permute.xlu1 %2064 }
 0xe81   :  { %3952 = vmatprep.subr.msk.bf16.mxu0 %vm345_vm1, %v2069_v33 }
 0xe88   :  { %3855 = vmatpush3.bf16.xpose.msra.mxu0 %v2080_v36 }
 0xe8f   :  { %3857 = vmatmul.mubr.msk.bf16.vlgmr.msra.gmra.mrb[40].mxu0 %vm345_vm1, %v2065_v37 }
 0xf52   :  { %v3842_v40 = vpop.f32.mrb[36].mxu0 }
 0xf53   :  { %v1952_v41 = vpop.f32.mrb[37].mxu0  ;;  %v1961_v49 = vadd.f32 %v4868_v47, %v3842_v40 }
 0xf54   :  { %v1953_v44 = vadd.f32 %v4862_v43, %v1952_v41  ;;  %v3843_v45 = vpop.f32.mrb[38].mxu0 }
 0xf55   :  { %v1955_v46 = vpop.f32.mrb[39].mxu0  ;;  %v1972_v17 = vsel %vm406_vm3, %v1961_v49, -inf }
 0xf56   :  { %v1956_v53 = vadd.f32 %v4874_v51, %v1955_v46  ;;  %v1966_v54 = vsel %vm406_vm3, %v1953_v44, -inf }
 0xf57   :  { %1967 = vmax.xlane.f32.xlu0 %v1966_v54 }
 0xf58   :  { %v1969_v55 = vsel %vm406_vm3, %v1956_v53, -inf }
 0xf59   :  { %1970 = vmax.xlane.f32.xlu1 %v1969_v55 }
 0xf5b   :  { %1973 = vmax.xlane.f32.xlu0 %v1972_v17 }
 0xf62   :  { %v3858_v19 = vpop.f32.mrb[40].mxu0 }
 0xf63   :  { %v2125_v24 = vadd.f32 %v4868_v47, %v3858_v19  ;;  %v2116_v27 = vpop.f32.mrb[41].mxu0 }
 0xf64   :  { %v2117_v18 = vadd.f32 %v4862_v43, %v2116_v27  ;;  %v3859_v38 = vpop.f32.mrb[42].mxu0 }
 0xf65   :  { %v2119_v56 = vpop.f32.mrb[43].mxu0  ;;  %v2136_v57 = vsel %vm406_vm3, %v2125_v24, -inf }
 0xf66   :  { %v2120_v58 = vadd.f32 %v4874_v51, %v2119_v56  ;;  %2137 = vmax.xlane.f32.xlu1 %v2136_v57  ;;  %v2130_v59 = vsel %vm406_vm3, %v2117_v18, -inf }
 0xf67   :  { %2131 = vmax.xlane.f32.xlu0 %v2130_v59 }
 0xf68   :  { %v2133_v60 = vsel %vm406_vm3, %v2120_v58, -inf }
 0xf6b   :  { %2134 = vmax.xlane.f32.xlu0 %v2133_v60 }
 0xfe4   :  { %v1968_v61 = vpop.xlane.xlu0 %1967 }
 0xfe5   :  { %v1975_v35 = vsub.f32 %v1953_v44, %v1968_v61 }
 0xfe6   :  { %v1971_v62 = vpop.xlane.xlu1 %1970 }
 0xfe7   :  { %v1976_v63 = vsub.f32 %v1956_v53, %v1971_v62  ;;  %v1978_v42 = vmul.f32 1.442695, %v1975_v35 }
 0xfe8   :  { %v1974_v0 = vpop.xlane.xlu0 %1973 }
 0xfe9   :  { %v1980_v39 = vmul.f32 1.442695, %v1976_v63  ;;  %v1977_v5 = vsub.f32 %v1961_v49, %v1974_v0  ;;  %v4028_v0 = vld [vmem:[%s5153_s9 + $0x20] sm:$0xff]  }
 0xfea   :  { %3874 = vmatprep.subr.bf16.mxu0 %v4028_v0 }
 0xfeb   :  { %4153 = vpow2.f32 %v1980_v39  ;;  %v1982_v7 = vmul.f32 1.442695, %v1977_v5  ;;  %3875 = vmatpush3.bf16.msra.mxu0 %v4028_v0 }
 0xfed   :  { %4155 = vpow2.f32 %v1982_v7 }
 0xfee   :  { %4157 = vpow2.f32 %v1978_v42 }
 0xff3   :  { %v2138_v48 = vpop.xlane.xlu1 %2137 }
 0xff4   :  { %v2141_v8 = vsub.f32 %v2125_v24, %v2138_v48  ;;  %v2132_v11 = vpop.xlane.xlu0 %2131 }
 0xff5   :  { %v4154_v12 = vpop.eup %4153  ;;  %v2139_v13 = vsub.f32 %v2117_v18, %v2132_v11  ;;  %v4027_v18 = vld [vmem:[%s5153_s9 + $0x28] sm:$0xff]  }
 0xff6   :  { %v2146_v14 = vmul.f32 1.442695, %v2141_v8  ;;  %v1987_v50 = vsel %vm406_vm3, %v4154_v12, 0.0 }
 0xff7   :  { %v4156_v16 = vpop.eup %4155  ;;  %v2142_v21 = vmul.f32 1.442695, %v2139_v13  ;;  %1988 = vadd.xlane.f32.xlu1 %v1987_v50 }
 0xff8   :  { %4159 = vpow2.f32 %v2146_v14  ;;  %v2135_v22 = vpop.xlane.xlu0 %2134  ;;  %v1990_v25 = vsel %vm406_vm3, %v4156_v16, 0.0  ;;  %v4158_v26 = vpop.eup %4157 }
 0xff9   :  { %v2140_v28 = vsub.f32 %v2120_v58, %v2135_v22  ;;  %1991 = vadd.xlane.f32.xlu0 %v1990_v25  ;;  %4161 = vpow2.f32 %v2142_v21  ;;  %v1984_v30 = vsel %vm406_vm3, %v4158_v26, 0.0 }
 0xffb   :  { %v2144_v29 = vmul.f32 1.442695, %v2140_v28 }
 0xffd   :  { %4163 = vpow2.f32 %v2144_v29  ;;  %1985 = vadd.xlane.f32.xlu0 %v1984_v30 }
0x1002   :  { %v4160_v31 = vpop.eup %4159 }
0x1003   :  { %v2154_v32 = vsel %vm406_vm3, %v4160_v31, 0.0  ;;  %v4162_v33 = vpop.eup %4161 }
0x1004   :  { %2155 = vadd.xlane.f32.xlu1 %v2154_v32  ;;  %v2148_v37 = vsel %vm406_vm3, %v4162_v33, 0.0 }
0x1007   :  { %v4164_v36 = vpop.eup %4163 }
0x1008   :  { %2149 = vadd.xlane.f32.xlu1 %v2148_v37  ;;  %v2151_v40 = vsel %vm406_vm3, %v4164_v36, 0.0 }
0x1009   :  { %2152 = vadd.xlane.f32.xlu0 %v2151_v40 }
0x1019   :  { %2169 = vrot.lane.b32.xlu1 %v4831_v20, %s4260_s0 }
0x101d   :  { %2355 = vrot.lane.b32.xlu1 %v4815_v9, %s4261_s21 }
0x101f   :  { %2167 = vrot.lane.b32.xlu0 %v4817_v52, %s4260_s0 }
0x1021   :  { %2357 = vrot.lane.b32.xlu1 %v4827_v15, %s4261_s21 }
0x1023   :  { %2351 = vrot.lane.b32.xlu0 %v4819_v10, %s5184_s2 }
0x1025   :  { %2353 = vrot.lane.b32.xlu1 %v4843_v23, %s5184_s2 }
0x1027   :  { %2585 = vrot.lane.b32.xlu0 %v4815_v9, %s5185_s3 }
0x1029   :  { %2587 = vrot.lane.b32.xlu1 %v4827_v15, %s5185_s3 }
0x102b   :  { %2581 = vrot.lane.b32.xlu0 %v4819_v10, %s5186_s26 }
0x102d   :  { %2583 = vrot.lane.b32.xlu1 %v4843_v23, %s5186_s26 }
0x1084   :  { %v1989_v41 = vpop.xlane.xlu1 %1988 }
0x1086   :  { %v1992_v44 = vpop.xlane.xlu0 %1991 }
0x1087   :  { %4165 = vrcp.f32 %v1992_v44 }
0x1088   :  { %4167 = vrcp.f32 %v1989_v41 }
0x108a   :  { %v1986_v45 = vpop.xlane.xlu0 %1985 }
0x108b   :  { %4169 = vrcp.f32 %v1986_v45 }
0x1091   :  { %v2156_v46 = vpop.xlane.xlu1 %2155  ;;  %v4166_v49 = vpop.eup %4165 }
0x1092   :  { %v4168_v53 = vpop.eup %4167  ;;  %4171 = vrcp.f32 %v2156_v46  ;;  %v1998_v54 = vmul.f32 %v4166_v49, %v4156_v16 }
0x1093   :  { %v1997_v10 = vmul.f32 %v4168_v53, %v4154_v12 }
0x1094   :  { %v2000_v23 = vpack.c.bf16 %v1998_v54, %v1998_v54 }
0x1095   :  { %v4170_v9 = vpop.eup %4169  ;;  %v2150_v55 = vpop.xlane.xlu1 %2149 }
0x1096   :  { %4173 = vrcp.f32 %v2150_v55  ;;  %v2153_v15 = vpop.xlane.xlu0 %2152  ;;  %v1996_v17 = vmul.f32 %v4170_v9, %v4158_v26 }
0x1097   :  { %4175 = vrcp.f32 %v2153_v15 }
0x1098   :  { %v1999_v19 = vpack.c.bf16 %v1997_v10, %v1996_v17 }
0x1099   :  { %v2170_v27 = vpop.permute.xlu1 %2169 }
0x109a   :  { %3848 = vmatprep.mubr.msk.bf16.mxu1 %vm406_vm3, %v1999_v19  ;;  %v2168_v24 = vpop.permute.xlu0 %2167  ;;  %v2179_v56 = vsel %vm448_vm2, %v2170_v27, 0 }
0x109b   :  { %3849 = vmatmul.mubr.msk.bf16.vlgmr.msra.gmra.mrb[44].mxu1 %vm406_vm3, %v2000_v23  ;;  %3860 = vmatprep.subr.bf16.mxu1 %v2168_v24 }
0x109c   :  { %3861 = vmatpush3.bf16.msra.mxu1 %v2168_v24  ;;  %v4172_v38 = vpop.eup %4171 }
0x109d   :  { %3953 = vmatprep.subr.msk.bf16.mxu1 %vm448_vm2, %v2170_v27  ;;  %v2162_v59 = vmul.f32 %v4172_v38, %v4160_v31  ;;  %v2356_v63 = vpop.permute.xlu1 %2355 }
0x109e   :  { %v2366_v21 = vsel %vm345_vm1, %v2356_v63, 0  ;;  %v2352_v22 = vpop.permute.xlu0 %2351 }
0x109f   :  { %v2164_v35 = vpack.c.bf16 %v2162_v59, %v2162_v59 }
0x10a0   :  { %v4174_v57 = vpop.eup %4173  ;;  %3863 = vmatpush3.bf16.msra.mxu1 %v2179_v56 }
0x10a1   :  { %v4176_v58 = vpop.eup %4175  ;;  %v2160_v60 = vmul.f32 %v4174_v57, %v4162_v33  ;;  %3868 = vmatprep.subr.bf16.mxu1 %v4027_v18  ;;  %v2358_v25 = vpop.permute.xlu1 %2357 }
0x10a2   :  { %v2161_v61 = vmul.f32 %v4176_v58, %v4164_v36  ;;  %v2369_v26 = vsel %vm345_vm1, %v2358_v25, 0  ;;  %v2586_v28 = vpop.permute.xlu0 %2585 }
0x10a3   :  { %v2596_v30 = vsel %vm345_vm1, %v2586_v28, 0 }
0x10a4   :  { %v2163_v62 = vpack.c.bf16 %v2161_v61, %v2160_v60 }
0x10a5   :  { %v2354_v29 = vpop.permute.xlu1 %2353 }
0x10a6   :  { %3864 = vmatprep.mubr.msk.bf16.mxu1 %vm406_vm3, %v2163_v62  ;;  %v2582_v31 = vpop.permute.xlu0 %2581 }
0x10a7   :  { %3865 = vmatmul.mubr.msk.bf16.vlgmr.msra.gmra.mrb[48].mxu1 %vm406_vm3, %v2164_v35 }
0x10a8   :  { %3869 = vmatpush3.bf16.msra.mxu1 %v4027_v18 }
0x10a9   :  { %3954 = vmatprep.subr.msk.bf16.mxu1 %vm345_vm1, %v2356_v63  ;;  %v2588_v32 = vpop.permute.xlu1 %2587 }
0x10aa   :  { %v2599_v33 = vsel %vm345_vm1, %v2588_v32, 0 }
0x10ad   :  { %v2584_v36 = vpop.permute.xlu1 %2583 }
0x116e   :  { %v3850_v39 = vpop.f32.mrb[44].mxu1 }
0x116f   :  { %v2044_v5 = vpop.f32.mrb[45].mxu1  ;;  %v2059_v8 = vpack.c.bf16 %v3850_v39, %v3850_v39 }
0x1170   :  { %v3851_v42 = vpop.f32.mrb[46].mxu1 }
0x1171   :  { %v2047_v7 = vpop.f32.mrb[47].mxu1 }
0x1172   :  { %v2058_v48 = vpack.c.bf16 %v2047_v7, %v2044_v5 }
0x1174   :  { %3876 = vmatprep.mubr.msk.bf16.mxu0 %vm345_vm1, %v2058_v48 }
0x1175   :  { %3877 = vmatmul.mubr.msk.bf16.vlgmr.msra.gmra.mrb[44].mxu0 %vm345_vm1, %v2059_v8 }
0x117a   :  { %v3866_v11 = vpop.f32.mrb[48].mxu1 }
0x117b   :  { %v2215_v12 = vpop.f32.mrb[49].mxu1  ;;  %v2230_v16 = vpack.c.bf16 %v3866_v11, %v3866_v11 }
0x117c   :  { %v3867_v13 = vpop.f32.mrb[50].mxu1 }
0x117d   :  { %v2218_v14 = vpop.f32.mrb[51].mxu1 }
0x117e   :  { %v2229_v50 = vpack.c.bf16 %v2218_v14, %v2215_v12 }
0x1180   :  { %3870 = vmatprep.mubr.msk.bf16.mxu1 %vm345_vm1, %v2229_v50 }
0x1181   :  { %3871 = vmatmul.mubr.msk.bf16.vlgmr.msra.gmra.mrb[52].mxu1 %vm345_vm1, %v2230_v16 }
0x1182   :  { %3881 = vmatpush3.bf16.xpose.msra.mxu1 %v2366_v21  ;;  %3884 = vmatprep.mubr.msk.bf16.mxu1 %vm345_vm1, %v2352_v22 }
0x1183   :  { %3955 = vmatprep.subr.msk.bf16.mxu1 %vm345_vm1, %v2358_v25 }
0x118a   :  { %3883 = vmatpush3.bf16.xpose.msra.mxu1 %v2369_v26 }
0x118b   :  { %3957 = vmatprep.subr.msk.bf16.mxu1 %vm345_vm1, %v2586_v28 }
0x1191   :  { %3885 = vmatmul.mubr.msk.bf16.vlgmr.msra.gmra.mrb[56].mxu1 %vm345_vm1, %v2354_v29 }
0x1192   :  { %3903 = vmatpush3.bf16.xpose.msra.mxu1 %v2596_v30  ;;  %3906 = vmatprep.mubr.msk.bf16.mxu1 %vm345_vm1, %v2582_v31 }
0x1193   :  { %3958 = vmatprep.subr.msk.bf16.mxu1 %vm345_vm1, %v2588_v32 }
0x119a   :  { %3905 = vmatpush3.bf16.xpose.msra.mxu1 %v2599_v33 }
0x11a1   :  { %3907 = vmatmul.mubr.msk.bf16.vlgmr.msra.gmra.mrb[60].mxu1 %vm345_vm1, %v2584_v36 }
0x11a2   :  { %2971 = vmatprep.mubr.bf16.mxu1 %v4258_v34 }
0x1248   :  { %v3878_v37 = vpop.f32.mrb[44].mxu0 }
0x1249   :  { %v2337_v40 = vpop.f32.mrb[45].mxu0 }
0x124a   :  { %v3879_v41 = vpop.f32.mrb[46].mxu0 }
0x124b   :  { %v2340_v44 = vpop.f32.mrb[47].mxu0 }
0x1254   :  { %v3872_v45 = vpop.f32.mrb[52].mxu1 }
0x1255   :  { %v4941_v46 = vadd.f32 %v3878_v37, %v3872_v45  ;;  %v2277_v49 = vpop.f32.mrb[53].mxu1 }
0x1256   :  { %v4943_v53 = vadd.f32 %v2337_v40, %v2277_v49  ;;  %v3873_v9 = vpop.f32.mrb[54].mxu1 }
0x1257   :  { %v2280_v54 = vpop.f32.mrb[55].mxu1 }
0x1258   :  { %v4945_v55 = vadd.f32 %v2340_v44, %v2280_v54 }
0x1264   :  { %v3886_v15 = vpop.f32.mrb[56].mxu1 }
0x1265   :  { %v2405_v17 = vpop.f32.mrb[57].mxu1  ;;  %v2414_v24 = vadd.f32 %v4868_v47, %v3886_v15 }
0x1266   :  { %v2406_v10 = vadd.f32 %v4862_v43, %v2405_v17  ;;  %v3887_v19 = vpop.f32.mrb[58].mxu1 }
0x1267   :  { %v2408_v23 = vpop.f32.mrb[59].mxu1  ;;  %v2425_v56 = vsel %vm406_vm3, %v2414_v24, -inf }
0x1268   :  { %v2409_v27 = vadd.f32 %v4874_v51, %v2408_v23  ;;  %v2419_v18 = vsel %vm406_vm3, %v2406_v10, -inf }
0x1269   :  { %2420 = vmax.xlane.f32.xlu0 %v2419_v18 }
0x126a   :  { %v2422_v38 = vsel %vm406_vm3, %v2409_v27, -inf }
0x126b   :  { %2423 = vmax.xlane.f32.xlu1 %v2422_v38 }
0x126d   :  { %2426 = vmax.xlane.f32.xlu0 %v2425_v56 }
0x1274   :  { %v3908_v57 = vpop.f32.mrb[60].mxu1 }
0x1275   :  { %v2635_v58 = vpop.f32.mrb[61].mxu1  ;;  %v2644_v21 = vadd.f32 %v4868_v47, %v3908_v57 }
0x1276   :  { %v3909_v59 = vpop.f32.mrb[62].mxu1  ;;  %v2636_v50 = vadd.f32 %v4862_v43, %v2635_v58  ;;  %v4029_v58 = vld [vmem:[%s5153_s9 + $0x30] sm:$0xff]  }
0x1277   :  { %v2638_v60 = vpop.f32.mrb[63].mxu1  ;;  %v2655_v26 = vsel %vm406_vm3, %v2644_v21, -inf }
0x1278   :  { %v2639_v16 = vadd.f32 %v4874_v51, %v2638_v60  ;;  %v2649_v25 = vsel %vm406_vm3, %v2636_v50, -inf }
0x127a   :  { %v2652_v22 = vsel %vm406_vm3, %v2639_v16, -inf }
0x12f6   :  { %v2421_v61 = vpop.xlane.xlu0 %2420 }
0x12f7   :  { %v2428_v62 = vsub.f32 %v2406_v10, %v2421_v61 }
0x12f8   :  { %v2424_v35 = vpop.xlane.xlu1 %2423 }
0x12f9   :  { %v2431_v63 = vmul.f32 1.442695, %v2428_v62  ;;  %v2429_v0 = vsub.f32 %v2409_v27, %v2424_v35 }
0x12fa   :  { %v2427_v39 = vpop.xlane.xlu0 %2426 }
0x12fb   :  { %4177 = vpow2.f32 %v2431_v63  ;;  %v2433_v5 = vmul.f32 1.442695, %v2429_v0  ;;  %v2430_v42 = vsub.f32 %v2414_v24, %v2427_v39 }
0x12fd   :  { %4179 = vpow2.f32 %v2433_v5  ;;  %v2435_v7 = vmul.f32 1.442695, %v2430_v42 }
0x12ff   :  { %4181 = vpow2.f32 %v2435_v7 }
0x1305   :  { %v4178_v48 = vpop.eup %4177 }
0x1306   :  { %v2437_v8 = vsel %vm406_vm3, %v4178_v48, 0.0 }
0x1307   :  { %v4180_v11 = vpop.eup %4179  ;;  %2438 = vadd.xlane.f32.xlu0 %v2437_v8 }
0x1308   :  { %v2440_v13 = vsel %vm406_vm3, %v4180_v11, 0.0 }
0x1309   :  { %v4182_v12 = vpop.eup %4181 }
0x130a   :  { %v2443_v14 = vsel %vm406_vm3, %v4182_v12, 0.0 }
0x130b   :  { %2441 = vadd.xlane.f32.xlu0 %v2440_v13  ;;  %2444 = vadd.xlane.f32.xlu1 %v2443_v14 }
0x131c   :  { %2456 = vrot.lane.b32.xlu1 %v4831_v20, %s5184_s2 }
0x1321   :  { %2454 = vrot.lane.b32.xlu0 %v4817_v52, %s5184_s2 }
0x1340   :  { %2653 = vmax.xlane.f32.xlu0 %v2652_v22  ;;  %2650 = vmax.xlane.f32.xlu1 %v2649_v25 }
0x1344   :  { %2656 = vmax.xlane.f32.xlu0 %v2655_v26 }
0x1394   :  { %v2439_v28 = vpop.xlane.xlu0 %2438 }
0x1395   :  { %4183 = vrcp.f32 %v2439_v28 }
0x1398   :  { %v2445_v29 = vpop.xlane.xlu1 %2444  ;;  %v2442_v30 = vpop.xlane.xlu0 %2441 }
0x1399   :  { %4185 = vrcp.f32 %v2445_v29 }
0x139a   :  { %4187 = vrcp.f32 %v2442_v30 }
0x139c   :  { %v2455_v43 = vpop.permute.xlu0 %2454  ;;  %v2457_v51 = vpop.permute.xlu1 %2456 }
0x139d   :  { %3888 = vmatprep.subr.bf16.mxu0 %v2455_v43  ;;  %v2466_v47 = vsel %vm448_vm2, %v2457_v51, 0 }
0x139e   :  { %3889 = vmatpush3.bf16.msra.mxu0 %v2455_v43 }
0x139f   :  { %3956 = vmatprep.subr.msk.bf16.mxu0 %vm448_vm2, %v2457_v51  ;;  %v4184_v31 = vpop.eup %4183 }
0x13a0   :  { %v2449_v37 = vmul.f32 %v4184_v31, %v4178_v48 }
0x13a2   :  { %3891 = vmatpush3.bf16.msra.mxu0 %v2466_v47 }
0x13a3   :  { %v4186_v32 = vpop.eup %4185  ;;  %3896 = vmatprep.subr.bf16.mxu0 %v4029_v58 }
0x13a4   :  { %v4188_v33 = vpop.eup %4187  ;;  %v2451_v36 = vmul.f32 %v4186_v32, %v4182_v12 }
0x13a5   :  { %v2450_v40 = vmul.f32 %v4188_v33, %v4180_v11 }
0x13a6   :  { %v2453_v41 = vpack.c.bf16 %v2451_v36, %v2451_v36 }
0x13a7   :  { %v2452_v44 = vpack.c.bf16 %v2450_v40, %v2449_v37 }
0x13a9   :  { %3892 = vmatprep.mubr.msk.bf16.mxu0 %vm406_vm3, %v2452_v44 }
0x13aa   :  { %3893 = vmatmul.mubr.msk.bf16.vlgmr.msra.gmra.mrb[48].mxu0 %vm406_vm3, %v2453_v41 }
0x13ab   :  { %3897 = vmatpush3.bf16.msra.mxu0 %v4029_v58 }
0x13cd   :  { %v2651_v45 = vpop.xlane.xlu1 %2650  ;;  %v2654_v49 = vpop.xlane.xlu0 %2653 }
0x13ce   :  { %v2659_v9 = vsub.f32 %v2639_v16, %v2654_v49  ;;  %v2658_v54 = vsub.f32 %v2636_v50, %v2651_v45  ;;  %v4030_v16 = vld [vmem:[%s5153_s9 + $0x38] sm:$0xff]  }
0x13d0   :  { %v2663_v15 = vmul.f32 1.442695, %v2659_v9  ;;  %v2661_v19 = vmul.f32 1.442695, %v2658_v54 }
0x13d1   :  { %v2657_v17 = vpop.xlane.xlu0 %2656 }
0x13d2   :  { %v2660_v10 = vsub.f32 %v2644_v21, %v2657_v17  ;;  %4189 = vpow2.f32 %v2663_v15 }
0x13d4   :  { %v2665_v23 = vmul.f32 1.442695, %v2660_v10 }
0x13d6   :  { %4191 = vpow2.f32 %v2665_v23 }
0x13d7   :  { %4193 = vpow2.f32 %v2661_v19 }
0x13dc   :  { %v4190_v24 = vpop.eup %4189 }
0x13dd   :  { %v2670_v27 = vsel %vm406_vm3, %v4190_v24, 0.0 }
0x13de   :  { %2671 = vadd.xlane.f32.xlu0 %v2670_v27 }
0x13e0   :  { %v4192_v18 = vpop.eup %4191 }
0x13e1   :  { %v2673_v38 = vsel %vm406_vm3, %v4192_v18, 0.0  ;;  %v4194_v56 = vpop.eup %4193 }
0x13e2   :  { %2674 = vadd.xlane.f32.xlu1 %v2673_v38  ;;  %v2667_v57 = vsel %vm406_vm3, %v4194_v56, 0.0 }
0x13e6   :  { %2668 = vadd.xlane.f32.xlu1 %v2667_v57 }
0x13f4   :  { %2684 = vrot.lane.b32.xlu0 %v4817_v52, %s5186_s26 }
0x13f7   :  { %2686 = vrot.lane.b32.xlu1 %v4831_v20, %s5186_s26 }
0x146b   :  { %v2672_v59 = vpop.xlane.xlu0 %2671 }
0x146c   :  { %4195 = vrcp.f32 %v2672_v59 }
0x146f   :  { %v2675_v60 = vpop.xlane.xlu1 %2674  ;;  %v2685_v61 = vpop.permute.xlu0 %2684 }
0x1470   :  { %3910 = vmatprep.subr.bf16.mxu0 %v2685_v61 }
0x1473   :  { %v2669_v62 = vpop.xlane.xlu1 %2668 }
0x1474   :  { %4197 = vrcp.f32 %v2669_v62 }
0x1475   :  { %4199 = vrcp.f32 %v2675_v60 }
0x1476   :  { %v4196_v35 = vpop.eup %4195 }
0x1477   :  { %v2680_v7 = vmul.f32 %v4196_v35, %v4190_v24  ;;  %v2687_v12 = vpop.permute.xlu1 %2686 }
0x1478   :  { %v2696_v14 = vsel %vm448_vm2, %v2687_v12, 0 }
0x147d   :  { %v3894_v63 = vpop.f32.mrb[48].mxu0 }
0x147e   :  { %v4198_v0 = vpop.eup %4197  ;;  %v2502_v39 = vpop.f32.mrb[49].mxu0  ;;  %v2517_v11 = vpack.c.bf16 %v3894_v63, %v3894_v63  ;;  %v4033_v63 = vld [vmem:[%s5157_s13 + $0x44] ss:$8 sps:$4 sm:$0xff]  }
0x147f   :  { %v3895_v5 = vpop.f32.mrb[50].mxu0  ;;  %v2679_v42 = vmul.f32 %v4198_v0, %v4194_v56  ;;  %v4200_v20 = vpop.eup %4199  ;;  %v4031_v0 = vld [vmem:[%s5157_s13 + $0x40] ss:$8 sps:$4 sm:$0xff]   ;;  %2939 = vmatprep.subr.bf16.mxu1 %v4033_v63 }
0x1480   :  { %v2505_v48 = vpop.f32.mrb[51].mxu0  ;;  %v2681_v13 = vmul.f32 %v4200_v20, %v4192_v18  ;;  %2940 = vmatpush1.bf16.msra.mxu1 %v4031_v0  ;;  %v4034_v5 = vld [vmem:[%s5157_s13 + $0x50] ss:$8 sps:$4 sm:$0xff]  }
0x1481   :  { %v2516_v52 = vpack.c.bf16 %v2505_v48, %v2502_v39  ;;  %v2682_v8 = vpack.c.bf16 %v2680_v7, %v2679_v42  ;;  %v4036_v39 = vld [vmem:[%s5157_s13 + $0x54] ss:$8 sps:$4 sm:$0xff]   ;;  %v4039_v42 = vld [vmem:[%s5157_s13 + $0x64] ss:$8 sps:$4 sm:$0xff]   ;;  %v4037_v7 = vld [vmem:[%s5157_s13 + $0x60] ss:$8 sps:$4 sm:$0xff]  }
0x1482   :  { %v2683_v50 = vpack.c.bf16 %v2681_v13, %v2681_v13  ;;  %2941 = vmatprep.subr.bf16.mxu1 %v4036_v39  ;;  %v4040_v48 = vld [vmem:[%s5157_s13 + $0x70] ss:$8 sps:$4 sm:$0xff]  }
0x1483   :  { %3898 = vmatprep.mubr.msk.bf16.mxu0 %vm345_vm1, %v2516_v52  ;;  %v4042_v52 = vld [vmem:[%s5157_s13 + $0x74] ss:$8 sps:$4 sm:$0xff]   ;;  %s3368_s13 = scalar_lea.vmem [#allocation2], %s3590_s22 }
0x1484   :  { %3899 = vmatmul.mubr.msk.bf16.vlgmr.msra.gmra.mrb[52].mxu0 %vm345_vm1, %v2517_v11  ;;  %2942 = vmatpush1.bf16.msra.mxu1 %v4034_v5 }
0x1485   :  { %3911 = vmatpush3.bf16.msra.mxu0 %v2685_v61  ;;  %3914 = vmatprep.mubr.msk.bf16.mxu0 %vm406_vm3, %v2682_v8 }
0x1486   :  { %3959 = vmatprep.subr.msk.bf16.mxu0 %vm448_vm2, %v2687_v12  ;;  %2943 = vmatprep.subr.bf16.mxu1 %v4039_v42 }
0x1488   :  { %2944 = vmatpush1.bf16.msra.mxu1 %v4037_v7 }
0x1489   :  { %3913 = vmatpush3.bf16.msra.mxu0 %v2696_v14  ;;  %2945 = vmatprep.subr.bf16.mxu1 %v4042_v52 }
0x148a   :  { %3918 = vmatprep.subr.bf16.mxu0 %v4030_v16 }
0x148c   :  { %3915 = vmatmul.mubr.msk.bf16.vlgmr.msra.gmra.mrb[56].mxu0 %vm406_vm3, %v2683_v50  ;;  %2946 = vmatpush1.bf16.msra.mxu1 %v4040_v48 }
0x148d   :  { %3919 = vmatpush3.bf16.msra.mxu0 %v4030_v16 }
0x1557   :  { %v3900_v21 = vpop.f32.mrb[52].mxu0 }
0x1558   :  { %v2580_v22 = vadd.f32 %v3900_v21, %v4941_v46  ;;  %v2564_v25 = vpop.f32.mrb[53].mxu0  ;;  %v3552_v46 = vld [vmem:[%s5154_s10 + $0x1] ss:$0 sm:$0xff] }
0x1559   :  { %v2578_v26 = vadd.f32 %v2564_v25, %v4943_v53  ;;  %v3901_v28 = vpop.f32.mrb[54].mxu0  ;;  %v3553_v25 = vld [vmem:[%s5155_s11 + $0x1] ss:$0 sm:$0xff] }
0x155a   :  { %v2567_v29 = vpop.f32.mrb[55].mxu0 }
0x155b   :  { %v2579_v30 = vadd.f32 %v2567_v29, %v4945_v55 }
0x155f   :  { %v3916_v43 = vpop.f32.mrb[56].mxu0 }
0x1560   :  { %v2732_v51 = vpop.f32.mrb[57].mxu0  ;;  %v2747_v33 = vpack.c.bf16 %v3916_v43, %v3916_v43  ;;  %v3554_v43 = vld [vmem:[%s5156_s12 + $0x1] ss:$0 sm:$0xff] }
0x1561   :  { %v3917_v47 = vpop.f32.mrb[58].mxu0 }
0x1562   :  { %v2735_v31 = vpop.f32.mrb[59].mxu0 }
0x1563   :  { %v2746_v32 = vpack.c.bf16 %v2735_v31, %v2732_v51 }
0x1565   :  { %3920 = vmatprep.mubr.msk.bf16.mxu0 %vm345_vm1, %v2746_v32 }
0x1566   :  { %3921 = vmatmul.mubr.msk.bf16.vlgmr.msra.gmra.mrb[60].mxu0 %vm345_vm1, %v2747_v33 }
0x1639   :  { %v3922_v36 = vpop.f32.mrb[60].mxu0 }
0x163a   :  { %v2810_v53 = vadd.f32 %v3922_v36, %v2580_v22  ;;  %v2794_v37 = vpop.f32.mrb[61].mxu0 }
0x163b   :  { %v2808_v40 = vadd.f32 %v2794_v37, %v2578_v26  ;;  %v3923_v41 = vpop.f32.mrb[62].mxu0 }
0x163c   :  { %v2797_v55 = vpop.f32.mrb[63].mxu0  ;;  %v2819_v49 = vadd.f32 %v3552_v46, %v2810_v53  ;;  %v4044_v41 = vld [vmem:[%s5159_s15 + $0x80] sm:$0xff]  }
0x163d   :  { %v2817_v44 = vadd.f32 %v3552_v46, %v2808_v40  ;;  %v2809_v45 = vadd.f32 %v2797_v55, %v2579_v30  ;;  %v4043_v40 = vld [vmem:[%s5159_s15 + $0xc0] sm:$0xff]   ;;  %v4045_v55 = vld [vmem:[%s5159_s15 + $0xc8] sm:$0xff]  }
0x163e   :  { %v5006_v10 = vadd.f32 %v2819_v49, %v4767_v6  ;;  %3715 = vmatprep.subr.bf16.mxu0 %v4043_v40  ;;  %v4049_v49 = vld [vmem:[%s5159_s15 + $0xd8] sm:$0xff]  }
0x163f   :  { %v4998_v9 = vadd.f32 %v2817_v44, %v4758_v1  ;;  %v2818_v54 = vadd.f32 %v3552_v46, %v2809_v45  ;;  %3716 = vmatpush3.bf16.msra.mxu0 %v4044_v41  ;;  %v4047_v44 = vld [vmem:[%s5159_s15 + $0xd0] sm:$0xff]  }
0x1640   :  { %v2829_v23 = vsel %vm91_vm0, %v5006_v10, 0.0  ;;  %3717 = vmatprep.subr.bf16.mxu0 %v4045_v55  ;;  %v4048_v45 = vld [vmem:[%s5159_s15 + $0x90] sm:$0xff]  }
0x1641   :  { %v5001_v15 = vadd.f32 %v2818_v54, %v4763_v3  ;;  %v2823_v17 = vsel %vm91_vm0, %v4998_v9, 0.0  ;;  %v4050_v54 = vld [vmem:[%s5159_s15 + $0x98] sm:$0xff]  }
0x1642   :  { %2824 = vadd.xlane.f32.xlu1 %v2823_v17  ;;  %v4051_v17 = vld [vmem:[%s5159_s15 + $0xe0] sm:$0xff]  }
0x1643   :  { %v2826_v19 = vsel %vm91_vm0, %v5001_v15, 0.0 }
0x1644   :  { %2827 = vadd.xlane.f32.xlu0 %v2826_v19  ;;  %v4052_v19 = vld [vmem:[%s5159_s15 + $0xa0] sm:$0xff]  }
0x1648   :  { %2830 = vadd.xlane.f32.xlu0 %v2829_v23  ;;  %v4053_v23 = vld [vmem:[%s5159_s15 + $0xe8] sm:$0xff]  }
0x16cf   :  { %v2825_v1 = vpop.xlane.xlu1 %2824 }
0x16d0   :  { %v2832_v24 = vmul.f32 0.015625, %v2825_v1  ;;  %v4054_v1 = vld [vmem:[%s5159_s15 + $0xa8] sm:$0xff]  }
0x16d1   :  { %v2828_v27 = vpop.xlane.xlu0 %2827 }
0x16d2   :  { %v2835_v3 = vsub.f32 %v4998_v9, %v2832_v24  ;;  %v2833_v18 = vmul.f32 0.015625, %v2828_v27  ;;  %v4055_v24 = vld [vmem:[%s5159_s15 + $0xf0] sm:$0xff]  }
0x16d3   :  { %v4056_v27 = vld [vmem:[%s5159_s15 + $0xb0] sm:$0xff]  }
0x16d4   :  { %v2836_v38 = vsub.f32 %v5001_v15, %v2833_v18  ;;  %v2838_v56 = vmul.f32 %v2835_v3, %v2835_v3  ;;  %v4058_v18 = vld [vmem:[%s5159_s15 + $0xb8] sm:$0xff]  }
0x16d5   :  { %v2831_v57 = vpop.xlane.xlu0 %2830 }
0x16d6   :  { %v2834_v6 = vmul.f32 0.015625, %v2831_v57  ;;  %v2841_v58 = vsel %vm91_vm0, %v2838_v56, 0.0  ;;  %v2839_v59 = vmul.f32 %v2836_v38, %v2836_v38 }
0x16d7   :  { %2842 = vadd.xlane.f32.xlu1 %v2841_v58 }
0x16d8   :  { %v2837_v60 = vsub.f32 %v5006_v10, %v2834_v6  ;;  %v2844_v61 = vsel %vm91_vm0, %v2839_v59, 0.0 }
0x16d9   :  { %2845 = vadd.xlane.f32.xlu0 %v2844_v61 }
0x16da   :  { %v2840_v62 = vmul.f32 %v2837_v60, %v2837_v60 }
0x16dc   :  { %v2847_v35 = vsel %vm91_vm0, %v2840_v62, 0.0 }
0x16dd   :  { %2848 = vadd.xlane.f32.xlu1 %v2847_v35 }
0x1764   :  { %v2843_v8 = vpop.xlane.xlu1 %2842 }
0x1765   :  { %v2850_v11 = vmul.f32 0.015625, %v2843_v8 }
0x1766   :  { %v2846_v20 = vpop.xlane.xlu0 %2845 }
0x1767   :  { %v2853_v12 = vadd.f32 1e-05, %v2850_v11  ;;  %v2851_v13 = vmul.f32 0.015625, %v2846_v20 }
0x1769   :  { %4201 = vrsqrt.f32 %v2853_v12  ;;  %v2854_v14 = vadd.f32 1e-05, %v2851_v13 }
0x176a   :  { %v2849_v50 = vpop.xlane.xlu1 %2848 }
0x176b   :  { %4203 = vrsqrt.f32 %v2854_v14  ;;  %v2852_v16 = vmul.f32 0.015625, %v2849_v50 }
0x176d   :  { %v2855_v21 = vadd.f32 1e-05, %v2852_v16 }
0x176f   :  { %4205 = vrsqrt.f32 %v2855_v21 }
0x1773   :  { %v4202_v22 = vpop.eup %4201 }
0x1774   :  { %v2859_v26 = vmul.f32 %v4202_v22, %v2835_v3  ;;  %v4057_v3 = vld [vmem:[%s5159_s15 + $0xf8] sm:$0xff]  }
0x1775   :  { %v4204_v28 = vpop.eup %4203 }
0x1776   :  { %v2868_v29 = vmul.f32 %v3553_v25, %v2859_v26  ;;  %v2860_v30 = vmul.f32 %v4204_v28, %v2836_v38  ;;  %v3478_v38 = vld [vmem:[%s5158_s14 + $0x2] sm:$0x3] }
0x1777   :  { %v2886_v56 = vrot.slane %v3478_v38, %v4437_v2  ;;  %v2890_v57 = vrot.slane %v3478_v38, %v4442_v4 }
0x1778   :  { %v2869_v51 = vmul.f32 %v3553_v25, %v2860_v30  ;;  %v2877_v31 = vadd.f32 %v3554_v43, %v2868_v29 }
0x1779   :  { %v4206_v47 = vpop.eup %4205 }
0x177a   :  { %v2878_v32 = vadd.f32 %v3554_v43, %v2869_v51  ;;  %v2861_v33 = vmul.f32 %v4206_v47, %v2837_v60 }
0x177c   :  { %v2880_v36 = vpack.c.bf16 %v2878_v32, %v2877_v31  ;;  %v2870_v46 = vmul.f32 %v3553_v25, %v2861_v33 }
0x177e   :  { %3563 = vmatmul.mubr.msk.bf16.vlgmr.msra.gmra.mrb[64].mxu1 %vm91_vm0, %v2880_v36  ;;  %v2879_v53 = vadd.f32 %v3554_v43, %v2870_v46 }
0x177f   :  { %2981 = vmatprep.mubr.bf16.mxu1 %v4258_v34  ;;  %v4046_v34 = vld [vmem:[%s5159_s15 + $0x88] sm:$0xff]  }
0x1780   :  { %v2881_v37 = vpack.c.bf16 %v2879_v53, %v2879_v53  ;;  %3718 = vmatpush3.bf16.msra.mxu0 %v4046_v34 }
0x1781   :  { %3719 = vmatprep.subr.bf16.mxu0 %v4047_v44 }
0x1784   :  { %3720 = vmatpush3.bf16.msra.mxu0 %v4048_v45 }
0x1785   :  { %3721 = vmatprep.subr.bf16.mxu0 %v4049_v49 }
0x1786   :  { %3564 = vmatmul.mubr.msk.bf16.gmra.mrb[68].mxu1 %vm91_vm0, %v2881_v37 }
0x1788   :  { %3722 = vmatpush3.bf16.msra.mxu0 %v4050_v54 }
0x1789   :  { %3723 = vmatprep.subr.bf16.mxu0 %v4051_v17 }
0x178c   :  { %3724 = vmatpush3.bf16.msra.mxu0 %v4052_v19 }
0x178d   :  { %3725 = vmatprep.subr.bf16.mxu0 %v4053_v23 }
0x1790   :  { %3726 = vmatpush3.bf16.msra.mxu0 %v4054_v1 }
0x1791   :  { %3727 = vmatprep.subr.bf16.mxu0 %v4055_v24 }
0x1794   :  { %3728 = vmatpush3.bf16.msra.mxu0 %v4056_v27  ;;  %v3571_v27 = vld [vmem:[%s5160_s16 + $0x1] ss:$0 sm:$0xff] }
0x1795   :  { %3729 = vmatprep.subr.bf16.mxu0 %v4057_v3 }
0x1798   :  { %3730 = vmatpush3.bf16.msra.mxu0 %v4058_v18 }
0x1851   :  { %v2973_v6 = vpop.f32.mrb[64].mxu1 }
0x1852   :  { %v2974_v58 = vadd.f32 %v2973_v6, %v2886_v56  ;;  %v2975_v59 = vpop.f32.mrb[65].mxu1 }
0x1853   :  { %v2976_v60 = vadd.f32 %v2975_v59, %v2890_v57  ;;  %v2977_v61 = vpop.f32.mrb[66].mxu1 }
0x1854   :  { %v3565_v62 = vmul.f32 -1.702, %v2974_v58  ;;  %v2978_v35 = vadd.f32 %v2977_v61, %v2886_v56  ;;  %v2979_v63 = vpop.f32.mrb[67].mxu1 }
0x1855   :  { %v3566_v0 = vmul.f32 -1.702, %v2976_v60  ;;  %v2980_v39 = vadd.f32 %v2979_v63, %v2890_v57 }
0x1856   :  { %v3002_v5 = vmul.f32 1.442695, %v3565_v62  ;;  %v3567_v42 = vmul.f32 -1.702, %v2978_v35 }
0x1857   :  { %v3004_v7 = vmul.f32 1.442695, %v3566_v0  ;;  %v3568_v48 = vmul.f32 -1.702, %v2980_v39 }
0x1858   :  { %4207 = vpow2.f32 %v3002_v5  ;;  %v3006_v52 = vmul.f32 1.442695, %v3567_v42 }
0x1859   :  { %4209 = vpow2.f32 %v3004_v7  ;;  %v3008_v2 = vmul.f32 1.442695, %v3568_v48  ;;  %v2983_v8 = vpop.f32.mrb[68].mxu1 }
0x185a   :  { %4211 = vpow2.f32 %v3006_v52  ;;  %v2984_v4 = vadd.f32 %v2983_v8, %v2886_v56  ;;  %v2985_v11 = vpop.f32.mrb[69].mxu1 }
0x185b   :  { %4213 = vpow2.f32 %v3008_v2  ;;  %v2986_v20 = vadd.f32 %v2985_v11, %v2890_v57  ;;  %v2987_v12 = vpop.f32.mrb[70].mxu1 }
0x185c   :  { %v3569_v13 = vmul.f32 -1.702, %v2984_v4  ;;  %v2988_v14 = vpop.f32.mrb[71].mxu1 }
0x185d   :  { %v3570_v50 = vmul.f32 -1.702, %v2986_v20 }
0x185e   :  { %v3010_v16 = vmul.f32 1.442695, %v3569_v13 }
0x185f   :  { %v3012_v21 = vmul.f32 1.442695, %v3570_v50 }
0x1860   :  { %4215 = vpow2.f32 %v3010_v16 }
0x1861   :  { %4217 = vpow2.f32 %v3012_v21 }
0x1862   :  { %v4208_v22 = vpop.eup %4207 }
0x1863   :  { %v4210_v25 = vpop.eup %4209  ;;  %v3014_v26 = vadd.f32 1.0, %v4208_v22 }
0x1864   :  { %v4212_v28 = vpop.eup %4211  ;;  %v3015_v29 = vadd.f32 1.0, %v4210_v25 }
0x1865   :  { %v4214_v30 = vpop.eup %4213  ;;  %4219 = vrcp.f32 %v3014_v26  ;;  %v3016_v43 = vadd.f32 1.0, %v4212_v28  ;;  %v4059_v28 = vld [vmem:[%s5163_s19] sm:$0xff]  }
0x1866   :  { %4221 = vrcp.f32 %v3015_v29  ;;  %v3017_v51 = vadd.f32 1.0, %v4214_v30  ;;  %v4266_v29 = vmov 0.0   ;;  %v4060_v30 = vld [vmem:[%s5163_s19 + $0x8] sm:$0xff]  }
0x1867   :  { %4223 = vrcp.f32 %v3016_v43  ;;  %3924 = vmatprep.subr.bf16.mxu1 %v4266_v29  ;;  %3932 = vmatprep.mubr.msk.bf16.mxu1 %vm4267_vm5, %v4266_v29  ;;  %v4061_v43 = vld [vmem:[%s5163_s19 + $0x10] sm:$0xff]  }
0x1868   :  { %4225 = vrcp.f32 %v3017_v51  ;;  %3925 = vmatpush3.bf16.msra.mxu1 %v4059_v28  ;;  %v4062_v51 = vld [vmem:[%s5163_s19 + $0x18] sm:$0xff]  }
0x1869   :  { %3926 = vmatprep.subr.bf16.mxu1 %v4266_v29 }
0x186a   :  { %v4216_v47 = vpop.eup %4215 }
0x186b   :  { %v4218_v31 = vpop.eup %4217  ;;  %v3018_v32 = vadd.f32 1.0, %v4216_v47 }
0x186c   :  { %v3019_v33 = vadd.f32 1.0, %v4218_v31  ;;  %3927 = vmatpush3.bf16.msra.mxu1 %v4060_v30 }
0x186d   :  { %4227 = vrcp.f32 %v3018_v32  ;;  %3928 = vmatprep.subr.bf16.mxu1 %v4266_v29 }
0x186e   :  { %4229 = vrcp.f32 %v3019_v33 }
0x186f   :  { %v4220_v36 = vpop.eup %4219 }
0x1870   :  { %v4222_v46 = vpop.eup %4221  ;;  %v3032_v40 = vmul.f32 %v4220_v36, %v2974_v58  ;;  %3929 = vmatpush3.bf16.msra.mxu1 %v4061_v43 }
0x1871   :  { %v4224_v53 = vpop.eup %4223  ;;  %v3033_v55 = vmul.f32 %v4222_v46, %v2976_v60  ;;  %3930 = vmatprep.subr.bf16.mxu1 %v4266_v29 }
0x1872   :  { %v4226_v37 = vpop.eup %4225  ;;  %v3034_v41 = vmul.f32 %v4224_v53, %v2978_v35 }
0x1873   :  { %v3035_v34 = vmul.f32 %v4226_v37, %v2980_v39 }
0x1874   :  { %v3038_v44 = vpack.c.bf16 %v3034_v41, %v3032_v40  ;;  %3931 = vmatpush3.bf16.msra.mxu1 %v4062_v51 }
0x1875   :  { %v3039_v45 = vpack.c.bf16 %v3035_v34, %v3033_v55  ;;  %v3588_v55 = vld [vmem:[%s5161_s17] ss:$0 sm:$0xff]  ;;  %s3592_s17 = sld [smem:[#allocation3 + $0x2]] }
0x1877   :  { %v4228_v49 = vpop.eup %4227  ;;  %3176 = vmatprep.mubr.bf16.mxu0 %v3039_v45  ;;  %v3589_v45 = vld [vmem:[%s5162_s18] ss:$0 sm:$0xff] }
0x1878   :  { %v4230_v54 = vpop.eup %4229  ;;  %3177 = vmatmul.mubr.bf16.vlgmr.msra.gmra.mrb[64].mxu0 %v3038_v44  ;;  %v3036_v19 = vmul.f32 %v4228_v49, %v2984_v4 }
0x1879   :  { %v3037_v17 = vmul.f32 %v4230_v54, %v2986_v20 }
0x187a   :  { %v3040_v1 = vpack.c.bf16 %v3036_v19, %v3036_v19 }
0x187b   :  { %v3041_v23 = vpack.c.bf16 %v3037_v17, %v3037_v17  ;;  %s3370_s18 = scalar_lea.vmem [#allocation2], %s3592_s17 }
0x187d   :  { %3184 = vmatprep.mubr.bf16.mxu0 %v3041_v23 }
0x1880   :  { %3185 = vmatmul.mubr.bf16.gmra.mrb[68].mxu0 %v3040_v1 }
0x194b   :  { %v3731_v24 = vpop.f32.mrb[64].mxu0 }
0x194c   :  { %v3732_v3 = vpop.f32.mrb[65].mxu0 }
0x194d   :  { %v3733_v18 = vadd.f32 %v3732_v3, %v3731_v24  ;;  %v3734_v38 = vpop.f32.mrb[66].mxu0 }
0x194e   :  { %v3735_v56 = vpop.f32.mrb[67].mxu0 }
0x194f   :  { %v3179_v57 = vadd.f32 %v3733_v18, %v3571_v27  ;;  %v3736_v6 = vadd.f32 %v3735_v56, %v3734_v38 }
0x1951   :  { %v3192_v58 = vadd.f32 %v3179_v57, %v4998_v9  ;;  %v3182_v59 = vadd.f32 %v3736_v6, %v3571_v27 }
0x1953   :  { %3195 = vst.msk [vmem:[#allocation2] sm:$0xff] %vm91_vm0, %v3192_v58  ;;  %v3193_v60 = vadd.f32 %v3182_v59, %v5001_v15  ;;  %v3737_v61 = vpop.f32.mrb[68].mxu0 }
0x1954   :  { %v3738_v62 = vpop.f32.mrb[69].mxu0 }
0x1955   :  { %3196 = vst.msk [vmem:[#allocation2 + $0x8] sm:$0xff] %vm91_vm0, %v3193_v60  ;;  %v3739_v35 = vadd.f32 %v3738_v62, %v3737_v61  ;;  %v3740_v63 = vpop.f32.mrb[70].mxu0 }
0x1956   :  { %v3741_v0 = vpop.f32.mrb[71].mxu0 }
0x1957   :  { %v3187_v39 = vadd.f32 %v3739_v35, %v3571_v27 }
0x1959   :  { %v3194_v5 = vadd.f32 %v3187_v39, %v5006_v10 }
0x195a   :  { %v3198_v42 = vld [vmem:[#allocation2] sm:$0xff] }
0x195b   :  { %3197 = vst.msk [vmem:[#allocation2 + $0x10] sm:$0xff] %vm91_vm0, %v3194_v5  ;;  %v3203_v9 = vsel %vm91_vm0, %v3198_v42, 0.0 }
0x195c   :  { %3204 = vadd.xlane.f32.xlu0 %v3203_v9  ;;  %v3199_v7 = vld [vmem:[#allocation2 + $0x8] sm:$0xff] }
0x195d   :  { %v3206_v48 = vsel %vm91_vm0, %v3199_v7, 0.0 }
0x195e   :  { %3207 = vadd.xlane.f32.xlu1 %v3206_v48 }
0x1962   :  { %v3200_v15 = vld [vmem:[#allocation2 + $0x10] sm:$0xff] }
0x1963   :  { %v3209_v52 = vsel %vm91_vm0, %v3200_v15, 0.0 }
0x1964   :  { %3210 = vadd.xlane.f32.xlu0 %v3209_v52 }
0x19e9   :  { %v3205_v2 = vpop.xlane.xlu0 %3204 }
0x19ea   :  { %v3212_v8 = vmul.f32 0.015625, %v3205_v2 }
0x19eb   :  { %v3208_v4 = vpop.xlane.xlu1 %3207 }
0x19ec   :  { %v3215_v11 = vsub.f32 %v3198_v42, %v3212_v8  ;;  %v3213_v20 = vmul.f32 0.015625, %v3208_v4 }
0x19ee   :  { %v3216_v10 = vsub.f32 %v3199_v7, %v3213_v20  ;;  %v3218_v12 = vmul.f32 %v3215_v11, %v3215_v11 }
0x19f0   :  { %v3221_v13 = vsel %vm91_vm0, %v3218_v12, 0.0  ;;  %v3219_v14 = vmul.f32 %v3216_v10, %v3216_v10 }
0x19f1   :  { %3222 = vadd.xlane.f32.xlu1 %v3221_v13  ;;  %v3211_v50 = vpop.xlane.xlu0 %3210 }
0x19f2   :  { %v3214_v16 = vmul.f32 0.015625, %v3211_v50  ;;  %v3224_v21 = vsel %vm91_vm0, %v3219_v14, 0.0 }
0x19f3   :  { %3225 = vadd.xlane.f32.xlu0 %v3224_v21 }
0x19f4   :  { %v3217_v22 = vsub.f32 %v3200_v15, %v3214_v16 }
0x19f6   :  { %v3220_v25 = vmul.f32 %v3217_v22, %v3217_v22 }
0x19f8   :  { %v3227_v26 = vsel %vm91_vm0, %v3220_v25, 0.0 }
0x19f9   :  { %3228 = vadd.xlane.f32.xlu1 %v3227_v26 }
0x1a7e   :  { %v3223_v47 = vpop.xlane.xlu1 %3222 }
0x1a7f   :  { %v3230_v31 = vmul.f32 0.015625, %v3223_v47 }
0x1a80   :  { %v3226_v32 = vpop.xlane.xlu0 %3225 }
0x1a81   :  { %v3233_v33 = vadd.f32 1e-05, %v3230_v31  ;;  %v3231_v36 = vmul.f32 0.015625, %v3226_v32 }
0x1a83   :  { %4231 = vrsqrt.f32 %v3233_v33  ;;  %v3234_v46 = vadd.f32 1e-05, %v3231_v36 }
0x1a85   :  { %4233 = vrsqrt.f32 %v3234_v46 }
0x1a86   :  { %v3229_v53 = vpop.xlane.xlu1 %3228 }
0x1a87   :  { %v3232_v37 = vmul.f32 0.015625, %v3229_v53 }
0x1a89   :  { %v3235_v40 = vadd.f32 1e-05, %v3232_v37 }
0x1a8b   :  { %4235 = vrsqrt.f32 %v3235_v40 }
0x1a8d   :  { %v4232_v41 = vpop.eup %4231 }
0x1a8e   :  { %v3239_v34 = vmul.f32 %v4232_v41, %v3215_v11 }
0x1a8f   :  { %v4234_v44 = vpop.eup %4233 }
0x1a90   :  { %v3248_v49 = vmul.f32 %v3588_v55, %v3239_v34  ;;  %v3240_v54 = vmul.f32 %v4234_v44, %v3216_v10 }
0x1a92   :  { %v3257_v17 = vadd.f32 %v3589_v45, %v3248_v49  ;;  %v3249_v19 = vmul.f32 %v3588_v55, %v3240_v54 }
0x1a94   :  { %3260 = vst.msk [vmem:[#allocation2] sm:$0xff] %vm91_vm0, %v3257_v17  ;;  %v3258_v23 = vadd.f32 %v3589_v45, %v3249_v19 }
0x1a95   :  { %v4236_v1 = vpop.eup %4235 }
0x1a96   :  { %3261 = vst.msk [vmem:[#allocation2 + $0x8] sm:$0xff] %vm91_vm0, %v3258_v23  ;;  %v3241_v24 = vmul.f32 %v4236_v1, %v3217_v22 }
0x1a98   :  { %v3250_v27 = vmul.f32 %v3588_v55, %v3241_v24 }
0x1a9a   :  { %v3259_v3 = vadd.f32 %v3589_v45, %v3250_v27 }
0x1a9c   :  { %3262 = vst.msk [vmem:[#allocation2 + $0x10] sm:$0xff] %vm91_vm0, %v3259_v3 }
0x1aa3   :  { %v3591_v18 = vld [vmem:[%s3368_s13 + $0x8] sm:$0x1]  ;;  %v3593_v38 = vld [vmem:[%s3370_s18 + $0x10] sm:$0x1]  ;;  %v3265_v6 = vld [vmem:[%s3264_s28] sm:$0x1] }
0x1aa4   :  { %v3275_v56 = vrot.slane %v3591_v18, 7  ;;  %v3278_v57 = vrot.slane %v3593_v38, 6 }
0x1aa6   :  { %v3281_v58 = vsel %vm3280_vm6, %v3265_v6, %v3275_v56 }
0x1aa7   :  { %v3283_v59 = vsel %vm3282_vm7, %v3281_v58, %v3278_v57 }
0x1aa8   :  { %v3292_v60 = vpack.c.bf16 %v3283_v59, %v3283_v59 }
0x1aaa   :  { %3933 = vmatmul.mubr.msk.bf16.vlgmr.msra.gmra.mrb[72].mxu1 %vm91_vm0, %v3292_v60 }
0x1b7d   :  { %v3354_v61 = vpop.f32.mrb[72].mxu1 }
0x1b7e   :  { %3361 = vst.msk [vmem:[%s5164_s20] sm:$0x7] %vm3360_vm8, %v3354_v61  ;;  %v3934_v62 = vpop.f32.mrb[73].mxu1 }
0x1b7f   :  { %v3357_v35 = vpop.f32.mrb[74].mxu1 }
0x1b80   :  { %v3935_v63 = vpop.f32.mrb[75].mxu1 }
0x1b81   :  { %3366 = vsyncpa [#allocation4], 1 }

// kernel: custom_clip_forward.4
= control target key start
LH: loop header
LB: loop body
LE: loop exit
PB: predicated region body
PF: predicated region fallthrough
CT: control target
= control target key end

     0   :  { %v5034_v0 = vmov 0   ;;  %v5035_v2 = vmov 0.0   ;;  %vm5036_vm0 = vmmov 0   ;;  %vm192_vm1 = vcmask 523264   ;;  %s6246_s2 = inlined_call_operand.vmem [shape: bf16[192,96], index: 2, kind: input, shape index: {}]   ;;  %s6247_s8 = inlined_call_operand.vmem [shape: bf16[64,96], index: 8, kind: input, shape index: {}]   ;;  %s6248_s0 = inlined_call_operand.vmem [shape: f32[8,192], index: 0, kind: input, shape index: {}]   ;;  %s6249_s7 = inlined_call_operand.vmem [shape: f32[2,64], index: 7, kind: input, shape index: {}]   ;;  %s6250_s3 = inlined_call_operand.vmem [shape: f32[1,96], index: 3, kind: input, shape index: {}]   ;;  %s6251_s4 = inlined_call_operand.vmem [shape: f32[5,96], index: 4, kind: input, shape index: {}]   ;;  %s6252_s9 = inlined_call_operand.vmem [shape: f32[1,96], index: 9, kind: input, shape index: {}]   ;;  %s6253_s5 = inlined_call_operand.vmem [shape: f32[1,96], index: 5, kind: input, shape index: {}]   ;;  %s6254_s6 = inlined_call_operand.vmem [shape: f32[1,96], index: 6, kind: input, shape index: {}]   ;;  %s6255_s15 = inlined_call_operand.vmem [shape: bf16[2,96,288], index: 15, kind: input, shape index: {}]   ;;  %s6256_s13 = inlined_call_operand.vmem [shape: f32[2,1,96], index: 13, kind: input, shape index: {}]   ;;  %s6257_s14 = inlined_call_operand.vmem [shape: f32[2,1,96], index: 14, kind: input, shape index: {}]   ;;  %s6258_s16 = inlined_call_operand.vmem [shape: f32[2,1,288], index: 16, kind: input, shape index: {}]   ;;  %s6259_s1 = inlined_call_operand.vmem [shape: f32[16,16], index: 1, kind: input, shape index: {}]   ;;  %s6260_s17 = inlined_call_operand.vmem [shape: bf16[2,96,96], index: 17, kind: input, shape index: {}]   ;;  %s6261_s18 = inlined_call_operand.vmem [shape: f32[2,1,96], index: 18, kind: input, shape index: {}]   ;;  %s6262_s21 = inlined_call_operand.vmem [shape: bf16[2,96,384], index: 21, kind: input, shape index: {}]   ;;  %s6263_s19 = inlined_call_operand.vmem [shape: f32[2,1,96], index: 19, kind: input, shape index: {}]   ;;  %s6264_s20 = inlined_call_operand.vmem [shape: f32[2,1,96], index: 20, kind: input, shape index: {}]   ;;  %s6265_s23 = inlined_call_operand.vmem [shape: bf16[2,384,96], index: 23, kind: input, shape index: {}]   ;;  %s6266_s11 = inlined_call_operand.vmem [shape: bf16[1,64,96], index: 11, kind: input, shape index: {}]   ;;  %s6267_s22 = inlined_call_operand.vmem [shape: f32[2,1,384], index: 22, kind: input, shape index: {}]   ;;  %s6268_s10 = inlined_call_operand.vmem [shape: f32[1,2,64], index: 10, kind: input, shape index: {}]   ;;  %s6269_s24 = inlined_call_operand.vmem [shape: f32[2,1,96], index: 24, kind: input, shape index: {}]   ;;  %s6270_s12 = inlined_call_operand.vmem [shape: f32[1,1,96], index: 12, kind: input, shape index: {}]   ;;  %s6271_s27 = inlined_call_operand.vmem [shape: bf16[96,64], index: 27, kind: input, shape index: {}]   ;;  %s6272_s25 = inlined_call_operand.vmem [shape: f32[1,96], index: 25, kind: input, shape index: {}]   ;;  %s6273_s26 = inlined_call_operand.vmem [shape: f32[1,96], index: 26, kind: input, shape index: {}]   ;;  %s6274_s28 = inlined_call_operand.vmem [shape: f32[2,64], index: 28, kind: output, shape index: {}]  }
   0x1   :  { %6295 = sst [smem:[#allocation3_spill]] %s6246_s2  ;;  %196 = vmatprep.subr.bf16.mxu0 %v5034_v0  ;;  %4394 = vmatprep.subr.bf16.mxu1 %v5035_v2  ;;  %vm323_vm2 = vcmask 778240   ;;  %vm329_vm3 = vcmask 779264   ;;  %vm327_vm4 = vcmask 781312   ;;  %vm338_vm5 = vcmask 785412  }
   0x2   :  { %6296 = sst [smem:[#allocation4_spill]] %s6247_s8  ;;  %4402 = vmatprep.mubr.msk.bf16.mxu1 %vm5036_vm0, %v5035_v2  ;;  %331 = vst.msk [vmem:[#allocation2 + $0x7] sm:$0x1] %vm323_vm2, %v5035_v2  ;;  %341 = vst.msk [vmem:[#allocation2 + $0xf] sm:$0x1] %vm323_vm2, %v5035_v2  ;;  %vm346_vm6 = vcmask 785408  }
   0x3   :  { %6297 = sst [smem:[#allocation5_spill]] %s6248_s0  ;;  %s6309_s29 = sld [smem:[#allocation4_spill]]  ;;  %vm760_vm7 = vcmask 195584   ;;  %vm808_vm8 = vcmask 130048   ;;  %vm888_vm9 = vcmask 64512   ;;  %vm1020_vm10 = vcmask 1043456  }
   0x4   :  { %6298 = sst [smem:[#allocation6_spill]] %s6249_s7  ;;  %s6289_s0 = smov 80   ;;  %vm3758_vm11 = vcmask 1040384   ;;  %vm3881_vm12 = vcmask 517120  }
   0x5   :  { %6299 = sst [smem:[#allocation7_spill]] %s6250_s3  ;;  %s6294_s3 = smov 104  }
   0x6   :  { %6300 = sst [smem:[#allocation8_spill]] %s6251_s4  ;;  %s6311_s4 = sld [smem:[#allocation6_spill]] }
   0x7   :  { %6301 = sst [smem:[#allocation9_spill]] %s6252_s9  ;;  %s6312_s30 = sld [smem:[#allocation7_spill]] }
   0x8   :  { %6302 = sst [smem:[#allocation10_spill]] %s6253_s5  ;;  %s6313_s9 = sld [smem:[#allocation8_spill]] }
   0x9   :  { %6303 = sst [smem:[#allocation11_spill]] %s6254_s6  ;;  %v4720_v5 = vld [vmem:[%s6309_s29] sm:$0xff]   ;;  %v4722_v7 = vld [vmem:[%s6309_s29 + $0x8] sm:$0xff]   ;;  %v4724_v9 = vld [vmem:[%s6309_s29 + $0x10] sm:$0xff]   ;;  %s6315_s7 = sld [smem:[#allocation10_spill]] }
   0xa   :  { %6304 = sst [smem:[#allocation12_spill]] %s6255_s15  ;;  %s6308_s15 = sld [smem:[#allocation3_spill]]  ;;  %4395 = vmatpush3.bf16.msra.mxu1 %v4720_v5  ;;  %v4726_v13 = vld [vmem:[%s6309_s29 + $0x18] sm:$0xff]  }
   0xb   :  { %6305 = sst [smem:[#allocation13_spill]] %s6256_s13  ;;  %4396 = vmatprep.subr.bf16.mxu1 %v5035_v2  ;;  %s6316_s8 = sld [smem:[#allocation11_spill]] }
   0xc   :  { %6306 = sst [smem:[#allocation14_spill]] %s6257_s14  ;;  %s6310_s13 = sld [smem:[#allocation5_spill]]  ;;  %v236_v14 = vld [vmem:[%s6311_s4] sm:$0x3] }
   0xd   :  { %6307 = sst [smem:[#allocation15_spill]] %s6258_s16  ;;  %v245_v15 = vpack.c.bf16 %v236_v14, %v236_v14  ;;  %v320_v24 = vld [vmem:[%s6312_s30] sm:$0x1]  ;;  %s6314_s14 = sld [smem:[#allocation9_spill]] }
   0xe   :  { %4397 = vmatpush3.bf16.msra.mxu1 %v4722_v7  ;;  %v321_v25 = vld [vmem:[%s6313_s9] sm:$0x1]  ;;  %v333_v33 = vld [vmem:[%s6313_s9 + $0x1] sm:$0xf]  ;;  %s6318_s30 = sld [smem:[#allocation13_spill]]  ;;  %s6320_s2 = sld [smem:[#allocation15_spill]] }
   0xf   :  { %4398 = vmatprep.subr.bf16.mxu1 %v5035_v2  ;;  %v322_v26 = vadd.f32 %v321_v25, %v320_v24  ;;  %v335_v34 = vrot.slane %v333_v33, 4  ;;  %v325_v35 = vld [vmem:[%s6313_s9 + $0x1] sm:$0xf]  ;;  %v3906_v63 = vld [vmem:[%s6315_s7] ss:$0 sm:$0xff]  ;;  %s6319_s9 = sld [smem:[#allocation14_spill]] }
  0x10   :  { %v4712_v1 = vld [vmem:[%s6308_s15] sm:$0xff]   ;;  %v4713_v3 = vld [vmem:[%s6308_s15 + $0x8] sm:$0xff]   ;;  %v4714_v4 = vld [vmem:[%s6308_s15 + $0x10] sm:$0xff]   ;;  %s5037_s5 = smov 32   ;;  %s6292_s16 = smov 8  }
  0x11   :  { %197 = vmatpush1.bf16.msra.mxu0 %v4712_v1  ;;  %v4715_v6 = vld [vmem:[%s6308_s15 + $0x18] sm:$0xff]   ;;  %v4716_v8 = vld [vmem:[%s6308_s15 + $0x20] sm:$0xff]   ;;  %v4717_v12 = vld [vmem:[%s6308_s15 + $0x28] sm:$0xff]   ;;  %324 = vst.msk [vmem:[#allocation2] sm:$0x1] %vm323_vm2, %v322_v26  ;;  %s6287_s4 = smov 16  }
  0x12   :  { %198 = vmatprep.subr.bf16.mxu0 %v5034_v0  ;;  %v93_v10 = vld [vmem:[%s6310_s13 + $0x8] sm:$0xff]  ;;  %4399 = vmatpush3.bf16.msra.mxu1 %v4724_v9  ;;  %v4718_v16 = vld [vmem:[%s6308_s15 + $0x30] sm:$0xff]   ;;  %v4719_v17 = vld [vmem:[%s6308_s15 + $0x38] sm:$0xff]   ;;  %332 = vst.msk [vmem:[#allocation2 + $0x8] sm:$0x1] %vm323_vm2, %v322_v26  ;;  %s6286_s6 = smov 88  }
  0x13   :  { %v119_v11 = vpack.c.bf16 %v93_v10, %v93_v10  ;;  %4400 = vmatprep.subr.bf16.mxu1 %v5035_v2  ;;  %v4721_v18 = vld [vmem:[%s6308_s15 + $0x40] sm:$0xff]   ;;  %v4723_v19 = vld [vmem:[%s6308_s15 + $0x48] sm:$0xff]   ;;  %v4725_v20 = vld [vmem:[%s6308_s15 + $0x50] sm:$0xff]   ;;  %s6284_s7 = smov 56  }
  0x14   :  { %v4727_v21 = vld [vmem:[%s6308_s15 + $0x58] sm:$0xff]   ;;  %v92_v22 = vld [vmem:[%s6310_s13] sm:$0xff]  ;;  %s6317_s13 = sld [smem:[#allocation12_spill]]  ;;  %s6283_s15 = smov 40  }
  0x15   :  { %199 = vmatpush1.bf16.msra.mxu0 %v4713_v3  ;;  %3899 = vmatprep.mubr.msk.bf16.mxu0 %vm192_vm1, %v119_v11  ;;  %v118_v23 = vpack.c.bf16 %v92_v22, %v92_v22  ;;  %v3900_v27 = vld [vmem:[%s6314_s14] ss:$0 sm:$0xff]  ;;  %s6290_s14 = smov 112  }
  0x16   :  { %200 = vmatprep.subr.bf16.mxu0 %v5034_v0  ;;  %4401 = vmatpush3.bf16.msra.mxu1 %v4726_v13  ;;  %v3907_v3 = vld [vmem:[%s6316_s8] ss:$0 sm:$0xff]  ;;  %s6291_s8 = smov 64  }
  0x19   :  { %201 = vmatpush1.bf16.msra.mxu0 %v4714_v4  ;;  %4403 = vmatmul.mubr.msk.bf16.vlgmr.msra.gmra.mrb[0].mxu1 %vm192_vm1, %v245_v15 }
  0x1a   :  { %202 = vmatprep.subr.bf16.mxu0 %v5034_v0  ;;  %700 = vmatprep.mubr.bf16.mxu1 %v5034_v0  ;;  %v4730_v24 = vld [vmem:[%s6317_s13 + $0x4] ss:$12 sps:$4 sm:$0xff]   ;;  %v4728_v25 = vld [vmem:[%s6317_s13] ss:$12 sps:$4 sm:$0xff]   ;;  %v4733_v26 = vld [vmem:[%s6317_s13 + $0x1c] ss:$12 sps:$4 sm:$0xff]  }
  0x1b   :  { %668 = vmatprep.subr.bf16.mxu1 %v4730_v24  ;;  %v4740_v33 = vld [vmem:[%s6317_s13 + $0x60] ss:$12 sps:$4 sm:$0xff]  }
  0x1c   :  { %669 = vmatpush1.bf16.msra.mxu1 %v4728_v25 }
  0x1d   :  { %203 = vmatpush1.bf16.msra.mxu0 %v4715_v6  ;;  %670 = vmatprep.subr.bf16.mxu1 %v4733_v26 }
  0x1e   :  { %204 = vmatprep.subr.bf16.mxu0 %v5034_v0 }
  0x21   :  { %205 = vmatpush1.bf16.msra.mxu0 %v4716_v8 }
  0x22   :  { %206 = vmatprep.subr.bf16.mxu0 %v5034_v0 }
  0x25   :  { %207 = vmatpush1.bf16.msra.mxu0 %v4717_v12 }
  0x26   :  { %208 = vmatprep.subr.bf16.mxu0 %v5034_v0 }
  0x29   :  { %209 = vmatpush1.bf16.msra.mxu0 %v4718_v16 }
  0x2a   :  { %210 = vmatprep.subr.bf16.mxu0 %v5034_v0 }
  0x2d   :  { %211 = vmatpush1.bf16.msra.mxu0 %v4719_v17 }
  0x2e   :  { %212 = vmatprep.subr.bf16.mxu0 %v5034_v0 }
  0x31   :  { %213 = vmatpush1.bf16.msra.mxu0 %v4721_v18 }
  0x32   :  { %214 = vmatprep.subr.bf16.mxu0 %v5034_v0 }
  0x35   :  { %215 = vmatpush1.bf16.msra.mxu0 %v4723_v19 }
  0x36   :  { %216 = vmatprep.subr.bf16.mxu0 %v5034_v0 }
  0x39   :  { %217 = vmatpush1.bf16.msra.mxu0 %v4725_v20 }
  0x3a   :  { %218 = vmatprep.subr.bf16.mxu0 %v5034_v0 }
  0x3d   :  { %219 = vmatpush1.bf16.msra.mxu0 %v4727_v21 }
  0x3e   :  { %4428 = vmatprep.subr.bf16.mxu0 %v5035_v2 }
  0x40   :  { %229 = vmatmul.mubr.bf16.vlgmr.msra.gmra.mrb[0].mxu0 %v118_v23 }
  0x41   :  { %4430 = vmatprep.mubr.msk.bf16.mxu0 %vm5036_vm0, %v5035_v2 }
  0xec   :  { %v314_v28 = vpop.f32.mrb[0].mxu1 }
  0xed   :  { %v315_v29 = vadd.f32 %v3900_v27, %v314_v28  ;;  %v4404_v30 = vpop.f32.mrb[1].mxu1  ;;  %v4731_v27 = vld [vmem:[%s6317_s13 + $0x18] ss:$12 sps:$4 sm:$0xff]   ;;  %v4736_v28 = vld [vmem:[%s6317_s13 + $0x34] ss:$12 sps:$4 sm:$0xff]  }
  0xee   :  { %v317_v31 = vpop.f32.mrb[2].mxu1  ;;  %671 = vmatpush1.bf16.msra.mxu1 %v4731_v27  ;;  %v4739_v30 = vld [vmem:[%s6317_s13 + $0x4c] ss:$12 sps:$4 sm:$0xff]  }
  0xef   :  { %330 = vst.msk [vmem:[#allocation2 + $0x5] sm:$0x3] %vm329_vm3, %v315_v29  ;;  %340 = vst.msk [vmem:[#allocation2 + $0xd] sm:$0x3] %vm329_vm3, %v315_v29  ;;  %v4405_v32 = vpop.f32.mrb[3].mxu1  ;;  %672 = vmatprep.subr.bf16.mxu1 %v4736_v28 }
  0xf0   :  { %v4734_v29 = vld [vmem:[%s6317_s13 + $0x30] ss:$12 sps:$4 sm:$0xff]   ;;  %v4737_v31 = vld [vmem:[%s6317_s13 + $0x48] ss:$12 sps:$4 sm:$0xff]  }
  0xf1   :  { %v4742_v32 = vld [vmem:[%s6317_s13 + $0x64] ss:$12 sps:$4 sm:$0xff]  }
  0xf2   :  { %673 = vmatpush1.bf16.msra.mxu1 %v4734_v29 }
  0xf3   :  { %674 = vmatprep.subr.bf16.mxu1 %v4739_v30  ;;  %v5423_v30 = vld [vmem:[%s6259_s1] sm:$0xff] }
  0xf6   :  { %675 = vmatpush1.bf16.msra.mxu1 %v4737_v31 }
  0xf7   :  { %676 = vmatprep.subr.bf16.mxu1 %v4742_v32  ;;  %v5428_v32 = vld [vmem:[%s6259_s1 + $0x8] sm:$0xff] }
  0xfa   :  { %677 = vmatpush1.bf16.msra.mxu1 %v4740_v33 }
 0x113   :  { %v230_v36 = vpop.f32.mrb[0].mxu0 }
 0x114   :  { %v326_v37 = vadd.f32 %v325_v35, %v230_v36  ;;  %v337_v38 = vadd.f32 %v335_v34, %v230_v36  ;;  %v232_v39 = vpop.f32.mrb[1].mxu0  ;;  %v4745_v34 = vld [vmem:[%s6317_s13 + $0x7c] ss:$12 sps:$4 sm:$0xff]   ;;  %v4743_v35 = vld [vmem:[%s6317_s13 + $0x78] ss:$12 sps:$4 sm:$0xff]  }
 0x115   :  { %v233_v40 = vpop.f32.mrb[2].mxu0  ;;  %678 = vmatprep.subr.bf16.mxu1 %v4745_v34 }
 0x116   :  { %328 = vst.msk [vmem:[#allocation2 + $0x1] sm:$0xf] %vm327_vm4, %v326_v37  ;;  %v234_v41 = vpop.f32.mrb[3].mxu0  ;;  %679 = vmatpush1.bf16.msra.mxu1 %v4743_v35 }
 0x117   :  { %339 = vst.msk [vmem:[#allocation2 + $0x5] sm:$0xf0] %vm338_vm5, %v337_v38  ;;  %4406 = vmatprep.subr.bf16.mxu1 %v5035_v2 }
 0x11d   :  { %v342_v42 = vld [vmem:[#allocation2] sm:$0xff] }
 0x11e   :  { %v347_v43 = vsel %vm346_vm6, %v342_v42, 0.0  ;;  %v343_v44 = vld [vmem:[#allocation2 + $0x8] sm:$0xff] }
 0x11f   :  { %348 = vadd.xlane.f32.xlu0 %v347_v43  ;;  %v350_v45 = vsel %vm346_vm6, %v343_v44, 0.0 }
 0x123   :  { %351 = vadd.xlane.f32.xlu0 %v350_v45 }
 0x1ac   :  { %v349_v46 = vpop.xlane.xlu0 %348 }
 0x1ad   :  { %v354_v47 = vmul.f32 0.010416667, %v349_v46 }
 0x1af   :  { %v356_v48 = vsub.f32 %v342_v42, %v354_v47 }
 0x1b0   :  { %v352_v49 = vpop.xlane.xlu0 %351 }
 0x1b1   :  { %v355_v50 = vmul.f32 0.010416667, %v352_v49  ;;  %v358_v51 = vmul.f32 %v356_v48, %v356_v48 }
 0x1b3   :  { %v357_v52 = vsub.f32 %v343_v44, %v355_v50  ;;  %v360_v53 = vsel %vm346_vm6, %v358_v51, 0.0  ;;  %v3908_v44 = vld [vmem:[%s6318_s30] ss:$0 sm:$0xff] }
 0x1b4   :  { %361 = vadd.xlane.f32.xlu1 %v360_v53 }
 0x1b5   :  { %v359_v54 = vmul.f32 %v357_v52, %v357_v52 }
 0x1b7   :  { %v363_v55 = vsel %vm346_vm6, %v359_v54, 0.0  ;;  %v4747_v54 = vld [vmem:[%s6317_s13 + $0x20] ss:$12 sps:$4 sm:$0xff]  }
 0x1b8   :  { %364 = vadd.xlane.f32.xlu1 %v363_v55  ;;  %v4748_v55 = vld [vmem:[%s6317_s13 + $0x38] ss:$12 sps:$4 sm:$0xff]  }
 0x241   :  { %v362_v56 = vpop.xlane.xlu1 %361 }
 0x242   :  { %v366_v57 = vmul.f32 0.010416667, %v362_v56  ;;  %v4749_v56 = vld [vmem:[%s6317_s13 + $0x50] ss:$12 sps:$4 sm:$0xff]  }
 0x244   :  { %v368_v58 = vadd.f32 1e-05, %v366_v57  ;;  %v4750_v57 = vld [vmem:[%s6317_s13 + $0x68] ss:$12 sps:$4 sm:$0xff]  }
 0x245   :  { %v365_v59 = vpop.xlane.xlu1 %364 }
 0x246   :  { %4898 = vrsqrt.f32 %v368_v58  ;;  %v367_v60 = vmul.f32 0.010416667, %v365_v59  ;;  %v4751_v58 = vld [vmem:[%s6317_s13 + $0x80] ss:$12 sps:$4 sm:$0xff]   ;;  %v554_v59 = vlaneseq }
 0x248   :  { %v369_v61 = vadd.f32 1e-05, %v367_v60  ;;  %v555_v60 = vshrl.u32 %v554_v59, 7 }
 0x24a   :  { %4900 = vrsqrt.f32 %v369_v61  ;;  %v5390_v61 = vsub.s32 0, %v555_v60 }
 0x250   :  { %v4899_v62 = vpop.eup %4898 }
 0x251   :  { %v372_v1 = vmul.f32 %v4899_v62, %v356_v48  ;;  %v3909_v48 = vld [vmem:[%s6319_s9] ss:$0 sm:$0xff] }
 0x252   :  { %v420_v62 = vld [vmem:[%s6320_s2] sm:$0x7] }
 0x253   :  { %v380_v4 = vmul.f32 %v3906_v63, %v372_v1  ;;  %v557_v1 = vrot.slane %v420_v62, %v5390_v61 }
 0x254   :  { %v4901_v5 = vpop.eup %4900 }
 0x255   :  { %v388_v6 = vadd.f32 %v3907_v3, %v380_v4  ;;  %v373_v7 = vmul.f32 %v4901_v5, %v357_v52  ;;  %v4746_v52 = vld [vmem:[%s6317_s13 + $0x8] ss:$12 sps:$4 sm:$0xff]  }
 0x257   :  { %390 = vst.msk [vmem:[#allocation2] sm:$0xff] %vm346_vm6, %v388_v6  ;;  %v381_v8 = vmul.f32 %v3906_v63, %v373_v7  ;;  %v5395_v63 = vsub.s32 1, %v555_v60 }
 0x259   :  { %v389_v9 = vadd.f32 %v3907_v3, %v381_v8  ;;  %v561_v4 = vrot.slane %v420_v62, %v5395_v63 }
 0x25b   :  { %391 = vst.msk [vmem:[#allocation2 + $0x8] sm:$0xff] %vm346_vm6, %v389_v9 }
 0x25e   :  { %v5305_v10 = vld [vmem:[#allocation2] sm:$0xff] }
 0x25f   :  { %v510_v11 = vsel %vm346_vm6, %v5305_v10, 0.0 }
 0x260   :  { %511 = vadd.xlane.f32.xlu0 %v510_v11 }
 0x262   :  { %v5309_v12 = vld [vmem:[#allocation2 + $0x8] sm:$0xff] }
 0x263   :  { %v513_v13 = vsel %vm346_vm6, %v5309_v12, 0.0 }
 0x264   :  { %514 = vadd.xlane.f32.xlu1 %v513_v13 }
 0x2ed   :  { %v512_v14 = vpop.xlane.xlu0 %511 }
 0x2ee   :  { %v516_v15 = vmul.f32 0.010416667, %v512_v14 }
 0x2f0   :  { %v518_v16 = vsub.f32 %v5305_v10, %v516_v15 }
 0x2f1   :  { %v515_v17 = vpop.xlane.xlu1 %514 }
 0x2f2   :  { %v517_v18 = vmul.f32 0.010416667, %v515_v17  ;;  %v520_v19 = vmul.f32 %v518_v16, %v518_v16 }
 0x2f4   :  { %v519_v20 = vsub.f32 %v5309_v12, %v517_v18  ;;  %v522_v21 = vsel %vm346_vm6, %v520_v19, 0.0  ;;  %v5409_v19 = vsub.s32 2, %v555_v60 }
 0x2f5   :  { %523 = vadd.xlane.f32.xlu0 %v522_v21 }
 0x2f6   :  { %v521_v22 = vmul.f32 %v519_v20, %v519_v20 }
 0x2f8   :  { %v525_v23 = vsel %vm346_vm6, %v521_v22, 0.0 }
 0x2f9   :  { %526 = vadd.xlane.f32.xlu1 %v525_v23 }
 0x382   :  { %v524_v36 = vpop.xlane.xlu0 %523 }
 0x383   :  { %v528_v37 = vmul.f32 0.010416667, %v524_v36 }
 0x385   :  { %v530_v38 = vadd.f32 1e-05, %v528_v37 }
 0x386   :  { %v527_v39 = vpop.xlane.xlu1 %526 }
 0x387   :  { %4902 = vrsqrt.f32 %v530_v38  ;;  %v529_v40 = vmul.f32 0.010416667, %v527_v39 }
 0x389   :  { %v531_v41 = vadd.f32 1e-05, %v529_v40 }
 0x38b   :  { %4904 = vrsqrt.f32 %v531_v41 }
 0x391   :  { %v4903_v42 = vpop.eup %4902 }
 0x392   :  { %v534_v43 = vmul.f32 %v4903_v42, %v518_v16 }
 0x394   :  { %v542_v46 = vmul.f32 %v3908_v44, %v534_v43 }
 0x395   :  { %v4905_v45 = vpop.eup %4904 }
 0x396   :  { %v535_v47 = vmul.f32 %v4905_v45, %v519_v20  ;;  %v550_v50 = vadd.f32 %v3909_v48, %v542_v46  ;;  %v565_v20 = vrot.slane %v420_v62, %v5409_v19 }
 0x398   :  { %v543_v49 = vmul.f32 %v3908_v44, %v535_v47 }
 0x39a   :  { %v551_v51 = vadd.f32 %v3909_v48, %v543_v49 }
 0x39c   :  { %v552_v53 = vpack.c.bf16 %v551_v51, %v550_v50 }
 0x39e   :  { %3928 = vmatmul.mubr.msk.bf16.vlgmr.msra.gmra.mrb[4].mxu1 %vm346_vm6, %v552_v53 }
 0x39f   :  { %4407 = vmatpush3.bf16.msra.mxu1 %v4746_v52  ;;  %4418 = vmatprep.mubr.msk.bf16.mxu1 %vm5036_vm0, %v5035_v2 }
 0x3a0   :  { %4408 = vmatprep.subr.bf16.mxu1 %v5035_v2 }
 0x3a3   :  { %4409 = vmatpush3.bf16.msra.mxu1 %v4747_v54 }
 0x3a4   :  { %4410 = vmatprep.subr.bf16.mxu1 %v5035_v2 }
 0x3a7   :  { %4411 = vmatpush3.bf16.msra.mxu1 %v4748_v55 }
 0x3a8   :  { %4412 = vmatprep.subr.bf16.mxu1 %v5035_v2 }
 0x3ab   :  { %4413 = vmatpush3.bf16.msra.mxu1 %v4749_v56 }
 0x3ac   :  { %4414 = vmatprep.subr.bf16.mxu1 %v5035_v2 }
 0x3af   :  { %4415 = vmatpush3.bf16.msra.mxu1 %v4750_v57 }
 0x3b0   :  { %4416 = vmatprep.subr.bf16.mxu1 %v5035_v2 }
 0x3b3   :  { %4417 = vmatpush3.bf16.msra.mxu1 %v4751_v58 }
 0x3b4   :  { %4422 = vmatprep.subr.bf16.mxu1 %v5035_v2 }
 0x3b6   :  { %4419 = vmatmul.mubr.msk.bf16.vlgmr.msra.gmra.mrb[8].mxu1 %vm346_vm6, %v552_v53 }
 0x3b7   :  { %4424 = vmatprep.mubr.msk.bf16.mxu1 %vm5036_vm0, %v5035_v2 }
 0x471   :  { %v702_v3 = vpop.f32.mrb[4].mxu1 }
 0x472   :  { %v703_v5 = vadd.f32 %v702_v3, %v557_v1  ;;  %v704_v6 = vpop.f32.mrb[5].mxu1 }
 0x473   :  { %v706_v7 = vpop.f32.mrb[6].mxu1  ;;  %v705_v11 = vadd.f32 %v704_v6, %v561_v4 }
 0x474   :  { %v707_v8 = vadd.f32 %v706_v7, %v557_v1  ;;  %v708_v9 = vpop.f32.mrb[7].mxu1  ;;  %v752_v14 = vmul.f32 0.20412415, %v703_v5 }
 0x475   :  { %v709_v13 = vadd.f32 %v708_v9, %v561_v4 }
 0x476   :  { %v753_v15 = vmul.f32 0.20412415, %v707_v8  ;;  %v755_v16 = vpack.c.bf16 %v707_v8, %v703_v5 }
 0x477   :  { %v5399_v17 = vpack.c.bf16 %v709_v13, %v705_v11 }
 0x478   :  { %v5401_v18 = vpack.c.bf16 %v753_v15, %v752_v14  ;;  %758 = vrot.lane.b32.xlu0 %v755_v16, %s5037_s5 }
 0x47c   :  { %884 = vrot.lane.b32.xlu0 %v755_v16, %s6292_s16 }
 0x480   :  { %886 = vrot.lane.b32.xlu0 %v5399_v17, %s6292_s16  ;;  %s6325_s16 = smov 80  }
 0x484   :  { %882 = vrot.lane.b32.xlu0 %v5401_v18, %s6294_s3  ;;  %s6326_s3 = smov 40  }
 0x489   :  { %v745_v21 = vpop.f32.mrb[8].mxu1 }
 0x48a   :  { %v4420_v22 = vpop.f32.mrb[9].mxu1  ;;  %v746_v24 = vadd.f32 %v745_v21, %v565_v20 }
 0x48b   :  { %v748_v23 = vpop.f32.mrb[10].mxu1 }
 0x48c   :  { %v749_v25 = vadd.f32 %v748_v23, %v565_v20  ;;  %v4421_v26 = vpop.f32.mrb[11].mxu1 }
 0x48e   :  { %v5412_v27 = vpack.c.bf16 %v749_v25, %v746_v24 }
 0x4ea   :  { %v759_v28 = vpop.permute.xlu0 %758 }
 0x4eb   :  { %v765_v29 = vsel %vm760_vm7, %v759_v28, 0 }
 0x4ec   :  { %4423 = vmatpush3.bf16.xpose.msra.mxu1 %v765_v29 }
 0x4ed   :  { %4440 = vmatprep.subr.bf16.mxu1 %v5035_v2 }
 0x4ee   :  { %v885_v52 = vpop.permute.xlu0 %884 }
 0x4f2   :  { %v887_v55 = vpop.permute.xlu0 %886 }
 0x4f3   :  { %4425 = vmatmul.mubr.msk.bf16.vlgmr.msra.gmra.mrb[12].mxu1 %vm760_vm7, %v5401_v18  ;;  %v889_v59 = vsel %vm888_vm9, %v885_v52, %v887_v55 }
 0x4f4   :  { %4442 = vmatprep.mubr.msk.bf16.mxu1 %vm5036_vm0, %v5035_v2  ;;  %v894_v62 = vsel %vm760_vm7, %v889_v59, 0 }
 0x4f6   :  { %v883_v1 = vpop.permute.xlu0 %882 }
 0x5c6   :  { %v801_v31 = vpop.f32.mrb[12].mxu1 }
 0x5c7   :  { %v802_v33 = vadd.f32 %v801_v31, %v5423_v30  ;;  %v4426_v34 = vpop.f32.mrb[13].mxu1 }
 0x5c8   :  { %v804_v35 = vpop.f32.mrb[14].mxu1 }
 0x5c9   :  { %v805_v36 = vadd.f32 %v804_v35, %v5428_v32  ;;  %v4427_v37 = vpop.f32.mrb[15].mxu1  ;;  %v809_v38 = vsel %vm808_vm8, %v802_v33, -inf  ;;  %v4754_v35 = vld [vmem:[%s6260_s17 + $0xc] sm:$0xff]  }
 0x5ca   :  { %810 = vmax.xlane.f32.xlu1 %v809_v38 }
 0x5cb   :  { %v812_v39 = vsel %vm808_vm8, %v805_v36, -inf }
 0x5ce   :  { %813 = vmax.xlane.f32.xlu1 %v812_v39 }
 0x657   :  { %v811_v40 = vpop.xlane.xlu1 %810 }
 0x658   :  { %v815_v41 = vsub.f32 %v802_v33, %v811_v40 }
 0x65a   :  { %v817_v42 = vmul.f32 1.442695, %v815_v41 }
 0x65b   :  { %v814_v43 = vpop.xlane.xlu1 %813 }
 0x65c   :  { %4906 = vpow2.f32 %v817_v42  ;;  %v816_v44 = vsub.f32 %v805_v36, %v814_v43  ;;  %v4755_v36 = vld [vmem:[%s6260_s17 + $0x14] ss:$0 sps:$4 sm:$0xff]  }
 0x65d   :  { %v1022_v37 = vsel %vm1020_vm10, %v4755_v36, 0 }
 0x65e   :  { %v819_v45 = vmul.f32 1.442695, %v816_v44  ;;  %v4752_v44 = vld [vmem:[%s6260_s17] sm:$0xff]  }
 0x660   :  { %4908 = vpow2.f32 %v819_v45 }
 0x666   :  { %v4907_v46 = vpop.eup %4906 }
 0x667   :  { %v821_v47 = vsel %vm808_vm8, %v4907_v46, 0.0 }
 0x668   :  { %822 = vadd.xlane.f32.xlu1 %v821_v47 }
 0x66a   :  { %v4909_v48 = vpop.eup %4908 }
 0x66b   :  { %v824_v49 = vsel %vm808_vm8, %v4909_v48, 0.0 }
 0x66c   :  { %825 = vadd.xlane.f32.xlu1 %v824_v49 }
 0x67d   :  { %833 = vrot.lane.b32.xlu1 %v5399_v17, %s6291_s8  ;;  %s6324_s8 = smov 112  }
 0x6f5   :  { %v823_v50 = vpop.xlane.xlu1 %822 }
 0x6f6   :  { %4910 = vrcp.f32 %v823_v50 }
 0x6f9   :  { %v826_v51 = vpop.xlane.xlu1 %825 }
 0x6fa   :  { %4912 = vrcp.f32 %v826_v51 }
 0x6fd   :  { %v834_v53 = vpop.permute.xlu1 %833 }
 0x6fe   :  { %4429 = vmatpush3.bf16.msra.mxu0 %v834_v53 }
 0x6ff   :  { %4434 = vmatprep.subr.bf16.mxu0 %v5035_v2 }
 0x700   :  { %v4911_v54 = vpop.eup %4910 }
 0x701   :  { %v829_v57 = vmul.f32 %v4911_v54, %v4907_v46  ;;  %v4753_v46 = vld [vmem:[%s6260_s17 + $0x8] ss:$0 sps:$4 sm:$0xff]  }
 0x702   :  { %v1078_v47 = vsel %vm1020_vm10, %v4753_v46, 0 }
 0x704   :  { %v4913_v56 = vpop.eup %4912 }
 0x705   :  { %v830_v58 = vmul.f32 %v4913_v56, %v4909_v48 }
 0x707   :  { %v831_v60 = vpack.c.bf16 %v830_v58, %v829_v57 }
 0x709   :  { %4431 = vmatmul.mubr.msk.bf16.vlgmr.msra.gmra.mrb[4].mxu0 %vm808_vm8, %v831_v60 }
 0x70a   :  { %4435 = vmatpush3.bf16.xpose.msra.mxu0 %v894_v62  ;;  %4436 = vmatprep.mubr.msk.bf16.mxu0 %vm5036_vm0, %v5035_v2 }
 0x70b   :  { %4446 = vmatprep.subr.bf16.mxu0 %v5035_v2 }
 0x711   :  { %4437 = vmatmul.mubr.msk.bf16.vlgmr.msra.gmra.mrb[8].mxu0 %vm760_vm7, %v883_v1 }
 0x712   :  { %4450 = vmatprep.mubr.msk.bf16.mxu0 %vm5036_vm0, %v5035_v2  ;;  %4447 = vmatpush3.bf16.msra.mxu0 %v4754_v35 }
 0x713   :  { %4448 = vmatprep.subr.bf16.mxu0 %v5035_v2 }
 0x716   :  { %4449 = vmatpush3.bf16.msra.mxu0 %v1022_v37 }
 0x717   :  { %4462 = vmatprep.subr.bf16.mxu0 %v5035_v2 }
 0x7dc   :  { %v5448_v3 = vpop.f32.mrb[4].mxu0 }
 0x7dd   :  { %v4432_v4 = vpop.f32.mrb[5].mxu0 }
 0x7de   :  { %v5450_v5 = vpop.f32.mrb[6].mxu0 }
 0x7df   :  { %v880_v6 = vpack.c.bf16 %v5450_v5, %v5448_v3  ;;  %v4433_v7 = vpop.f32.mrb[7].mxu0 }
 0x7e4   :  { %v930_v8 = vpop.f32.mrb[8].mxu0 }
 0x7e5   :  { %v931_v9 = vadd.f32 %v930_v8, %v5423_v30  ;;  %v4438_v11 = vpop.f32.mrb[9].mxu0 }
 0x7e6   :  { %v933_v13 = vpop.f32.mrb[10].mxu0 }
 0x7e7   :  { %v934_v14 = vadd.f32 %v933_v13, %v5428_v32  ;;  %v4439_v15 = vpop.f32.mrb[11].mxu0  ;;  %v937_v16 = vsel %vm808_vm8, %v931_v9, -inf }
 0x7e8   :  { %938 = vmax.xlane.f32.xlu1 %v937_v16 }
 0x7e9   :  { %v940_v20 = vsel %vm808_vm8, %v934_v14, -inf }
 0x7ea   :  { %941 = vmax.xlane.f32.xlu0 %v940_v20 }
 0x7f9   :  { %960 = vrot.lane.b32.xlu1 %v5399_v17, %s6283_s15  ;;  %s6285_s15 = smov 120  }
 0x7fd   :  { %1122 = vrot.lane.b32.xlu1 %v5401_v18, %s6289_s0 }
 0x875   :  { %v939_v21 = vpop.xlane.xlu1 %938 }
 0x876   :  { %v943_v22 = vsub.f32 %v931_v9, %v939_v21 }
 0x877   :  { %v942_v23 = vpop.xlane.xlu0 %941 }
 0x878   :  { %v945_v24 = vmul.f32 1.442695, %v943_v22  ;;  %v944_v25 = vsub.f32 %v934_v14, %v942_v23 }
 0x879   :  { %v961_v26 = vpop.permute.xlu1 %960 }
 0x87a   :  { %4914 = vpow2.f32 %v945_v24  ;;  %v947_v28 = vmul.f32 1.442695, %v944_v25  ;;  %4441 = vmatpush3.bf16.msra.mxu1 %v961_v26 }
 0x87b   :  { %4454 = vmatprep.subr.bf16.mxu1 %v5035_v2 }
 0x87c   :  { %4916 = vpow2.f32 %v947_v28 }
 0x87d   :  { %v1123_v59 = vpop.permute.xlu1 %1122 }
 0x884   :  { %v4915_v29 = vpop.eup %4914 }
 0x885   :  { %v949_v31 = vsel %vm808_vm8, %v4915_v29, 0.0 }
 0x886   :  { %v4917_v33 = vpop.eup %4916  ;;  %950 = vadd.xlane.f32.xlu0 %v949_v31  ;;  %v4756_v31 = vld [vmem:[%s6260_s17 + $0x18] sm:$0xff]  }
 0x887   :  { %v952_v34 = vsel %vm808_vm8, %v4917_v33, 0.0 }
 0x88a   :  { %953 = vadd.xlane.f32.xlu0 %v952_v34 }
 0x8a0   :  { %1124 = vrot.lane.b32.xlu0 %v5399_v17, %s6290_s14 }
 0x913   :  { %v951_v38 = vpop.xlane.xlu0 %950 }
 0x914   :  { %4918 = vrcp.f32 %v951_v38 }
 0x917   :  { %v954_v39 = vpop.xlane.xlu0 %953 }
 0x918   :  { %4920 = vrcp.f32 %v954_v39 }
 0x91b   :  { %v1125_v50 = vpop.permute.xlu0 %1124 }
 0x91c   :  { %v1130_v54 = vsel %vm760_vm7, %v1125_v50, 0 }
 0x91e   :  { %v4919_v40 = vpop.eup %4918 }
 0x91f   :  { %v957_v42 = vmul.f32 %v4919_v40, %v4915_v29 }
 0x922   :  { %v4921_v41 = vpop.eup %4920 }
 0x923   :  { %v958_v43 = vmul.f32 %v4921_v41, %v4917_v33 }
 0x925   :  { %v959_v45 = vpack.c.bf16 %v958_v43, %v957_v42 }
 0x927   :  { %4443 = vmatmul.mubr.msk.bf16.vlgmr.msra.gmra.mrb[16].mxu1 %vm808_vm8, %v959_v45 }
 0x928   :  { %4455 = vmatpush3.bf16.msra.mxu1 %v4752_v44  ;;  %4458 = vmatprep.mubr.msk.bf16.mxu1 %vm5036_vm0, %v5035_v2  ;;  %v4757_v44 = vld [vmem:[%s6260_s17 + $0x20] ss:$0 sps:$4 sm:$0xff]  }
 0x929   :  { %4456 = vmatprep.subr.bf16.mxu1 %v5035_v2  ;;  %v1262_v45 = vsel %vm1020_vm10, %v4757_v44, 0 }
 0x92c   :  { %4457 = vmatpush3.bf16.msra.mxu1 %v1078_v47 }
 0x92d   :  { %4468 = vmatprep.subr.bf16.mxu1 %v5035_v2 }
 0x92f   :  { %4459 = vmatmul.mubr.msk.bf16.vlgmr.msra.gmra.mrb[20].mxu1 %vm760_vm7, %v880_v6 }
 0x930   :  { %4470 = vmatprep.mubr.msk.bf16.mxu1 %vm5036_vm0, %v5035_v2 }
 0x9fa   :  { %v1000_v48 = vpop.f32.mrb[16].mxu1 }
 0x9fb   :  { %v4444_v49 = vpop.f32.mrb[17].mxu1 }
 0x9fc   :  { %v1003_v51 = vpop.f32.mrb[18].mxu1 }
 0x9fd   :  { %v1007_v52 = vpack.c.bf16 %v1003_v51, %v1000_v48  ;;  %v4445_v53 = vpop.f32.mrb[19].mxu1 }
 0x9ff   :  { %4451 = vmatmul.mubr.msk.bf16.vlgmr.msra.gmra.mrb[12].mxu0 %vm760_vm7, %v1007_v52 }
 0xa00   :  { %4463 = vmatpush3.bf16.xpose.msra.mxu0 %v1130_v54  ;;  %4464 = vmatprep.mubr.msk.bf16.mxu0 %vm5036_vm0, %v5035_v2 }
 0xa01   :  { %4474 = vmatprep.subr.bf16.mxu0 %v5035_v2 }
 0xa02   :  { %v1114_v55 = vpop.f32.mrb[20].mxu1 }
 0xa03   :  { %v4460_v56 = vpop.f32.mrb[21].mxu1 }
 0xa04   :  { %v1117_v57 = vpop.f32.mrb[22].mxu1 }
 0xa05   :  { %v4461_v58 = vpop.f32.mrb[23].mxu1 }
 0xa07   :  { %4465 = vmatmul.mubr.msk.bf16.vlgmr.msra.gmra.mrb[16].mxu0 %vm760_vm7, %v1123_v59 }
 0xa08   :  { %4478 = vmatprep.mubr.msk.bf16.mxu0 %vm5036_vm0, %v5035_v2  ;;  %4475 = vmatpush3.bf16.msra.mxu0 %v4756_v31 }
 0xa09   :  { %4476 = vmatprep.subr.bf16.mxu0 %v5035_v2 }
 0xa0c   :  { %4477 = vmatpush3.bf16.msra.mxu0 %v1262_v45 }
 0xa0d   :  { %4488 = vmatprep.subr.bf16.mxu0 %v5035_v2 }
 0xad2   :  { %v1058_v60 = vpop.f32.mrb[12].mxu0 }
 0xad3   :  { %v5499_v62 = vadd.f32 %v1114_v55, %v1058_v60  ;;  %v4452_v1 = vpop.f32.mrb[13].mxu0 }
 0xad4   :  { %v1061_v3 = vpop.f32.mrb[14].mxu0 }
 0xad5   :  { %v5501_v4 = vadd.f32 %v1117_v57, %v1061_v3  ;;  %v4453_v5 = vpop.f32.mrb[15].mxu0 }
 0xada   :  { %v1166_v6 = vpop.f32.mrb[16].mxu0 }
 0xadb   :  { %v1167_v7 = vadd.f32 %v1166_v6, %v5423_v30  ;;  %v4466_v8 = vpop.f32.mrb[17].mxu0 }
 0xadc   :  { %v1169_v9 = vpop.f32.mrb[18].mxu0 }
 0xadd   :  { %v1170_v11 = vadd.f32 %v1169_v9, %v5428_v32  ;;  %v4467_v13 = vpop.f32.mrb[19].mxu0  ;;  %v1173_v14 = vsel %vm808_vm8, %v1167_v7, -inf  ;;  %v4758_v9 = vld [vmem:[%s6260_s17 + $0x24] sm:$0xff]  }
 0xade   :  { %1174 = vmax.xlane.f32.xlu1 %v1173_v14 }
 0xadf   :  { %v1176_v15 = vsel %vm808_vm8, %v1170_v11, -inf }
 0xae0   :  { %1177 = vmax.xlane.f32.xlu0 %v1176_v15 }
 0xaef   :  { %1199 = vrot.lane.b32.xlu1 %v5412_v27, %s6287_s4 }
 0xb6b   :  { %v1175_v16 = vpop.xlane.xlu1 %1174 }
 0xb6c   :  { %v1179_v20 = vsub.f32 %v1167_v7, %v1175_v16 }
 0xb6d   :  { %v1178_v21 = vpop.xlane.xlu0 %1177 }
 0xb6e   :  { %v1181_v22 = vmul.f32 1.442695, %v1179_v20  ;;  %v1180_v23 = vsub.f32 %v1170_v11, %v1178_v21 }
 0xb6f   :  { %v1200_v33 = vpop.permute.xlu1 %1199 }
 0xb70   :  { %4922 = vpow2.f32 %v1181_v22  ;;  %v1183_v24 = vmul.f32 1.442695, %v1180_v23 }
 0xb72   :  { %4924 = vpow2.f32 %v1183_v24 }
 0xb7a   :  { %v4923_v25 = vpop.eup %4922 }
 0xb7b   :  { %v1185_v26 = vsel %vm808_vm8, %v4923_v25, 0.0 }
 0xb7c   :  { %v4925_v28 = vpop.eup %4924  ;;  %1186 = vadd.xlane.f32.xlu0 %v1185_v26 }
 0xb7d   :  { %v1188_v29 = vsel %vm808_vm8, %v4925_v28, 0.0 }
 0xb7e   :  { %1189 = vadd.xlane.f32.xlu1 %v1188_v29 }
 0xb8f   :  { %1309 = vrot.lane.b32.xlu1 %v5399_v17, %s6286_s6 }
 0xb92   :  { %1197 = vrot.lane.b32.xlu0 %v5399_v17, %s6287_s4 }
 0xb93   :  { %1307 = vrot.lane.b32.xlu1 %v5401_v18, %s6284_s7 }
 0xc09   :  { %v1187_v34 = vpop.xlane.xlu0 %1186 }
 0xc0a   :  { %4926 = vrcp.f32 %v1187_v34 }
 0xc0b   :  { %v1190_v35 = vpop.xlane.xlu1 %1189 }
 0xc0c   :  { %4928 = vrcp.f32 %v1190_v35 }
 0xc0d   :  { %v1198_v36 = vpop.permute.xlu0 %1197 }
 0xc0e   :  { %v1202_v37 = vsel %vm808_vm8, %v1198_v36, %v1200_v33  ;;  %v3950_v36 = vld [vmem:[%s6261_s18] ss:$0 sm:$0xff] }
 0xc0f   :  { %4469 = vmatpush3.bf16.msra.mxu1 %v1202_v37  ;;  %v1310_v40 = vpop.permute.xlu1 %1309 }
 0xc10   :  { %4482 = vmatprep.subr.bf16.mxu1 %v5035_v2  ;;  %v1315_v42 = vsel %vm760_vm7, %v1310_v40, 0 }
 0xc13   :  { %v1308_v43 = vpop.permute.xlu1 %1307 }
 0xc14   :  { %v4927_v17 = vpop.eup %4926 }
 0xc15   :  { %v1193_v38 = vmul.f32 %v4927_v17, %v4923_v25 }
 0xc16   :  { %v4929_v18 = vpop.eup %4928 }
 0xc17   :  { %v1194_v39 = vmul.f32 %v4929_v18, %v4925_v28 }
 0xc19   :  { %v1195_v41 = vpack.c.bf16 %v1194_v39, %v1193_v38 }
 0xc1b   :  { %4471 = vmatmul.mubr.msk.bf16.vlgmr.msra.gmra.mrb[24].mxu1 %vm808_vm8, %v1195_v41 }
 0xc1c   :  { %4483 = vmatpush3.bf16.xpose.msra.mxu1 %v1315_v42  ;;  %4484 = vmatprep.mubr.msk.bf16.mxu1 %vm5036_vm0, %v5035_v2 }
 0xc1d   :  { %4494 = vmatprep.subr.bf16.mxu1 %v5035_v2 }
 0xc23   :  { %4485 = vmatmul.mubr.msk.bf16.vlgmr.msra.gmra.mrb[28].mxu1 %vm760_vm7, %v1308_v43 }
 0xc24   :  { %4498 = vmatprep.mubr.msk.bf16.mxu1 %vm5036_vm0, %v5035_v2  ;;  %4495 = vmatpush3.bf16.msra.mxu1 %v4758_v9  ;;  %v4779_v9 = vld [vmem:[%s6262_s21 + $0x68] ss:$12 sps:$4 sm:$0xff]  }
 0xc25   :  { %4496 = vmatprep.subr.bf16.mxu1 %v5035_v2 }
 0xcee   :  { %v1241_v46 = vpop.f32.mrb[24].mxu1 }
 0xcef   :  { %v4472_v47 = vpop.f32.mrb[25].mxu1 }
 0xcf0   :  { %v1244_v48 = vpop.f32.mrb[26].mxu1 }
 0xcf1   :  { %v1248_v49 = vpack.c.bf16 %v1244_v48, %v1241_v46  ;;  %v4473_v50 = vpop.f32.mrb[27].mxu1 }
 0xcf3   :  { %4479 = vmatmul.mubr.msk.bf16.vlgmr.msra.gmra.mrb[20].mxu0 %vm760_vm7, %v1248_v49 }
 0xcf4   :  { %4490 = vmatprep.mubr.msk.bf16.mxu0 %vm5036_vm0, %v5035_v2 }
 0xcf6   :  { %v1351_v51 = vpop.f32.mrb[28].mxu1 }
 0xcf7   :  { %v1352_v52 = vadd.f32 %v1351_v51, %v5423_v30  ;;  %v4486_v53 = vpop.f32.mrb[29].mxu1 }
 0xcf8   :  { %v1354_v54 = vpop.f32.mrb[30].mxu1 }
 0xcf9   :  { %v1355_v55 = vadd.f32 %v1354_v54, %v5428_v32  ;;  %v4487_v56 = vpop.f32.mrb[31].mxu1  ;;  %v1358_v57 = vsel %vm808_vm8, %v1352_v52, -inf }
 0xcfa   :  { %1359 = vmax.xlane.f32.xlu0 %v1358_v57  ;;  %v4760_v56 = vld [vmem:[%s6262_s21] ss:$12 sps:$4 sm:$0xff]   ;;  %v4763_v57 = vld [vmem:[%s6262_s21 + $0x8] ss:$12 sps:$4 sm:$0xff]  }
 0xcfb   :  { %v1361_v58 = vsel %vm808_vm8, %v1355_v55, -inf }
 0xcfc   :  { %1362 = vmax.xlane.f32.xlu1 %v1361_v58  ;;  %v4766_v58 = vld [vmem:[%s6262_s21 + $0x1c] ss:$12 sps:$4 sm:$0xff]  }
 0xd87   :  { %v1360_v59 = vpop.xlane.xlu0 %1359 }
 0xd88   :  { %v1364_v60 = vsub.f32 %v1352_v52, %v1360_v59  ;;  %v4764_v59 = vld [vmem:[%s6262_s21 + $0x18] ss:$12 sps:$4 sm:$0xff]  }
 0xd89   :  { %v1363_v1 = vpop.xlane.xlu1 %1362 }
 0xd8a   :  { %v1366_v3 = vmul.f32 1.442695, %v1364_v60  ;;  %v1365_v5 = vsub.f32 %v1355_v55, %v1363_v1  ;;  %v4762_v55 = vld [vmem:[%s6262_s21 + $0x4] ss:$12 sps:$4 sm:$0xff]   ;;  %v4767_v60 = vld [vmem:[%s6262_s21 + $0x20] ss:$12 sps:$4 sm:$0xff]  }
 0xd8b   :  { %v4770_v1 = vld [vmem:[%s6262_s21 + $0x34] ss:$12 sps:$4 sm:$0xff]  }
 0xd8c   :  { %4930 = vpow2.f32 %v1366_v3  ;;  %v1368_v6 = vmul.f32 1.442695, %v1365_v5  ;;  %v4768_v3 = vld [vmem:[%s6262_s21 + $0x30] ss:$12 sps:$4 sm:$0xff]   ;;  %v4771_v5 = vld [vmem:[%s6262_s21 + $0x38] ss:$12 sps:$4 sm:$0xff]  }
 0xd8e   :  { %4932 = vpow2.f32 %v1368_v6  ;;  %v4774_v6 = vld [vmem:[%s6262_s21 + $0x4c] ss:$12 sps:$4 sm:$0xff]  }
 0xd96   :  { %v4931_v30 = vpop.eup %4930 }
 0xd97   :  { %v1370_v7 = vsel %vm808_vm8, %v4931_v30, 0.0 }
 0xd98   :  { %v4933_v8 = vpop.eup %4932  ;;  %1371 = vadd.xlane.f32.xlu0 %v1370_v7  ;;  %v4775_v7 = vld [vmem:[%s6262_s21 + $0x50] ss:$12 sps:$4 sm:$0xff]  }
 0xd99   :  { %v1373_v32 = vsel %vm808_vm8, %v4933_v8, 0.0 }
 0xd9c   :  { %1374 = vadd.xlane.f32.xlu0 %v1373_v32  ;;  %v4776_v32 = vld [vmem:[%s6262_s21 + $0x60] ss:$12 sps:$4 sm:$0xff]  }
 0xdb2   :  { %1381 = vrot.lane.b32.xlu0 %v5412_v27, %s6285_s15 }
 0xdc6   :  { %v1298_v11 = vpop.f32.mrb[20].mxu0 }
 0xdc7   :  { %v1305_v13 = vadd.f32 %v1298_v11, %v5499_v62  ;;  %v4480_v14 = vpop.f32.mrb[21].mxu0  ;;  %v4759_v62 = vld [vmem:[%s6260_s17 + $0x2c] ss:$0 sps:$4 sm:$0xff]   ;;  %v4780_v11 = vld [vmem:[%s6262_s21 + $0x78] ss:$12 sps:$4 sm:$0xff]  }
 0xdc8   :  { %v1301_v15 = vpop.f32.mrb[22].mxu0  ;;  %v4783_v14 = vld [vmem:[%s6262_s21 + $0x80] ss:$12 sps:$4 sm:$0xff]  }
 0xdc9   :  { %v1306_v16 = vadd.f32 %v1301_v15, %v5501_v4  ;;  %v4481_v20 = vpop.f32.mrb[23].mxu0  ;;  %v1442_v4 = vsel %vm1020_vm10, %v4759_v62, 0 }
 0xdca   :  { %4497 = vmatpush3.bf16.msra.mxu1 %v1442_v4  ;;  %v3952_v4 = vld [vmem:[%s6264_s20] ss:$0 sm:$0xff] }
 0xdcb   :  { %4502 = vmatprep.subr.bf16.mxu1 %v5035_v2 }
 0xe25   :  { %v1372_v21 = vpop.xlane.xlu0 %1371 }
 0xe26   :  { %4934 = vrcp.f32 %v1372_v21 }
 0xe29   :  { %v1375_v22 = vpop.xlane.xlu0 %1374 }
 0xe2a   :  { %4936 = vrcp.f32 %v1375_v22 }
 0xe2d   :  { %v1382_v27 = vpop.permute.xlu0 %1381 }
 0xe2e   :  { %4489 = vmatpush3.bf16.msra.mxu0 %v1382_v27 }
 0xe2f   :  { %1655 = vmatprep.subr.bf16.mxu0 %v4762_v55  ;;  %v4806_v55 = vld [vmem:[%s6265_s23 + $0xb8] sm:$0xff]  }
 0xe30   :  { %v4935_v23 = vpop.eup %4934 }
 0xe31   :  { %v1378_v25 = vmul.f32 %v4935_v23, %v4931_v30  ;;  %v4772_v30 = vld [vmem:[%s6262_s21 + $0x48] ss:$12 sps:$4 sm:$0xff]  }
 0xe34   :  { %v4937_v24 = vpop.eup %4936 }
 0xe35   :  { %v1379_v26 = vmul.f32 %v4937_v24, %v4933_v8  ;;  %v4778_v8 = vld [vmem:[%s6262_s21 + $0x64] ss:$12 sps:$4 sm:$0xff]  }
 0xe37   :  { %v1380_v28 = vpack.c.bf16 %v1379_v26, %v1378_v25  ;;  %v3951_v25 = vld [vmem:[%s6263_s19] ss:$0 sm:$0xff] }
 0xe39   :  { %4491 = vmatmul.mubr.msk.bf16.vlgmr.msra.gmra.mrb[24].mxu0 %vm808_vm8, %v1380_v28 }
 0xe3a   :  { %1687 = vmatprep.mubr.bf16.mxu0 %v5034_v0  ;;  %1656 = vmatpush1.bf16.msra.mxu0 %v4760_v56  ;;  %v4807_v56 = vld [vmem:[%s6265_s23 + $0x38] sm:$0xff]  }
 0xe3b   :  { %1657 = vmatprep.subr.bf16.mxu0 %v4766_v58 }
 0xe3e   :  { %1658 = vmatpush1.bf16.msra.mxu0 %v4764_v59 }
 0xe3f   :  { %1659 = vmatprep.subr.bf16.mxu0 %v4770_v1 }
 0xe42   :  { %1660 = vmatpush1.bf16.msra.mxu0 %v4768_v3 }
 0xe43   :  { %1661 = vmatprep.subr.bf16.mxu0 %v4774_v6 }
 0xe46   :  { %1662 = vmatpush1.bf16.msra.mxu0 %v4772_v30 }
 0xe47   :  { %1663 = vmatprep.subr.bf16.mxu0 %v4778_v8 }
 0xe4a   :  { %1664 = vmatpush1.bf16.msra.mxu0 %v4776_v32 }
 0xf0c   :  { %v1421_v29 = vpop.f32.mrb[24].mxu0 }
 0xf0d   :  { %v4492_v31 = vpop.f32.mrb[25].mxu0 }
 0xf0e   :  { %v1424_v33 = vpop.f32.mrb[26].mxu0 }
 0xf0f   :  { %v1428_v34 = vpack.c.bf16 %v1424_v33, %v1421_v29  ;;  %v4493_v35 = vpop.f32.mrb[27].mxu0 }
 0xf10   :  { %v4784_v35 = vld [vmem:[%s6265_s23 + $0x40] sm:$0xff]  }
 0xf11   :  { %4499 = vmatmul.mubr.msk.bf16.vlgmr.msra.gmra.mrb[32].mxu1 %vm760_vm7, %v1428_v34 }
 0xf12   :  { %4514 = vmatprep.mubr.msk.bf16.mxu1 %vm5036_vm0, %v5035_v2  ;;  %4503 = vmatpush3.bf16.msra.mxu1 %v4763_v57  ;;  %v460_v57 = vld [vmem:[%s6267_s22] sm:$0x7] }
 0xf13   :  { %4504 = vmatprep.subr.bf16.mxu1 %v5035_v2  ;;  %v1544_v58 = vrot.slane %v460_v57, %v5390_v61  ;;  %v1552_v59 = vrot.slane %v460_v57, %v5409_v19 }
 0xf16   :  { %4505 = vmatpush3.bf16.msra.mxu1 %v4767_v60  ;;  %v1548_v60 = vrot.slane %v460_v57, %v5395_v63  ;;  %v4808_v57 = vld [vmem:[%s6266_s11] sm:$0xff]  }
 0xf17   :  { %4506 = vmatprep.subr.bf16.mxu1 %v5035_v2 }
 0xf1a   :  { %4507 = vmatpush3.bf16.msra.mxu1 %v4771_v5 }
 0xf1b   :  { %4508 = vmatprep.subr.bf16.mxu1 %v5035_v2 }
 0xf1e   :  { %4509 = vmatpush3.bf16.msra.mxu1 %v4775_v7 }
 0xf1f   :  { %4510 = vmatprep.subr.bf16.mxu1 %v5035_v2 }
 0xf22   :  { %4511 = vmatpush3.bf16.msra.mxu1 %v4779_v9 }
 0xf23   :  { %4512 = vmatprep.subr.bf16.mxu1 %v5035_v2 }
 0xf26   :  { %4513 = vmatpush3.bf16.msra.mxu1 %v4783_v14 }
 0xf27   :  { %4518 = vmatprep.subr.bf16.mxu1 %v5035_v2 }
 0xfe4   :  { %v1478_v37 = vpop.f32.mrb[32].mxu1 }
 0xfe5   :  { %v1485_v17 = vadd.f32 %v1478_v37, %v1305_v13  ;;  %v4500_v18 = vpop.f32.mrb[33].mxu1  ;;  %v4782_v13 = vld [vmem:[%s6262_s21 + $0x7c] ss:$12 sps:$4 sm:$0xff]   ;;  %v4786_v37 = vld [vmem:[%s6265_s23] sm:$0xff]  }
 0xfe6   :  { %v1481_v38 = vpop.f32.mrb[34].mxu1  ;;  %1665 = vmatprep.subr.bf16.mxu0 %v4782_v13  ;;  %v4788_v18 = vld [vmem:[%s6265_s23 + $0x88] sm:$0xff]  }
 0xfe7   :  { %v1493_v39 = vadd.f32 %v3950_v36, %v1485_v17  ;;  %v1486_v40 = vadd.f32 %v1481_v38, %v1306_v16  ;;  %v4501_v41 = vpop.f32.mrb[35].mxu1  ;;  %1666 = vmatpush1.bf16.msra.mxu0 %v4780_v11  ;;  %v4787_v17 = vld [vmem:[%s6265_s23 + $0x48] sm:$0xff]  }
 0xfe8   :  { %4278 = vmatprep.subr.bf16.mxu0 %v4784_v35  ;;  %v4789_v38 = vld [vmem:[%s6265_s23 + $0x8] sm:$0xff]   ;;  %v4792_v41 = vld [vmem:[%s6265_s23 + $0x10] sm:$0xff]  }
 0xfe9   :  { %v5567_v42 = vadd.f32 %v1493_v39, %v5305_v10  ;;  %v1494_v43 = vadd.f32 %v3950_v36, %v1486_v40  ;;  %v4785_v36 = vld [vmem:[%s6265_s23 + $0x80] sm:$0xff]   ;;  %v4790_v39 = vld [vmem:[%s6265_s23 + $0x50] sm:$0xff]  }
 0xfea   :  { %v4791_v40 = vld [vmem:[%s6265_s23 + $0x90] sm:$0xff]  }
 0xfeb   :  { %v5570_v44 = vadd.f32 %v1494_v43, %v5309_v12  ;;  %v1497_v45 = vsel %vm346_vm6, %v5567_v42, 0.0  ;;  %v4793_v43 = vld [vmem:[%s6265_s23 + $0x58] sm:$0xff]  }
 0xfec   :  { %1498 = vadd.xlane.f32.xlu1 %v1497_v45  ;;  %v4794_v45 = vld [vmem:[%s6265_s23 + $0x98] sm:$0xff]  }
 0xfed   :  { %v1500_v46 = vsel %vm346_vm6, %v5570_v44, 0.0 }
 0xff0   :  { %1501 = vadd.xlane.f32.xlu1 %v1500_v46  ;;  %v4795_v46 = vld [vmem:[%s6265_s23 + $0x18] sm:$0xff]  }
0x1079   :  { %v1499_v47 = vpop.xlane.xlu1 %1498 }
0x107a   :  { %v1503_v48 = vmul.f32 0.010416667, %v1499_v47  ;;  %v4796_v47 = vld [vmem:[%s6265_s23 + $0x60] sm:$0xff]  }
0x107c   :  { %v5577_v49 = vsub.f32 %v5567_v42, %v1503_v48  ;;  %v4797_v48 = vld [vmem:[%s6265_s23 + $0xa0] sm:$0xff]  }
0x107d   :  { %v1502_v50 = vpop.xlane.xlu1 %1501 }
0x107e   :  { %v1504_v10 = vmul.f32 0.010416667, %v1502_v50  ;;  %v1507_v51 = vmul.f32 %v5577_v49, %v5577_v49  ;;  %v4799_v50 = vld [vmem:[%s6265_s23 + $0x68] sm:$0xff]  }
0x1080   :  { %v5582_v12 = vsub.f32 %v5570_v44, %v1504_v10  ;;  %v1509_v52 = vsel %vm346_vm6, %v1507_v51, 0.0  ;;  %v4800_v10 = vld [vmem:[%s6265_s23 + $0xa8] sm:$0xff]  }
0x1081   :  { %1510 = vadd.xlane.f32.xlu1 %v1509_v52  ;;  %v4801_v51 = vld [vmem:[%s6265_s23 + $0x28] sm:$0xff]   ;;  %v4803_v52 = vld [vmem:[%s6265_s23 + $0xb0] sm:$0xff]  }
0x1082   :  { %v1508_v53 = vmul.f32 %v5582_v12, %v5582_v12 }
0x1084   :  { %v1512_v54 = vsel %vm346_vm6, %v1508_v53, 0.0  ;;  %v4804_v53 = vld [vmem:[%s6265_s23 + $0x30] sm:$0xff]  }
0x1085   :  { %1513 = vadd.xlane.f32.xlu1 %v1512_v54  ;;  %v4805_v54 = vld [vmem:[%s6265_s23 + $0x78] sm:$0xff]  }
0x110e   :  { %v1511_v15 = vpop.xlane.xlu1 %1510 }
0x110f   :  { %v1515_v16 = vmul.f32 0.010416667, %v1511_v15 }
0x1111   :  { %v1517_v20 = vadd.f32 1e-05, %v1515_v16 }
0x1112   :  { %v1514_v21 = vpop.xlane.xlu1 %1513 }
0x1113   :  { %4938 = vrsqrt.f32 %v1517_v20  ;;  %v1516_v22 = vmul.f32 0.010416667, %v1514_v21 }
0x1115   :  { %v1518_v27 = vadd.f32 1e-05, %v1516_v22 }
0x1117   :  { %4940 = vrsqrt.f32 %v1518_v27 }
0x111d   :  { %v4939_v23 = vpop.eup %4938 }
0x111e   :  { %v1521_v24 = vmul.f32 %v4939_v23, %v5577_v49  ;;  %v4798_v49 = vld [vmem:[%s6265_s23 + $0x20] sm:$0xff]  }
0x1120   :  { %v1529_v28 = vmul.f32 %v3951_v25, %v1521_v24 }
0x1121   :  { %v4941_v26 = vpop.eup %4940 }
0x1122   :  { %v1522_v62 = vmul.f32 %v4941_v26, %v5582_v12  ;;  %v1537_v31 = vadd.f32 %v3952_v4, %v1529_v28  ;;  %v4802_v12 = vld [vmem:[%s6265_s23 + $0x70] sm:$0xff]  }
0x1124   :  { %v1530_v29 = vmul.f32 %v3951_v25, %v1522_v62 }
0x1126   :  { %v1538_v33 = vadd.f32 %v3952_v4, %v1530_v29 }
0x1128   :  { %v1539_v34 = vpack.c.bf16 %v1538_v33, %v1537_v31 }
0x112a   :  { %3971 = vmatmul.mubr.msk.bf16.vlgmr.msra.gmra.mrb[28].mxu0 %vm346_vm6, %v1539_v34  ;;  %4515 = vmatmul.mubr.msk.bf16.vlgmr.msra.gmra.mrb[36].mxu1 %vm346_vm6, %v1539_v34 }
0x112b   :  { %4534 = vmatprep.mubr.msk.bf16.mxu1 %vm5036_vm0, %v5035_v2  ;;  %4519 = vmatpush3.bf16.msra.mxu1 %v4785_v36 }
0x112c   :  { %4279 = vmatpush3.bf16.msra.mxu0 %v4786_v37  ;;  %4520 = vmatprep.subr.bf16.mxu1 %v5035_v2 }
0x112d   :  { %4280 = vmatprep.subr.bf16.mxu0 %v4787_v17 }
0x112f   :  { %4521 = vmatpush3.bf16.msra.mxu1 %v4788_v18 }
0x1130   :  { %4281 = vmatpush3.bf16.msra.mxu0 %v4789_v38  ;;  %4522 = vmatprep.subr.bf16.mxu1 %v5035_v2 }
0x1131   :  { %4282 = vmatprep.subr.bf16.mxu0 %v4790_v39 }
0x1133   :  { %4523 = vmatpush3.bf16.msra.mxu1 %v4791_v40 }
0x1134   :  { %4283 = vmatpush3.bf16.msra.mxu0 %v4792_v41  ;;  %4524 = vmatprep.subr.bf16.mxu1 %v5035_v2 }
0x1135   :  { %4284 = vmatprep.subr.bf16.mxu0 %v4793_v43 }
0x1137   :  { %4525 = vmatpush3.bf16.msra.mxu1 %v4794_v45 }
0x1138   :  { %4285 = vmatpush3.bf16.msra.mxu0 %v4795_v46  ;;  %4526 = vmatprep.subr.bf16.mxu1 %v5035_v2 }
0x1139   :  { %4286 = vmatprep.subr.bf16.mxu0 %v4796_v47 }
0x113b   :  { %4527 = vmatpush3.bf16.msra.mxu1 %v4797_v48 }
0x113c   :  { %4287 = vmatpush3.bf16.msra.mxu0 %v4798_v49  ;;  %4528 = vmatprep.subr.bf16.mxu1 %v5035_v2 }
0x113d   :  { %4288 = vmatprep.subr.bf16.mxu0 %v4799_v50 }
0x113f   :  { %4529 = vmatpush3.bf16.msra.mxu1 %v4800_v10 }
0x1140   :  { %4289 = vmatpush3.bf16.msra.mxu0 %v4801_v51  ;;  %4530 = vmatprep.subr.bf16.mxu1 %v5035_v2 }
0x1141   :  { %4290 = vmatprep.subr.bf16.mxu0 %v4802_v12 }
0x1143   :  { %4531 = vmatpush3.bf16.msra.mxu1 %v4803_v52 }
0x1144   :  { %4291 = vmatpush3.bf16.msra.mxu0 %v4804_v53  ;;  %4532 = vmatprep.subr.bf16.mxu1 %v5035_v2 }
0x1145   :  { %4292 = vmatprep.subr.bf16.mxu0 %v4805_v54 }
0x1147   :  { %4533 = vmatpush3.bf16.msra.mxu1 %v4806_v55 }
0x1148   :  { %4293 = vmatpush3.bf16.msra.mxu0 %v4807_v56 }
0x1149   :  { %4538 = vmatprep.subr.bf16.mxu0 %v5035_v2 }
0x11fd   :  { %v1689_v1 = vpop.f32.mrb[28].mxu0  ;;  %v1732_v3 = vpop.f32.mrb[36].mxu1 }
0x11fe   :  { %v1690_v5 = vadd.f32 %v1689_v1, %v1544_v58  ;;  %v1733_v6 = vadd.f32 %v1732_v3, %v1552_v59  ;;  %v1691_v30 = vpop.f32.mrb[29].mxu0  ;;  %v4516_v7 = vpop.f32.mrb[37].mxu1  ;;  %v2026_v1 = vld [vmem:[%s6268_s10] sm:$0x3] }
0x11ff   :  { %v1692_v8 = vadd.f32 %v1691_v30, %v1548_v60  ;;  %v1693_v32 = vpop.f32.mrb[30].mxu0  ;;  %v1735_v9 = vpop.f32.mrb[38].mxu1  ;;  %v2035_v3 = vpack.c.bf16 %v2026_v1, %v2026_v1 }
0x1200   :  { %v3973_v11 = vmul.f32 -1.702, %v1690_v5  ;;  %v3975_v13 = vmul.f32 -1.702, %v1733_v6  ;;  %v1694_v14 = vadd.f32 %v1693_v32, %v1544_v58  ;;  %v1736_v15 = vadd.f32 %v1735_v9, %v1552_v59  ;;  %v1695_v16 = vpop.f32.mrb[31].mxu0  ;;  %v4517_v20 = vpop.f32.mrb[39].mxu1 }
0x1201   :  { %v3974_v21 = vmul.f32 -1.702, %v1692_v8  ;;  %v1696_v22 = vadd.f32 %v1695_v16, %v1548_v60  ;;  %v4809_v58 = vld [vmem:[%s6266_s11 + $0x8] sm:$0xff]   ;;  %v4810_v59 = vld [vmem:[%s6266_s11 + $0x10] sm:$0xff]   ;;  %v4811_v60 = vld [vmem:[%s6266_s11 + $0x18] sm:$0xff]  }
0x1202   :  { %v1751_v27 = vmul.f32 1.442695, %v3973_v11  ;;  %v1755_v23 = vmul.f32 1.442695, %v3975_v13  ;;  %v3976_v24 = vmul.f32 -1.702, %v1694_v14 }
0x1203   :  { %v1753_v25 = vmul.f32 1.442695, %v3974_v21  ;;  %v3978_v26 = vmul.f32 -1.702, %v1736_v15  ;;  %v3977_v28 = vmul.f32 -1.702, %v1696_v22 }
0x1204   :  { %4942 = vpow2.f32 %v1751_v27  ;;  %v1757_v62 = vmul.f32 1.442695, %v3976_v24  ;;  %v4004_v24 = vld [vmem:[%s6270_s12] ss:$0 sm:$0xff]  ;;  %s6327_s12 = smov 16  }
0x1205   :  { %4944 = vpow2.f32 %v1755_v23  ;;  %v1761_v4 = vmul.f32 1.442695, %v3978_v26  ;;  %v1759_v29 = vmul.f32 1.442695, %v3977_v28 }
0x1206   :  { %4946 = vpow2.f32 %v1753_v25 }
0x1207   :  { %4948 = vpow2.f32 %v1757_v62 }
0x1208   :  { %4950 = vpow2.f32 %v1761_v4 }
0x1209   :  { %4952 = vpow2.f32 %v1759_v29 }
0x120e   :  { %v4943_v31 = vpop.eup %4942 }
0x120f   :  { %v4945_v33 = vpop.eup %4944  ;;  %v1763_v34 = vadd.f32 1.0, %v4943_v31 }
0x1210   :  { %v4947_v35 = vpop.eup %4946  ;;  %v1765_v36 = vadd.f32 1.0, %v4945_v33 }
0x1211   :  { %v4949_v37 = vpop.eup %4948  ;;  %4954 = vrcp.f32 %v1763_v34  ;;  %v1764_v17 = vadd.f32 1.0, %v4947_v35 }
0x1212   :  { %v4951_v18 = vpop.eup %4950  ;;  %4956 = vrcp.f32 %v1765_v36  ;;  %v1766_v38 = vadd.f32 1.0, %v4949_v37 }
0x1213   :  { %v4953_v39 = vpop.eup %4952  ;;  %4958 = vrcp.f32 %v1764_v17  ;;  %v1768_v40 = vadd.f32 1.0, %v4951_v18 }
0x1214   :  { %4960 = vrcp.f32 %v1766_v38  ;;  %v1767_v41 = vadd.f32 1.0, %v4953_v39 }
0x1215   :  { %4962 = vrcp.f32 %v1768_v40 }
0x1216   :  { %4964 = vrcp.f32 %v1767_v41  ;;  %v4814_v41 = vld [vmem:[%s6317_s13 + $0x94] ss:$12 sps:$4 sm:$0xff]  }
0x1217   :  { %2400 = vmatprep.subr.bf16.mxu1 %v4814_v41 }
0x121b   :  { %v4955_v43 = vpop.eup %4954 }
0x121c   :  { %v4957_v45 = vpop.eup %4956  ;;  %v1781_v49 = vmul.f32 %v4955_v43, %v1690_v5  ;;  %v4812_v43 = vld [vmem:[%s6317_s13 + $0x90] ss:$12 sps:$4 sm:$0xff]  }
0x121d   :  { %v4959_v46 = vpop.eup %4958  ;;  %v1783_v51 = vmul.f32 %v4957_v45, %v1733_v6  ;;  %v4815_v45 = vld [vmem:[%s6317_s13 + $0x98] ss:$12 sps:$4 sm:$0xff]  }
0x121e   :  { %v4961_v47 = vpop.eup %4960  ;;  %v1782_v52 = vmul.f32 %v4959_v46, %v1692_v8  ;;  %v3979_v8 = vld [vmem:[%s6269_s24] ss:$0 sm:$0xff]  ;;  %v4818_v46 = vld [vmem:[%s6317_s13 + $0xac] ss:$12 sps:$4 sm:$0xff]  }
0x121f   :  { %v4963_v48 = vpop.eup %4962  ;;  %v1784_v50 = vmul.f32 %v4961_v47, %v1694_v14  ;;  %v4816_v47 = vld [vmem:[%s6317_s13 + $0xa8] ss:$12 sps:$4 sm:$0xff]  }
0x1220   :  { %v4965_v10 = vpop.eup %4964  ;;  %v1786_v12 = vmul.f32 %v4963_v48, %v1736_v15  ;;  %v4819_v48 = vld [vmem:[%s6317_s13 + $0xb0] ss:$12 sps:$4 sm:$0xff]  }
0x1221   :  { %v1787_v53 = vpack.c.bf16 %v1784_v50, %v1781_v49  ;;  %v1785_v54 = vmul.f32 %v4965_v10, %v1696_v22  ;;  %v4822_v49 = vld [vmem:[%s6317_s13 + $0xc4] ss:$12 sps:$4 sm:$0xff]   ;;  %v4820_v50 = vld [vmem:[%s6317_s13 + $0xc0] ss:$12 sps:$4 sm:$0xff]   ;;  %v4823_v10 = vld [vmem:[%s6317_s13 + $0xc8] ss:$12 sps:$4 sm:$0xff]  }
0x1222   :  { %v1789_v55 = vpack.c.bf16 %v1786_v12, %v1783_v51  ;;  %v4826_v51 = vld [vmem:[%s6317_s13 + $0xdc] ss:$12 sps:$4 sm:$0xff]   ;;  %v4824_v12 = vld [vmem:[%s6317_s13 + $0xd8] ss:$12 sps:$4 sm:$0xff]  }
0x1223   :  { %v1788_v56 = vpack.c.bf16 %v1785_v54, %v1782_v52  ;;  %v4827_v52 = vld [vmem:[%s6317_s13 + $0xe0] ss:$12 sps:$4 sm:$0xff]   ;;  %v4828_v54 = vld [vmem:[%s6317_s13 + $0xf0] ss:$12 sps:$4 sm:$0xff]  }
0x1224   :  { %4535 = vmatmul.mubr.bf16.vlgmr.msra.gmra.mrb[40].mxu1 %v1789_v55  ;;  %v4831_v55 = vld [vmem:[%s6317_s13 + $0xf8] ss:$12 sps:$4 sm:$0xff]  }
0x1225   :  { %1972 = vmatprep.mubr.bf16.mxu0 %v1788_v56  ;;  %2432 = vmatprep.mubr.bf16.mxu1 %v5034_v0  ;;  %v4832_v56 = vld [vmem:[%s6317_s13 + $0x108] ss:$12 sps:$4 sm:$0xff]  }
0x1226   :  { %1973 = vmatmul.mubr.bf16.vlgmr.msra.gmra.mrb[32].mxu0 %v1787_v53  ;;  %2401 = vmatpush1.bf16.msra.mxu1 %v4812_v43  ;;  %v4830_v53 = vld [vmem:[%s6317_s13 + $0xf4] ss:$12 sps:$4 sm:$0xff]  }
0x1227   :  { %4539 = vmatpush3.bf16.msra.mxu0 %v4808_v57  ;;  %4546 = vmatprep.mubr.msk.bf16.mxu0 %vm5036_vm0, %v5035_v2  ;;  %v4834_v57 = vld [vmem:[%s6317_s13 + $0x10c] ss:$12 sps:$4 sm:$0xff]  }
0x1228   :  { %4540 = vmatprep.subr.bf16.mxu0 %v5035_v2  ;;  %2402 = vmatprep.subr.bf16.mxu1 %v4818_v46 }
0x122a   :  { %2403 = vmatpush1.bf16.msra.mxu1 %v4816_v47 }
0x122b   :  { %4541 = vmatpush3.bf16.msra.mxu0 %v4809_v58  ;;  %2404 = vmatprep.subr.bf16.mxu1 %v4822_v49  ;;  %v4835_v58 = vld [vmem:[%s6317_s13 + $0x110] ss:$12 sps:$4 sm:$0xff]  }
0x122c   :  { %4542 = vmatprep.subr.bf16.mxu0 %v5035_v2 }
0x122e   :  { %2405 = vmatpush1.bf16.msra.mxu1 %v4820_v50 }
0x122f   :  { %4543 = vmatpush3.bf16.msra.mxu0 %v4810_v59  ;;  %2406 = vmatprep.subr.bf16.mxu1 %v4826_v51 }
0x1230   :  { %4544 = vmatprep.subr.bf16.mxu0 %v5035_v2 }
0x1232   :  { %2407 = vmatpush1.bf16.msra.mxu1 %v4824_v12  ;;  %v5901_v12 = vld [vmem:[%s6259_s1] sm:$0xff] }
0x1233   :  { %4545 = vmatpush3.bf16.msra.mxu0 %v4811_v60  ;;  %2408 = vmatprep.subr.bf16.mxu1 %v4830_v53 }
0x1234   :  { %4550 = vmatprep.subr.bf16.mxu0 %v5035_v2 }
0x1236   :  { %4547 = vmatmul.mubr.msk.bf16.vlgmr.msra.gmra.mrb[36].mxu0 %vm192_vm1, %v2035_v3  ;;  %2409 = vmatpush1.bf16.msra.mxu1 %v4828_v54 }
0x1237   :  { %4562 = vmatprep.mubr.msk.bf16.mxu0 %vm5036_vm0, %v5035_v2  ;;  %4551 = vmatpush3.bf16.msra.mxu0 %v4815_v45 }
0x1238   :  { %4552 = vmatprep.subr.bf16.mxu0 %v5035_v2  ;;  %2410 = vmatprep.subr.bf16.mxu1 %v4834_v57 }
0x123a   :  { %2411 = vmatpush1.bf16.msra.mxu1 %v4832_v56 }
0x123b   :  { %4553 = vmatpush3.bf16.msra.mxu0 %v4819_v48  ;;  %4566 = vmatprep.subr.bf16.mxu1 %v5035_v2 }
0x123c   :  { %4554 = vmatprep.subr.bf16.mxu0 %v5035_v2 }
0x123f   :  { %4555 = vmatpush3.bf16.msra.mxu0 %v4823_v10 }
0x1240   :  { %4556 = vmatprep.subr.bf16.mxu0 %v5035_v2 }
0x1243   :  { %4557 = vmatpush3.bf16.msra.mxu0 %v4827_v52 }
0x1244   :  { %4558 = vmatprep.subr.bf16.mxu0 %v5035_v2 }
0x1247   :  { %4559 = vmatpush3.bf16.msra.mxu0 %v4831_v55  ;;  %v5907_v55 = vld [vmem:[%s6259_s1 + $0x8] sm:$0xff]  ;;  %s6323_s1 = smov 64  }
0x1248   :  { %4560 = vmatprep.subr.bf16.mxu0 %v5035_v2 }
0x124b   :  { %4561 = vmatpush3.bf16.msra.mxu0 %v4835_v58 }
0x124c   :  { %4578 = vmatprep.subr.bf16.mxu0 %v5035_v2 }
0x12f7   :  { %v2015_v5 = vpop.f32.mrb[40].mxu1 }
0x12f8   :  { %v4536_v6 = vpop.f32.mrb[41].mxu1 }
0x12f9   :  { %v4294_v30 = vpop.f32.mrb[32].mxu0  ;;  %v2018_v7 = vpop.f32.mrb[42].mxu1 }
0x12fa   :  { %v4295_v32 = vpop.f32.mrb[33].mxu0  ;;  %v4537_v9 = vpop.f32.mrb[43].mxu1 }
0x12fb   :  { %v4296_v11 = vadd.f32 %v4295_v32, %v4294_v30  ;;  %v4297_v13 = vpop.f32.mrb[34].mxu0 }
0x12fc   :  { %v4298_v14 = vpop.f32.mrb[35].mxu0 }
0x12fd   :  { %v1975_v15 = vadd.f32 %v4296_v11, %v3979_v8  ;;  %v4299_v16 = vadd.f32 %v4298_v14, %v4297_v13  ;;  %v4127_v13 = vld [vmem:[%s6319_s9 + $0x1] ss:$0 sm:$0xff]  ;;  %s6321_s9 = smov 104  }
0x12ff   :  { %v2016_v20 = vadd.f32 %v2015_v5, %v1975_v15  ;;  %v1978_v21 = vadd.f32 %v4299_v16, %v3979_v8  ;;  %v4126_v8 = vld [vmem:[%s6318_s30 + $0x1] ss:$0 sm:$0xff] }
0x1301   :  { %v2022_v22 = vadd.f32 %v2016_v20, %v5567_v42  ;;  %v2019_v27 = vadd.f32 %v2018_v7, %v1978_v21  ;;  %v4036_v21 = vld [vmem:[%s6320_s2 + $0x3] sm:$0x7]  ;;  %s6322_s2 = smov 8  }
0x1303   :  { %2024 = vst.msk [vmem:[#allocation2] sm:$0xff] %vm346_vm6, %v2022_v22  ;;  %v2023_v23 = vadd.f32 %v2019_v27, %v5570_v44  ;;  %v2289_v22 = vrot.slane %v4036_v21, %v5390_v61  ;;  %v2297_v27 = vrot.slane %v4036_v21, %v5409_v19 }
0x1305   :  { %2025 = vst.msk [vmem:[#allocation2 + $0x8] sm:$0xff] %vm346_vm6, %v2023_v23 }
0x1309   :  { %v2104_v25 = vpop.f32.mrb[36].mxu0 }
0x130a   :  { %v2105_v26 = vadd.f32 %v4004_v24, %v2104_v25  ;;  %v4548_v28 = vpop.f32.mrb[37].mxu0  ;;  %v2293_v25 = vrot.slane %v4036_v21, %v5395_v63 }
0x130b   :  { %v2107_v62 = vpop.f32.mrb[38].mxu0 }
0x130c   :  { %2110 = vst.msk [vmem:[#allocation2 + $0x5] sm:$0x3] %vm329_vm3, %v2105_v26  ;;  %2111 = vst.msk [vmem:[#allocation2 + $0xd] sm:$0x3] %vm329_vm3, %v2105_v26  ;;  %v4549_v42 = vpop.f32.mrb[39].mxu0 }
0x1313   :  { %v5783_v4 = vld [vmem:[#allocation2] sm:$0xff]  ;;  %v5787_v29 = vld [vmem:[#allocation2 + $0x8] sm:$0xff] }
0x1314   :  { %v2242_v44 = vsel %vm346_vm6, %v5783_v4, 0.0  ;;  %v2245_v31 = vsel %vm346_vm6, %v5787_v29, 0.0 }
0x1315   :  { %2243 = vadd.xlane.f32.xlu1 %v2242_v44 }
0x1319   :  { %2246 = vadd.xlane.f32.xlu1 %v2245_v31 }
0x13a2   :  { %v2244_v33 = vpop.xlane.xlu1 %2243 }
0x13a3   :  { %v2248_v34 = vmul.f32 0.010416667, %v2244_v33 }
0x13a5   :  { %v2250_v35 = vsub.f32 %v5783_v4, %v2248_v34 }
0x13a6   :  { %v2247_v36 = vpop.xlane.xlu1 %2246 }
0x13a7   :  { %v2249_v37 = vmul.f32 0.010416667, %v2247_v36  ;;  %v2252_v17 = vmul.f32 %v2250_v35, %v2250_v35 }
0x13a9   :  { %v2251_v18 = vsub.f32 %v5787_v29, %v2249_v37  ;;  %v2254_v38 = vsel %vm346_vm6, %v2252_v17, 0.0 }
0x13aa   :  { %2255 = vadd.xlane.f32.xlu0 %v2254_v38 }
0x13ab   :  { %v2253_v39 = vmul.f32 %v2251_v18, %v2251_v18 }
0x13ad   :  { %v2257_v40 = vsel %vm346_vm6, %v2253_v39, 0.0 }
0x13ae   :  { %2258 = vadd.xlane.f32.xlu1 %v2257_v40 }
0x1437   :  { %v2256_v59 = vpop.xlane.xlu0 %2255 }
0x1438   :  { %v2260_v60 = vmul.f32 0.010416667, %v2256_v59 }
0x143a   :  { %v2262_v1 = vadd.f32 1e-05, %v2260_v60 }
0x143b   :  { %v2259_v3 = vpop.xlane.xlu1 %2258 }
0x143c   :  { %4966 = vrsqrt.f32 %v2262_v1  ;;  %v2261_v5 = vmul.f32 0.010416667, %v2259_v3 }
0x143e   :  { %v2263_v6 = vadd.f32 1e-05, %v2261_v5 }
0x1440   :  { %4968 = vrsqrt.f32 %v2263_v6 }
0x1446   :  { %v4967_v30 = vpop.eup %4966 }
0x1447   :  { %v2266_v7 = vmul.f32 %v4967_v30, %v2250_v35 }
0x1449   :  { %v2274_v9 = vmul.f32 %v4126_v8, %v2266_v7 }
0x144a   :  { %v4969_v32 = vpop.eup %4968 }
0x144b   :  { %v2267_v11 = vmul.f32 %v4969_v32, %v2251_v18  ;;  %v2282_v15 = vadd.f32 %v4127_v13, %v2274_v9 }
0x144d   :  { %v2275_v14 = vmul.f32 %v4126_v8, %v2267_v11 }
0x144f   :  { %v2283_v16 = vadd.f32 %v4127_v13, %v2275_v14 }
0x1451   :  { %v2284_v20 = vpack.c.bf16 %v2283_v16, %v2282_v15 }
0x1453   :  { %4146 = vmatmul.mubr.msk.bf16.vlgmr.msra.gmra.mrb[44].mxu1 %vm346_vm6, %v2284_v20  ;;  %4563 = vmatmul.mubr.msk.bf16.vlgmr.msra.gmra.mrb[40].mxu0 %vm346_vm6, %v2284_v20 }
0x1454   :  { %4568 = vmatprep.mubr.msk.bf16.mxu1 %vm5036_vm0, %v5035_v2  ;;  %4580 = vmatprep.mubr.msk.bf16.mxu0 %vm5036_vm0, %v5035_v2 }
0x1526   :  { %v2434_v23 = vpop.f32.mrb[44].mxu1  ;;  %v2477_v24 = vpop.f32.mrb[40].mxu0 }
0x1527   :  { %v2435_v26 = vadd.f32 %v2434_v23, %v2289_v22  ;;  %v2436_v28 = vpop.f32.mrb[45].mxu1  ;;  %v4564_v62 = vpop.f32.mrb[41].mxu0  ;;  %v2478_v31 = vadd.f32 %v2477_v24, %v2297_v27 }
0x1528   :  { %v2438_v42 = vpop.f32.mrb[46].mxu1  ;;  %v2480_v44 = vpop.f32.mrb[42].mxu0  ;;  %v2437_v37 = vadd.f32 %v2436_v28, %v2293_v25 }
0x1529   :  { %v2439_v33 = vadd.f32 %v2438_v42, %v2289_v22  ;;  %v2481_v34 = vadd.f32 %v2480_v44, %v2297_v27  ;;  %v2440_v35 = vpop.f32.mrb[47].mxu1  ;;  %v4565_v36 = vpop.f32.mrb[43].mxu0  ;;  %v2484_v18 = vmul.f32 0.20412415, %v2435_v26 }
0x152a   :  { %v2441_v17 = vadd.f32 %v2440_v35, %v2293_v25 }
0x152b   :  { %v2485_v38 = vmul.f32 0.20412415, %v2439_v33  ;;  %v2487_v39 = vpack.c.bf16 %v2439_v33, %v2435_v26  ;;  %v5874_v40 = vpack.c.bf16 %v2481_v34, %v2478_v31 }
0x152c   :  { %v5876_v41 = vpack.c.bf16 %v2441_v17, %v2437_v37 }
0x152d   :  { %v5878_v43 = vpack.c.bf16 %v2485_v38, %v2484_v18  ;;  %2490 = vrot.lane.b32.xlu1 %v2487_v39, %s5037_s5 }
0x152f   :  { %2612 = vrot.lane.b32.xlu0 %v5878_v43, %s6321_s9  ;;  %s6328_s9 = smov 88  }
0x1531   :  { %2614 = vrot.lane.b32.xlu1 %v2487_v39, %s6322_s2 }
0x1535   :  { %2616 = vrot.lane.b32.xlu1 %v5876_v41, %s6322_s2  ;;  %s6329_s2 = smov 56  }
0x159f   :  { %v2491_v45 = vpop.permute.xlu1 %2490 }
0x15a0   :  { %v2496_v46 = vsel %vm760_vm7, %v2491_v45, 0 }
0x15a1   :  { %4567 = vmatpush3.bf16.xpose.msra.mxu1 %v2496_v46  ;;  %v2613_v10 = vpop.permute.xlu0 %2612 }
0x15a2   :  { %4572 = vmatprep.subr.bf16.mxu1 %v5035_v2 }
0x15a3   :  { %v2615_v47 = vpop.permute.xlu1 %2614 }
0x15a7   :  { %v2617_v48 = vpop.permute.xlu1 %2616 }
0x15a8   :  { %v2618_v49 = vsel %vm888_vm9, %v2615_v47, %v2617_v48  ;;  %4569 = vmatmul.mubr.msk.bf16.vlgmr.msra.gmra.mrb[48].mxu1 %vm760_vm7, %v5878_v43 }
0x15a9   :  { %v2623_v50 = vsel %vm760_vm7, %v2618_v49, 0  ;;  %4574 = vmatprep.mubr.msk.bf16.mxu1 %vm5036_vm0, %v5035_v2 }
0x15aa   :  { %4579 = vmatpush3.bf16.xpose.msra.mxu0 %v2623_v50 }
0x15ab   :  { %4590 = vmatprep.subr.bf16.mxu0 %v5035_v2 }
0x15b1   :  { %4581 = vmatmul.mubr.msk.bf16.vlgmr.msra.gmra.mrb[44].mxu0 %vm760_vm7, %v2613_v10  ;;  %v4836_v10 = vld [vmem:[%s6260_s17 + $0x30] sm:$0xff]  }
0x15b2   :  { %4594 = vmatprep.mubr.msk.bf16.mxu0 %vm5036_vm0, %v5035_v2 }
0x167b   :  { %v2532_v51 = vpop.f32.mrb[48].mxu1 }
0x167c   :  { %v2533_v52 = vadd.f32 %v5901_v12, %v2532_v51  ;;  %v4570_v53 = vpop.f32.mrb[49].mxu1 }
0x167d   :  { %v2535_v54 = vpop.f32.mrb[50].mxu1  ;;  %v4838_v53 = vld [vmem:[%s6260_s17 + $0x38] ss:$0 sps:$4 sm:$0xff]  }
0x167e   :  { %v2536_v56 = vadd.f32 %v5907_v55, %v2535_v54  ;;  %v4571_v57 = vpop.f32.mrb[51].mxu1  ;;  %v2539_v58 = vsel %vm808_vm8, %v2533_v52, -inf  ;;  %v2806_v54 = vsel %vm1020_vm10, %v4838_v53, 0 }
0x167f   :  { %2540 = vmax.xlane.f32.xlu1 %v2539_v58 }
0x1680   :  { %v2542_v59 = vsel %vm808_vm8, %v2536_v56, -inf }
0x1681   :  { %2543 = vmax.xlane.f32.xlu0 %v2542_v59 }
0x1684   :  { %v2659_v60 = vpop.f32.mrb[44].mxu0 }
0x1685   :  { %v2660_v1 = vadd.f32 %v5901_v12, %v2659_v60  ;;  %v4582_v3 = vpop.f32.mrb[45].mxu0 }
0x1686   :  { %v2662_v5 = vpop.f32.mrb[46].mxu0 }
0x1687   :  { %v2663_v6 = vadd.f32 %v5907_v55, %v2662_v5  ;;  %v4583_v30 = vpop.f32.mrb[47].mxu0  ;;  %v2666_v7 = vsel %vm808_vm8, %v2660_v1, -inf }
0x1688   :  { %2667 = vmax.xlane.f32.xlu1 %v2666_v7 }
0x1689   :  { %v2669_v8 = vsel %vm808_vm8, %v2663_v6, -inf }
0x168c   :  { %2670 = vmax.xlane.f32.xlu1 %v2669_v8 }
0x170c   :  { %v2541_v32 = vpop.xlane.xlu1 %2540 }
0x170d   :  { %v2545_v9 = vsub.f32 %v2533_v52, %v2541_v32  ;;  %v4837_v52 = vld [vmem:[%s6260_s17 + $0x3c] sm:$0xff]  }
0x170e   :  { %v2544_v11 = vpop.xlane.xlu0 %2543  ;;  %4591 = vmatpush3.bf16.msra.mxu0 %v4837_v52 }
0x170f   :  { %v2547_v13 = vmul.f32 1.442695, %v2545_v9  ;;  %v2546_v14 = vsub.f32 %v2536_v56, %v2544_v11  ;;  %4592 = vmatprep.subr.bf16.mxu0 %v5035_v2  ;;  %v4839_v56 = vld [vmem:[%s6260_s17 + $0x44] ss:$0 sps:$4 sm:$0xff]  }
0x1710   :  { %v2750_v57 = vsel %vm1020_vm10, %v4839_v56, 0 }
0x1711   :  { %4970 = vpow2.f32 %v2547_v13  ;;  %v2549_v15 = vmul.f32 1.442695, %v2546_v14 }
0x1712   :  { %4593 = vmatpush3.bf16.msra.mxu0 %v2750_v57 }
0x1713   :  { %4972 = vpow2.f32 %v2549_v15  ;;  %4606 = vmatprep.subr.bf16.mxu0 %v5035_v2 }
0x1715   :  { %v2668_v16 = vpop.xlane.xlu1 %2667 }
0x1716   :  { %v2672_v20 = vsub.f32 %v2660_v1, %v2668_v16 }
0x1718   :  { %v2674_v21 = vmul.f32 1.442695, %v2672_v20 }
0x1719   :  { %v2671_v22 = vpop.xlane.xlu1 %2670 }
0x171a   :  { %4974 = vpow2.f32 %v2674_v21  ;;  %v2673_v27 = vsub.f32 %v2663_v6, %v2671_v22 }
0x171b   :  { %v4971_v23 = vpop.eup %4970 }
0x171c   :  { %v2676_v24 = vmul.f32 1.442695, %v2673_v27  ;;  %v2551_v25 = vsel %vm808_vm8, %v4971_v23, 0.0 }
0x171d   :  { %v4973_v26 = vpop.eup %4972  ;;  %2552 = vadd.xlane.f32.xlu1 %v2551_v25 }
0x171e   :  { %4976 = vpow2.f32 %v2676_v24  ;;  %v2554_v28 = vsel %vm808_vm8, %v4973_v26, 0.0 }
0x1721   :  { %2555 = vadd.xlane.f32.xlu1 %v2554_v28 }
0x1724   :  { %v4975_v62 = vpop.eup %4974 }
0x1725   :  { %v2678_v42 = vsel %vm808_vm8, %v4975_v62, 0.0 }
0x1726   :  { %2679 = vadd.xlane.f32.xlu1 %v2678_v42 }
0x1728   :  { %v4977_v44 = vpop.eup %4976 }
0x1729   :  { %v2681_v31 = vsel %vm808_vm8, %v4977_v44, 0.0 }
0x172a   :  { %2682 = vadd.xlane.f32.xlu0 %v2681_v31 }
0x1737   :  { %2563 = vrot.lane.b32.xlu1 %v5876_v41, %s6323_s1  ;;  %s6330_s1 = smov 120  }
0x173b   :  { %2852 = vrot.lane.b32.xlu1 %v5876_v41, %s6324_s8 }
0x173f   :  { %2850 = vrot.lane.b32.xlu1 %v5878_v43, %s6325_s16 }
0x1740   :  { %2689 = vrot.lane.b32.xlu0 %v5876_v41, %s6326_s3 }
0x17aa   :  { %v2553_v33 = vpop.xlane.xlu1 %2552 }
0x17ab   :  { %4978 = vrcp.f32 %v2553_v33 }
0x17ae   :  { %v2556_v34 = vpop.xlane.xlu1 %2555 }
0x17af   :  { %4980 = vrcp.f32 %v2556_v34 }
0x17b3   :  { %v2680_v35 = vpop.xlane.xlu1 %2679 }
0x17b4   :  { %4982 = vrcp.f32 %v2680_v35 }
0x17b5   :  { %v4979_v36 = vpop.eup %4978 }
0x17b6   :  { %v2559_v38 = vmul.f32 %v4979_v36, %v4971_v23 }
0x17b7   :  { %v2564_v37 = vpop.permute.xlu1 %2563  ;;  %v2683_v17 = vpop.xlane.xlu0 %2682 }
0x17b8   :  { %4984 = vrcp.f32 %v2683_v17  ;;  %4573 = vmatpush3.bf16.msra.mxu1 %v2564_v37 }
0x17b9   :  { %v4981_v18 = vpop.eup %4980  ;;  %4584 = vmatprep.subr.bf16.mxu1 %v5035_v2 }
0x17ba   :  { %v2560_v39 = vmul.f32 %v4981_v18, %v4973_v26 }
0x17bb   :  { %v2690_v46 = vpop.permute.xlu0 %2689  ;;  %v2853_v30 = vpop.permute.xlu1 %2852 }
0x17bc   :  { %v2561_v45 = vpack.c.bf16 %v2560_v39, %v2559_v38  ;;  %v2858_v9 = vsel %vm760_vm7, %v2853_v30, 0 }
0x17be   :  { %4575 = vmatmul.mubr.msk.bf16.vlgmr.msra.gmra.mrb[52].mxu1 %vm808_vm8, %v2561_v45  ;;  %v4983_v47 = vpop.eup %4982 }
0x17bf   :  { %4585 = vmatpush3.bf16.msra.mxu1 %v2690_v46  ;;  %4586 = vmatprep.mubr.msk.bf16.mxu1 %vm5036_vm0, %v5035_v2  ;;  %v2686_v49 = vmul.f32 %v4983_v47, %v4975_v62  ;;  %v2851_v11 = vpop.permute.xlu1 %2850 }
0x17c0   :  { %4598 = vmatprep.subr.bf16.mxu1 %v5035_v2 }
0x17c2   :  { %v4985_v48 = vpop.eup %4984 }
0x17c3   :  { %v2687_v50 = vmul.f32 %v4985_v48, %v4977_v44 }
0x17c5   :  { %v2688_v51 = vpack.c.bf16 %v2687_v50, %v2686_v49 }
0x17c7   :  { %4587 = vmatmul.mubr.msk.bf16.vlgmr.msra.gmra.mrb[56].mxu1 %vm808_vm8, %v2688_v51 }
0x17c8   :  { %4599 = vmatpush3.bf16.msra.mxu1 %v4836_v10  ;;  %4602 = vmatprep.mubr.msk.bf16.mxu1 %vm5036_vm0, %v5035_v2 }
0x17c9   :  { %4600 = vmatprep.subr.bf16.mxu1 %v5035_v2 }
0x17cc   :  { %4601 = vmatpush3.bf16.msra.mxu1 %v2806_v54 }
0x17cd   :  { %4612 = vmatprep.subr.bf16.mxu1 %v5035_v2 }
0x1891   :  { %v2603_v58 = vpop.f32.mrb[52].mxu1 }
0x1892   :  { %v4576_v59 = vpop.f32.mrb[53].mxu1 }
0x1893   :  { %v2606_v60 = vpop.f32.mrb[54].mxu1  ;;  %v4841_v59 = vld [vmem:[%s6260_s17 + $0x50] ss:$0 sps:$4 sm:$0xff]  }
0x1894   :  { %v2610_v1 = vpack.c.bf16 %v2606_v60, %v2603_v58  ;;  %v4577_v3 = vpop.f32.mrb[55].mxu1  ;;  %v2989_v60 = vsel %vm1020_vm10, %v4841_v59, 0 }
0x1896   :  { %4603 = vmatmul.mubr.msk.bf16.vlgmr.msra.gmra.mrb[60].mxu1 %vm760_vm7, %v2610_v1 }
0x1897   :  { %4614 = vmatprep.mubr.msk.bf16.mxu1 %vm5036_vm0, %v5035_v2 }
0x189a   :  { %v2729_v5 = vpop.f32.mrb[56].mxu1 }
0x189b   :  { %v4588_v6 = vpop.f32.mrb[57].mxu1 }
0x189c   :  { %v2732_v7 = vpop.f32.mrb[58].mxu1 }
0x189d   :  { %v2736_v8 = vpack.c.bf16 %v2732_v7, %v2729_v5  ;;  %v4589_v32 = vpop.f32.mrb[59].mxu1 }
0x189f   :  { %4595 = vmatmul.mubr.msk.bf16.vlgmr.msra.gmra.mrb[48].mxu0 %vm760_vm7, %v2736_v8 }
0x18a0   :  { %4607 = vmatpush3.bf16.xpose.msra.mxu0 %v2858_v9  ;;  %4608 = vmatprep.mubr.msk.bf16.mxu0 %vm5036_vm0, %v5035_v2 }
0x18a1   :  { %4618 = vmatprep.subr.bf16.mxu0 %v5035_v2 }
0x18a7   :  { %4609 = vmatmul.mubr.msk.bf16.vlgmr.msra.gmra.mrb[52].mxu0 %vm760_vm7, %v2851_v11 }
0x18a8   :  { %4622 = vmatprep.mubr.msk.bf16.mxu0 %vm5036_vm0, %v5035_v2 }
0x1969   :  { %v2842_v13 = vpop.f32.mrb[60].mxu1 }
0x196a   :  { %v4604_v14 = vpop.f32.mrb[61].mxu1 }
0x196b   :  { %v2845_v15 = vpop.f32.mrb[62].mxu1 }
0x196c   :  { %v4605_v16 = vpop.f32.mrb[63].mxu1 }
0x1972   :  { %v2786_v20 = vpop.f32.mrb[48].mxu0 }
0x1973   :  { %v5965_v21 = vadd.f32 %v2842_v13, %v2786_v20  ;;  %v4596_v22 = vpop.f32.mrb[49].mxu0 }
0x1974   :  { %v2789_v27 = vpop.f32.mrb[50].mxu0 }
0x1975   :  { %v5967_v23 = vadd.f32 %v2845_v15, %v2789_v27  ;;  %v4597_v24 = vpop.f32.mrb[51].mxu0 }
0x197a   :  { %v2894_v25 = vpop.f32.mrb[52].mxu0 }
0x197b   :  { %v2895_v26 = vadd.f32 %v5901_v12, %v2894_v25  ;;  %v4610_v28 = vpop.f32.mrb[53].mxu0 }
0x197c   :  { %v2897_v62 = vpop.f32.mrb[54].mxu0 }
0x197d   :  { %v2898_v42 = vadd.f32 %v5907_v55, %v2897_v62  ;;  %v4611_v44 = vpop.f32.mrb[55].mxu0  ;;  %v2901_v31 = vsel %vm808_vm8, %v2895_v26, -inf }
0x197e   :  { %2902 = vmax.xlane.f32.xlu0 %v2901_v31 }
0x197f   :  { %v2904_v33 = vsel %vm808_vm8, %v2898_v42, -inf }
0x1980   :  { %2905 = vmax.xlane.f32.xlu1 %v2904_v33 }
0x1991   :  { %2925 = vrot.lane.b32.xlu1 %v5876_v41, %s6327_s12 }
0x1995   :  { %3036 = vrot.lane.b32.xlu1 %v5876_v41, %s6328_s9  ;;  %v4840_v41 = vld [vmem:[%s6260_s17 + $0x48] sm:$0xff]  }
0x1996   :  { %4619 = vmatpush3.bf16.msra.mxu0 %v4840_v41 }
0x1997   :  { %4620 = vmatprep.subr.bf16.mxu0 %v5035_v2 }
0x1999   :  { %3034 = vrot.lane.b32.xlu1 %v5878_v43, %s6329_s2 }
0x199a   :  { %4621 = vmatpush3.bf16.msra.mxu0 %v2989_v60 }
0x199b   :  { %4632 = vmatprep.subr.bf16.mxu0 %v5035_v2 }
0x1a0b   :  { %v2903_v34 = vpop.xlane.xlu0 %2902 }
0x1a0c   :  { %v2907_v35 = vsub.f32 %v2895_v26, %v2903_v34 }
0x1a0d   :  { %v2906_v36 = vpop.xlane.xlu1 %2905 }
0x1a0e   :  { %v2909_v37 = vmul.f32 1.442695, %v2907_v35  ;;  %v2908_v17 = vsub.f32 %v2898_v42, %v2906_v36 }
0x1a10   :  { %4986 = vpow2.f32 %v2909_v37  ;;  %v2911_v18 = vmul.f32 1.442695, %v2908_v17 }
0x1a11   :  { %v2926_v48 = vpop.permute.xlu1 %2925 }
0x1a12   :  { %4988 = vpow2.f32 %v2911_v18 }
0x1a15   :  { %v3037_v54 = vpop.permute.xlu1 %3036 }
0x1a16   :  { %v3042_v57 = vsel %vm760_vm7, %v3037_v54, 0 }
0x1a19   :  { %v3035_v58 = vpop.permute.xlu1 %3034 }
0x1a1a   :  { %v4987_v38 = vpop.eup %4986 }
0x1a1b   :  { %v2913_v39 = vsel %vm808_vm8, %v4987_v38, 0.0 }
0x1a1c   :  { %v4989_v45 = vpop.eup %4988  ;;  %2914 = vadd.xlane.f32.xlu0 %v2913_v39 }
0x1a1d   :  { %v2916_v46 = vsel %vm808_vm8, %v4989_v45, 0.0 }
0x1a20   :  { %2917 = vadd.xlane.f32.xlu0 %v2916_v46 }
0x1a36   :  { %2927 = vrot.lane.b32.xlu0 %v5874_v40, %s6327_s12 }
0x1aa9   :  { %v2915_v43 = vpop.xlane.xlu0 %2914 }
0x1aaa   :  { %4990 = vrcp.f32 %v2915_v43 }
0x1aad   :  { %v2918_v47 = vpop.xlane.xlu0 %2917 }
0x1aae   :  { %4992 = vrcp.f32 %v2918_v47 }
0x1ab1   :  { %v2928_v49 = vpop.permute.xlu0 %2927 }
0x1ab2   :  { %v2929_v50 = vsel %vm808_vm8, %v2926_v48, %v2928_v49 }
0x1ab3   :  { %4613 = vmatpush3.bf16.msra.mxu1 %v2929_v50 }
0x1ab4   :  { %4626 = vmatprep.subr.bf16.mxu1 %v5035_v2  ;;  %v4991_v10 = vpop.eup %4990 }
0x1ab5   :  { %v2921_v52 = vmul.f32 %v4991_v10, %v4987_v38 }
0x1ab8   :  { %v4993_v51 = vpop.eup %4992 }
0x1ab9   :  { %v2922_v53 = vmul.f32 %v4993_v51, %v4989_v45 }
0x1abb   :  { %v2923_v56 = vpack.c.bf16 %v2922_v53, %v2921_v52 }
0x1abd   :  { %4615 = vmatmul.mubr.msk.bf16.vlgmr.msra.gmra.mrb[64].mxu1 %vm808_vm8, %v2923_v56 }
0x1abe   :  { %4627 = vmatpush3.bf16.xpose.msra.mxu1 %v3042_v57  ;;  %4628 = vmatprep.mubr.msk.bf16.mxu1 %vm5036_vm0, %v5035_v2 }
0x1abf   :  { %4638 = vmatprep.subr.bf16.mxu1 %v5035_v2 }
0x1ac5   :  { %4629 = vmatmul.mubr.msk.bf16.vlgmr.msra.gmra.mrb[68].mxu1 %vm760_vm7, %v3035_v58 }
0x1ac6   :  { %4642 = vmatprep.mubr.msk.bf16.mxu1 %vm5036_vm0, %v5035_v2 }
0x1b90   :  { %v2968_v1 = vpop.f32.mrb[64].mxu1 }
0x1b91   :  { %v4616_v3 = vpop.f32.mrb[65].mxu1 }
0x1b92   :  { %v2971_v5 = vpop.f32.mrb[66].mxu1 }
0x1b93   :  { %v2975_v6 = vpack.c.bf16 %v2971_v5, %v2968_v1  ;;  %v4617_v30 = vpop.f32.mrb[67].mxu1 }
0x1b95   :  { %4623 = vmatmul.mubr.msk.bf16.vlgmr.msra.gmra.mrb[56].mxu0 %vm760_vm7, %v2975_v6 }
0x1b96   :  { %4634 = vmatprep.mubr.msk.bf16.mxu0 %vm5036_vm0, %v5035_v2 }
0x1b98   :  { %v3078_v7 = vpop.f32.mrb[68].mxu1 }
0x1b99   :  { %v3079_v8 = vadd.f32 %v5901_v12, %v3078_v7  ;;  %v4630_v32 = vpop.f32.mrb[69].mxu1 }
0x1b9a   :  { %v3081_v9 = vpop.f32.mrb[70].mxu1 }
0x1b9b   :  { %v3082_v11 = vadd.f32 %v5907_v55, %v3081_v9  ;;  %v4631_v13 = vpop.f32.mrb[71].mxu1  ;;  %v3085_v14 = vsel %vm808_vm8, %v3079_v8, -inf  ;;  %v4846_v9 = vld [vmem:[%s6262_s21 + $0x94] ss:$12 sps:$4 sm:$0xff]  }
0x1b9c   :  { %3086 = vmax.xlane.f32.xlu0 %v3085_v14  ;;  %v4847_v13 = vld [vmem:[%s6262_s21 + $0x98] ss:$12 sps:$4 sm:$0xff]  }
0x1b9d   :  { %v3088_v15 = vsel %vm808_vm8, %v3082_v11, -inf  ;;  %v4850_v14 = vld [vmem:[%s6262_s21 + $0xac] ss:$12 sps:$4 sm:$0xff]  }
0x1b9e   :  { %3089 = vmax.xlane.f32.xlu1 %v3088_v15  ;;  %v4848_v15 = vld [vmem:[%s6262_s21 + $0xa8] ss:$12 sps:$4 sm:$0xff]  }
0x1baf   :  { %3108 = vrot.lane.b32.xlu1 %v5874_v40, %s6330_s1  ;;  %v4842_v40 = vld [vmem:[%s6260_s17 + $0x54] sm:$0xff]  }
0x1bb0   :  { %4639 = vmatpush3.bf16.msra.mxu1 %v4842_v40  ;;  %v4866_v40 = vld [vmem:[%s6262_s21 + $0x10c] ss:$12 sps:$4 sm:$0xff]  }
0x1bb1   :  { %4640 = vmatprep.subr.bf16.mxu1 %v5035_v2 }
0x1c29   :  { %v3087_v16 = vpop.xlane.xlu0 %3086 }
0x1c2a   :  { %v3091_v20 = vsub.f32 %v3079_v8, %v3087_v16  ;;  %v4851_v16 = vld [vmem:[%s6262_s21 + $0xb0] ss:$12 sps:$4 sm:$0xff]  }
0x1c2b   :  { %v3090_v22 = vpop.xlane.xlu1 %3089 }
0x1c2c   :  { %v3093_v27 = vmul.f32 1.442695, %v3091_v20  ;;  %v3092_v24 = vsub.f32 %v3082_v11, %v3090_v22  ;;  %v4844_v11 = vld [vmem:[%s6262_s21 + $0x90] ss:$12 sps:$4 sm:$0xff]   ;;  %v4852_v22 = vld [vmem:[%s6262_s21 + $0xc0] ss:$12 sps:$4 sm:$0xff]  }
0x1c2d   :  { %v4854_v20 = vld [vmem:[%s6262_s21 + $0xc4] ss:$12 sps:$4 sm:$0xff]  }
0x1c2e   :  { %4994 = vpow2.f32 %v3093_v27  ;;  %v3095_v12 = vmul.f32 1.442695, %v3092_v24  ;;  %v4855_v27 = vld [vmem:[%s6262_s21 + $0xc8] ss:$12 sps:$4 sm:$0xff]  }
0x1c2f   :  { %v3109_v25 = vpop.permute.xlu1 %3108  ;;  %v4858_v24 = vld [vmem:[%s6262_s21 + $0xdc] ss:$12 sps:$4 sm:$0xff]  }
0x1c30   :  { %4996 = vpow2.f32 %v3095_v12  ;;  %4633 = vmatpush3.bf16.msra.mxu0 %v3109_v25  ;;  %v4856_v12 = vld [vmem:[%s6262_s21 + $0xd8] ss:$12 sps:$4 sm:$0xff]   ;;  %v4859_v25 = vld [vmem:[%s6262_s21 + $0xe0] ss:$12 sps:$4 sm:$0xff]  }
0x1c31   :  { %3382 = vmatprep.subr.bf16.mxu0 %v4846_v9  ;;  %v4891_v9 = vld [vmem:[%s6265_s23 + $0xf8] sm:$0xff]  }
0x1c38   :  { %v4995_v55 = vpop.eup %4994 }
0x1c39   :  { %v3097_v26 = vsel %vm808_vm8, %v4995_v55, 0.0 }
0x1c3a   :  { %v4997_v28 = vpop.eup %4996  ;;  %3098 = vadd.xlane.f32.xlu0 %v3097_v26  ;;  %v4860_v26 = vld [vmem:[%s6262_s21 + $0xf0] ss:$12 sps:$4 sm:$0xff]  }
0x1c3b   :  { %v3100_v62 = vsel %vm808_vm8, %v4997_v28, 0.0 }
0x1c3e   :  { %3101 = vadd.xlane.f32.xlu0 %v3100_v62  ;;  %v4864_v62 = vld [vmem:[%s6262_s21 + $0x108] ss:$12 sps:$4 sm:$0xff]  }
0x1c68   :  { %v3025_v42 = vpop.f32.mrb[56].mxu0 }
0x1c69   :  { %v3032_v44 = vadd.f32 %v3025_v42, %v5965_v21  ;;  %v4624_v31 = vpop.f32.mrb[57].mxu0  ;;  %v4843_v21 = vld [vmem:[%s6260_s17 + $0x5c] ss:$0 sps:$4 sm:$0xff]  }
0x1c6a   :  { %v3028_v33 = vpop.f32.mrb[58].mxu0  ;;  %v4867_v42 = vld [vmem:[%s6262_s21 + $0x110] ss:$12 sps:$4 sm:$0xff]  }
0x1c6b   :  { %v3033_v34 = vadd.f32 %v3028_v33, %v5967_v23  ;;  %v4625_v35 = vpop.f32.mrb[59].mxu0  ;;  %v3169_v23 = vsel %vm1020_vm10, %v4843_v21, 0  ;;  %v4170_v21 = vld [vmem:[%s6264_s20 + $0x1] ss:$0 sm:$0xff] }
0x1c6c   :  { %4641 = vmatpush3.bf16.msra.mxu1 %v3169_v23 }
0x1c6d   :  { %4646 = vmatprep.subr.bf16.mxu1 %v5035_v2 }
0x1cc7   :  { %v3099_v36 = vpop.xlane.xlu0 %3098 }
0x1cc8   :  { %4998 = vrcp.f32 %v3099_v36 }
0x1ccb   :  { %v3102_v37 = vpop.xlane.xlu0 %3101 }
0x1ccc   :  { %5000 = vrcp.f32 %v3102_v37 }
0x1cd2   :  { %v4999_v17 = vpop.eup %4998 }
0x1cd3   :  { %v3105_v38 = vmul.f32 %v4999_v17, %v4995_v55  ;;  %v4862_v55 = vld [vmem:[%s6262_s21 + $0xf4] ss:$12 sps:$4 sm:$0xff]  }
0x1cd6   :  { %v5001_v18 = vpop.eup %5000 }
0x1cd7   :  { %v3106_v39 = vmul.f32 %v5001_v18, %v4997_v28  ;;  %v4863_v28 = vld [vmem:[%s6262_s21 + $0xf8] ss:$12 sps:$4 sm:$0xff]   ;;  %v4169_v18 = vld [vmem:[%s6263_s19 + $0x1] ss:$0 sm:$0xff] }
0x1cd9   :  { %v3107_v45 = vpack.c.bf16 %v3106_v39, %v3105_v38 }
0x1cdb   :  { %4635 = vmatmul.mubr.msk.bf16.vlgmr.msra.gmra.mrb[60].mxu0 %vm808_vm8, %v3107_v45 }
0x1cdc   :  { %3414 = vmatprep.mubr.bf16.mxu0 %v5034_v0  ;;  %v4168_v0 = vld [vmem:[%s6261_s18 + $0x1] ss:$0 sm:$0xff]  ;;  %3383 = vmatpush1.bf16.msra.mxu0 %v4844_v11  ;;  %v4076_v11 = vld [vmem:[%s6267_s22 + $0x3] sm:$0x7] }
0x1cdd   :  { %3384 = vmatprep.subr.bf16.mxu0 %v4850_v14  ;;  %v3279_v14 = vrot.slane %v4076_v11, %v5409_v19 }
0x1ce0   :  { %3385 = vmatpush1.bf16.msra.mxu0 %v4848_v15  ;;  %v3275_v15 = vrot.slane %v4076_v11, %v5395_v63 }
0x1ce1   :  { %3386 = vmatprep.subr.bf16.mxu0 %v4854_v20 }
0x1ce4   :  { %3387 = vmatpush1.bf16.msra.mxu0 %v4852_v22 }
0x1ce5   :  { %3388 = vmatprep.subr.bf16.mxu0 %v4858_v24 }
0x1ce8   :  { %3389 = vmatpush1.bf16.msra.mxu0 %v4856_v12 }
0x1ce9   :  { %3390 = vmatprep.subr.bf16.mxu0 %v4862_v55 }
0x1cec   :  { %3391 = vmatpush1.bf16.msra.mxu0 %v4860_v26 }
0x1ced   :  { %3392 = vmatprep.subr.bf16.mxu0 %v4866_v40 }
0x1cf0   :  { %3393 = vmatpush1.bf16.msra.mxu0 %v4864_v62 }
0x1dae   :  { %v3148_v46 = vpop.f32.mrb[60].mxu0 }
0x1daf   :  { %v4636_v41 = vpop.f32.mrb[61].mxu0 }
0x1db0   :  { %v3151_v43 = vpop.f32.mrb[62].mxu0 }
0x1db1   :  { %v3155_v47 = vpack.c.bf16 %v3151_v43, %v3148_v46  ;;  %v4637_v48 = vpop.f32.mrb[63].mxu0 }
0x1db2   :  { %v4869_v48 = vld [vmem:[%s6265_s23 + $0x100] sm:$0xff]  }
0x1db3   :  { %4643 = vmatmul.mubr.msk.bf16.vlgmr.msra.gmra.mrb[72].mxu1 %vm760_vm7, %v3155_v47  ;;  %v4868_v47 = vld [vmem:[%s6265_s23 + $0x140] sm:$0xff]   ;;  %4356 = vmatprep.subr.bf16.mxu0 %v4869_v48 }
0x1db4   :  { %4658 = vmatprep.mubr.msk.bf16.mxu1 %vm5036_vm0, %v5035_v2  ;;  %4647 = vmatpush3.bf16.msra.mxu1 %v4847_v13  ;;  %v3271_v13 = vrot.slane %v4076_v11, %v5390_v61  ;;  %v4197_v11 = vld [vmem:[%s6269_s24 + $0x1] ss:$0 sm:$0xff] }
0x1db5   :  { %4648 = vmatprep.subr.bf16.mxu1 %v5035_v2 }
0x1db8   :  { %4649 = vmatpush3.bf16.msra.mxu1 %v4851_v16 }
0x1db9   :  { %4650 = vmatprep.subr.bf16.mxu1 %v5035_v2 }
0x1dbc   :  { %4651 = vmatpush3.bf16.msra.mxu1 %v4855_v27 }
0x1dbd   :  { %4652 = vmatprep.subr.bf16.mxu1 %v5035_v2 }
0x1dc0   :  { %4653 = vmatpush3.bf16.msra.mxu1 %v4859_v25 }
0x1dc1   :  { %4654 = vmatprep.subr.bf16.mxu1 %v5035_v2 }
0x1dc4   :  { %4655 = vmatpush3.bf16.msra.mxu1 %v4863_v28 }
0x1dc5   :  { %4656 = vmatprep.subr.bf16.mxu1 %v5035_v2 }
0x1dc8   :  { %4657 = vmatpush3.bf16.msra.mxu1 %v4867_v42 }
0x1dc9   :  { %4662 = vmatprep.subr.bf16.mxu1 %v5035_v2 }
0x1e86   :  { %v3205_v49 = vpop.f32.mrb[72].mxu1 }
0x1e87   :  { %v3212_v50 = vadd.f32 %v3205_v49, %v3032_v44  ;;  %v4644_v10 = vpop.f32.mrb[73].mxu1  ;;  %v4871_v49 = vld [vmem:[%s6265_s23 + $0x148] sm:$0xff]  }
0x1e88   :  { %v3208_v51 = vpop.f32.mrb[74].mxu1  ;;  %v4873_v10 = vld [vmem:[%s6265_s23 + $0xc8] sm:$0xff]  }
0x1e89   :  { %v3220_v52 = vadd.f32 %v4168_v0, %v3212_v50  ;;  %v3213_v53 = vadd.f32 %v3208_v51, %v3033_v34  ;;  %v4645_v54 = vpop.f32.mrb[75].mxu1  ;;  %v4872_v50 = vld [vmem:[%s6265_s23 + $0x108] sm:$0xff]   ;;  %v4874_v51 = vld [vmem:[%s6265_s23 + $0x150] sm:$0xff]  }
0x1e8a   :  { %v4877_v54 = vld [vmem:[%s6265_s23 + $0x158] sm:$0xff]  }
0x1e8b   :  { %v6033_v56 = vadd.f32 %v3220_v52, %v5783_v4  ;;  %v3221_v57 = vadd.f32 %v4168_v0, %v3213_v53  ;;  %v4870_v0 = vld [vmem:[%s6265_s23 + $0xc0] sm:$0xff]   ;;  %v4875_v52 = vld [vmem:[%s6265_s23 + $0x110] sm:$0xff]  }
0x1e8c   :  { %v4876_v53 = vld [vmem:[%s6265_s23 + $0xd0] sm:$0xff]  }
0x1e8d   :  { %v6036_v58 = vadd.f32 %v3221_v57, %v5787_v29  ;;  %v3224_v59 = vsel %vm346_vm6, %v6033_v56, 0.0  ;;  %v4878_v57 = vld [vmem:[%s6265_s23 + $0x118] sm:$0xff]  }
0x1e8e   :  { %3225 = vadd.xlane.f32.xlu0 %v3224_v59  ;;  %v4879_v59 = vld [vmem:[%s6265_s23 + $0xd8] sm:$0xff]  }
0x1e8f   :  { %v3227_v60 = vsel %vm346_vm6, %v6036_v58, 0.0 }
0x1e92   :  { %3228 = vadd.xlane.f32.xlu0 %v3227_v60  ;;  %v4880_v60 = vld [vmem:[%s6265_s23 + $0x160] sm:$0xff]  }
0x1f1b   :  { %v3226_v1 = vpop.xlane.xlu0 %3225 }
0x1f1c   :  { %v3230_v3 = vmul.f32 0.010416667, %v3226_v1  ;;  %v4881_v1 = vld [vmem:[%s6265_s23 + $0x120] sm:$0xff]  }
0x1f1e   :  { %v3232_v5 = vsub.f32 %v6033_v56, %v3230_v3  ;;  %v4882_v3 = vld [vmem:[%s6265_s23 + $0xe0] sm:$0xff]  }
0x1f1f   :  { %v3229_v6 = vpop.xlane.xlu0 %3228 }
0x1f20   :  { %v3231_v30 = vmul.f32 0.010416667, %v3229_v6  ;;  %v3234_v4 = vmul.f32 %v3232_v5, %v3232_v5  ;;  %v4884_v6 = vld [vmem:[%s6265_s23 + $0x128] sm:$0xff]  }
0x1f22   :  { %v3233_v7 = vsub.f32 %v6036_v58, %v3231_v30  ;;  %v3236_v29 = vsel %vm346_vm6, %v3234_v4, 0.0  ;;  %v4885_v30 = vld [vmem:[%s6265_s23 + $0xe8] sm:$0xff]   ;;  %v4886_v4 = vld [vmem:[%s6265_s23 + $0x170] sm:$0xff]  }
0x1f23   :  { %3237 = vadd.xlane.f32.xlu0 %v3236_v29  ;;  %v4888_v29 = vld [vmem:[%s6265_s23 + $0xf0] sm:$0xff]  }
0x1f24   :  { %v3235_v8 = vmul.f32 %v3233_v7, %v3233_v7 }
0x1f26   :  { %v3239_v32 = vsel %vm346_vm6, %v3235_v8, 0.0  ;;  %v4889_v8 = vld [vmem:[%s6265_s23 + $0x178] sm:$0xff]  }
0x1f27   :  { %3240 = vadd.xlane.f32.xlu0 %v3239_v32  ;;  %v4890_v32 = vld [vmem:[%s6265_s23 + $0x138] sm:$0xff]  }
0x1fb0   :  { %v3238_v44 = vpop.xlane.xlu0 %3237 }
0x1fb1   :  { %v3242_v31 = vmul.f32 0.010416667, %v3238_v44 }
0x1fb3   :  { %v3244_v33 = vadd.f32 1e-05, %v3242_v31 }
0x1fb4   :  { %v3241_v34 = vpop.xlane.xlu0 %3240 }
0x1fb5   :  { %5002 = vrsqrt.f32 %v3244_v33  ;;  %v3243_v35 = vmul.f32 0.010416667, %v3241_v34 }
0x1fb7   :  { %v3245_v36 = vadd.f32 1e-05, %v3243_v35 }
0x1fb9   :  { %5004 = vrsqrt.f32 %v3245_v36 }
0x1fbf   :  { %v5003_v37 = vpop.eup %5002 }
0x1fc0   :  { %v3248_v17 = vmul.f32 %v5003_v37, %v3232_v5  ;;  %v4883_v5 = vld [vmem:[%s6265_s23 + $0x168] sm:$0xff]  }
0x1fc2   :  { %v3256_v39 = vmul.f32 %v4169_v18, %v3248_v17 }
0x1fc3   :  { %v5005_v38 = vpop.eup %5004 }
0x1fc4   :  { %v3249_v45 = vmul.f32 %v5005_v38, %v3233_v7  ;;  %v3264_v46 = vadd.f32 %v4170_v21, %v3256_v39  ;;  %v4887_v7 = vld [vmem:[%s6265_s23 + $0x130] sm:$0xff]  }
0x1fc6   :  { %v3257_v23 = vmul.f32 %v4169_v18, %v3249_v45 }
0x1fc8   :  { %v3265_v41 = vadd.f32 %v4170_v21, %v3257_v23 }
0x1fca   :  { %v3266_v43 = vpack.c.bf16 %v3265_v41, %v3264_v46 }
0x1fcc   :  { %4189 = vmatmul.mubr.msk.bf16.vlgmr.msra.gmra.mrb[64].mxu0 %vm346_vm6, %v3266_v43  ;;  %4659 = vmatmul.mubr.msk.bf16.vlgmr.msra.gmra.mrb[76].mxu1 %vm346_vm6, %v3266_v43 }
0x1fcd   :  { %4678 = vmatprep.mubr.msk.bf16.mxu1 %vm5036_vm0, %v5035_v2  ;;  %4663 = vmatpush3.bf16.msra.mxu1 %v4868_v47 }
0x1fce   :  { %4664 = vmatprep.subr.bf16.mxu1 %v5035_v2  ;;  %4357 = vmatpush3.bf16.msra.mxu0 %v4870_v0 }
0x1fcf   :  { %4358 = vmatprep.subr.bf16.mxu0 %v4872_v50 }
0x1fd1   :  { %4665 = vmatpush3.bf16.msra.mxu1 %v4871_v49 }
0x1fd2   :  { %4666 = vmatprep.subr.bf16.mxu1 %v5035_v2  ;;  %4359 = vmatpush3.bf16.msra.mxu0 %v4873_v10 }
0x1fd3   :  { %4360 = vmatprep.subr.bf16.mxu0 %v4875_v52 }
0x1fd5   :  { %4667 = vmatpush3.bf16.msra.mxu1 %v4874_v51 }
0x1fd6   :  { %4668 = vmatprep.subr.bf16.mxu1 %v5035_v2  ;;  %4361 = vmatpush3.bf16.msra.mxu0 %v4876_v53 }
0x1fd7   :  { %4362 = vmatprep.subr.bf16.mxu0 %v4878_v57 }
0x1fd9   :  { %4669 = vmatpush3.bf16.msra.mxu1 %v4877_v54 }
0x1fda   :  { %4670 = vmatprep.subr.bf16.mxu1 %v5035_v2  ;;  %4363 = vmatpush3.bf16.msra.mxu0 %v4879_v59 }
0x1fdb   :  { %4364 = vmatprep.subr.bf16.mxu0 %v4881_v1 }
0x1fdd   :  { %4671 = vmatpush3.bf16.msra.mxu1 %v4880_v60 }
0x1fde   :  { %4672 = vmatprep.subr.bf16.mxu1 %v5035_v2  ;;  %4365 = vmatpush3.bf16.msra.mxu0 %v4882_v3 }
0x1fdf   :  { %4366 = vmatprep.subr.bf16.mxu0 %v4884_v6 }
0x1fe1   :  { %4673 = vmatpush3.bf16.msra.mxu1 %v4883_v5 }
0x1fe2   :  { %4674 = vmatprep.subr.bf16.mxu1 %v5035_v2  ;;  %4367 = vmatpush3.bf16.msra.mxu0 %v4885_v30 }
0x1fe3   :  { %4368 = vmatprep.subr.bf16.mxu0 %v4887_v7 }
0x1fe5   :  { %4675 = vmatpush3.bf16.msra.mxu1 %v4886_v4 }
0x1fe6   :  { %4676 = vmatprep.subr.bf16.mxu1 %v5035_v2  ;;  %4369 = vmatpush3.bf16.msra.mxu0 %v4888_v29 }
0x1fe7   :  { %4370 = vmatprep.subr.bf16.mxu0 %v4890_v32 }
0x1fe9   :  { %4677 = vmatpush3.bf16.msra.mxu1 %v4889_v8 }
0x1fea   :  { %4371 = vmatpush3.bf16.msra.mxu0 %v4891_v9 }
0x1feb   :  { %4682 = vmatprep.subr.bf16.mxu0 %v5035_v2 }
0x209f   :  { %v3416_v16 = vpop.f32.mrb[64].mxu0  ;;  %v3459_v20 = vpop.f32.mrb[76].mxu1 }
0x20a0   :  { %v3417_v22 = vadd.f32 %v3416_v16, %v3271_v13  ;;  %v3460_v27 = vadd.f32 %v3459_v20, %v3279_v14  ;;  %v3418_v24 = vpop.f32.mrb[65].mxu0  ;;  %v4660_v12 = vpop.f32.mrb[77].mxu1 }
0x20a1   :  { %v3419_v25 = vadd.f32 %v3418_v24, %v3275_v15  ;;  %v3420_v55 = vpop.f32.mrb[66].mxu0  ;;  %v3462_v26 = vpop.f32.mrb[78].mxu1 }
0x20a2   :  { %v4191_v28 = vmul.f32 -1.702, %v3417_v22  ;;  %v4193_v62 = vmul.f32 -1.702, %v3460_v27  ;;  %v3421_v40 = vadd.f32 %v3420_v55, %v3271_v13  ;;  %v3463_v42 = vadd.f32 %v3462_v26, %v3279_v14  ;;  %v3422_v44 = vpop.f32.mrb[67].mxu0  ;;  %v4661_v31 = vpop.f32.mrb[79].mxu1 }
0x20a3   :  { %v4192_v61 = vmul.f32 -1.702, %v3419_v25  ;;  %v3423_v33 = vadd.f32 %v3422_v44, %v3275_v15 }
0x20a4   :  { %v3478_v19 = vmul.f32 1.442695, %v4191_v28  ;;  %v3482_v34 = vmul.f32 1.442695, %v4193_v62  ;;  %v4194_v63 = vmul.f32 -1.702, %v3421_v40 }
0x20a5   :  { %v3480_v35 = vmul.f32 1.442695, %v4192_v61  ;;  %v4196_v36 = vmul.f32 -1.702, %v3463_v42  ;;  %v4195_v37 = vmul.f32 -1.702, %v3423_v33 }
0x20a6   :  { %5006 = vpow2.f32 %v3478_v19  ;;  %v3484_v17 = vmul.f32 1.442695, %v4194_v63  ;;  %v4894_v63 = vld [vmem:[%s6271_s27 + $0x10] sm:$0xff]  }
0x20a7   :  { %5008 = vpow2.f32 %v3482_v34  ;;  %v3488_v18 = vmul.f32 1.442695, %v4196_v36  ;;  %v3486_v38 = vmul.f32 1.442695, %v4195_v37  ;;  %v4893_v34 = vld [vmem:[%s6271_s27 + $0x8] sm:$0xff]   ;;  %v4896_v36 = vld [vmem:[%s6271_s27 + $0x20] sm:$0xff]  }
0x20a8   :  { %5010 = vpow2.f32 %v3480_v35  ;;  %v4895_v35 = vld [vmem:[%s6271_s27 + $0x18] sm:$0xff]   ;;  %v4897_v37 = vld [vmem:[%s6271_s27 + $0x28] sm:$0xff]  }
0x20a9   :  { %5012 = vpow2.f32 %v3484_v17 }
0x20aa   :  { %5014 = vpow2.f32 %v3488_v18 }
0x20ab   :  { %5016 = vpow2.f32 %v3486_v38 }
0x20b0   :  { %v5007_v39 = vpop.eup %5006 }
0x20b1   :  { %v5009_v45 = vpop.eup %5008  ;;  %v3490_v21 = vadd.f32 1.0, %v5007_v39 }
0x20b2   :  { %v5011_v23 = vpop.eup %5010  ;;  %v3492_v46 = vadd.f32 1.0, %v5009_v45  ;;  %v4222_v45 = vld [vmem:[%s6272_s25] ss:$0 sm:$0xff] }
0x20b3   :  { %v5013_v41 = vpop.eup %5012  ;;  %5018 = vrcp.f32 %v3490_v21  ;;  %v3491_v43 = vadd.f32 1.0, %v5011_v23  ;;  %v4223_v23 = vld [vmem:[%s6273_s26] ss:$0 sm:$0xff] }
0x20b4   :  { %v5015_v47 = vpop.eup %5014  ;;  %5020 = vrcp.f32 %v3492_v46  ;;  %v3493_v48 = vadd.f32 1.0, %v5013_v41 }
0x20b5   :  { %v5017_v0 = vpop.eup %5016  ;;  %5022 = vrcp.f32 %v3491_v43  ;;  %v3495_v49 = vadd.f32 1.0, %v5015_v47 }
0x20b6   :  { %5024 = vrcp.f32 %v3493_v48  ;;  %v3494_v50 = vadd.f32 1.0, %v5017_v0 }
0x20b7   :  { %5026 = vrcp.f32 %v3495_v49 }
0x20b8   :  { %5028 = vrcp.f32 %v3494_v50 }
0x20bd   :  { %v5019_v10 = vpop.eup %5018 }
0x20be   :  { %v5021_v51 = vpop.eup %5020  ;;  %v3508_v57 = vmul.f32 %v5019_v10, %v3417_v22 }
0x20bf   :  { %v5023_v52 = vpop.eup %5022  ;;  %v3510_v1 = vmul.f32 %v5021_v51, %v3460_v27 }
0x20c0   :  { %v5025_v53 = vpop.eup %5024  ;;  %v3509_v5 = vmul.f32 %v5023_v52, %v3419_v25 }
0x20c1   :  { %v5027_v54 = vpop.eup %5026  ;;  %v3511_v59 = vmul.f32 %v5025_v53, %v3421_v40 }
0x20c2   :  { %v5029_v60 = vpop.eup %5028  ;;  %v3513_v3 = vmul.f32 %v5027_v54, %v3463_v42 }
0x20c3   :  { %v3514_v6 = vpack.c.bf16 %v3511_v59, %v3508_v57  ;;  %v3512_v30 = vmul.f32 %v5029_v60, %v3423_v33 }
0x20c4   :  { %v3516_v4 = vpack.c.bf16 %v3513_v3, %v3510_v1 }
0x20c5   :  { %v3515_v7 = vpack.c.bf16 %v3512_v30, %v3509_v5 }
0x20c6   :  { %4679 = vmatmul.mubr.bf16.vlgmr.msra.gmra.mrb[80].mxu1 %v3516_v4 }
0x20c7   :  { %3699 = vmatprep.mubr.bf16.mxu0 %v3515_v7 }
0x20c8   :  { %3700 = vmatmul.mubr.bf16.vlgmr.msra.gmra.mrb[68].mxu0 %v3514_v6 }
0x20c9   :  { %4694 = vmatprep.mubr.msk.bf16.mxu0 %vm5036_vm0, %v5035_v2 }
0x2199   :  { %v3742_v29 = vpop.f32.mrb[80].mxu1 }
0x219a   :  { %v4680_v8 = vpop.f32.mrb[81].mxu1 }
0x219b   :  { %v4372_v32 = vpop.f32.mrb[68].mxu0  ;;  %v3745_v9 = vpop.f32.mrb[82].mxu1 }
0x219c   :  { %v4373_v13 = vpop.f32.mrb[69].mxu0  ;;  %v4681_v14 = vpop.f32.mrb[83].mxu1 }
0x219d   :  { %v4374_v15 = vadd.f32 %v4373_v13, %v4372_v32  ;;  %v4375_v16 = vpop.f32.mrb[70].mxu0 }
0x219e   :  { %v4376_v20 = vpop.f32.mrb[71].mxu0 }
0x219f   :  { %v3702_v22 = vadd.f32 %v4374_v15, %v4197_v11  ;;  %v4377_v27 = vadd.f32 %v4376_v20, %v4375_v16 }
0x21a1   :  { %v3743_v24 = vadd.f32 %v3742_v29, %v3702_v22  ;;  %v3705_v12 = vadd.f32 %v4377_v27, %v4197_v11 }
0x21a3   :  { %v3749_v25 = vadd.f32 %v3743_v24, %v6033_v56  ;;  %v3746_v55 = vadd.f32 %v3745_v9, %v3705_v12 }
0x21a5   :  { %3751 = vst.msk [vmem:[#allocation2] sm:$0xff] %vm346_vm6, %v3749_v25  ;;  %v3750_v26 = vadd.f32 %v3746_v55, %v6036_v58  ;;  %v4892_v58 = vld [vmem:[%s6271_s27] sm:$0xff]  }
0x21a6   :  { %4683 = vmatpush3.bf16.msra.mxu0 %v4892_v58 }
0x21a7   :  { %3752 = vst.msk [vmem:[#allocation2 + $0x8] sm:$0xff] %vm346_vm6, %v3750_v26  ;;  %4684 = vmatprep.subr.bf16.mxu0 %v5035_v2 }
0x21aa   :  { %4685 = vmatpush3.bf16.msra.mxu0 %v4893_v34 }
0x21ab   :  { %4686 = vmatprep.subr.bf16.mxu0 %v5035_v2 }
0x21ac   :  { %v3753_v40 = vld [vmem:[#allocation2] sm:$0x1] }
0x21ae   :  { %v3754_v28 = vld [vmem:[#allocation2 + $0x8] sm:$0x1]  ;;  %4687 = vmatpush3.bf16.msra.mxu0 %v4894_v63 }
0x21af   :  { %v3756_v62 = vrot.slane %v3754_v28, 7  ;;  %4688 = vmatprep.subr.bf16.mxu0 %v5035_v2 }
0x21b1   :  { %v3759_v42 = vsel %vm3758_vm11, %v3753_v40, %v3756_v62 }
0x21b2   :  { %v3762_v44 = vsel %vm329_vm3, %v3759_v42, 0.0  ;;  %4689 = vmatpush3.bf16.msra.mxu0 %v4895_v35 }
0x21b3   :  { %3763 = vadd.xlane.f32.xlu0 %v3762_v44  ;;  %4690 = vmatprep.subr.bf16.mxu0 %v5035_v2 }
0x21b6   :  { %4691 = vmatpush3.bf16.msra.mxu0 %v4896_v36 }
0x21b7   :  { %4692 = vmatprep.subr.bf16.mxu0 %v5035_v2 }
0x21ba   :  { %4693 = vmatpush3.bf16.msra.mxu0 %v4897_v37 }
0x2240   :  { %v3764_v31 = vpop.xlane.xlu0 %3763 }
0x2241   :  { %v3765_v61 = vmul.f32 0.010416667, %v3764_v31 }
0x2243   :  { %v3766_v33 = vsub.f32 %v3759_v42, %v3765_v61 }
0x2245   :  { %v3767_v19 = vmul.f32 %v3766_v33, %v3766_v33 }
0x2247   :  { %v3768_v56 = vsel %vm329_vm3, %v3767_v19, 0.0 }
0x2248   :  { %3769 = vadd.xlane.f32.xlu1 %v3768_v56 }
0x22d5   :  { %v3770_v17 = vpop.xlane.xlu1 %3769 }
0x22d6   :  { %v3771_v18 = vmul.f32 0.010416667, %v3770_v17 }
0x22d8   :  { %v3772_v38 = vadd.f32 1e-05, %v3771_v18 }
0x22da   :  { %5030 = vrsqrt.f32 %v3772_v38 }
0x22e4   :  { %v5031_v39 = vpop.eup %5030 }
0x22e5   :  { %v3774_v21 = vmul.f32 %v5031_v39, %v3766_v33 }
0x22e7   :  { %v3781_v2 = vmul.f32 %v4222_v45, %v3774_v21 }
0x22e9   :  { %v3788_v46 = vadd.f32 %v4223_v23, %v3781_v2 }
0x22eb   :  { %v3801_v41 = vpack.c.bf16 %v3788_v46, %v3788_v46 }
0x22ed   :  { %4695 = vmatmul.mubr.msk.bf16.vlgmr.msra.gmra.mrb[72].mxu0 %vm346_vm6, %v3801_v41 }
0x23c0   :  { %v3875_v43 = vpop.f32.mrb[72].mxu0 }
0x23c1   :  { %3882 = vst.msk [vmem:[%s6274_s28] sm:$0x3] %vm3881_vm12, %v3875_v43  ;;  %v4696_v47 = vpop.f32.mrb[73].mxu0 }
0x23c2   :  { %v3878_v48 = vpop.f32.mrb[74].mxu0 }
0x23c3   :  { %v4697_v0 = vpop.f32.mrb[75].mxu0 }

</bundles_post_ra>
